<compile_context>
chip_gen: v7x
topology: tpu7x:2x2x1
jax: 0.10.0
libtpu: 0.0.40
codegen_flags: <defaults>
</compile_context>

<pallas_src>
import functools

import jax
import jax.numpy as jnp
from jax.experimental import pallas as pl
from jax.experimental.pallas import tpu as pltpu

N_MELS = 128          # conv1 in-channels
C1 = 64               # conv1 out-channels
C2 = 32               # conv2 out-channels
T_IN = 90             # input sequence length (required by fc = Linear(32*42, 8))
PAIRS = T_IN // 2     # 45  rows per batch element in the packed layout (time pairs)
L1 = T_IN - 2         # 88  conv1 output length
LP = L1 // 2          # 44  after maxpool1d(2)
L2 = LP - 2           # 42  conv2 output length
OUT = 8               # fc output features

# dtype used for MXU operands (accumulation is always float32).
MATMUL_DTYPE = jnp.bfloat16


def _audio_encoder_kernel(x_ref, w1_ref, b1_ref, w2_ref, b2_ref, wsel_ref, bfc_ref, out_ref):
    # x_ref   : (BB*45, 256)  row q = b*45+p holds [x[b, 2p, :], x[b, 2p+1, :]]
    # w1_ref  : (3, 128, 64)   conv1 taps (Cin, Cout)
    # b1_ref  : (1, 64)
    # w2_ref  : (3, 64, 32)    conv2 taps
    # b2_ref  : (1, 32)
    # wsel_ref: (8, BB*45, 32) fc weight regrouped per (time, channel), zero for invalid rows
    # bfc_ref : (1, 8)
    # out_ref : (BB, 8)
    n = x_ref.shape[0]            # BB * PAIRS
    bb = n // PAIRS
    cd = MATMUL_DTYPE
    f32 = jnp.float32

    def shift_up(a, k):
        # result[q] = a[q + k]; the k wrapped tail rows are garbage and are discarded later.
        return jnp.concatenate([a[k:], a[:k]], axis=0)

    x = x_ref[...]
    xe = x[:, :N_MELS].astype(cd)          # x[b, 2p, :]
    xo = x[:, N_MELS:].astype(cd)          # x[b, 2p+1, :]
    w10 = w1_ref[0].astype(cd)
    w11 = w1_ref[1].astype(cd)
    w12 = w1_ref[2].astype(cd)

    # conv1 evaluated at even (t=2p) and odd (t=2p+1) output positions; 6 contiguous MXU matmuls.
    conv_even = (jnp.dot(xe, w10, preferred_element_type=f32)
                 + jnp.dot(xo, w11, preferred_element_type=f32)
                 + shift_up(jnp.dot(xe, w12, preferred_element_type=f32), 1))
    conv_odd = (jnp.dot(xo, w10, preferred_element_type=f32)
                + shift_up(jnp.dot(xe, w11, preferred_element_type=f32)
                           + jnp.dot(xo, w12, preferred_element_type=f32), 1))

    # maxpool1d(2) fused with bias + ReLU (bias shared inside a pool pair, ReLU monotone).
    # dropout_1 / dropout_2 are identity in eval mode.
    pooled = jnp.maximum(jnp.maximum(conv_even, conv_odd) + b1_ref[...], 0.0)   # (n, 64) f32

    pc = pooled.astype(cd)
    p0 = jnp.dot(pc, w2_ref[0].astype(cd), preferred_element_type=f32)
    p1 = jnp.dot(pc, w2_ref[1].astype(cd), preferred_element_type=f32)
    p2 = jnp.dot(pc, w2_ref[2].astype(cd), preferred_element_type=f32)
    z = jnp.maximum(p0 + shift_up(p1, 1) + shift_up(p2, 2) + b2_ref[...], 0.0)  # (n, 32) f32

    # Fused fc (torch: out.flatten(1) with channel-major index c*L2 + u, then Linear):
    #   out[b, o] = sum_{u<L2, c} z[b*45+u, c] * wfc[c*L2+u, o] + bfc[o]
    # wsel already folds the (u < L2) validity mask via zero rows, so garbage rows contribute 0.
    cols = [jnp.sum(z * wsel_ref[o], axis=1, keepdims=True) for o in range(OUT)]   # each (n, 1)
    f = jnp.concatenate(cols, axis=1)                                              # (n, 8)
    rows = [jnp.sum(f[b * PAIRS:(b + 1) * PAIRS], axis=0, keepdims=True)
            for b in range(bb)]                                                    # each (1, 8)
    out_ref[...] = jnp.concatenate(rows, axis=0) + bfc_ref[...]


def audio_encoder_forward(x, params, *, block_b=None):
    """x: (B, T_IN, N_MELS) float32 -> (B, OUT) float32."""
    w1, b1, w2, b2, wfc, bfc = params
    B = x.shape[0]

    # Batch block size: multiple of 8 (row-tiling), capped so VMEM stays comfortable on all gens
    # (v7x has only 64 MiB).  Tune upward on v6e for large batches if desired.
    if block_b is None:
        block_b = min(32, max(8, ((B + 7) // 8) * 8))
    BB = block_b
    Bp = ((B + BB - 1) // BB) * BB
    if Bp != B:
        x = jnp.concatenate([x, jnp.zeros((Bp - B,) + x.shape[1:], x.dtype)], axis=0)

    # (Bp, 90, 128) -> (Bp*45, 256): free row-major reshape packing adjacent time pairs per row.
    xp = x.reshape(Bp * PAIRS, 2 * N_MELS)

    # fc weight regrouped as (out, time, channel), invalid tail times zeroed, tiled across the
    # batch block so it lines up row-for-row with the in-kernel feature map.
    wsel = wfc.reshape(C2, L2, OUT).transpose(2, 1, 0)          # (OUT, L2, C2)
    wsel = jnp.pad(wsel, ((0, 0), (0, PAIRS - L2), (0, 0)))     # (OUT, 45, C2)
    wsel = jnp.tile(wsel, (1, BB, 1))                           # (OUT, BB*45, C2)

    rows = BB * PAIRS
    out = pl.pallas_call(
        _audio_encoder_kernel,
        out_shape=jax.ShapeDtypeStruct((Bp, OUT), jnp.float32),
        grid_spec=pltpu.PrefetchScalarGridSpec(
            num_scalar_prefetch=0,
            grid=(Bp // BB,),
            in_specs=[
                pl.BlockSpec((rows, 2 * N_MELS), lambda i: (i, 0)),    # packed input rows
                pl.BlockSpec((3, N_MELS, C1), lambda i: (0, 0, 0)),    # w1
                pl.BlockSpec((1, C1), lambda i: (0, 0)),               # b1
                pl.BlockSpec((3, C1, C2), lambda i: (0, 0, 0)),        # w2
                pl.BlockSpec((1, C2), lambda i: (0, 0)),               # b2
                pl.BlockSpec((OUT, rows, C2), lambda i: (0, 0, 0)),    # fc weight (regrouped)
                pl.BlockSpec((1, OUT), lambda i: (0, 0)),              # fc bias
            ],
            out_specs=pl.BlockSpec((BB, OUT), lambda i: (i, 0)),
        ),
        compiler_params=pltpu.CompilerParams(
            dimension_semantics=("parallel",),
            vmem_limit_bytes=32 * 1024 * 1024,
        ),
    )(xp, w1, b1, w2, b2, wsel, bfc)
    return out[:B]


def init_params(key):
    # Deterministic synthetic init (PyTorch-style uniform(+-1/sqrt(fan_in))).
    k1, k2, k3, k4, k5, k6 = jax.random.split(key, 6)
    bnd1 = 1.0 / float(jnp.sqrt(N_MELS * 3.0))
    w1 = jax.random.uniform(k1, (3, N_MELS, C1), jnp.float32, -bnd1, bnd1)
    b1 = jax.random.uniform(k2, (1, C1), jnp.float32, -bnd1, bnd1)
    bnd2 = 1.0 / float(jnp.sqrt(C1 * 3.0))
    w2 = jax.random.uniform(k3, (3, C1, C2), jnp.float32, -bnd2, bnd2)
    b2 = jax.random.uniform(k4, (1, C2), jnp.float32, -bnd2, bnd2)
    bndf = 1.0 / float(jnp.sqrt(float(C2 * L2)))
    wfc = jax.random.uniform(k5, (C2 * L2, OUT), jnp.float32, -bndf, bndf)   # rows: c*L2 + u
    bfc = jax.random.uniform(k6, (1, OUT), jnp.float32, -bndf, bndf)
    return w1, b1, w2, b2, wfc, bfc


def reference_forward(x, params):
    # Pure-JAX reference with identical semantics (convs use the same bf16-operand / f32-accum
    # precision as the kernel; set MATMUL_DTYPE = jnp.float32 for strict f32 PyTorch parity).
    w1, b1, w2, b2, wfc, bfc = params
    cd = MATMUL_DTYPE
    f32 = jnp.float32
    B = x.shape[0]
    xc = x.astype(cd)
    y1 = jnp.zeros((B, L1, C1), f32)
    for k in range(3):
        y1 = y1 + jnp.einsum('btc,cd->btd', xc[:, k:k + L1, :], w1[k].astype(cd),
                             preferred_element_type=f32)
    y1 = jax.nn.relu(y1 + b1[None])
    pooled = jnp.max(y1.reshape(B, LP, 2, C1), axis=2)
    pc = pooled.astype(cd)
    y2 = jnp.zeros((B, L2, C2), f32)
    for k in range(3):
        y2 = y2 + jnp.einsum('btc,cd->btd', pc[:, k:k + L2, :], w2[k].astype(cd),
                             preferred_element_type=f32)
    y2 = jax.nn.relu(y2 + b2[None])
    flat = jnp.transpose(y2, (0, 2, 1)).reshape(B, C2 * L2)      # channel-major flatten (torch)
    return jnp.dot(flat, wfc, preferred_element_type=f32,
                   precision=jax.lax.Precision.HIGHEST) + bfc


if __name__ == "__main__":
    key = jax.random.PRNGKey(0)
    pkey, xkey = jax.random.split(key)
    params = init_params(pkey)

    fwd = jax.jit(functools.partial(audio_encoder_forward))
    fwd_blk = jax.jit(audio_encoder_forward, static_argnames=("block_b",))

    # case 1: tiny batch, single grid step
    x = jax.random.normal(xkey, (2, T_IN, N_MELS), jnp.float32)
    out = jax.block_until_ready(fwd(x, params))
    ref = reference_forward(x, params)
    assert out.shape == (2, OUT), out.shape
    if not jnp.allclose(out, ref, atol=1e-2, rtol=1e-2):
        raise AssertionError(
            f"Pallas output does not match JAX reference (B=2), "
            f"max abs err {float(jnp.max(jnp.abs(out - ref)))}")

    # case 2: batch padding + multi-step grid (3 blocks of 8)
    x2 = jax.random.normal(jax.random.fold_in(xkey, 1), (20, T_IN, N_MELS), jnp.float32)
    out2 = jax.block_until_ready(fwd_blk(x2, params, block_b=8))
    ref2 = reference_forward(x2, params)
    assert out2.shape == (20, OUT), out2.shape
    if not jnp.allclose(out2, ref2, atol=1e-2, rtol=1e-2):
        raise AssertionError(
            f"Pallas output does not match JAX reference (B=20), "
            f"max abs err {float(jnp.max(jnp.abs(out2 - ref2)))}")

    print("KERNEL_OK")
</pallas_src>

<mosaic_0001>
module attributes {stable_mosaic.version = 11 : i64} {
  func.func @_audio_encoder_kernel(%arg0: i32, %arg1: memref<360x256xf32, #tpu.memory_space<vmem>>, %arg2: memref<3x128x64xf32, #tpu.memory_space<vmem>>, %arg3: memref<1x64xf32, #tpu.memory_space<vmem>>, %arg4: memref<3x64x32xf32, #tpu.memory_space<vmem>>, %arg5: memref<1x32xf32, #tpu.memory_space<vmem>>, %arg6: memref<8x360x32xf32, #tpu.memory_space<vmem>>, %arg7: memref<1x8xf32, #tpu.memory_space<vmem>>, %arg8: memref<8x8xf32, #tpu.memory_space<vmem>>) attributes {dimension_semantics = [#tpu.dimension_semantics<parallel>], iteration_bounds = array<i64: 1>, scalar_prefetch = 0 : i64, scratch_operands = 0 : i64, tpu.core_type = #tpu.core_type<tc>, window_params = [{transform_indices = @transform_0, window_bounds = array<i64: 360, 256>}, {pipeline_mode = #tpu.pipeline_mode<synchronous>, transform_indices = @transform_1, window_bounds = array<i64: 3, 128, 64>}, {pipeline_mode = #tpu.pipeline_mode<synchronous>, transform_indices = @transform_2, window_bounds = array<i64: 1, 64>}, {pipeline_mode = #tpu.pipeline_mode<synchronous>, transform_indices = @transform_3, window_bounds = array<i64: 3, 64, 32>}, {pipeline_mode = #tpu.pipeline_mode<synchronous>, transform_indices = @transform_4, window_bounds = array<i64: 1, 32>}, {pipeline_mode = #tpu.pipeline_mode<synchronous>, transform_indices = @transform_5, window_bounds = array<i64: 8, 360, 32>}, {pipeline_mode = #tpu.pipeline_mode<synchronous>, transform_indices = @transform_6, window_bounds = array<i64: 1, 8>}, {transform_indices = @transform_7, window_bounds = array<i64: 8, 8>}]} {
    %c0 = arith.constant 0 : index
    %c0_0 = arith.constant 0 : index
    %0 = vector.load %arg1[%c0, %c0_0] : memref<360x256xf32, #tpu.memory_space<vmem>>, vector<360x256xf32>
    %1 = vector.extract_strided_slice %0 {offsets = [0, 0], sizes = [360, 128], strides = [1, 1]} : vector<360x256xf32> to vector<360x128xf32>
    %2 = arith.truncf %1 : vector<360x128xf32> to vector<360x128xbf16>
    %3 = vector.extract_strided_slice %0 {offsets = [0, 128], sizes = [360, 128], strides = [1, 1]} : vector<360x256xf32> to vector<360x128xf32>
    %4 = arith.truncf %3 : vector<360x128xf32> to vector<360x128xbf16>
    %c0_1 = arith.constant 0 : index
    %c0_2 = arith.constant 0 : index
    %c0_3 = arith.constant 0 : index
    %5 = vector.load %arg2[%c0_1, %c0_2, %c0_3] : memref<3x128x64xf32, #tpu.memory_space<vmem>>, vector<1x128x64xf32>
    %6 = vector.shape_cast %5 : vector<1x128x64xf32> to vector<128x64xf32>
    %7 = arith.truncf %6 : vector<128x64xf32> to vector<128x64xbf16>
    %c1 = arith.constant 1 : index
    %c0_4 = arith.constant 0 : index
    %c0_5 = arith.constant 0 : index
    %8 = vector.load %arg2[%c1, %c0_4, %c0_5] : memref<3x128x64xf32, #tpu.memory_space<vmem>>, vector<1x128x64xf32>
    %9 = vector.shape_cast %8 : vector<1x128x64xf32> to vector<128x64xf32>
    %10 = arith.truncf %9 : vector<128x64xf32> to vector<128x64xbf16>
    %c2 = arith.constant 2 : index
    %c0_6 = arith.constant 0 : index
    %c0_7 = arith.constant 0 : index
    %11 = vector.load %arg2[%c2, %c0_6, %c0_7] : memref<3x128x64xf32, #tpu.memory_space<vmem>>, vector<1x128x64xf32>
    %12 = vector.shape_cast %11 : vector<1x128x64xf32> to vector<128x64xf32>
    %13 = arith.truncf %12 : vector<128x64xf32> to vector<128x64xbf16>
    %cst = arith.constant dense<0.000000e+00> : vector<360x64xf32>
    %14 = tpu.matmul %2, %7, %cst {dimension_numbers = #tpu.dot_dimension_numbers<[1], [0], [0], [1], [0, 0, 1, 1], [], []>} : vector<360x128xbf16>, vector<128x64xbf16>, vector<360x64xf32> -> vector<360x64xf32>
    %cst_8 = arith.constant dense<0.000000e+00> : vector<360x64xf32>
    %15 = tpu.matmul %4, %10, %cst_8 {dimension_numbers = #tpu.dot_dimension_numbers<[1], [0], [0], [1], [0, 0, 1, 1], [], []>} : vector<360x128xbf16>, vector<128x64xbf16>, vector<360x64xf32> -> vector<360x64xf32>
    %16 = arith.addf %14, %15 : vector<360x64xf32>
    %cst_9 = arith.constant dense<0.000000e+00> : vector<360x64xf32>
    %17 = tpu.matmul %2, %13, %cst_9 {dimension_numbers = #tpu.dot_dimension_numbers<[1], [0], [0], [1], [0, 0, 1, 1], [], []>} : vector<360x128xbf16>, vector<128x64xbf16>, vector<360x64xf32> -> vector<360x64xf32>
    %18 = vector.extract_strided_slice %17 {offsets = [1, 0], sizes = [359, 64], strides = [1, 1]} : vector<360x64xf32> to vector<359x64xf32>
    %19 = vector.extract_strided_slice %17 {offsets = [0, 0], sizes = [1, 64], strides = [1, 1]} : vector<360x64xf32> to vector<1x64xf32>
    %20 = tpu.concatenate %18, %19 in 0 : vector<359x64xf32>, vector<1x64xf32> -> vector<360x64xf32>
    %21 = arith.addf %16, %20 : vector<360x64xf32>
    %cst_10 = arith.constant dense<0.000000e+00> : vector<360x64xf32>
    %22 = tpu.matmul %4, %7, %cst_10 {dimension_numbers = #tpu.dot_dimension_numbers<[1], [0], [0], [1], [0, 0, 1, 1], [], []>} : vector<360x128xbf16>, vector<128x64xbf16>, vector<360x64xf32> -> vector<360x64xf32>
    %cst_11 = arith.constant dense<0.000000e+00> : vector<360x64xf32>
    %23 = tpu.matmul %2, %10, %cst_11 {dimension_numbers = #tpu.dot_dimension_numbers<[1], [0], [0], [1], [0, 0, 1, 1], [], []>} : vector<360x128xbf16>, vector<128x64xbf16>, vector<360x64xf32> -> vector<360x64xf32>
    %cst_12 = arith.constant dense<0.000000e+00> : vector<360x64xf32>
    %24 = tpu.matmul %4, %13, %cst_12 {dimension_numbers = #tpu.dot_dimension_numbers<[1], [0], [0], [1], [0, 0, 1, 1], [], []>} : vector<360x128xbf16>, vector<128x64xbf16>, vector<360x64xf32> -> vector<360x64xf32>
    %25 = arith.addf %23, %24 : vector<360x64xf32>
    %26 = vector.extract_strided_slice %25 {offsets = [1, 0], sizes = [359, 64], strides = [1, 1]} : vector<360x64xf32> to vector<359x64xf32>
    %27 = vector.extract_strided_slice %25 {offsets = [0, 0], sizes = [1, 64], strides = [1, 1]} : vector<360x64xf32> to vector<1x64xf32>
    %28 = tpu.concatenate %26, %27 in 0 : vector<359x64xf32>, vector<1x64xf32> -> vector<360x64xf32>
    %29 = arith.addf %22, %28 : vector<360x64xf32>
    %30 = arith.maximumf %21, %29 : vector<360x64xf32>
    %c0_13 = arith.constant 0 : index
    %c0_14 = arith.constant 0 : index
    %31 = vector.load %arg3[%c0_13, %c0_14] : memref<1x64xf32, #tpu.memory_space<vmem>>, vector<1x64xf32>
    %32 = vector.broadcast %31 : vector<1x64xf32> to vector<360x64xf32>
    %33 = arith.addf %30, %32 : vector<360x64xf32>
    %cst_15 = arith.constant 0.000000e+00 : f32
    %34 = vector.broadcast %cst_15 : f32 to vector<360x64xf32>
    %35 = arith.maximumf %33, %34 : vector<360x64xf32>
    %36 = arith.truncf %35 : vector<360x64xf32> to vector<360x64xbf16>
    %c0_16 = arith.constant 0 : index
    %c0_17 = arith.constant 0 : index
    %c0_18 = arith.constant 0 : index
    %37 = vector.load %arg4[%c0_16, %c0_17, %c0_18] : memref<3x64x32xf32, #tpu.memory_space<vmem>>, vector<1x64x32xf32>
    %38 = vector.shape_cast %37 : vector<1x64x32xf32> to vector<64x32xf32>
    %39 = arith.truncf %38 : vector<64x32xf32> to vector<64x32xbf16>
    %cst_19 = arith.constant dense<0.000000e+00> : vector<360x32xf32>
    %40 = tpu.matmul %36, %39, %cst_19 {dimension_numbers = #tpu.dot_dimension_numbers<[1], [0], [0], [1], [0, 0, 1, 1], [], []>} : vector<360x64xbf16>, vector<64x32xbf16>, vector<360x32xf32> -> vector<360x32xf32>
    %c1_20 = arith.constant 1 : index
    %c0_21 = arith.constant 0 : index
    %c0_22 = arith.constant 0 : index
    %41 = vector.load %arg4[%c1_20, %c0_21, %c0_22] : memref<3x64x32xf32, #tpu.memory_space<vmem>>, vector<1x64x32xf32>
    %42 = vector.shape_cast %41 : vector<1x64x32xf32> to vector<64x32xf32>
    %43 = arith.truncf %42 : vector<64x32xf32> to vector<64x32xbf16>
    %cst_23 = arith.constant dense<0.000000e+00> : vector<360x32xf32>
    %44 = tpu.matmul %36, %43, %cst_23 {dimension_numbers = #tpu.dot_dimension_numbers<[1], [0], [0], [1], [0, 0, 1, 1], [], []>} : vector<360x64xbf16>, vector<64x32xbf16>, vector<360x32xf32> -> vector<360x32xf32>
    %c2_24 = arith.constant 2 : index
    %c0_25 = arith.constant 0 : index
    %c0_26 = arith.constant 0 : index
    %45 = vector.load %arg4[%c2_24, %c0_25, %c0_26] : memref<3x64x32xf32, #tpu.memory_space<vmem>>, vector<1x64x32xf32>
    %46 = vector.shape_cast %45 : vector<1x64x32xf32> to vector<64x32xf32>
    %47 = arith.truncf %46 : vector<64x32xf32> to vector<64x32xbf16>
    %cst_27 = arith.constant dense<0.000000e+00> : vector<360x32xf32>
    %48 = tpu.matmul %36, %47, %cst_27 {dimension_numbers = #tpu.dot_dimension_numbers<[1], [0], [0], [1], [0, 0, 1, 1], [], []>} : vector<360x64xbf16>, vector<64x32xbf16>, vector<360x32xf32> -> vector<360x32xf32>
    %49 = vector.extract_strided_slice %44 {offsets = [1, 0], sizes = [359, 32], strides = [1, 1]} : vector<360x32xf32> to vector<359x32xf32>
    %50 = vector.extract_strided_slice %44 {offsets = [0, 0], sizes = [1, 32], strides = [1, 1]} : vector<360x32xf32> to vector<1x32xf32>
    %51 = tpu.concatenate %49, %50 in 0 : vector<359x32xf32>, vector<1x32xf32> -> vector<360x32xf32>
    %52 = arith.addf %40, %51 : vector<360x32xf32>
    %53 = vector.extract_strided_slice %48 {offsets = [2, 0], sizes = [358, 32], strides = [1, 1]} : vector<360x32xf32> to vector<358x32xf32>
    %54 = vector.extract_strided_slice %48 {offsets = [0, 0], sizes = [2, 32], strides = [1, 1]} : vector<360x32xf32> to vector<2x32xf32>
    %55 = tpu.concatenate %53, %54 in 0 : vector<358x32xf32>, vector<2x32xf32> -> vector<360x32xf32>
    %56 = arith.addf %52, %55 : vector<360x32xf32>
    %c0_28 = arith.constant 0 : index
    %c0_29 = arith.constant 0 : index
    %57 = vector.load %arg5[%c0_28, %c0_29] : memref<1x32xf32, #tpu.memory_space<vmem>>, vector<1x32xf32>
    %58 = vector.broadcast %57 : vector<1x32xf32> to vector<360x32xf32>
    %59 = arith.addf %56, %58 : vector<360x32xf32>
    %cst_30 = arith.constant 0.000000e+00 : f32
    %60 = vector.broadcast %cst_30 : f32 to vector<360x32xf32>
    %61 = arith.maximumf %59, %60 : vector<360x32xf32>
    %c0_31 = arith.constant 0 : index
    %c0_32 = arith.constant 0 : index
    %c0_33 = arith.constant 0 : index
    %62 = vector.load %arg6[%c0_31, %c0_32, %c0_33] : memref<8x360x32xf32, #tpu.memory_space<vmem>>, vector<1x360x32xf32>
    %63 = vector.shape_cast %62 : vector<1x360x32xf32> to vector<360x32xf32>
    %64 = arith.mulf %61, %63 : vector<360x32xf32>
    %cst_34 = arith.constant dense<0.000000e+00> : vector<360xf32>
    %65 = vector.multi_reduction <add>, %64, %cst_34 [1] : vector<360x32xf32> to vector<360xf32>
    %66 = vector.shape_cast %65 : vector<360xf32> to vector<360x1xf32>
    %c1_35 = arith.constant 1 : index
    %c0_36 = arith.constant 0 : index
    %c0_37 = arith.constant 0 : index
    %67 = vector.load %arg6[%c1_35, %c0_36, %c0_37] : memref<8x360x32xf32, #tpu.memory_space<vmem>>, vector<1x360x32xf32>
    %68 = vector.shape_cast %67 : vector<1x360x32xf32> to vector<360x32xf32>
    %69 = arith.mulf %61, %68 : vector<360x32xf32>
    %cst_38 = arith.constant dense<0.000000e+00> : vector<360xf32>
    %70 = vector.multi_reduction <add>, %69, %cst_38 [1] : vector<360x32xf32> to vector<360xf32>
    %71 = vector.shape_cast %70 : vector<360xf32> to vector<360x1xf32>
    %c2_39 = arith.constant 2 : index
    %c0_40 = arith.constant 0 : index
    %c0_41 = arith.constant 0 : index
    %72 = vector.load %arg6[%c2_39, %c0_40, %c0_41] : memref<8x360x32xf32, #tpu.memory_space<vmem>>, vector<1x360x32xf32>
    %73 = vector.shape_cast %72 : vector<1x360x32xf32> to vector<360x32xf32>
    %74 = arith.mulf %61, %73 : vector<360x32xf32>
    %cst_42 = arith.constant dense<0.000000e+00> : vector<360xf32>
    %75 = vector.multi_reduction <add>, %74, %cst_42 [1] : vector<360x32xf32> to vector<360xf32>
    %76 = vector.shape_cast %75 : vector<360xf32> to vector<360x1xf32>
    %c3 = arith.constant 3 : index
    %c0_43 = arith.constant 0 : index
    %c0_44 = arith.constant 0 : index
    %77 = vector.load %arg6[%c3, %c0_43, %c0_44] : memref<8x360x32xf32, #tpu.memory_space<vmem>>, vector<1x360x32xf32>
    %78 = vector.shape_cast %77 : vector<1x360x32xf32> to vector<360x32xf32>
    %79 = arith.mulf %61, %78 : vector<360x32xf32>
    %cst_45 = arith.constant dense<0.000000e+00> : vector<360xf32>
    %80 = vector.multi_reduction <add>, %79, %cst_45 [1] : vector<360x32xf32> to vector<360xf32>
    %81 = vector.shape_cast %80 : vector<360xf32> to vector<360x1xf32>
    %c4 = arith.constant 4 : index
    %c0_46 = arith.constant 0 : index
    %c0_47 = arith.constant 0 : index
    %82 = vector.load %arg6[%c4, %c0_46, %c0_47] : memref<8x360x32xf32, #tpu.memory_space<vmem>>, vector<1x360x32xf32>
    %83 = vector.shape_cast %82 : vector<1x360x32xf32> to vector<360x32xf32>
    %84 = arith.mulf %61, %83 : vector<360x32xf32>
    %cst_48 = arith.constant dense<0.000000e+00> : vector<360xf32>
    %85 = vector.multi_reduction <add>, %84, %cst_48 [1] : vector<360x32xf32> to vector<360xf32>
    %86 = vector.shape_cast %85 : vector<360xf32> to vector<360x1xf32>
    %c5 = arith.constant 5 : index
    %c0_49 = arith.constant 0 : index
    %c0_50 = arith.constant 0 : index
    %87 = vector.load %arg6[%c5, %c0_49, %c0_50] : memref<8x360x32xf32, #tpu.memory_space<vmem>>, vector<1x360x32xf32>
    %88 = vector.shape_cast %87 : vector<1x360x32xf32> to vector<360x32xf32>
    %89 = arith.mulf %61, %88 : vector<360x32xf32>
    %cst_51 = arith.constant dense<0.000000e+00> : vector<360xf32>
    %90 = vector.multi_reduction <add>, %89, %cst_51 [1] : vector<360x32xf32> to vector<360xf32>
    %91 = vector.shape_cast %90 : vector<360xf32> to vector<360x1xf32>
    %c6 = arith.constant 6 : index
    %c0_52 = arith.constant 0 : index
    %c0_53 = arith.constant 0 : index
    %92 = vector.load %arg6[%c6, %c0_52, %c0_53] : memref<8x360x32xf32, #tpu.memory_space<vmem>>, vector<1x360x32xf32>
    %93 = vector.shape_cast %92 : vector<1x360x32xf32> to vector<360x32xf32>
    %94 = arith.mulf %61, %93 : vector<360x32xf32>
    %cst_54 = arith.constant dense<0.000000e+00> : vector<360xf32>
    %95 = vector.multi_reduction <add>, %94, %cst_54 [1] : vector<360x32xf32> to vector<360xf32>
    %96 = vector.shape_cast %95 : vector<360xf32> to vector<360x1xf32>
    %c7 = arith.constant 7 : index
    %c0_55 = arith.constant 0 : index
    %c0_56 = arith.constant 0 : index
    %97 = vector.load %arg6[%c7, %c0_55, %c0_56] : memref<8x360x32xf32, #tpu.memory_space<vmem>>, vector<1x360x32xf32>
    %98 = vector.shape_cast %97 : vector<1x360x32xf32> to vector<360x32xf32>
    %99 = arith.mulf %61, %98 : vector<360x32xf32>
    %cst_57 = arith.constant dense<0.000000e+00> : vector<360xf32>
    %100 = vector.multi_reduction <add>, %99, %cst_57 [1] : vector<360x32xf32> to vector<360xf32>
    %101 = vector.shape_cast %100 : vector<360xf32> to vector<360x1xf32>
    %102 = tpu.concatenate %66, %71, %76, %81, %86, %91, %96, %101 in 1 : vector<360x1xf32>, vector<360x1xf32>, vector<360x1xf32>, vector<360x1xf32>, vector<360x1xf32>, vector<360x1xf32>, vector<360x1xf32>, vector<360x1xf32> -> vector<360x8xf32>
    %103 = vector.extract_strided_slice %102 {offsets = [0, 0], sizes = [45, 8], strides = [1, 1]} : vector<360x8xf32> to vector<45x8xf32>
    %cst_58 = arith.constant dense<0.000000e+00> : vector<8xf32>
    %104 = vector.multi_reduction <add>, %103, %cst_58 [0] : vector<45x8xf32> to vector<8xf32>
    %105 = vector.shape_cast %104 : vector<8xf32> to vector<1x8xf32>
    %106 = vector.extract_strided_slice %102 {offsets = [45, 0], sizes = [45, 8], strides = [1, 1]} : vector<360x8xf32> to vector<45x8xf32>
    %cst_59 = arith.constant dense<0.000000e+00> : vector<8xf32>
    %107 = vector.multi_reduction <add>, %106, %cst_59 [0] : vector<45x8xf32> to vector<8xf32>
    %108 = vector.shape_cast %107 : vector<8xf32> to vector<1x8xf32>
    %109 = vector.extract_strided_slice %102 {offsets = [90, 0], sizes = [45, 8], strides = [1, 1]} : vector<360x8xf32> to vector<45x8xf32>
    %cst_60 = arith.constant dense<0.000000e+00> : vector<8xf32>
    %110 = vector.multi_reduction <add>, %109, %cst_60 [0] : vector<45x8xf32> to vector<8xf32>
    %111 = vector.shape_cast %110 : vector<8xf32> to vector<1x8xf32>
    %112 = vector.extract_strided_slice %102 {offsets = [135, 0], sizes = [45, 8], strides = [1, 1]} : vector<360x8xf32> to vector<45x8xf32>
    %cst_61 = arith.constant dense<0.000000e+00> : vector<8xf32>
    %113 = vector.multi_reduction <add>, %112, %cst_61 [0] : vector<45x8xf32> to vector<8xf32>
    %114 = vector.shape_cast %113 : vector<8xf32> to vector<1x8xf32>
    %115 = vector.extract_strided_slice %102 {offsets = [180, 0], sizes = [45, 8], strides = [1, 1]} : vector<360x8xf32> to vector<45x8xf32>
    %cst_62 = arith.constant dense<0.000000e+00> : vector<8xf32>
    %116 = vector.multi_reduction <add>, %115, %cst_62 [0] : vector<45x8xf32> to vector<8xf32>
    %117 = vector.shape_cast %116 : vector<8xf32> to vector<1x8xf32>
    %118 = vector.extract_strided_slice %102 {offsets = [225, 0], sizes = [45, 8], strides = [1, 1]} : vector<360x8xf32> to vector<45x8xf32>
    %cst_63 = arith.constant dense<0.000000e+00> : vector<8xf32>
    %119 = vector.multi_reduction <add>, %118, %cst_63 [0] : vector<45x8xf32> to vector<8xf32>
    %120 = vector.shape_cast %119 : vector<8xf32> to vector<1x8xf32>
    %121 = vector.extract_strided_slice %102 {offsets = [270, 0], sizes = [45, 8], strides = [1, 1]} : vector<360x8xf32> to vector<45x8xf32>
    %cst_64 = arith.constant dense<0.000000e+00> : vector<8xf32>
    %122 = vector.multi_reduction <add>, %121, %cst_64 [0] : vector<45x8xf32> to vector<8xf32>
    %123 = vector.shape_cast %122 : vector<8xf32> to vector<1x8xf32>
    %124 = vector.extract_strided_slice %102 {offsets = [315, 0], sizes = [45, 8], strides = [1, 1]} : vector<360x8xf32> to vector<45x8xf32>
    %cst_65 = arith.constant dense<0.000000e+00> : vector<8xf32>
    %125 = vector.multi_reduction <add>, %124, %cst_65 [0] : vector<45x8xf32> to vector<8xf32>
    %126 = vector.shape_cast %125 : vector<8xf32> to vector<1x8xf32>
    %127 = tpu.concatenate %105, %108, %111, %114, %117, %120, %123, %126 in 0 : vector<1x8xf32>, vector<1x8xf32>, vector<1x8xf32>, vector<1x8xf32>, vector<1x8xf32>, vector<1x8xf32>, vector<1x8xf32>, vector<1x8xf32> -> vector<8x8xf32>
    %c0_66 = arith.constant 0 : index
    %c0_67 = arith.constant 0 : index
    %128 = vector.load %arg7[%c0_66, %c0_67] : memref<1x8xf32, #tpu.memory_space<vmem>>, vector<1x8xf32>
    %129 = vector.broadcast %128 : vector<1x8xf32> to vector<8x8xf32>
    %130 = arith.addf %127, %129 : vector<8x8xf32>
    %c0_68 = arith.constant 0 : index
    %c0_69 = arith.constant 0 : index
    %131 = vector.load %arg8[%c0_68, %c0_69] : memref<8x8xf32, #tpu.memory_space<vmem>>, vector<8x8xf32>
    tpu.vector_store %arg8[%c0_68, %c0_69], %130 {strides = array<i32>} : memref<8x8xf32, #tpu.memory_space<vmem>>, vector<8x8xf32>,
    return
  }
  func.func @transform_0(%arg0: i32) -> (i32, i32) {
    %c0_i32 = arith.constant 0 : i32
    %c0_i32_0 = arith.constant 0 : i32
    return %arg0, %c0_i32 : i32, i32
  }
  func.func @transform_1(%arg0: i32) -> (i32, i32, i32) {
    %c0_i32 = arith.constant 0 : i32
    %c0_i32_0 = arith.constant 0 : i32
    %c0_i32_1 = arith.constant 0 : i32
    %c0_i32_2 = arith.constant 0 : i32
    return %c0_i32, %c0_i32_0, %c0_i32_1 : i32, i32, i32
  }
  func.func @transform_2(%arg0: i32) -> (i32, i32) {
    %c0_i32 = arith.constant 0 : i32
    %c0_i32_0 = arith.constant 0 : i32
    %c0_i32_1 = arith.constant 0 : i32
    return %c0_i32, %c0_i32_0 : i32, i32
  }
  func.func @transform_3(%arg0: i32) -> (i32, i32, i32) {
    %c0_i32 = arith.constant 0 : i32
    %c0_i32_0 = arith.constant 0 : i32
    %c0_i32_1 = arith.constant 0 : i32
    %c0_i32_2 = arith.constant 0 : i32
    return %c0_i32, %c0_i32_0, %c0_i32_1 : i32, i32, i32
  }
  func.func @transform_4(%arg0: i32) -> (i32, i32) {
    %c0_i32 = arith.constant 0 : i32
    %c0_i32_0 = arith.constant 0 : i32
    %c0_i32_1 = arith.constant 0 : i32
    return %c0_i32, %c0_i32_0 : i32, i32
  }
  func.func @transform_5(%arg0: i32) -> (i32, i32, i32) {
    %c0_i32 = arith.constant 0 : i32
    %c0_i32_0 = arith.constant 0 : i32
    %c0_i32_1 = arith.constant 0 : i32
    %c0_i32_2 = arith.constant 0 : i32
    return %c0_i32, %c0_i32_0, %c0_i32_1 : i32, i32, i32
  }
  func.func @transform_6(%arg0: i32) -> (i32, i32) {
    %c0_i32 = arith.constant 0 : i32
    %c0_i32_0 = arith.constant 0 : i32
    %c0_i32_1 = arith.constant 0 : i32
    return %c0_i32, %c0_i32_0 : i32, i32
  }
  func.func @transform_7(%arg0: i32) -> (i32, i32) {
    %c0_i32 = arith.constant 0 : i32
    %c0_i32_0 = arith.constant 0 : i32
    return %arg0, %c0_i32 : i32, i32
  }
}

</mosaic_0001>

<bundles_post_ra>
// kernel: tile.9
= control target key start
LH: loop header
LB: loop body
LE: loop exit
PB: predicated region body
PF: predicated region fallthrough
CT: control target
= control target key end

     0   :  { %vm4_vm0 = vcmask 1047556   ;;  %vm299_vm1 = vcmask 252928   ;;  %s4415_s22 = smov 97   ;;  %vm1003_vm2 = vcmask 310272   ;;  %s4416_s26 = smov 90   ;;  %vm303_vm3 = vcmask 113664   ;;  %s8240_s0 = inlined_call_operand.vmem [shape: f32[8,8,45,32], index: 0, kind: input, shape index: {}]   ;;  %s8241_s1 = inlined_call_operand.vmem [shape: f32[8,360,32], index: 1, kind: output, shape index: {}]  }
   0x1   :  { %v3558_v0 = vld [vmem:[%s8240_s0 + $0x285] ss:$8 sm:$0xf]   ;;  %vm306_vm4 = vcmask 1048328   ;;  %s4417_s30 = smov 59   ;;  %vm6_vm5 = vcmask 367616  }
   0x2   :  { %v3559_v1 = vld [vmem:[%s8240_s0 + $0x285] ss:$8 sm:$0xf0]   ;;  %vm1007_vm6 = vcmask 56320   ;;  %vm1010_vm7 = vcmask 1048272   ;;  %s4418_s19 = smov 52  }
   0x3   :  { %v336_v2 = vsel %vm4_vm0, %v3559_v1, %v3558_v0  ;;  %v3560_v3 = vld [vmem:[%s8240_s0 + $0x245] ss:$8 sm:$0xf]   ;;  %vm1702_vm8 = vcmask 851416   ;;  %s4419_s14 = smov 45   ;;  %vm2054_vm9 = vcmask 794016  }
   0x4   :  { %v3561_v4 = vld [vmem:[%s8240_s0 + $0x245] ss:$8 sm:$0xf0]   ;;  %s4420_s9 = smov 14   ;;  %vm2406_vm10 = vcmask 736616   ;;  %vm2757_vm11 = vcmask 482416  }
   0x5   :  { %v342_v5 = vsel %vm4_vm0, %v3561_v4, %v3560_v3  ;;  %v3546_v6 = vld [vmem:[%s8240_s0 + $0x85] ss:$8 sm:$0xf]   ;;  %vm3109_vm12 = vcmask 425016  }
   0x6   :  { %v3547_v7 = vld [vmem:[%s8240_s0 + $0x85] ss:$8 sm:$0xf0]   ;;  %v344_v8 = vsel %vm299_vm1, %v342_v5, %v336_v2 }
   0x7   :  { %v292_v9 = vsel %vm4_vm0, %v3547_v7, %v3546_v6  ;;  %v3548_v10 = vld [vmem:[%s8240_s0 + $0x45] ss:$8 sm:$0xf]   ;;  %345 = vrot.lane.b32.xlu1 %v344_v8, %s4415_s22 }
   0x8   :  { %v3549_v11 = vld [vmem:[%s8240_s0 + $0x45] ss:$8 sm:$0xf0]  }
   0x9   :  { %v298_v12 = vsel %vm4_vm0, %v3549_v11, %v3548_v10  ;;  %v3564_v13 = vld [vmem:[%s8240_s0 + $0x385] ss:$8 sm:$0xf]  }
   0xa   :  { %v3565_v14 = vld [vmem:[%s8240_s0 + $0x385] ss:$8 sm:$0xf0]   ;;  %v300_v15 = vsel %vm299_vm1, %v298_v12, %v292_v9 }
   0xb   :  { %v358_v16 = vsel %vm4_vm0, %v3565_v14, %v3564_v13  ;;  %v3566_v17 = vld [vmem:[%s8240_s0 + $0x345] ss:$8 sm:$0xf]   ;;  %301 = vrot.lane.b32.xlu0 %v300_v15, %s4415_s22 }
   0xc   :  { %v3567_v18 = vld [vmem:[%s8240_s0 + $0x345] ss:$8 sm:$0xf0]  }
   0xd   :  { %v364_v19 = vsel %vm4_vm0, %v3567_v18, %v3566_v17  ;;  %v3552_v20 = vld [vmem:[%s8240_s0 + $0x185] ss:$8 sm:$0xf]  }
   0xe   :  { %v3553_v21 = vld [vmem:[%s8240_s0 + $0x185] ss:$8 sm:$0xf0]   ;;  %v366_v22 = vsel %vm299_vm1, %v364_v19, %v358_v16 }
   0xf   :  { %v314_v23 = vsel %vm4_vm0, %v3553_v21, %v3552_v20  ;;  %v3554_v24 = vld [vmem:[%s8240_s0 + $0x145] ss:$8 sm:$0xf]   ;;  %367 = vrot.lane.b32.xlu1 %v366_v22, %s4415_s22 }
  0x10   :  { %v3555_v25 = vld [vmem:[%s8240_s0 + $0x145] ss:$8 sm:$0xf0]  }
  0x11   :  { %v320_v26 = vsel %vm4_vm0, %v3555_v25, %v3554_v24  ;;  %v3576_v27 = vld [vmem:[%s8240_s0 + $0x585] ss:$8 sm:$0xf]  }
  0x12   :  { %v3577_v28 = vld [vmem:[%s8240_s0 + $0x585] ss:$8 sm:$0xf0]   ;;  %v322_v29 = vsel %vm299_vm1, %v320_v26, %v314_v23 }
  0x13   :  { %v402_v30 = vsel %vm4_vm0, %v3577_v28, %v3576_v27  ;;  %v3578_v31 = vld [vmem:[%s8240_s0 + $0x545] ss:$8 sm:$0xf]   ;;  %323 = vrot.lane.b32.xlu0 %v322_v29, %s4415_s22 }
  0x14   :  { %v3579_v32 = vld [vmem:[%s8240_s0 + $0x545] ss:$8 sm:$0xf0]  }
  0x15   :  { %v408_v33 = vsel %vm4_vm0, %v3579_v32, %v3578_v31  ;;  %v3570_v34 = vld [vmem:[%s8240_s0 + $0x485] ss:$8 sm:$0xf]  }
  0x16   :  { %v3571_v35 = vld [vmem:[%s8240_s0 + $0x485] ss:$8 sm:$0xf0]   ;;  %v410_v36 = vsel %vm299_vm1, %v408_v33, %v402_v30 }
  0x17   :  { %v380_v37 = vsel %vm4_vm0, %v3571_v35, %v3570_v34  ;;  %v3572_v38 = vld [vmem:[%s8240_s0 + $0x445] ss:$8 sm:$0xf]   ;;  %411 = vrot.lane.b32.xlu1 %v410_v36, %s4415_s22 }
  0x18   :  { %v3573_v39 = vld [vmem:[%s8240_s0 + $0x445] ss:$8 sm:$0xf0]  }
  0x19   :  { %v386_v40 = vsel %vm4_vm0, %v3573_v39, %v3572_v38  ;;  %v3588_v41 = vld [vmem:[%s8240_s0 + $0x785] ss:$8 sm:$0xf]  }
  0x1a   :  { %v3589_v42 = vld [vmem:[%s8240_s0 + $0x785] ss:$8 sm:$0xf0]   ;;  %v388_v43 = vsel %vm299_vm1, %v386_v40, %v380_v37 }
  0x1b   :  { %v446_v44 = vsel %vm4_vm0, %v3589_v42, %v3588_v41  ;;  %v3590_v45 = vld [vmem:[%s8240_s0 + $0x745] ss:$8 sm:$0xf]   ;;  %389 = vrot.lane.b32.xlu0 %v388_v43, %s4415_s22 }
  0x1c   :  { %v3591_v46 = vld [vmem:[%s8240_s0 + $0x745] ss:$8 sm:$0xf0]  }
  0x1d   :  { %v452_v47 = vsel %vm4_vm0, %v3591_v46, %v3590_v45  ;;  %v3582_v48 = vld [vmem:[%s8240_s0 + $0x685] ss:$8 sm:$0xf]  }
  0x1e   :  { %v3583_v49 = vld [vmem:[%s8240_s0 + $0x685] ss:$8 sm:$0xf0]   ;;  %v454_v50 = vsel %vm299_vm1, %v452_v47, %v446_v44 }
  0x1f   :  { %v424_v51 = vsel %vm4_vm0, %v3583_v49, %v3582_v48  ;;  %v3584_v52 = vld [vmem:[%s8240_s0 + $0x645] ss:$8 sm:$0xf]   ;;  %455 = vrot.lane.b32.xlu1 %v454_v50, %s4415_s22 }
  0x20   :  { %v3585_v53 = vld [vmem:[%s8240_s0 + $0x645] ss:$8 sm:$0xf0]  }
  0x21   :  { %v430_v54 = vsel %vm4_vm0, %v3585_v53, %v3584_v52  ;;  %v3600_v55 = vld [vmem:[%s8240_s0 + $0x145] ss:$8 sm:$0xf]  }
  0x22   :  { %v3601_v56 = vld [vmem:[%s8240_s0 + $0x145] ss:$8 sm:$0xf0]   ;;  %v432_v57 = vsel %vm299_vm1, %v430_v54, %v424_v51 }
  0x23   :  { %v490_v58 = vsel %vm4_vm0, %v3601_v56, %v3600_v55  ;;  %v3602_v59 = vld [vmem:[%s8240_s0 + $0x105] ss:$8 sm:$0xf]   ;;  %433 = vrot.lane.b32.xlu0 %v432_v57, %s4415_s22 }
  0x24   :  { %v3603_v60 = vld [vmem:[%s8240_s0 + $0x105] ss:$8 sm:$0xf0]  }
  0x25   :  { %v496_v61 = vsel %vm4_vm0, %v3603_v60, %v3602_v59  ;;  %v3594_v62 = vld [vmem:[%s8240_s0 + $0x45] ss:$8 sm:$0xf]  }
  0x26   :  { %v3595_v63 = vld [vmem:[%s8240_s0 + $0x45] ss:$8 sm:$0xf0]   ;;  %v498_v0 = vsel %vm299_vm1, %v496_v61, %v490_v58 }
  0x27   :  { %v468_v1 = vsel %vm4_vm0, %v3595_v63, %v3594_v62  ;;  %v3596_v2 = vld [vmem:[%s8240_s0 + $0x5] ss:$8 sm:$0xf]   ;;  %499 = vrot.lane.b32.xlu1 %v498_v0, %s4415_s22 }
  0x28   :  { %v3597_v3 = vld [vmem:[%s8240_s0 + $0x5] ss:$8 sm:$0xf0]  }
  0x29   :  { %v474_v4 = vsel %vm4_vm0, %v3597_v3, %v3596_v2  ;;  %v3612_v5 = vld [vmem:[%s8240_s0 + $0x345] ss:$8 sm:$0xf]  }
  0x2a   :  { %v3613_v6 = vld [vmem:[%s8240_s0 + $0x345] ss:$8 sm:$0xf0]   ;;  %v476_v7 = vsel %vm299_vm1, %v474_v4, %v468_v1 }
  0x2b   :  { %v534_v8 = vsel %vm4_vm0, %v3613_v6, %v3612_v5  ;;  %v3614_v9 = vld [vmem:[%s8240_s0 + $0x305] ss:$8 sm:$0xf]   ;;  %477 = vrot.lane.b32.xlu0 %v476_v7, %s4415_s22 }
  0x2c   :  { %v3615_v10 = vld [vmem:[%s8240_s0 + $0x305] ss:$8 sm:$0xf0]  }
  0x2d   :  { %v540_v11 = vsel %vm4_vm0, %v3615_v10, %v3614_v9  ;;  %v3606_v12 = vld [vmem:[%s8240_s0 + $0x245] ss:$8 sm:$0xf]  }
  0x2e   :  { %v3607_v13 = vld [vmem:[%s8240_s0 + $0x245] ss:$8 sm:$0xf0]   ;;  %v542_v14 = vsel %vm299_vm1, %v540_v11, %v534_v8 }
  0x2f   :  { %v512_v15 = vsel %vm4_vm0, %v3607_v13, %v3606_v12  ;;  %v3608_v16 = vld [vmem:[%s8240_s0 + $0x205] ss:$8 sm:$0xf]   ;;  %543 = vrot.lane.b32.xlu1 %v542_v14, %s4415_s22 }
  0x30   :  { %v3609_v17 = vld [vmem:[%s8240_s0 + $0x205] ss:$8 sm:$0xf0]  }
  0x31   :  { %v518_v18 = vsel %vm4_vm0, %v3609_v17, %v3608_v16  ;;  %v3624_v19 = vld [vmem:[%s8240_s0 + $0x545] ss:$8 sm:$0xf]  }
  0x32   :  { %v3625_v20 = vld [vmem:[%s8240_s0 + $0x545] ss:$8 sm:$0xf0]   ;;  %v520_v21 = vsel %vm299_vm1, %v518_v18, %v512_v15 }
  0x33   :  { %v578_v22 = vsel %vm4_vm0, %v3625_v20, %v3624_v19  ;;  %v3626_v23 = vld [vmem:[%s8240_s0 + $0x505] ss:$8 sm:$0xf]   ;;  %521 = vrot.lane.b32.xlu0 %v520_v21, %s4415_s22 }
  0x34   :  { %v3627_v24 = vld [vmem:[%s8240_s0 + $0x505] ss:$8 sm:$0xf0]  }
  0x35   :  { %v584_v25 = vsel %vm4_vm0, %v3627_v24, %v3626_v23  ;;  %v3618_v26 = vld [vmem:[%s8240_s0 + $0x445] ss:$8 sm:$0xf]  }
  0x36   :  { %v3619_v27 = vld [vmem:[%s8240_s0 + $0x445] ss:$8 sm:$0xf0]   ;;  %v586_v28 = vsel %vm299_vm1, %v584_v25, %v578_v22 }
  0x37   :  { %v556_v29 = vsel %vm4_vm0, %v3619_v27, %v3618_v26  ;;  %v3620_v30 = vld [vmem:[%s8240_s0 + $0x405] ss:$8 sm:$0xf]   ;;  %587 = vrot.lane.b32.xlu1 %v586_v28, %s4415_s22 }
  0x38   :  { %v3621_v31 = vld [vmem:[%s8240_s0 + $0x405] ss:$8 sm:$0xf0]  }
  0x39   :  { %v562_v32 = vsel %vm4_vm0, %v3621_v31, %v3620_v30  ;;  %v3636_v33 = vld [vmem:[%s8240_s0 + $0x745] ss:$8 sm:$0xf]  }
  0x3a   :  { %v3637_v34 = vld [vmem:[%s8240_s0 + $0x745] ss:$8 sm:$0xf0]   ;;  %v564_v35 = vsel %vm299_vm1, %v562_v32, %v556_v29 }
  0x3b   :  { %v622_v36 = vsel %vm4_vm0, %v3637_v34, %v3636_v33  ;;  %v3638_v37 = vld [vmem:[%s8240_s0 + $0x705] ss:$8 sm:$0xf]   ;;  %565 = vrot.lane.b32.xlu0 %v564_v35, %s4415_s22 }
  0x3c   :  { %v3639_v38 = vld [vmem:[%s8240_s0 + $0x705] ss:$8 sm:$0xf0]  }
  0x3d   :  { %v628_v39 = vsel %vm4_vm0, %v3639_v38, %v3638_v37  ;;  %v3630_v40 = vld [vmem:[%s8240_s0 + $0x645] ss:$8 sm:$0xf]  }
  0x3e   :  { %v3631_v41 = vld [vmem:[%s8240_s0 + $0x645] ss:$8 sm:$0xf0]   ;;  %v630_v42 = vsel %vm299_vm1, %v628_v39, %v622_v36 }
  0x3f   :  { %v600_v43 = vsel %vm4_vm0, %v3631_v41, %v3630_v40  ;;  %v3632_v44 = vld [vmem:[%s8240_s0 + $0x605] ss:$8 sm:$0xf]   ;;  %631 = vrot.lane.b32.xlu1 %v630_v42, %s4415_s22 }
  0x40   :  { %v3633_v45 = vld [vmem:[%s8240_s0 + $0x605] ss:$8 sm:$0xf0]  }
  0x41   :  { %v606_v46 = vsel %vm4_vm0, %v3633_v45, %v3632_v44  ;;  %v3648_v47 = vld [vmem:[%s8240_s0 + $0x105] ss:$8 sm:$0xf]  }
  0x42   :  { %v3649_v48 = vld [vmem:[%s8240_s0 + $0x105] ss:$8 sm:$0xf0]   ;;  %v608_v49 = vsel %vm299_vm1, %v606_v46, %v600_v43 }
  0x43   :  { %v666_v50 = vsel %vm4_vm0, %v3649_v48, %v3648_v47  ;;  %v3650_v51 = vld [vmem:[%s8240_s0 + $0x1c5] ss:$8 sm:$0xf]   ;;  %609 = vrot.lane.b32.xlu0 %v608_v49, %s4415_s22 }
  0x44   :  { %v3651_v52 = vld [vmem:[%s8240_s0 + $0x1c5] ss:$8 sm:$0xf0]  }
  0x45   :  { %v672_v53 = vsel %vm4_vm0, %v3651_v52, %v3650_v51  ;;  %v3642_v54 = vld [vmem:[%s8240_s0 + $0x5] ss:$8 sm:$0xf]  }
  0x46   :  { %v3643_v55 = vld [vmem:[%s8240_s0 + $0x5] ss:$8 sm:$0xf0]   ;;  %v674_v56 = vsel %vm299_vm1, %v672_v53, %v666_v50 }
  0x47   :  { %v644_v57 = vsel %vm4_vm0, %v3643_v55, %v3642_v54  ;;  %v3644_v58 = vld [vmem:[%s8240_s0 + $0xc5] ss:$8 sm:$0xf]   ;;  %675 = vrot.lane.b32.xlu1 %v674_v56, %s4415_s22 }
  0x48   :  { %v3645_v59 = vld [vmem:[%s8240_s0 + $0xc5] ss:$8 sm:$0xf0]  }
  0x49   :  { %v650_v60 = vsel %vm4_vm0, %v3645_v59, %v3644_v58  ;;  %v3660_v61 = vld [vmem:[%s8240_s0 + $0x305] ss:$8 sm:$0xf]  }
  0x4a   :  { %v3661_v62 = vld [vmem:[%s8240_s0 + $0x305] ss:$8 sm:$0xf0]   ;;  %v652_v63 = vsel %vm299_vm1, %v650_v60, %v644_v57 }
  0x4b   :  { %v710_v0 = vsel %vm4_vm0, %v3661_v62, %v3660_v61  ;;  %v3662_v1 = vld [vmem:[%s8240_s0 + $0x3c5] ss:$8 sm:$0xf]   ;;  %653 = vrot.lane.b32.xlu0 %v652_v63, %s4415_s22 }
  0x4c   :  { %v3663_v2 = vld [vmem:[%s8240_s0 + $0x3c5] ss:$8 sm:$0xf0]  }
  0x4d   :  { %v716_v3 = vsel %vm4_vm0, %v3663_v2, %v3662_v1  ;;  %v3654_v4 = vld [vmem:[%s8240_s0 + $0x205] ss:$8 sm:$0xf]  }
  0x4e   :  { %v3655_v5 = vld [vmem:[%s8240_s0 + $0x205] ss:$8 sm:$0xf0]   ;;  %v718_v6 = vsel %vm299_vm1, %v716_v3, %v710_v0 }
  0x4f   :  { %v688_v7 = vsel %vm4_vm0, %v3655_v5, %v3654_v4  ;;  %v3656_v8 = vld [vmem:[%s8240_s0 + $0x2c5] ss:$8 sm:$0xf]   ;;  %719 = vrot.lane.b32.xlu1 %v718_v6, %s4415_s22 }
  0x50   :  { %v3657_v9 = vld [vmem:[%s8240_s0 + $0x2c5] ss:$8 sm:$0xf0]  }
  0x51   :  { %v694_v10 = vsel %vm4_vm0, %v3657_v9, %v3656_v8  ;;  %v3672_v11 = vld [vmem:[%s8240_s0 + $0x505] ss:$8 sm:$0xf]  }
  0x52   :  { %v3673_v12 = vld [vmem:[%s8240_s0 + $0x505] ss:$8 sm:$0xf0]   ;;  %v696_v13 = vsel %vm299_vm1, %v694_v10, %v688_v7 }
  0x53   :  { %v754_v14 = vsel %vm4_vm0, %v3673_v12, %v3672_v11  ;;  %v3674_v15 = vld [vmem:[%s8240_s0 + $0x5c5] ss:$8 sm:$0xf]   ;;  %697 = vrot.lane.b32.xlu0 %v696_v13, %s4415_s22 }
  0x54   :  { %v3675_v16 = vld [vmem:[%s8240_s0 + $0x5c5] ss:$8 sm:$0xf0]  }
  0x55   :  { %v760_v17 = vsel %vm4_vm0, %v3675_v16, %v3674_v15  ;;  %v3666_v18 = vld [vmem:[%s8240_s0 + $0x405] ss:$8 sm:$0xf]  }
  0x56   :  { %v3667_v19 = vld [vmem:[%s8240_s0 + $0x405] ss:$8 sm:$0xf0]   ;;  %v762_v20 = vsel %vm299_vm1, %v760_v17, %v754_v14 }
  0x57   :  { %v732_v21 = vsel %vm4_vm0, %v3667_v19, %v3666_v18  ;;  %v3668_v22 = vld [vmem:[%s8240_s0 + $0x4c5] ss:$8 sm:$0xf]   ;;  %763 = vrot.lane.b32.xlu1 %v762_v20, %s4415_s22 }
  0x58   :  { %v3669_v23 = vld [vmem:[%s8240_s0 + $0x4c5] ss:$8 sm:$0xf0]  }
  0x59   :  { %v738_v24 = vsel %vm4_vm0, %v3669_v23, %v3668_v22  ;;  %v3684_v25 = vld [vmem:[%s8240_s0 + $0x705] ss:$8 sm:$0xf]  }
  0x5a   :  { %v3685_v26 = vld [vmem:[%s8240_s0 + $0x705] ss:$8 sm:$0xf0]   ;;  %v740_v27 = vsel %vm299_vm1, %v738_v24, %v732_v21 }
  0x5b   :  { %v798_v28 = vsel %vm4_vm0, %v3685_v26, %v3684_v25  ;;  %v3686_v29 = vld [vmem:[%s8240_s0 + $0x7c5] ss:$8 sm:$0xf]   ;;  %741 = vrot.lane.b32.xlu0 %v740_v27, %s4415_s22 }
  0x5c   :  { %v3687_v30 = vld [vmem:[%s8240_s0 + $0x7c5] ss:$8 sm:$0xf0]  }
  0x5d   :  { %v804_v31 = vsel %vm4_vm0, %v3687_v30, %v3686_v29  ;;  %v3678_v32 = vld [vmem:[%s8240_s0 + $0x605] ss:$8 sm:$0xf]  }
  0x5e   :  { %v3679_v33 = vld [vmem:[%s8240_s0 + $0x605] ss:$8 sm:$0xf0]   ;;  %v806_v34 = vsel %vm299_vm1, %v804_v31, %v798_v28  ;;  %v3743_v31 = vld [vmem:[%s8240_s0 + $0x142] ss:$8 sm:$0xf]  }
  0x5f   :  { %v776_v35 = vsel %vm4_vm0, %v3679_v33, %v3678_v32  ;;  %v3680_v36 = vld [vmem:[%s8240_s0 + $0x6c5] ss:$8 sm:$0xf]   ;;  %807 = vrot.lane.b32.xlu1 %v806_v34, %s4415_s22  ;;  %v3744_v32 = vld [vmem:[%s8240_s0 + $0x142] ss:$8 sm:$0xf0]  }
  0x60   :  { %v3681_v37 = vld [vmem:[%s8240_s0 + $0x6c5] ss:$8 sm:$0xf0]   ;;  %v1017_v34 = vsel %vm4_vm0, %v3744_v32, %v3743_v31  ;;  %v3786_v31 = vld [vmem:[%s8240_s0 + $0x2] ss:$8 sm:$0xf0]  }
  0x61   :  { %v782_v38 = vsel %vm4_vm0, %v3681_v37, %v3680_v36  ;;  %v3696_v39 = vld [vmem:[%s8240_s0 + $0x1c5] ss:$8 sm:$0xf]   ;;  %v3746_v36 = vld [vmem:[%s8240_s0 + $0x102] ss:$8 sm:$0xf0]  }
  0x62   :  { %v3697_v40 = vld [vmem:[%s8240_s0 + $0x1c5] ss:$8 sm:$0xf0]   ;;  %v784_v41 = vsel %vm299_vm1, %v782_v38, %v776_v35  ;;  %v3745_v35 = vld [vmem:[%s8240_s0 + $0x102] ss:$8 sm:$0xf]  }
  0x63   :  { %v842_v42 = vsel %vm4_vm0, %v3697_v40, %v3696_v39  ;;  %v3698_v43 = vld [vmem:[%s8240_s0 + $0x185] ss:$8 sm:$0xf]   ;;  %785 = vrot.lane.b32.xlu0 %v784_v41, %s4415_s22  ;;  %v1023_v37 = vsel %vm4_vm0, %v3746_v36, %v3745_v35  ;;  %v3738_v38 = vld [vmem:[%s8240_s0 + $0x42] ss:$8 sm:$0xf]  }
  0x64   :  { %v3699_v44 = vld [vmem:[%s8240_s0 + $0x185] ss:$8 sm:$0xf0]   ;;  %v3739_v39 = vld [vmem:[%s8240_s0 + $0x42] ss:$8 sm:$0xf0]   ;;  %v1025_v40 = vsel %vm1003_vm2, %v1023_v37, %v1017_v34 }
  0x65   :  { %v848_v45 = vsel %vm4_vm0, %v3699_v44, %v3698_v43  ;;  %v3690_v46 = vld [vmem:[%s8240_s0 + $0xc5] ss:$8 sm:$0xf]   ;;  %v996_v41 = vsel %vm4_vm0, %v3739_v39, %v3738_v38  ;;  %v3741_v43 = vld [vmem:[%s8240_s0 + $0x2] ss:$8 sm:$0xf0]  }
  0x66   :  { %v3691_v47 = vld [vmem:[%s8240_s0 + $0xc5] ss:$8 sm:$0xf0]   ;;  %v850_v48 = vsel %vm299_vm1, %v848_v45, %v842_v42  ;;  %v3740_v42 = vld [vmem:[%s8240_s0 + $0x2] ss:$8 sm:$0xf]  }
  0x67   :  { %v820_v49 = vsel %vm4_vm0, %v3691_v47, %v3690_v46  ;;  %v3692_v50 = vld [vmem:[%s8240_s0 + $0x85] ss:$8 sm:$0xf]   ;;  %851 = vrot.lane.b32.xlu1 %v850_v48, %s4415_s22  ;;  %v1002_v44 = vsel %vm4_vm0, %v3741_v43, %v3740_v42  ;;  %v3755_v45 = vld [vmem:[%s8240_s0 + $0x342] ss:$8 sm:$0xf]  }
  0x68   :  { %v3693_v51 = vld [vmem:[%s8240_s0 + $0x85] ss:$8 sm:$0xf0]   ;;  %v3756_v46 = vld [vmem:[%s8240_s0 + $0x342] ss:$8 sm:$0xf0]   ;;  %v1004_v47 = vsel %vm1003_vm2, %v1002_v44, %v996_v41 }
  0x69   :  { %v826_v52 = vsel %vm4_vm0, %v3693_v51, %v3692_v50  ;;  %v3708_v53 = vld [vmem:[%s8240_s0 + $0x3c5] ss:$8 sm:$0xf]   ;;  %v1061_v48 = vsel %vm4_vm0, %v3756_v46, %v3755_v45  ;;  %v3758_v50 = vld [vmem:[%s8240_s0 + $0x302] ss:$8 sm:$0xf0]  }
  0x6a   :  { %v3709_v54 = vld [vmem:[%s8240_s0 + $0x3c5] ss:$8 sm:$0xf0]   ;;  %v828_v55 = vsel %vm299_vm1, %v826_v52, %v820_v49  ;;  %v3757_v49 = vld [vmem:[%s8240_s0 + $0x302] ss:$8 sm:$0xf]  }
  0x6b   :  { %v886_v56 = vsel %vm4_vm0, %v3709_v54, %v3708_v53  ;;  %v3710_v57 = vld [vmem:[%s8240_s0 + $0x385] ss:$8 sm:$0xf]   ;;  %829 = vrot.lane.b32.xlu0 %v828_v55, %s4415_s22  ;;  %v1067_v51 = vsel %vm4_vm0, %v3758_v50, %v3757_v49  ;;  %v3749_v52 = vld [vmem:[%s8240_s0 + $0x242] ss:$8 sm:$0xf]  }
  0x6c   :  { %v3711_v58 = vld [vmem:[%s8240_s0 + $0x385] ss:$8 sm:$0xf0]   ;;  %v3750_v53 = vld [vmem:[%s8240_s0 + $0x242] ss:$8 sm:$0xf0]   ;;  %v1069_v54 = vsel %vm1003_vm2, %v1067_v51, %v1061_v48 }
  0x6d   :  { %v892_v59 = vsel %vm4_vm0, %v3711_v58, %v3710_v57  ;;  %v3702_v60 = vld [vmem:[%s8240_s0 + $0x2c5] ss:$8 sm:$0xf]   ;;  %v1039_v55 = vsel %vm4_vm0, %v3750_v53, %v3749_v52  ;;  %v3752_v57 = vld [vmem:[%s8240_s0 + $0x202] ss:$8 sm:$0xf0]  }
  0x6e   :  { %v3703_v61 = vld [vmem:[%s8240_s0 + $0x2c5] ss:$8 sm:$0xf0]   ;;  %v894_v62 = vsel %vm299_vm1, %v892_v59, %v886_v56  ;;  %v3751_v56 = vld [vmem:[%s8240_s0 + $0x202] ss:$8 sm:$0xf]  }
  0x6f   :  { %v864_v63 = vsel %vm4_vm0, %v3703_v61, %v3702_v60  ;;  %v3704_v0 = vld [vmem:[%s8240_s0 + $0x285] ss:$8 sm:$0xf]   ;;  %895 = vrot.lane.b32.xlu1 %v894_v62, %s4415_s22  ;;  %v1045_v58 = vsel %vm4_vm0, %v3752_v57, %v3751_v56  ;;  %v3767_v59 = vld [vmem:[%s8240_s0 + $0x542] ss:$8 sm:$0xf]  }
  0x70   :  { %v3705_v1 = vld [vmem:[%s8240_s0 + $0x285] ss:$8 sm:$0xf0]   ;;  %v3768_v60 = vld [vmem:[%s8240_s0 + $0x542] ss:$8 sm:$0xf0]   ;;  %v1047_v61 = vsel %vm1003_vm2, %v1045_v58, %v1039_v55 }
  0x71   :  { %v870_v2 = vsel %vm4_vm0, %v3705_v1, %v3704_v0  ;;  %v3720_v3 = vld [vmem:[%s8240_s0 + $0x5c5] ss:$8 sm:$0xf]   ;;  %v1105_v62 = vsel %vm4_vm0, %v3768_v60, %v3767_v59  ;;  %v3770_v0 = vld [vmem:[%s8240_s0 + $0x502] ss:$8 sm:$0xf0]  }
  0x72   :  { %v3721_v4 = vld [vmem:[%s8240_s0 + $0x5c5] ss:$8 sm:$0xf0]   ;;  %v872_v5 = vsel %vm299_vm1, %v870_v2, %v864_v63  ;;  %v3769_v63 = vld [vmem:[%s8240_s0 + $0x502] ss:$8 sm:$0xf]  }
  0x73   :  { %v930_v6 = vsel %vm4_vm0, %v3721_v4, %v3720_v3  ;;  %v3722_v7 = vld [vmem:[%s8240_s0 + $0x585] ss:$8 sm:$0xf]   ;;  %873 = vrot.lane.b32.xlu0 %v872_v5, %s4415_s22  ;;  %v1111_v1 = vsel %vm4_vm0, %v3770_v0, %v3769_v63  ;;  %v3761_v2 = vld [vmem:[%s8240_s0 + $0x442] ss:$8 sm:$0xf]  }
  0x74   :  { %v3723_v8 = vld [vmem:[%s8240_s0 + $0x585] ss:$8 sm:$0xf0]   ;;  %v3762_v3 = vld [vmem:[%s8240_s0 + $0x442] ss:$8 sm:$0xf0]   ;;  %v1113_v4 = vsel %vm1003_vm2, %v1111_v1, %v1105_v62 }
  0x75   :  { %v936_v9 = vsel %vm4_vm0, %v3723_v8, %v3722_v7  ;;  %v3714_v10 = vld [vmem:[%s8240_s0 + $0x4c5] ss:$8 sm:$0xf]   ;;  %v1083_v5 = vsel %vm4_vm0, %v3762_v3, %v3761_v2  ;;  %v3764_v7 = vld [vmem:[%s8240_s0 + $0x402] ss:$8 sm:$0xf0]  }
  0x76   :  { %v3715_v11 = vld [vmem:[%s8240_s0 + $0x4c5] ss:$8 sm:$0xf0]   ;;  %v938_v12 = vsel %vm299_vm1, %v936_v9, %v930_v6  ;;  %v3763_v6 = vld [vmem:[%s8240_s0 + $0x402] ss:$8 sm:$0xf]  }
  0x77   :  { %v908_v13 = vsel %vm4_vm0, %v3715_v11, %v3714_v10  ;;  %v3716_v14 = vld [vmem:[%s8240_s0 + $0x485] ss:$8 sm:$0xf]   ;;  %939 = vrot.lane.b32.xlu1 %v938_v12, %s4415_s22  ;;  %v1089_v8 = vsel %vm4_vm0, %v3764_v7, %v3763_v6  ;;  %v3779_v9 = vld [vmem:[%s8240_s0 + $0x742] ss:$8 sm:$0xf]  }
  0x78   :  { %v3717_v15 = vld [vmem:[%s8240_s0 + $0x485] ss:$8 sm:$0xf0]   ;;  %v3780_v10 = vld [vmem:[%s8240_s0 + $0x742] ss:$8 sm:$0xf0]   ;;  %v1091_v11 = vsel %vm1003_vm2, %v1089_v8, %v1083_v5 }
  0x79   :  { %v914_v16 = vsel %vm4_vm0, %v3717_v15, %v3716_v14  ;;  %v3732_v17 = vld [vmem:[%s8240_s0 + $0x7c5] ss:$8 sm:$0xf]   ;;  %v1149_v12 = vsel %vm4_vm0, %v3780_v10, %v3779_v9  ;;  %v3782_v14 = vld [vmem:[%s8240_s0 + $0x702] ss:$8 sm:$0xf0]  }
  0x7a   :  { %v3733_v18 = vld [vmem:[%s8240_s0 + $0x7c5] ss:$8 sm:$0xf0]   ;;  %v916_v19 = vsel %vm299_vm1, %v914_v16, %v908_v13  ;;  %v3781_v13 = vld [vmem:[%s8240_s0 + $0x702] ss:$8 sm:$0xf]  }
  0x7b   :  { %v974_v20 = vsel %vm4_vm0, %v3733_v18, %v3732_v17  ;;  %v3734_v21 = vld [vmem:[%s8240_s0 + $0x785] ss:$8 sm:$0xf]   ;;  %917 = vrot.lane.b32.xlu0 %v916_v19, %s4415_s22  ;;  %v1155_v15 = vsel %vm4_vm0, %v3782_v14, %v3781_v13  ;;  %v3773_v16 = vld [vmem:[%s8240_s0 + $0x642] ss:$8 sm:$0xf]  }
  0x7c   :  { %v3735_v22 = vld [vmem:[%s8240_s0 + $0x785] ss:$8 sm:$0xf0]   ;;  %v3774_v17 = vld [vmem:[%s8240_s0 + $0x642] ss:$8 sm:$0xf0]   ;;  %v1157_v18 = vsel %vm1003_vm2, %v1155_v15, %v1149_v12 }
  0x7d   :  { %v980_v23 = vsel %vm4_vm0, %v3735_v22, %v3734_v21  ;;  %v3726_v24 = vld [vmem:[%s8240_s0 + $0x6c5] ss:$8 sm:$0xf]   ;;  %v1127_v19 = vsel %vm4_vm0, %v3774_v17, %v3773_v16  ;;  %v3776_v21 = vld [vmem:[%s8240_s0 + $0x602] ss:$8 sm:$0xf0]  }
  0x7e   :  { %v3727_v25 = vld [vmem:[%s8240_s0 + $0x6c5] ss:$8 sm:$0xf0]   ;;  %v982_v26 = vsel %vm299_vm1, %v980_v23, %v974_v20  ;;  %v3775_v20 = vld [vmem:[%s8240_s0 + $0x602] ss:$8 sm:$0xf]  }
  0x7f   :  { %v952_v27 = vsel %vm4_vm0, %v3727_v25, %v3726_v24  ;;  %v3728_v28 = vld [vmem:[%s8240_s0 + $0x685] ss:$8 sm:$0xf]   ;;  %983 = vrot.lane.b32.xlu1 %v982_v26, %s4415_s22  ;;  %v1133_v22 = vsel %vm4_vm0, %v3776_v21, %v3775_v20  ;;  %v3791_v23 = vld [vmem:[%s8240_s0 + $0x102] ss:$8 sm:$0xf]  }
  0x80   :  { %v3729_v29 = vld [vmem:[%s8240_s0 + $0x685] ss:$8 sm:$0xf0]   ;;  %v3792_v24 = vld [vmem:[%s8240_s0 + $0x102] ss:$8 sm:$0xf0]   ;;  %v1135_v25 = vsel %vm1003_vm2, %v1133_v22, %v1127_v19 }
  0x81   :  { %v958_v30 = vsel %vm4_vm0, %v3729_v29, %v3728_v28  ;;  %v1193_v26 = vsel %vm4_vm0, %v3792_v24, %v3791_v23  ;;  %v3794_v28 = vld [vmem:[%s8240_s0 + $0x1c2] ss:$8 sm:$0xf0]  }
  0x82   :  { %v960_v33 = vsel %vm299_vm1, %v958_v30, %v952_v27  ;;  %v3793_v27 = vld [vmem:[%s8240_s0 + $0x1c2] ss:$8 sm:$0xf]  }
  0x83   :  { %961 = vrot.lane.b32.xlu0 %v960_v33, %s4415_s22  ;;  %1026 = vrot.lane.b32.xlu1 %v1025_v40, %s4416_s26  ;;  %v1199_v29 = vsel %vm4_vm0, %v3794_v28, %v3793_v27  ;;  %v3785_v30 = vld [vmem:[%s8240_s0 + $0x2] ss:$8 sm:$0xf]  }
  0x84   :  { %v1201_v32 = vsel %vm1003_vm2, %v1199_v29, %v1193_v26  ;;  %v1171_v33 = vsel %vm4_vm0, %v3786_v31, %v3785_v30  ;;  %v3787_v34 = vld [vmem:[%s8240_s0 + $0xc2] ss:$8 sm:$0xf]  }
  0x85   :  { %v3788_v35 = vld [vmem:[%s8240_s0 + $0xc2] ss:$8 sm:$0xf0]  }
  0x86   :  { %v1177_v36 = vsel %vm4_vm0, %v3788_v35, %v3787_v34  ;;  %v3803_v37 = vld [vmem:[%s8240_s0 + $0x302] ss:$8 sm:$0xf]  }
  0x87   :  { %1005 = vrot.lane.b32.xlu0 %v1004_v47, %s4416_s26  ;;  %1070 = vrot.lane.b32.xlu1 %v1069_v54, %s4416_s26  ;;  %v3804_v38 = vld [vmem:[%s8240_s0 + $0x302] ss:$8 sm:$0xf0]   ;;  %v1179_v39 = vsel %vm1003_vm2, %v1177_v36, %v1171_v33 }
  0x88   :  { %v1237_v40 = vsel %vm4_vm0, %v3804_v38, %v3803_v37  ;;  %v3805_v41 = vld [vmem:[%s8240_s0 + $0x3c2] ss:$8 sm:$0xf]  }
  0x89   :  { %v3806_v42 = vld [vmem:[%s8240_s0 + $0x3c2] ss:$8 sm:$0xf0]  }
  0x8a   :  { %v1243_v43 = vsel %vm4_vm0, %v3806_v42, %v3805_v41  ;;  %v3797_v44 = vld [vmem:[%s8240_s0 + $0x202] ss:$8 sm:$0xf]  }
  0x8b   :  { %1048 = vrot.lane.b32.xlu0 %v1047_v61, %s4416_s26  ;;  %1114 = vrot.lane.b32.xlu1 %v1113_v4, %s4416_s26  ;;  %v3798_v45 = vld [vmem:[%s8240_s0 + $0x202] ss:$8 sm:$0xf0]   ;;  %v1245_v46 = vsel %vm1003_vm2, %v1243_v43, %v1237_v40 }
  0x8c   :  { %v1215_v47 = vsel %vm4_vm0, %v3798_v45, %v3797_v44  ;;  %v3799_v48 = vld [vmem:[%s8240_s0 + $0x2c2] ss:$8 sm:$0xf]  }
  0x8d   :  { %v3800_v49 = vld [vmem:[%s8240_s0 + $0x2c2] ss:$8 sm:$0xf0]  }
  0x8e   :  { %v1221_v50 = vsel %vm4_vm0, %v3800_v49, %v3799_v48  ;;  %v3815_v51 = vld [vmem:[%s8240_s0 + $0x502] ss:$8 sm:$0xf]  }
  0x8f   :  { %1092 = vrot.lane.b32.xlu0 %v1091_v11, %s4416_s26  ;;  %1158 = vrot.lane.b32.xlu1 %v1157_v18, %s4416_s26  ;;  %v3816_v52 = vld [vmem:[%s8240_s0 + $0x502] ss:$8 sm:$0xf0]   ;;  %v1223_v53 = vsel %vm1003_vm2, %v1221_v50, %v1215_v47 }
  0x90   :  { %v1281_v54 = vsel %vm4_vm0, %v3816_v52, %v3815_v51  ;;  %v3817_v55 = vld [vmem:[%s8240_s0 + $0x5c2] ss:$8 sm:$0xf]  }
  0x91   :  { %v3818_v56 = vld [vmem:[%s8240_s0 + $0x5c2] ss:$8 sm:$0xf0]  }
  0x92   :  { %v1287_v57 = vsel %vm4_vm0, %v3818_v56, %v3817_v55  ;;  %v3809_v58 = vld [vmem:[%s8240_s0 + $0x402] ss:$8 sm:$0xf]  }
  0x93   :  { %1136 = vrot.lane.b32.xlu0 %v1135_v25, %s4416_s26  ;;  %1202 = vrot.lane.b32.xlu1 %v1201_v32, %s4416_s26  ;;  %v3810_v59 = vld [vmem:[%s8240_s0 + $0x402] ss:$8 sm:$0xf0]   ;;  %v1289_v60 = vsel %vm1003_vm2, %v1287_v57, %v1281_v54 }
  0x94   :  { %v1259_v61 = vsel %vm4_vm0, %v3810_v59, %v3809_v58  ;;  %v3811_v62 = vld [vmem:[%s8240_s0 + $0x4c2] ss:$8 sm:$0xf]  }
  0x95   :  { %v3812_v63 = vld [vmem:[%s8240_s0 + $0x4c2] ss:$8 sm:$0xf0]  }
  0x96   :  { %v1265_v0 = vsel %vm4_vm0, %v3812_v63, %v3811_v62  ;;  %v3827_v1 = vld [vmem:[%s8240_s0 + $0x702] ss:$8 sm:$0xf]  }
  0x97   :  { %1180 = vrot.lane.b32.xlu0 %v1179_v39, %s4416_s26  ;;  %1246 = vrot.lane.b32.xlu1 %v1245_v46, %s4416_s26  ;;  %v3828_v2 = vld [vmem:[%s8240_s0 + $0x702] ss:$8 sm:$0xf0]   ;;  %v1267_v3 = vsel %vm1003_vm2, %v1265_v0, %v1259_v61 }
  0x98   :  { %v1325_v4 = vsel %vm4_vm0, %v3828_v2, %v3827_v1  ;;  %v3829_v5 = vld [vmem:[%s8240_s0 + $0x7c2] ss:$8 sm:$0xf]  }
  0x99   :  { %v3830_v6 = vld [vmem:[%s8240_s0 + $0x7c2] ss:$8 sm:$0xf0]  }
  0x9a   :  { %v1331_v7 = vsel %vm4_vm0, %v3830_v6, %v3829_v5  ;;  %v3821_v8 = vld [vmem:[%s8240_s0 + $0x602] ss:$8 sm:$0xf]  }
  0x9b   :  { %1224 = vrot.lane.b32.xlu0 %v1223_v53, %s4416_s26  ;;  %1290 = vrot.lane.b32.xlu1 %v1289_v60, %s4416_s26  ;;  %v3822_v9 = vld [vmem:[%s8240_s0 + $0x602] ss:$8 sm:$0xf0]   ;;  %v1333_v10 = vsel %vm1003_vm2, %v1331_v7, %v1325_v4 }
  0x9c   :  { %v1303_v11 = vsel %vm4_vm0, %v3822_v9, %v3821_v8  ;;  %v3823_v12 = vld [vmem:[%s8240_s0 + $0x6c2] ss:$8 sm:$0xf]  }
  0x9d   :  { %v3824_v13 = vld [vmem:[%s8240_s0 + $0x6c2] ss:$8 sm:$0xf0]  }
  0x9e   :  { %v1309_v14 = vsel %vm4_vm0, %v3824_v13, %v3823_v12  ;;  %v3839_v15 = vld [vmem:[%s8240_s0 + $0x1c2] ss:$8 sm:$0xf]  }
  0x9f   :  { %1268 = vrot.lane.b32.xlu0 %v1267_v3, %s4416_s26  ;;  %1334 = vrot.lane.b32.xlu1 %v1333_v10, %s4416_s26  ;;  %v3840_v16 = vld [vmem:[%s8240_s0 + $0x1c2] ss:$8 sm:$0xf0]   ;;  %v1311_v17 = vsel %vm1003_vm2, %v1309_v14, %v1303_v11 }
  0xa0   :  { %v1369_v18 = vsel %vm4_vm0, %v3840_v16, %v3839_v15  ;;  %v3841_v19 = vld [vmem:[%s8240_s0 + $0x182] ss:$8 sm:$0xf]  }
  0xa1   :  { %v3842_v20 = vld [vmem:[%s8240_s0 + $0x182] ss:$8 sm:$0xf0]  }
  0xa2   :  { %v1375_v21 = vsel %vm4_vm0, %v3842_v20, %v3841_v19  ;;  %v3833_v22 = vld [vmem:[%s8240_s0 + $0xc2] ss:$8 sm:$0xf]  }
  0xa3   :  { %1312 = vrot.lane.b32.xlu0 %v1311_v17, %s4416_s26  ;;  %v3834_v23 = vld [vmem:[%s8240_s0 + $0xc2] ss:$8 sm:$0xf0]   ;;  %v1377_v24 = vsel %vm1003_vm2, %v1375_v21, %v1369_v18 }
  0xa4   :  { %v1347_v25 = vsel %vm4_vm0, %v3834_v23, %v3833_v22  ;;  %v3835_v26 = vld [vmem:[%s8240_s0 + $0x82] ss:$8 sm:$0xf]   ;;  %1378 = vrot.lane.b32.xlu1 %v1377_v24, %s4416_s26 }
  0xa5   :  { %v3836_v27 = vld [vmem:[%s8240_s0 + $0x82] ss:$8 sm:$0xf0]  }
  0xa6   :  { %v1353_v28 = vsel %vm4_vm0, %v3836_v27, %v3835_v26  ;;  %v3851_v29 = vld [vmem:[%s8240_s0 + $0x3c2] ss:$8 sm:$0xf]  }
  0xa7   :  { %v3852_v30 = vld [vmem:[%s8240_s0 + $0x3c2] ss:$8 sm:$0xf0]   ;;  %v1355_v31 = vsel %vm1003_vm2, %v1353_v28, %v1347_v25  ;;  %v346_v25 = vpop.permute.xlu1 %345  }
  0xa8   :  { %v1413_v32 = vsel %vm4_vm0, %v3852_v30, %v3851_v29  ;;  %v3853_v33 = vld [vmem:[%s8240_s0 + $0x382] ss:$8 sm:$0xf]   ;;  %1356 = vrot.lane.b32.xlu0 %v1355_v31, %s4416_s26  ;;  %3562 = vst.msk [vmem:[%s8241_s1 + $0x100] sm:$0xff] %vm303_vm3, %v346_v25  }
  0xa9   :  { %v3854_v34 = vld [vmem:[%s8240_s0 + $0x382] ss:$8 sm:$0xf0]   ;;  %3563 = vst.msk [vmem:[%s8241_s1 + $0xe0] sm:$0xff] %vm306_vm4, %v346_v25  }
  0xaa   :  { %v1419_v35 = vsel %vm4_vm0, %v3854_v34, %v3853_v33  ;;  %v3845_v36 = vld [vmem:[%s8240_s0 + $0x2c2] ss:$8 sm:$0xf]   ;;  %v3942_v25 = vld [vmem:[%s8240_s0 + $0x487] ss:$8 sm:$0xf0]  }
  0xab   :  { %v3846_v37 = vld [vmem:[%s8240_s0 + $0x2c2] ss:$8 sm:$0xf0]   ;;  %v1421_v38 = vsel %vm1003_vm2, %v1419_v35, %v1413_v32  ;;  %v302_v32 = vpop.permute.xlu0 %301  }
  0xac   :  { %v1391_v39 = vsel %vm4_vm0, %v3846_v37, %v3845_v36  ;;  %v3847_v40 = vld [vmem:[%s8240_s0 + $0x282] ss:$8 sm:$0xf]   ;;  %1422 = vrot.lane.b32.xlu1 %v1421_v38, %s4416_s26  ;;  %3550 = vst.msk [vmem:[%s8241_s1 + $0x40] sm:$0xff] %vm303_vm3, %v302_v32  }
  0xad   :  { %v3848_v41 = vld [vmem:[%s8240_s0 + $0x282] ss:$8 sm:$0xf0]   ;;  %3551 = vst.msk [vmem:[%s8241_s1 + $0x20] sm:$0xff] %vm306_vm4, %v302_v32  }
  0xae   :  { %v1397_v42 = vsel %vm4_vm0, %v3848_v41, %v3847_v40  ;;  %v3863_v43 = vld [vmem:[%s8240_s0 + $0x5c2] ss:$8 sm:$0xf]   ;;  %v368_v41 = vpop.permute.xlu1 %367   ;;  %v3947_v32 = vld [vmem:[%s8240_s0 + $0x687] ss:$8 sm:$0xf]  }
  0xaf   :  { %v3864_v44 = vld [vmem:[%s8240_s0 + $0x5c2] ss:$8 sm:$0xf0]   ;;  %v1399_v45 = vsel %vm1003_vm2, %v1397_v42, %v1391_v39  ;;  %3568 = vst.msk [vmem:[%s8241_s1 + $0x160] sm:$0xff] %vm303_vm3, %v368_v41  }
  0xb0   :  { %v1457_v46 = vsel %vm4_vm0, %v3864_v44, %v3863_v43  ;;  %v3865_v47 = vld [vmem:[%s8240_s0 + $0x582] ss:$8 sm:$0xf]   ;;  %1400 = vrot.lane.b32.xlu0 %v1399_v45, %s4416_s26  ;;  %3569 = vst.msk [vmem:[%s8241_s1 + $0x140] sm:$0xff] %vm306_vm4, %v368_v41  }
  0xb1   :  { %v3866_v48 = vld [vmem:[%s8240_s0 + $0x582] ss:$8 sm:$0xf0]   ;;  %v3954_v41 = vld [vmem:[%s8240_s0 + $0x47] ss:$8 sm:$0xf0]  }
  0xb2   :  { %v1463_v49 = vsel %vm4_vm0, %v3866_v48, %v3865_v47  ;;  %v3857_v50 = vld [vmem:[%s8240_s0 + $0x4c2] ss:$8 sm:$0xf]   ;;  %v324_v48 = vpop.permute.xlu0 %323  }
  0xb3   :  { %v3858_v51 = vld [vmem:[%s8240_s0 + $0x4c2] ss:$8 sm:$0xf0]   ;;  %v1465_v52 = vsel %vm1003_vm2, %v1463_v49, %v1457_v46  ;;  %3556 = vst.msk [vmem:[%s8241_s1 + $0xa0] sm:$0xff] %vm303_vm3, %v324_v48  }
  0xb4   :  { %v1435_v53 = vsel %vm4_vm0, %v3858_v51, %v3857_v50  ;;  %v3859_v54 = vld [vmem:[%s8240_s0 + $0x482] ss:$8 sm:$0xf]   ;;  %1466 = vrot.lane.b32.xlu1 %v1465_v52, %s4416_s26  ;;  %3557 = vst.msk [vmem:[%s8241_s1 + $0x80] sm:$0xff] %vm306_vm4, %v324_v48  }
  0xb5   :  { %v3860_v55 = vld [vmem:[%s8240_s0 + $0x482] ss:$8 sm:$0xf0]   ;;  %v3959_v48 = vld [vmem:[%s8240_s0 + $0x247] ss:$8 sm:$0xf]  }
  0xb6   :  { %v1441_v56 = vsel %vm4_vm0, %v3860_v55, %v3859_v54  ;;  %v3875_v57 = vld [vmem:[%s8240_s0 + $0x7c2] ss:$8 sm:$0xf]  }
  0xb7   :  { %v3876_v58 = vld [vmem:[%s8240_s0 + $0x7c2] ss:$8 sm:$0xf0]   ;;  %v1443_v59 = vsel %vm1003_vm2, %v1441_v56, %v1435_v53 }
  0xb8   :  { %v1501_v60 = vsel %vm4_vm0, %v3876_v58, %v3875_v57  ;;  %v3877_v61 = vld [vmem:[%s8240_s0 + $0x782] ss:$8 sm:$0xf]   ;;  %1444 = vrot.lane.b32.xlu0 %v1443_v59, %s4416_s26  ;;  %v412_v57 = vpop.permute.xlu1 %411  }
  0xb9   :  { %v3878_v62 = vld [vmem:[%s8240_s0 + $0x782] ss:$8 sm:$0xf0]   ;;  %3580 = vst.msk [vmem:[%s8241_s1 + $0x220] sm:$0xff] %vm303_vm3, %v412_v57  }
  0xba   :  { %v1507_v63 = vsel %vm4_vm0, %v3878_v62, %v3877_v61  ;;  %v3869_v0 = vld [vmem:[%s8240_s0 + $0x6c2] ss:$8 sm:$0xf]   ;;  %3581 = vst.msk [vmem:[%s8241_s1 + $0x200] sm:$0xff] %vm306_vm4, %v412_v57  }
  0xbb   :  { %v3870_v1 = vld [vmem:[%s8240_s0 + $0x6c2] ss:$8 sm:$0xf0]   ;;  %v1509_v2 = vsel %vm1003_vm2, %v1507_v63, %v1501_v60  ;;  %v3966_v57 = vld [vmem:[%s8240_s0 + $0x447] ss:$8 sm:$0xf0]  }
  0xbc   :  { %v1479_v3 = vsel %vm4_vm0, %v3870_v1, %v3869_v0  ;;  %v3871_v4 = vld [vmem:[%s8240_s0 + $0x682] ss:$8 sm:$0xf]   ;;  %1510 = vrot.lane.b32.xlu1 %v1509_v2, %s4416_s26  ;;  %v390_v0 = vpop.permute.xlu0 %389  }
  0xbd   :  { %v3872_v5 = vld [vmem:[%s8240_s0 + $0x682] ss:$8 sm:$0xf0]   ;;  %3574 = vst.msk [vmem:[%s8241_s1 + $0x1c0] sm:$0xff] %vm303_vm3, %v390_v0  }
  0xbe   :  { %v1485_v6 = vsel %vm4_vm0, %v3872_v5, %v3871_v4  ;;  %v3887_v7 = vld [vmem:[%s8240_s0 + $0x182] ss:$8 sm:$0xf]   ;;  %v3932_v4 = vld [vmem:[%s8240_s0 + $0x187] ss:$8 sm:$0xf]  }
  0xbf   :  { %v3888_v8 = vld [vmem:[%s8240_s0 + $0x182] ss:$8 sm:$0xf0]   ;;  %v1487_v9 = vsel %vm1003_vm2, %v1485_v6, %v1479_v3  ;;  %3575 = vst.msk [vmem:[%s8241_s1 + $0x1a0] sm:$0xff] %vm306_vm4, %v390_v0  }
  0xc0   :  { %v1545_v10 = vsel %vm4_vm0, %v3888_v8, %v3887_v7  ;;  %v3889_v11 = vld [vmem:[%s8240_s0 + $0x142] ss:$8 sm:$0xf]   ;;  %1488 = vrot.lane.b32.xlu0 %v1487_v9, %s4416_s26  ;;  %v3933_v6 = vld [vmem:[%s8240_s0 + $0x187] ss:$8 sm:$0xf0]   ;;  %v456_v9 = vpop.permute.xlu1 %455  }
  0xc1   :  { %v3890_v12 = vld [vmem:[%s8240_s0 + $0x142] ss:$8 sm:$0xf0]   ;;  %v3929_v7 = vld [vmem:[%s8240_s0 + $0x87] ss:$8 sm:$0xf]  }
  0xc2   :  { %v1551_v13 = vsel %vm4_vm0, %v3890_v12, %v3889_v11  ;;  %v3881_v14 = vld [vmem:[%s8240_s0 + $0x82] ss:$8 sm:$0xf]   ;;  %v3930_v11 = vld [vmem:[%s8240_s0 + $0x87] ss:$8 sm:$0xf0]  }
  0xc3   :  { %v3882_v15 = vld [vmem:[%s8240_s0 + $0x82] ss:$8 sm:$0xf0]   ;;  %v1553_v16 = vsel %vm1003_vm2, %v1551_v13, %v1545_v10  ;;  %v1710_v10 = vsel %vm4_vm0, %v3933_v6, %v3932_v4  ;;  %3592 = vst.msk [vmem:[%s8241_s1 + $0x2e0] sm:$0xff] %vm303_vm3, %v456_v9  }
  0xc4   :  { %v1523_v17 = vsel %vm4_vm0, %v3882_v15, %v3881_v14  ;;  %v3883_v18 = vld [vmem:[%s8240_s0 + $0x42] ss:$8 sm:$0xf]   ;;  %1554 = vrot.lane.b32.xlu1 %v1553_v16, %s4416_s26  ;;  %3593 = vst.msk [vmem:[%s8241_s1 + $0x2c0] sm:$0xff] %vm306_vm4, %v456_v9   ;;  %v434_v14 = vpop.permute.xlu0 %433   ;;  %v1699_v15 = vsel %vm4_vm0, %v3930_v11, %v3929_v7 }
  0xc5   :  { %v3884_v19 = vld [vmem:[%s8240_s0 + $0x42] ss:$8 sm:$0xf0]   ;;  %v3938_v12 = vld [vmem:[%s8240_s0 + $0x387] ss:$8 sm:$0xf]  }
  0xc6   :  { %v1529_v20 = vsel %vm4_vm0, %v3884_v19, %v3883_v18  ;;  %v3899_v21 = vld [vmem:[%s8240_s0 + $0x382] ss:$8 sm:$0xf]   ;;  %v3939_v13 = vld [vmem:[%s8240_s0 + $0x387] ss:$8 sm:$0xf0]   ;;  %v500_v18 = vpop.permute.xlu1 %499  }
  0xc7   :  { %v1531_v22 = vsel %vm1003_vm2, %v1529_v20, %v1523_v17  ;;  %v3900_v23 = vld [vmem:[%s8240_s0 + $0x382] ss:$8 sm:$0xf0]   ;;  %3586 = vst.msk [vmem:[%s8241_s1 + $0x280] sm:$0xff] %vm303_vm3, %v434_v14   ;;  %v1732_v19 = vsel %vm4_vm0, %v3939_v13, %v3938_v12  ;;  %3604 = vst.msk [vmem:[%s8241_s1 + $0x88] sm:$0xff] %vm303_vm3, %v500_v18  }
  0xc8   :  { %v3901_v24 = vld [vmem:[%s8240_s0 + $0x342] ss:$8 sm:$0xf]   ;;  %1532 = vrot.lane.b32.xlu0 %v1531_v22, %s4416_s26  ;;  %v1589_v26 = vsel %vm4_vm0, %v3900_v23, %v3899_v21  ;;  %3587 = vst.msk [vmem:[%s8241_s1 + $0x260] sm:$0xff] %vm306_vm4, %v434_v14   ;;  %3605 = vst.msk [vmem:[%s8241_s1 + $0x68] sm:$0xff] %vm306_vm4, %v500_v18   ;;  %v478_v22 = vpop.permute.xlu0 %477  }
  0xc9   :  { %v3902_v27 = vld [vmem:[%s8240_s0 + $0x342] ss:$8 sm:$0xf0]   ;;  %v3935_v16 = vld [vmem:[%s8240_s0 + $0x287] ss:$8 sm:$0xf]  }
  0xca   :  { %v3893_v28 = vld [vmem:[%s8240_s0 + $0x282] ss:$8 sm:$0xf]   ;;  %v1595_v29 = vsel %vm4_vm0, %v3902_v27, %v3901_v24  ;;  %v3936_v17 = vld [vmem:[%s8240_s0 + $0x287] ss:$8 sm:$0xf0]  }
  0xcb   :  { %v3894_v30 = vld [vmem:[%s8240_s0 + $0x282] ss:$8 sm:$0xf0]   ;;  %v1597_v33 = vsel %vm1003_vm2, %v1595_v29, %v1589_v26  ;;  %v3944_v20 = vld [vmem:[%s8240_s0 + $0x587] ss:$8 sm:$0xf]   ;;  %v1721_v23 = vsel %vm4_vm0, %v3936_v17, %v3935_v16  ;;  %v544_v26 = vpop.permute.xlu1 %543  }
  0xcc   :  { %v3895_v31 = vld [vmem:[%s8240_s0 + $0x242] ss:$8 sm:$0xf]   ;;  %v1567_v34 = vsel %vm4_vm0, %v3894_v30, %v3893_v28  ;;  %1598 = vrot.lane.b32.xlu1 %v1597_v33, %s4416_s26  ;;  %v3945_v21 = vld [vmem:[%s8240_s0 + $0x587] ss:$8 sm:$0xf0]   ;;  %v522_v30 = vpop.permute.xlu0 %521  }
  0xcd   :  { %v3896_v35 = vld [vmem:[%s8240_s0 + $0x242] ss:$8 sm:$0xf0]   ;;  %3598 = vst.msk [vmem:[%s8241_s1 + $0x28] sm:$0xff] %vm303_vm3, %v478_v22   ;;  %v1754_v27 = vsel %vm4_vm0, %v3945_v21, %v3944_v20  ;;  %3616 = vst.msk [vmem:[%s8241_s1 + $0x148] sm:$0xff] %vm303_vm3, %v544_v26  }
  0xce   :  { %v3911_v36 = vld [vmem:[%s8240_s0 + $0x582] ss:$8 sm:$0xf]   ;;  %v1573_v37 = vsel %vm4_vm0, %v3896_v35, %v3895_v31  ;;  %3599 = vst.msk [vmem:[%s8241_s1 + $0x8] sm:$0xff] %vm306_vm4, %v478_v22   ;;  %3617 = vst.msk [vmem:[%s8241_s1 + $0x128] sm:$0xff] %vm306_vm4, %v544_v26  }
  0xcf   :  { %v3912_v38 = vld [vmem:[%s8240_s0 + $0x582] ss:$8 sm:$0xf0]   ;;  %v1575_v40 = vsel %vm1003_vm2, %v1573_v37, %v1567_v34  ;;  %v3941_v24 = vld [vmem:[%s8240_s0 + $0x487] ss:$8 sm:$0xf]   ;;  %v588_v34 = vpop.permute.xlu1 %587  }
  0xd0   :  { %v3913_v39 = vld [vmem:[%s8240_s0 + $0x542] ss:$8 sm:$0xf]   ;;  %v1633_v42 = vsel %vm4_vm0, %v3912_v38, %v3911_v36  ;;  %1576 = vrot.lane.b32.xlu0 %v1575_v40, %s4416_s26  ;;  %v3950_v28 = vld [vmem:[%s8240_s0 + $0x787] ss:$8 sm:$0xf]   ;;  %v1743_v31 = vsel %vm4_vm0, %v3942_v25, %v3941_v24  ;;  %v566_v38 = vpop.permute.xlu0 %565  }
  0xd1   :  { %v3914_v43 = vld [vmem:[%s8240_s0 + $0x542] ss:$8 sm:$0xf0]   ;;  %v3951_v29 = vld [vmem:[%s8240_s0 + $0x787] ss:$8 sm:$0xf0]  }
  0xd2   :  { %v3905_v44 = vld [vmem:[%s8240_s0 + $0x482] ss:$8 sm:$0xf]   ;;  %v1639_v45 = vsel %vm4_vm0, %v3914_v43, %v3913_v39  ;;  %3610 = vst.msk [vmem:[%s8241_s1 + $0xe8] sm:$0xff] %vm303_vm3, %v522_v30   ;;  %v1776_v35 = vsel %vm4_vm0, %v3951_v29, %v3950_v28  ;;  %3628 = vst.msk [vmem:[%s8241_s1 + $0x208] sm:$0xff] %vm303_vm3, %v588_v34  }
  0xd3   :  { %v3906_v46 = vld [vmem:[%s8240_s0 + $0x482] ss:$8 sm:$0xf0]   ;;  %v1641_v49 = vsel %vm1003_vm2, %v1639_v45, %v1633_v42  ;;  %3611 = vst.msk [vmem:[%s8241_s1 + $0xc8] sm:$0xff] %vm306_vm4, %v522_v30   ;;  %3629 = vst.msk [vmem:[%s8241_s1 + $0x1e8] sm:$0xff] %vm306_vm4, %v588_v34   ;;  %v632_v42 = vpop.permute.xlu1 %631  }
  0xd4   :  { %v3907_v47 = vld [vmem:[%s8240_s0 + $0x442] ss:$8 sm:$0xf]   ;;  %v1611_v50 = vsel %vm4_vm0, %v3906_v46, %v3905_v44  ;;  %1642 = vrot.lane.b32.xlu1 %v1641_v49, %s4416_s26  ;;  %v3948_v33 = vld [vmem:[%s8240_s0 + $0x687] ss:$8 sm:$0xf0]   ;;  %v610_v46 = vpop.permute.xlu0 %609  }
  0xd5   :  { %v3908_v51 = vld [vmem:[%s8240_s0 + $0x442] ss:$8 sm:$0xf0]   ;;  %v3956_v36 = vld [vmem:[%s8240_s0 + $0x147] ss:$8 sm:$0xf]   ;;  %v1765_v39 = vsel %vm4_vm0, %v3948_v33, %v3947_v32 }
  0xd6   :  { %v3923_v52 = vld [vmem:[%s8240_s0 + $0x782] ss:$8 sm:$0xf]   ;;  %v1617_v53 = vsel %vm4_vm0, %v3908_v51, %v3907_v47  ;;  %v3957_v37 = vld [vmem:[%s8240_s0 + $0x147] ss:$8 sm:$0xf0]  }
  0xd7   :  { %v3924_v54 = vld [vmem:[%s8240_s0 + $0x782] ss:$8 sm:$0xf0]   ;;  %v1619_v56 = vsel %vm1003_vm2, %v1617_v53, %v1611_v50  ;;  %3622 = vst.msk [vmem:[%s8241_s1 + $0x1a8] sm:$0xff] %vm303_vm3, %v566_v38   ;;  %v1798_v43 = vsel %vm4_vm0, %v3957_v37, %v3956_v36  ;;  %3640 = vst.msk [vmem:[%s8241_s1 + $0x2c8] sm:$0xff] %vm303_vm3, %v632_v42   ;;  %v676_v50 = vpop.permute.xlu1 %675  }
  0xd8   :  { %v3925_v55 = vld [vmem:[%s8240_s0 + $0x742] ss:$8 sm:$0xf]   ;;  %v1677_v58 = vsel %vm4_vm0, %v3924_v54, %v3923_v52  ;;  %1620 = vrot.lane.b32.xlu0 %v1619_v56, %s4416_s26  ;;  %3623 = vst.msk [vmem:[%s8241_s1 + $0x188] sm:$0xff] %vm306_vm4, %v566_v38   ;;  %3641 = vst.msk [vmem:[%s8241_s1 + $0x2a8] sm:$0xff] %vm306_vm4, %v632_v42   ;;  %v654_v54 = vpop.permute.xlu0 %653  }
  0xd9   :  { %v3926_v59 = vld [vmem:[%s8240_s0 + $0x742] ss:$8 sm:$0xf0]   ;;  %v3953_v40 = vld [vmem:[%s8240_s0 + $0x47] ss:$8 sm:$0xf]  }
  0xda   :  { %v3917_v60 = vld [vmem:[%s8240_s0 + $0x682] ss:$8 sm:$0xf]   ;;  %v1683_v61 = vsel %vm4_vm0, %v3926_v59, %v3925_v55  ;;  %v3962_v44 = vld [vmem:[%s8240_s0 + $0x347] ss:$8 sm:$0xf]   ;;  %v1787_v47 = vsel %vm4_vm0, %v3954_v41, %v3953_v40 }
  0xdb   :  { %v3918_v62 = vld [vmem:[%s8240_s0 + $0x682] ss:$8 sm:$0xf0]   ;;  %v1685_v1 = vsel %vm1003_vm2, %v1683_v61, %v1677_v58  ;;  %v3963_v45 = vld [vmem:[%s8240_s0 + $0x347] ss:$8 sm:$0xf0]   ;;  %v720_v58 = vpop.permute.xlu1 %719  }
  0xdc   :  { %v3919_v63 = vld [vmem:[%s8240_s0 + $0x642] ss:$8 sm:$0xf]   ;;  %v1655_v2 = vsel %vm4_vm0, %v3918_v62, %v3917_v60  ;;  %1686 = vrot.lane.b32.xlu1 %v1685_v1, %s4416_s26  ;;  %3634 = vst.msk [vmem:[%s8241_s1 + $0x268] sm:$0xff] %vm303_vm3, %v610_v46   ;;  %v1820_v51 = vsel %vm4_vm0, %v3963_v45, %v3962_v44  ;;  %3652 = vst.msk [vmem:[%s8241_s1 + $0x70] sm:$0xff] %vm303_vm3, %v676_v50   ;;  %v698_v0 = vpop.permute.xlu0 %697  }
  0xdd   :  { %v3920_v3 = vld [vmem:[%s8240_s0 + $0x642] ss:$8 sm:$0xf0]   ;;  %3635 = vst.msk [vmem:[%s8241_s1 + $0x248] sm:$0xff] %vm306_vm4, %v610_v46   ;;  %3653 = vst.msk [vmem:[%s8241_s1 + $0xb0] sm:$0xff] %vm306_vm4, %v676_v50  }
  0xde   :  { %v1661_v5 = vsel %vm4_vm0, %v3920_v3, %v3919_v63  ;;  %v3960_v49 = vld [vmem:[%s8240_s0 + $0x247] ss:$8 sm:$0xf0]   ;;  %3646 = vst.msk [vmem:[%s8241_s1 + $0x10] sm:$0xff] %vm303_vm3, %v654_v54   ;;  %3664 = vst.msk [vmem:[%s8241_s1 + $0x130] sm:$0xff] %vm303_vm3, %v720_v58  }
  0xdf   :  { %v1663_v8 = vsel %vm1003_vm2, %v1661_v5, %v1655_v2  ;;  %v3968_v52 = vld [vmem:[%s8240_s0 + $0x547] ss:$8 sm:$0xf]   ;;  %v1809_v55 = vsel %vm4_vm0, %v3960_v49, %v3959_v48  ;;  %3647 = vst.msk [vmem:[%s8241_s1 + $0x50] sm:$0xff] %vm306_vm4, %v654_v54   ;;  %3665 = vst.msk [vmem:[%s8241_s1 + $0x170] sm:$0xff] %vm306_vm4, %v720_v58  }
  0xe0   :  { %1664 = vrot.lane.b32.xlu0 %v1663_v8, %s4416_s26  ;;  %1711 = vrot.lane.b32.xlu1 %v1710_v10, %s4417_s30  ;;  %v3969_v53 = vld [vmem:[%s8240_s0 + $0x547] ss:$8 sm:$0xf0]   ;;  %v3462_v62 = vld [vmem:[%s8240_s0 + $0x100] ss:$8 sm:$0xf]   ;;  %v764_v8 = vpop.permute.xlu1 %763   ;;  %v742_v14 = vpop.permute.xlu0 %741  }
  0xe1   :  { %v3965_v56 = vld [vmem:[%s8240_s0 + $0x447] ss:$8 sm:$0xf]   ;;  %v1842_v59 = vsel %vm4_vm0, %v3969_v53, %v3968_v52  ;;  %v3463_v63 = vld [vmem:[%s8240_s0 + $0x100] ss:$8 sm:$0xf0]  }
  0xe2   :  { %v3974_v60 = vld [vmem:[%s8240_s0 + $0x747] ss:$8 sm:$0xf]   ;;  %v1831_v1 = vsel %vm4_vm0, %v3966_v57, %v3965_v56  ;;  %v40_v2 = vsel %vm4_vm0, %v3463_v63, %v3462_v62  ;;  %v2_v3 = vld [vmem:[%s8240_s0] ss:$8 sm:$0xf]  }
  0xe3   :  { %v3975_v61 = vld [vmem:[%s8240_s0 + $0x747] ss:$8 sm:$0xf0]   ;;  %v3_v4 = vld [vmem:[%s8240_s0] ss:$8 sm:$0xf0]  }
  0xe4   :  { %1700 = vrot.lane.b32.xlu0 %v1699_v15, %s4417_s30  ;;  %1733 = vrot.lane.b32.xlu1 %v1732_v19, %s4417_s30  ;;  %3658 = vst.msk [vmem:[%s8241_s1 + $0xd0] sm:$0xff] %vm303_vm3, %v698_v0   ;;  %v3971_v5 = vld [vmem:[%s8240_s0 + $0x647] ss:$8 sm:$0xf]   ;;  %v5_v7 = vsel %vm4_vm0, %v3_v4, %v2_v3  ;;  %v1864_v9 = vsel %vm4_vm0, %v3975_v61, %v3974_v60  ;;  %v808_v22 = vpop.permute.xlu1 %807   ;;  %v786_v28 = vpop.permute.xlu0 %785  }
  0xe5   :  { %3659 = vst.msk [vmem:[%s8241_s1 + $0x110] sm:$0xff] %vm306_vm4, %v698_v0   ;;  %v3972_v6 = vld [vmem:[%s8240_s0 + $0x647] ss:$8 sm:$0xf0]   ;;  %3677 = vst.msk [vmem:[%s8241_s1 + $0x230] sm:$0xff] %vm306_vm4, %v764_v8  }
  0xe6   :  { %3464 = vst.msk [vmem:[%s8241_s1 + $0x60] sm:$0xff] %vm6_vm5, %v40_v2   ;;  %v3980_v10 = vld [vmem:[%s8240_s0 + $0x107] ss:$8 sm:$0xf]   ;;  %7 = vst.msk [vmem:[%s8241_s1] sm:$0xff] %vm6_vm5, %v5_v7   ;;  %v1853_v15 = vsel %vm4_vm0, %v3972_v6, %v3971_v5 }
  0xe7   :  { %v3981_v11 = vld [vmem:[%s8240_s0 + $0x107] ss:$8 sm:$0xf0]   ;;  %3676 = vst.msk [vmem:[%s8241_s1 + $0x1f0] sm:$0xff] %vm303_vm3, %v764_v8   ;;  %3670 = vst.msk [vmem:[%s8241_s1 + $0x190] sm:$0xff] %vm303_vm3, %v742_v14  }
  0xe8   :  { %1722 = vrot.lane.b32.xlu0 %v1721_v23, %s4417_s30  ;;  %1755 = vrot.lane.b32.xlu1 %v1754_v27, %s4417_s30  ;;  %v3486_v12 = vld [vmem:[%s8240_s0 + $0x300] ss:$8 sm:$0xf]   ;;  %3671 = vst.msk [vmem:[%s8241_s1 + $0x1d0] sm:$0xff] %vm306_vm4, %v742_v14   ;;  %v1886_v23 = vsel %vm4_vm0, %v3981_v11, %v3980_v10  ;;  %v852_v36 = vpop.permute.xlu1 %851   ;;  %v830_v42 = vpop.permute.xlu0 %829  }
  0xe9   :  { %v3487_v13 = vld [vmem:[%s8240_s0 + $0x300] ss:$8 sm:$0xf0]   ;;  %v3977_v19 = vld [vmem:[%s8240_s0 + $0x7] ss:$8 sm:$0xf]  }
  0xea   :  { %v112_v16 = vsel %vm4_vm0, %v3487_v13, %v3486_v12  ;;  %v3474_v17 = vld [vmem:[%s8240_s0 + $0x200] ss:$8 sm:$0xf]   ;;  %v3978_v20 = vld [vmem:[%s8240_s0 + $0x7] ss:$8 sm:$0xf0]  }
  0xeb   :  { %v3475_v18 = vld [vmem:[%s8240_s0 + $0x200] ss:$8 sm:$0xf0]   ;;  %3488 = vst.msk [vmem:[%s8241_s1 + $0x120] sm:$0xff] %vm6_vm5, %v112_v16   ;;  %v1875_v29 = vsel %vm4_vm0, %v3978_v20, %v3977_v19 }
  0xec   :  { %1744 = vrot.lane.b32.xlu0 %v1743_v31, %s4417_s30  ;;  %1777 = vrot.lane.b32.xlu1 %v1776_v35, %s4417_s30  ;;  %v76_v21 = vsel %vm4_vm0, %v3475_v18, %v3474_v17  ;;  %v3986_v24 = vld [vmem:[%s8240_s0 + $0x307] ss:$8 sm:$0xf]   ;;  %3688 = vst.msk [vmem:[%s8241_s1 + $0x2b0] sm:$0xff] %vm303_vm3, %v808_v22   ;;  %v896_v50 = vpop.permute.xlu1 %895   ;;  %v874_v56 = vpop.permute.xlu0 %873  }
  0xed   :  { %v3987_v25 = vld [vmem:[%s8240_s0 + $0x307] ss:$8 sm:$0xf0]   ;;  %3476 = vst.msk [vmem:[%s8241_s1 + $0xc0] sm:$0xff] %vm6_vm5, %v76_v21  }
  0xee   :  { %3689 = vst.msk [vmem:[%s8241_s1 + $0x2f0] sm:$0xff] %vm306_vm4, %v808_v22   ;;  %v3510_v26 = vld [vmem:[%s8240_s0 + $0x500] ss:$8 sm:$0xf]   ;;  %3683 = vst.msk [vmem:[%s8241_s1 + $0x290] sm:$0xff] %vm306_vm4, %v786_v28   ;;  %v1908_v37 = vsel %vm4_vm0, %v3987_v25, %v3986_v24 }
  0xef   :  { %v3511_v27 = vld [vmem:[%s8240_s0 + $0x500] ss:$8 sm:$0xf0]   ;;  %3682 = vst.msk [vmem:[%s8241_s1 + $0x250] sm:$0xff] %vm303_vm3, %v786_v28   ;;  %3700 = vst.msk [vmem:[%s8241_s1 + $0xb8] sm:$0xff] %vm303_vm3, %v852_v36  }
  0xf0   :  { %1766 = vrot.lane.b32.xlu0 %v1765_v39, %s4417_s30  ;;  %1799 = vrot.lane.b32.xlu1 %v1798_v43, %s4417_s30  ;;  %v184_v30 = vsel %vm4_vm0, %v3511_v27, %v3510_v26  ;;  %v3498_v31 = vld [vmem:[%s8240_s0 + $0x400] ss:$8 sm:$0xf]   ;;  %v3983_v33 = vld [vmem:[%s8240_s0 + $0x207] ss:$8 sm:$0xf]   ;;  %v940_v0 = vpop.permute.xlu1 %939   ;;  %v918_v7 = vpop.permute.xlu0 %917  }
  0xf1   :  { %v3499_v32 = vld [vmem:[%s8240_s0 + $0x400] ss:$8 sm:$0xf0]   ;;  %v3984_v34 = vld [vmem:[%s8240_s0 + $0x207] ss:$8 sm:$0xf0]  }
  0xf2   :  { %3512 = vst.msk [vmem:[%s8241_s1 + $0x1e0] sm:$0xff] %vm6_vm5, %v184_v30   ;;  %v148_v35 = vsel %vm4_vm0, %v3499_v32, %v3498_v31  ;;  %v3992_v38 = vld [vmem:[%s8240_s0 + $0x507] ss:$8 sm:$0xf]   ;;  %v1897_v43 = vsel %vm4_vm0, %v3984_v34, %v3983_v33 }
  0xf3   :  { %v3993_v39 = vld [vmem:[%s8240_s0 + $0x507] ss:$8 sm:$0xf0]   ;;  %3500 = vst.msk [vmem:[%s8241_s1 + $0x180] sm:$0xff] %vm6_vm5, %v148_v35  }
  0xf4   :  { %1788 = vrot.lane.b32.xlu0 %v1787_v47, %s4417_s30  ;;  %1821 = vrot.lane.b32.xlu1 %v1820_v51, %s4417_s30  ;;  %3701 = vst.msk [vmem:[%s8241_s1 + $0x98] sm:$0xff] %vm306_vm4, %v852_v36   ;;  %v3534_v40 = vld [vmem:[%s8240_s0 + $0x700] ss:$8 sm:$0xf]   ;;  %v1930_v51 = vsel %vm4_vm0, %v3993_v39, %v3992_v38  ;;  %v984_v14 = vpop.permute.xlu1 %983  }
  0xf5   :  { %v3535_v41 = vld [vmem:[%s8240_s0 + $0x700] ss:$8 sm:$0xf0]   ;;  %3694 = vst.msk [vmem:[%s8241_s1 + $0x58] sm:$0xff] %vm303_vm3, %v830_v42   ;;  %3712 = vst.msk [vmem:[%s8241_s1 + $0x178] sm:$0xff] %vm303_vm3, %v896_v50   ;;  %v962_v20 = vpop.permute.xlu0 %961  }
  0xf6   :  { %v256_v44 = vsel %vm4_vm0, %v3535_v41, %v3534_v40  ;;  %v3522_v45 = vld [vmem:[%s8240_s0 + $0x600] ss:$8 sm:$0xf]   ;;  %3695 = vst.msk [vmem:[%s8241_s1 + $0x38] sm:$0xff] %vm306_vm4, %v830_v42   ;;  %3713 = vst.msk [vmem:[%s8241_s1 + $0x158] sm:$0xff] %vm306_vm4, %v896_v50  }
  0xf7   :  { %v3523_v46 = vld [vmem:[%s8240_s0 + $0x600] ss:$8 sm:$0xf0]   ;;  %v3989_v47 = vld [vmem:[%s8240_s0 + $0x407] ss:$8 sm:$0xf]  }
  0xf8   :  { %1810 = vrot.lane.b32.xlu0 %v1809_v55, %s4417_s30  ;;  %1843 = vrot.lane.b32.xlu1 %v1842_v59, %s4417_s30  ;;  %v3990_v48 = vld [vmem:[%s8240_s0 + $0x407] ss:$8 sm:$0xf0]   ;;  %3536 = vst.msk [vmem:[%s8241_s1 + $0x2a0] sm:$0xff] %vm6_vm5, %v256_v44   ;;  %v220_v49 = vsel %vm4_vm0, %v3523_v46, %v3522_v45  ;;  %v1027_v28 = vpop.permute.xlu1 %1026  }
  0xf9   :  { %v3998_v52 = vld [vmem:[%s8240_s0 + $0x707] ss:$8 sm:$0xf]   ;;  %3524 = vst.msk [vmem:[%s8241_s1 + $0x240] sm:$0xff] %vm6_vm5, %v220_v49   ;;  %v1919_v57 = vsel %vm4_vm0, %v3990_v48, %v3989_v47  ;;  %v1006_v34 = vpop.permute.xlu0 %1005  }
  0xfa   :  { %v3999_v53 = vld [vmem:[%s8240_s0 + $0x707] ss:$8 sm:$0xf0]   ;;  %v3471_v54 = vld [vmem:[%s8240_s0 + $0x1c0] ss:$8 sm:$0xf]  }
  0xfb   :  { %v3472_v55 = vld [vmem:[%s8240_s0 + $0x1c0] ss:$8 sm:$0xf0]   ;;  %3706 = vst.msk [vmem:[%s8241_s1 + $0x118] sm:$0xff] %vm303_vm3, %v874_v56   ;;  %3724 = vst.msk [vmem:[%s8241_s1 + $0x238] sm:$0xff] %vm303_vm3, %v940_v0  }
  0xfc   :  { %1832 = vrot.lane.b32.xlu0 %v1831_v1, %s4417_s30  ;;  %1865 = vrot.lane.b32.xlu1 %v1864_v9, %s4417_s30  ;;  %v67_v58 = vsel %vm4_vm0, %v3472_v55, %v3471_v54  ;;  %v3459_v59 = vld [vmem:[%s8240_s0 + $0xc0] ss:$8 sm:$0xf]   ;;  %3707 = vst.msk [vmem:[%s8241_s1 + $0xf8] sm:$0xff] %vm306_vm4, %v874_v56   ;;  %v1952_v1 = vsel %vm4_vm0, %v3999_v53, %v3998_v52  ;;  %v1071_v42 = vpop.permute.xlu1 %1070  }
  0xfd   :  { %v3460_v60 = vld [vmem:[%s8240_s0 + $0xc0] ss:$8 sm:$0xf0]   ;;  %v3995_v61 = vld [vmem:[%s8240_s0 + $0x607] ss:$8 sm:$0xf]   ;;  %v1049_v48 = vpop.permute.xlu0 %1048  }
  0xfe   :  { %v3996_v62 = vld [vmem:[%s8240_s0 + $0x607] ss:$8 sm:$0xf0]   ;;  %3473 = vst.msk [vmem:[%s8241_s1 + $0xa8] sm:$0xff] %vm6_vm5, %v67_v58   ;;  %v31_v63 = vsel %vm4_vm0, %v3460_v60, %v3459_v59 }
  0xff   :  { %v4004_v2 = vld [vmem:[%s8240_s0 + $0x1c7] ss:$8 sm:$0xf]   ;;  %3461 = vst.msk [vmem:[%s8241_s1 + $0x48] sm:$0xff] %vm6_vm5, %v31_v63   ;;  %v1941_v8 = vsel %vm4_vm0, %v3996_v62, %v3995_v61 }
 0x100   :  { %1854 = vrot.lane.b32.xlu0 %v1853_v15, %s4417_s30  ;;  %1887 = vrot.lane.b32.xlu1 %v1886_v23, %s4417_s30  ;;  %v4005_v3 = vld [vmem:[%s8240_s0 + $0x1c7] ss:$8 sm:$0xf0]   ;;  %3725 = vst.msk [vmem:[%s8241_s1 + $0x218] sm:$0xff] %vm306_vm4, %v940_v0   ;;  %v1115_v56 = vpop.permute.xlu1 %1114  }
 0x101   :  { %v4001_v4 = vld [vmem:[%s8240_s0 + $0xc7] ss:$8 sm:$0xf]   ;;  %v3495_v5 = vld [vmem:[%s8240_s0 + $0x3c0] ss:$8 sm:$0xf]   ;;  %v1974_v15 = vsel %vm4_vm0, %v4005_v3, %v4004_v2  ;;  %v1093_v62 = vpop.permute.xlu0 %1092  }
 0x102   :  { %v3496_v6 = vld [vmem:[%s8240_s0 + $0x3c0] ss:$8 sm:$0xf0]   ;;  %3718 = vst.msk [vmem:[%s8241_s1 + $0x1d8] sm:$0xff] %vm303_vm3, %v918_v7   ;;  %3736 = vst.msk [vmem:[%s8241_s1 + $0x2f8] sm:$0xff] %vm303_vm3, %v984_v14  }
 0x103   :  { %v139_v9 = vsel %vm4_vm0, %v3496_v6, %v3495_v5  ;;  %v3483_v10 = vld [vmem:[%s8240_s0 + $0x2c0] ss:$8 sm:$0xf]   ;;  %3719 = vst.msk [vmem:[%s8241_s1 + $0x1b8] sm:$0xff] %vm306_vm4, %v918_v7   ;;  %3737 = vst.msk [vmem:[%s8241_s1 + $0x2d8] sm:$0xff] %vm306_vm4, %v984_v14  }
 0x104   :  { %1876 = vrot.lane.b32.xlu0 %v1875_v29, %s4417_s30  ;;  %1909 = vrot.lane.b32.xlu1 %v1908_v37, %s4417_s30  ;;  %v3484_v11 = vld [vmem:[%s8240_s0 + $0x2c0] ss:$8 sm:$0xf0]   ;;  %v4002_v12 = vld [vmem:[%s8240_s0 + $0xc7] ss:$8 sm:$0xf0]   ;;  %v1159_v6 = vpop.permute.xlu1 %1158  }
 0x105   :  { %3497 = vst.msk [vmem:[%s8241_s1 + $0x168] sm:$0xff] %vm6_vm5, %v139_v9   ;;  %v103_v13 = vsel %vm4_vm0, %v3484_v11, %v3483_v10  ;;  %v4010_v16 = vld [vmem:[%s8240_s0 + $0x3c7] ss:$8 sm:$0xf]   ;;  %v1963_v21 = vsel %vm4_vm0, %v4002_v12, %v4001_v4  ;;  %v1137_v12 = vpop.permute.xlu0 %1136  }
 0x106   :  { %v4011_v17 = vld [vmem:[%s8240_s0 + $0x3c7] ss:$8 sm:$0xf0]   ;;  %3485 = vst.msk [vmem:[%s8241_s1 + $0x108] sm:$0xff] %vm6_vm5, %v103_v13  }
 0x107   :  { %v3519_v18 = vld [vmem:[%s8240_s0 + $0x5c0] ss:$8 sm:$0xf]   ;;  %3730 = vst.msk [vmem:[%s8241_s1 + $0x298] sm:$0xff] %vm303_vm3, %v962_v20   ;;  %v1996_v29 = vsel %vm4_vm0, %v4011_v17, %v4010_v16 }
 0x108   :  { %1898 = vrot.lane.b32.xlu0 %v1897_v43, %s4417_s30  ;;  %1931 = vrot.lane.b32.xlu1 %v1930_v51, %s4417_s30  ;;  %v3520_v19 = vld [vmem:[%s8240_s0 + $0x5c0] ss:$8 sm:$0xf0]   ;;  %3731 = vst.msk [vmem:[%s8241_s1 + $0x278] sm:$0xff] %vm306_vm4, %v962_v20   ;;  %v1203_v20 = vpop.permute.xlu1 %1202  }
 0x109   :  { %v211_v22 = vsel %vm4_vm0, %v3520_v19, %v3519_v18  ;;  %v3507_v23 = vld [vmem:[%s8240_s0 + $0x4c0] ss:$8 sm:$0xf]   ;;  %v4007_v25 = vld [vmem:[%s8240_s0 + $0x2c7] ss:$8 sm:$0xf]  }
 0x10a   :  { %v3508_v24 = vld [vmem:[%s8240_s0 + $0x4c0] ss:$8 sm:$0xf0]   ;;  %v4008_v26 = vld [vmem:[%s8240_s0 + $0x2c7] ss:$8 sm:$0xf0]  }
 0x10b   :  { %3521 = vst.msk [vmem:[%s8241_s1 + $0x228] sm:$0xff] %vm6_vm5, %v211_v22   ;;  %v175_v27 = vsel %vm4_vm0, %v3508_v24, %v3507_v23  ;;  %v4016_v30 = vld [vmem:[%s8240_s0 + $0x5c7] ss:$8 sm:$0xf]   ;;  %v1985_v35 = vsel %vm4_vm0, %v4008_v26, %v4007_v25  ;;  %v1181_v26 = vpop.permute.xlu0 %1180  }
 0x10c   :  { %1920 = vrot.lane.b32.xlu0 %v1919_v57, %s4417_s30  ;;  %1953 = vrot.lane.b32.xlu1 %v1952_v1, %s4417_s30  ;;  %v4017_v31 = vld [vmem:[%s8240_s0 + $0x5c7] ss:$8 sm:$0xf0]   ;;  %3509 = vst.msk [vmem:[%s8241_s1 + $0x1c8] sm:$0xff] %vm6_vm5, %v175_v27  }
 0x10d   :  { %3747 = vst.msk [vmem:[%s8241_s1 + $0x80] sm:$0xff] %vm1007_vm6, %v1027_v28   ;;  %v3543_v32 = vld [vmem:[%s8240_s0 + $0x7c0] ss:$8 sm:$0xf]   ;;  %3742 = vst.msk [vmem:[%s8241_s1 + $0x20] sm:$0xff] %vm1007_vm6, %v1006_v34   ;;  %v2018_v43 = vsel %vm4_vm0, %v4017_v31, %v4016_v30 }
 0x10e   :  { %3748 = vst.msk [vmem:[%s8241_s1 + $0x60] sm:$0xff] %vm1010_vm7, %v1027_v28   ;;  %v3544_v33 = vld [vmem:[%s8240_s0 + $0x7c0] ss:$8 sm:$0xf0]   ;;  %1011 = vst.msk [vmem:[%s8241_s1] sm:$0xff] %vm1010_vm7, %v1006_v34   ;;  %v1247_v34 = vpop.permute.xlu1 %1246  }
 0x10f   :  { %v283_v36 = vsel %vm4_vm0, %v3544_v33, %v3543_v32  ;;  %v3531_v37 = vld [vmem:[%s8240_s0 + $0x6c0] ss:$8 sm:$0xf]   ;;  %v4013_v39 = vld [vmem:[%s8240_s0 + $0x4c7] ss:$8 sm:$0xf]  }
 0x110   :  { %1942 = vrot.lane.b32.xlu0 %v1941_v8, %s4417_s30  ;;  %1975 = vrot.lane.b32.xlu1 %v1974_v15, %s4417_s30  ;;  %v3532_v38 = vld [vmem:[%s8240_s0 + $0x6c0] ss:$8 sm:$0xf0]   ;;  %v4014_v40 = vld [vmem:[%s8240_s0 + $0x4c7] ss:$8 sm:$0xf0]  }
 0x111   :  { %3545 = vst.msk [vmem:[%s8241_s1 + $0x2e8] sm:$0xff] %vm6_vm5, %v283_v36   ;;  %v247_v41 = vsel %vm4_vm0, %v3532_v38, %v3531_v37  ;;  %v4022_v44 = vld [vmem:[%s8240_s0 + $0x7c7] ss:$8 sm:$0xf]   ;;  %v2007_v49 = vsel %vm4_vm0, %v4014_v40, %v4013_v39  ;;  %v1225_v40 = vpop.permute.xlu0 %1224  }
 0x112   :  { %v4023_v45 = vld [vmem:[%s8240_s0 + $0x7c7] ss:$8 sm:$0xf0]   ;;  %3533 = vst.msk [vmem:[%s8241_s1 + $0x288] sm:$0xff] %vm6_vm5, %v247_v41  }
 0x113   :  { %3759 = vst.msk [vmem:[%s8241_s1 + $0x140] sm:$0xff] %vm1007_vm6, %v1071_v42   ;;  %v3468_v46 = vld [vmem:[%s8240_s0 + $0x180] ss:$8 sm:$0xf]   ;;  %3753 = vst.msk [vmem:[%s8241_s1 + $0xe0] sm:$0xff] %vm1007_vm6, %v1049_v48   ;;  %v2040_v57 = vsel %vm4_vm0, %v4023_v45, %v4022_v44 }
 0x114   :  { %1964 = vrot.lane.b32.xlu0 %v1963_v21, %s4417_s30  ;;  %1997 = vrot.lane.b32.xlu1 %v1996_v29, %s4417_s30  ;;  %3760 = vst.msk [vmem:[%s8241_s1 + $0x120] sm:$0xff] %vm1010_vm7, %v1071_v42   ;;  %v3469_v47 = vld [vmem:[%s8240_s0 + $0x180] ss:$8 sm:$0xf0]  }
 0x115   :  { %v58_v50 = vsel %vm4_vm0, %v3469_v47, %v3468_v46  ;;  %v3456_v51 = vld [vmem:[%s8240_s0 + $0x80] ss:$8 sm:$0xf]   ;;  %3754 = vst.msk [vmem:[%s8241_s1 + $0xc0] sm:$0xff] %vm1010_vm7, %v1049_v48   ;;  %3772 = vst.msk [vmem:[%s8241_s1 + $0x1e0] sm:$0xff] %vm1010_vm7, %v1115_v56   ;;  %v1291_v48 = vpop.permute.xlu1 %1290  }
 0x116   :  { %v3457_v52 = vld [vmem:[%s8240_s0 + $0x80] ss:$8 sm:$0xf0]   ;;  %v4019_v53 = vld [vmem:[%s8240_s0 + $0x6c7] ss:$8 sm:$0xf]  }
 0x117   :  { %v4020_v54 = vld [vmem:[%s8240_s0 + $0x6c7] ss:$8 sm:$0xf0]   ;;  %3470 = vst.msk [vmem:[%s8241_s1 + $0x90] sm:$0xff] %vm6_vm5, %v58_v50   ;;  %v22_v55 = vsel %vm4_vm0, %v3457_v52, %v3456_v51 }
 0x118   :  { %1986 = vrot.lane.b32.xlu0 %v1985_v35, %s4417_s30  ;;  %2019 = vrot.lane.b32.xlu1 %v2018_v43, %s4417_s30  ;;  %v4028_v58 = vld [vmem:[%s8240_s0 + $0x144] ss:$8 sm:$0xf]   ;;  %3458 = vst.msk [vmem:[%s8241_s1 + $0x30] sm:$0xff] %vm6_vm5, %v22_v55   ;;  %v2029_v63 = vsel %vm4_vm0, %v4020_v54, %v4019_v53  ;;  %v1269_v54 = vpop.permute.xlu0 %1268  }
 0x119   :  { %v4029_v59 = vld [vmem:[%s8240_s0 + $0x144] ss:$8 sm:$0xf0]   ;;  %3771 = vst.msk [vmem:[%s8241_s1 + $0x200] sm:$0xff] %vm1007_vm6, %v1115_v56   ;;  %3765 = vst.msk [vmem:[%s8241_s1 + $0x1a0] sm:$0xff] %vm1007_vm6, %v1093_v62  }
 0x11a   :  { %v3492_v60 = vld [vmem:[%s8240_s0 + $0x380] ss:$8 sm:$0xf]   ;;  %3766 = vst.msk [vmem:[%s8241_s1 + $0x180] sm:$0xff] %vm1010_vm7, %v1093_v62   ;;  %v2062_v7 = vsel %vm4_vm0, %v4029_v59, %v4028_v58  ;;  %3784 = vst.msk [vmem:[%s8241_s1 + $0x2a0] sm:$0xff] %vm1010_vm7, %v1159_v6   ;;  %v1335_v62 = vpop.permute.xlu1 %1334  }
 0x11b   :  { %v3493_v61 = vld [vmem:[%s8240_s0 + $0x380] ss:$8 sm:$0xf0]   ;;  %v4025_v3 = vld [vmem:[%s8240_s0 + $0x44] ss:$8 sm:$0xf]  }
 0x11c   :  { %2008 = vrot.lane.b32.xlu0 %v2007_v49, %s4417_s30  ;;  %v130_v0 = vsel %vm4_vm0, %v3493_v61, %v3492_v60  ;;  %v3480_v1 = vld [vmem:[%s8240_s0 + $0x280] ss:$8 sm:$0xf]   ;;  %2041 = vrot.lane.b32.xlu1 %v2040_v57, %s4417_s30  ;;  %v4026_v4 = vld [vmem:[%s8240_s0 + $0x44] ss:$8 sm:$0xf0]  }
 0x11d   :  { %v3481_v2 = vld [vmem:[%s8240_s0 + $0x280] ss:$8 sm:$0xf0]   ;;  %3494 = vst.msk [vmem:[%s8241_s1 + $0x150] sm:$0xff] %vm6_vm5, %v130_v0   ;;  %v2051_v13 = vsel %vm4_vm0, %v4026_v4, %v4025_v3  ;;  %v1313_v4 = vpop.permute.xlu0 %1312  }
 0x11e   :  { %v94_v5 = vsel %vm4_vm0, %v3481_v2, %v3480_v1  ;;  %v4034_v8 = vld [vmem:[%s8240_s0 + $0x344] ss:$8 sm:$0xf]   ;;  %3783 = vst.msk [vmem:[%s8241_s1 + $0x2c0] sm:$0xff] %vm1007_vm6, %v1159_v6   ;;  %3777 = vst.msk [vmem:[%s8241_s1 + $0x260] sm:$0xff] %vm1007_vm6, %v1137_v12  }
 0x11f   :  { %v4035_v9 = vld [vmem:[%s8240_s0 + $0x344] ss:$8 sm:$0xf0]   ;;  %3482 = vst.msk [vmem:[%s8241_s1 + $0xf0] sm:$0xff] %vm6_vm5, %v94_v5  }
 0x120   :  { %2030 = vrot.lane.b32.xlu0 %v2029_v63, %s4417_s30  ;;  %v3516_v10 = vld [vmem:[%s8240_s0 + $0x580] ss:$8 sm:$0xf]   ;;  %3778 = vst.msk [vmem:[%s8241_s1 + $0x240] sm:$0xff] %vm1010_vm7, %v1137_v12   ;;  %2063 = vrot.lane.b32.xlu1 %v2062_v7, %s4418_s19  ;;  %v2084_v21 = vsel %vm4_vm0, %v4035_v9, %v4034_v8  ;;  %v1379_v12 = vpop.permute.xlu1 %1378   ;;  %s4421_s30 = smov 7  }
 0x121   :  { %v3517_v11 = vld [vmem:[%s8240_s0 + $0x580] ss:$8 sm:$0xf0]   ;;  %v4031_v17 = vld [vmem:[%s8240_s0 + $0x244] ss:$8 sm:$0xf]  }
 0x122   :  { %v202_v14 = vsel %vm4_vm0, %v3517_v11, %v3516_v10  ;;  %v3504_v15 = vld [vmem:[%s8240_s0 + $0x480] ss:$8 sm:$0xf]   ;;  %v4032_v18 = vld [vmem:[%s8240_s0 + $0x244] ss:$8 sm:$0xf0]  }
 0x123   :  { %v3505_v16 = vld [vmem:[%s8240_s0 + $0x480] ss:$8 sm:$0xf0]   ;;  %3518 = vst.msk [vmem:[%s8241_s1 + $0x210] sm:$0xff] %vm6_vm5, %v202_v14   ;;  %v2073_v27 = vsel %vm4_vm0, %v4032_v18, %v4031_v17  ;;  %v1357_v18 = vpop.permute.xlu0 %1356  }
 0x124   :  { %v166_v19 = vsel %vm4_vm0, %v3505_v16, %v3504_v15  ;;  %v4040_v22 = vld [vmem:[%s8240_s0 + $0x544] ss:$8 sm:$0xf]   ;;  %2052 = vrot.lane.b32.xlu0 %v2051_v13, %s4418_s19  ;;  %3795 = vst.msk [vmem:[%s8241_s1 + $0x68] sm:$0xff] %vm1007_vm6, %v1203_v20   ;;  %3789 = vst.msk [vmem:[%s8241_s1 + $0x8] sm:$0xff] %vm1007_vm6, %v1181_v26  }
 0x125   :  { %v4041_v23 = vld [vmem:[%s8240_s0 + $0x544] ss:$8 sm:$0xf0]   ;;  %3506 = vst.msk [vmem:[%s8241_s1 + $0x1b0] sm:$0xff] %vm6_vm5, %v166_v19   ;;  %2085 = vrot.lane.b32.xlu1 %v2084_v21, %s4418_s19 }
 0x126   :  { %3796 = vst.msk [vmem:[%s8241_s1 + $0xa8] sm:$0xff] %vm1010_vm7, %v1203_v20   ;;  %v3540_v24 = vld [vmem:[%s8240_s0 + $0x780] ss:$8 sm:$0xf]   ;;  %3790 = vst.msk [vmem:[%s8241_s1 + $0x48] sm:$0xff] %vm1010_vm7, %v1181_v26   ;;  %v2106_v35 = vsel %vm4_vm0, %v4041_v23, %v4040_v22  ;;  %v1423_v26 = vpop.permute.xlu1 %1422  }
 0x127   :  { %v3541_v25 = vld [vmem:[%s8240_s0 + $0x780] ss:$8 sm:$0xf0]   ;;  %v4037_v31 = vld [vmem:[%s8240_s0 + $0x444] ss:$8 sm:$0xf]  }
 0x128   :  { %v274_v28 = vsel %vm4_vm0, %v3541_v25, %v3540_v24  ;;  %v3528_v29 = vld [vmem:[%s8240_s0 + $0x680] ss:$8 sm:$0xf]   ;;  %v4038_v32 = vld [vmem:[%s8240_s0 + $0x444] ss:$8 sm:$0xf0]   ;;  %2074 = vrot.lane.b32.xlu0 %v2073_v27, %s4418_s19 }
 0x129   :  { %v3529_v30 = vld [vmem:[%s8240_s0 + $0x680] ss:$8 sm:$0xf0]   ;;  %3542 = vst.msk [vmem:[%s8241_s1 + $0x2d0] sm:$0xff] %vm6_vm5, %v274_v28   ;;  %v2095_v41 = vsel %vm4_vm0, %v4038_v32, %v4037_v31  ;;  %2107 = vrot.lane.b32.xlu1 %v2106_v35, %s4418_s19 }
 0x12a   :  { %v238_v33 = vsel %vm4_vm0, %v3529_v30, %v3528_v29  ;;  %v4046_v36 = vld [vmem:[%s8240_s0 + $0x744] ss:$8 sm:$0xf]   ;;  %3807 = vst.msk [vmem:[%s8241_s1 + $0x128] sm:$0xff] %vm1007_vm6, %v1247_v34   ;;  %3801 = vst.msk [vmem:[%s8241_s1 + $0xc8] sm:$0xff] %vm1007_vm6, %v1225_v40   ;;  %v1401_v30 = vpop.permute.xlu0 %1400  }
 0x12b   :  { %v4047_v37 = vld [vmem:[%s8240_s0 + $0x744] ss:$8 sm:$0xf0]   ;;  %3530 = vst.msk [vmem:[%s8241_s1 + $0x270] sm:$0xff] %vm6_vm5, %v238_v33  }
 0x12c   :  { %3808 = vst.msk [vmem:[%s8241_s1 + $0x168] sm:$0xff] %vm1010_vm7, %v1247_v34   ;;  %v3465_v38 = vld [vmem:[%s8240_s0 + $0x140] ss:$8 sm:$0xf]   ;;  %3802 = vst.msk [vmem:[%s8241_s1 + $0x108] sm:$0xff] %vm1010_vm7, %v1225_v40   ;;  %v2128_v49 = vsel %vm4_vm0, %v4047_v37, %v4046_v36  ;;  %2096 = vrot.lane.b32.xlu0 %v2095_v41, %s4418_s19  ;;  %v1467_v34 = vpop.permute.xlu1 %1466  }
 0x12d   :  { %v3466_v39 = vld [vmem:[%s8240_s0 + $0x140] ss:$8 sm:$0xf0]   ;;  %v4043_v45 = vld [vmem:[%s8240_s0 + $0x644] ss:$8 sm:$0xf]   ;;  %2129 = vrot.lane.b32.xlu1 %v2128_v49, %s4418_s19 }
 0x12e   :  { %v49_v42 = vsel %vm4_vm0, %v3466_v39, %v3465_v38  ;;  %v3453_v43 = vld [vmem:[%s8240_s0 + $0x40] ss:$8 sm:$0xf]   ;;  %v4044_v46 = vld [vmem:[%s8240_s0 + $0x644] ss:$8 sm:$0xf0]   ;;  %v1445_v38 = vpop.permute.xlu0 %1444  }
 0x12f   :  { %v3454_v44 = vld [vmem:[%s8240_s0 + $0x40] ss:$8 sm:$0xf0]   ;;  %3467 = vst.msk [vmem:[%s8241_s1 + $0x78] sm:$0xff] %vm6_vm5, %v49_v42   ;;  %v2117_v55 = vsel %vm4_vm0, %v4044_v46, %v4043_v45 }
 0x130   :  { %v13_v47 = vsel %vm4_vm0, %v3454_v44, %v3453_v43  ;;  %v4052_v50 = vld [vmem:[%s8240_s0 + $0x104] ss:$8 sm:$0xf]   ;;  %3819 = vst.msk [vmem:[%s8241_s1 + $0x1e8] sm:$0xff] %vm1007_vm6, %v1291_v48   ;;  %3813 = vst.msk [vmem:[%s8241_s1 + $0x188] sm:$0xff] %vm1007_vm6, %v1269_v54   ;;  %2118 = vrot.lane.b32.xlu0 %v2117_v55, %s4418_s19  ;;  %v1511_v42 = vpop.permute.xlu1 %1510  }
 0x131   :  { %v4053_v51 = vld [vmem:[%s8240_s0 + $0x104] ss:$8 sm:$0xf0]   ;;  %3455 = vst.msk [vmem:[%s8241_s1 + $0x18] sm:$0xff] %vm6_vm5, %v13_v47  }
 0x132   :  { %3820 = vst.msk [vmem:[%s8241_s1 + $0x228] sm:$0xff] %vm1010_vm7, %v1291_v48   ;;  %v3489_v52 = vld [vmem:[%s8240_s0 + $0x340] ss:$8 sm:$0xf]   ;;  %3814 = vst.msk [vmem:[%s8241_s1 + $0x1c8] sm:$0xff] %vm1010_vm7, %v1269_v54   ;;  %v2150_v63 = vsel %vm4_vm0, %v4053_v51, %v4052_v50  ;;  %v1489_v46 = vpop.permute.xlu0 %1488  }
 0x133   :  { %v3490_v53 = vld [vmem:[%s8240_s0 + $0x340] ss:$8 sm:$0xf0]   ;;  %v4049_v59 = vld [vmem:[%s8240_s0 + $0x4] ss:$8 sm:$0xf]   ;;  %2151 = vrot.lane.b32.xlu1 %v2150_v63, %s4418_s19 }
 0x134   :  { %v121_v56 = vsel %vm4_vm0, %v3490_v53, %v3489_v52  ;;  %v3477_v57 = vld [vmem:[%s8240_s0 + $0x240] ss:$8 sm:$0xf]   ;;  %v4050_v60 = vld [vmem:[%s8240_s0 + $0x4] ss:$8 sm:$0xf0]  }
 0x135   :  { %v3478_v58 = vld [vmem:[%s8240_s0 + $0x240] ss:$8 sm:$0xf0]   ;;  %3491 = vst.msk [vmem:[%s8241_s1 + $0x138] sm:$0xff] %vm6_vm5, %v121_v56   ;;  %v2139_v5 = vsel %vm4_vm0, %v4050_v60, %v4049_v59 }
 0x136   :  { %v85_v61 = vsel %vm4_vm0, %v3478_v58, %v3477_v57  ;;  %v4058_v0 = vld [vmem:[%s8240_s0 + $0x304] ss:$8 sm:$0xf]   ;;  %3831 = vst.msk [vmem:[%s8241_s1 + $0x2a8] sm:$0xff] %vm1007_vm6, %v1335_v62   ;;  %3825 = vst.msk [vmem:[%s8241_s1 + $0x248] sm:$0xff] %vm1007_vm6, %v1313_v4   ;;  %2140 = vrot.lane.b32.xlu0 %v2139_v5, %s4418_s19  ;;  %v1555_v50 = vpop.permute.xlu1 %1554  }
 0x137   :  { %v4059_v1 = vld [vmem:[%s8240_s0 + $0x304] ss:$8 sm:$0xf0]   ;;  %3479 = vst.msk [vmem:[%s8241_s1 + $0xd8] sm:$0xff] %vm6_vm5, %v85_v61  }
 0x138   :  { %3832 = vst.msk [vmem:[%s8241_s1 + $0x2e8] sm:$0xff] %vm1010_vm7, %v1335_v62   ;;  %v3513_v2 = vld [vmem:[%s8240_s0 + $0x540] ss:$8 sm:$0xf]   ;;  %3826 = vst.msk [vmem:[%s8241_s1 + $0x288] sm:$0xff] %vm1010_vm7, %v1313_v4   ;;  %v2172_v13 = vsel %vm4_vm0, %v4059_v1, %v4058_v0 }
 0x139   :  { %v3514_v3 = vld [vmem:[%s8240_s0 + $0x540] ss:$8 sm:$0xf0]   ;;  %v4055_v9 = vld [vmem:[%s8240_s0 + $0x204] ss:$8 sm:$0xf]   ;;  %2173 = vrot.lane.b32.xlu1 %v2172_v13, %s4418_s19 }
 0x13a   :  { %v193_v6 = vsel %vm4_vm0, %v3514_v3, %v3513_v2  ;;  %v3501_v7 = vld [vmem:[%s8240_s0 + $0x440] ss:$8 sm:$0xf]   ;;  %v4056_v10 = vld [vmem:[%s8240_s0 + $0x204] ss:$8 sm:$0xf0]   ;;  %v1533_v54 = vpop.permute.xlu0 %1532  }
 0x13b   :  { %v3502_v8 = vld [vmem:[%s8240_s0 + $0x440] ss:$8 sm:$0xf0]   ;;  %3515 = vst.msk [vmem:[%s8241_s1 + $0x1f8] sm:$0xff] %vm6_vm5, %v193_v6   ;;  %v2161_v19 = vsel %vm4_vm0, %v4056_v10, %v4055_v9 }
 0x13c   :  { %v157_v11 = vsel %vm4_vm0, %v3502_v8, %v3501_v7  ;;  %v4064_v14 = vld [vmem:[%s8240_s0 + $0x504] ss:$8 sm:$0xf]   ;;  %3843 = vst.msk [vmem:[%s8241_s1 + $0xb0] sm:$0xff] %vm1007_vm6, %v1379_v12   ;;  %3837 = vst.msk [vmem:[%s8241_s1 + $0x50] sm:$0xff] %vm1007_vm6, %v1357_v18   ;;  %2162 = vrot.lane.b32.xlu0 %v2161_v19, %s4418_s19 }
 0x13d   :  { %v4065_v15 = vld [vmem:[%s8240_s0 + $0x504] ss:$8 sm:$0xf0]   ;;  %3503 = vst.msk [vmem:[%s8241_s1 + $0x198] sm:$0xff] %vm6_vm5, %v157_v11  }
 0x13e   :  { %3844 = vst.msk [vmem:[%s8241_s1 + $0x90] sm:$0xff] %vm1010_vm7, %v1379_v12   ;;  %v3537_v16 = vld [vmem:[%s8240_s0 + $0x740] ss:$8 sm:$0xf]   ;;  %3838 = vst.msk [vmem:[%s8241_s1 + $0x30] sm:$0xff] %vm1010_vm7, %v1357_v18   ;;  %v2194_v27 = vsel %vm4_vm0, %v4065_v15, %v4064_v14  ;;  %v1599_v59 = vpop.permute.xlu1 %1598  }
 0x13f   :  { %v3538_v17 = vld [vmem:[%s8240_s0 + $0x740] ss:$8 sm:$0xf0]   ;;  %v4061_v23 = vld [vmem:[%s8240_s0 + $0x404] ss:$8 sm:$0xf]   ;;  %2195 = vrot.lane.b32.xlu1 %v2194_v27, %s4418_s19 }
 0x140   :  { %v265_v20 = vsel %vm4_vm0, %v3538_v17, %v3537_v16  ;;  %v3525_v21 = vld [vmem:[%s8240_s0 + $0x640] ss:$8 sm:$0xf]   ;;  %v4062_v24 = vld [vmem:[%s8240_s0 + $0x404] ss:$8 sm:$0xf0]  }
 0x141   :  { %v3526_v22 = vld [vmem:[%s8240_s0 + $0x640] ss:$8 sm:$0xf0]   ;;  %3539 = vst.msk [vmem:[%s8241_s1 + $0x2b8] sm:$0xff] %vm6_vm5, %v265_v20   ;;  %v2183_v31 = vsel %vm4_vm0, %v4062_v24, %v4061_v23 }
 0x142   :  { %v229_v25 = vsel %vm4_vm0, %v3526_v22, %v3525_v21  ;;  %3855 = vst.msk [vmem:[%s8241_s1 + $0x170] sm:$0xff] %vm1007_vm6, %v1423_v26   ;;  %v4070_v28 = vld [vmem:[%s8240_s0 + $0x704] ss:$8 sm:$0xf]   ;;  %3849 = vst.msk [vmem:[%s8241_s1 + $0x110] sm:$0xff] %vm1007_vm6, %v1401_v30   ;;  %2184 = vrot.lane.b32.xlu0 %v2183_v31, %s4418_s19  ;;  %v1577_v63 = vpop.permute.xlu0 %1576  }
 0x143   :  { %3527 = vst.msk [vmem:[%s8241_s1 + $0x258] sm:$0xff] %vm6_vm5, %v229_v25   ;;  %v4071_v29 = vld [vmem:[%s8240_s0 + $0x704] ss:$8 sm:$0xf0]  }
 0x144   :  { %3856 = vst.msk [vmem:[%s8241_s1 + $0x150] sm:$0xff] %vm1010_vm7, %v1423_v26   ;;  %3850 = vst.msk [vmem:[%s8241_s1 + $0xf0] sm:$0xff] %vm1010_vm7, %v1401_v30   ;;  %v4067_v32 = vld [vmem:[%s8240_s0 + $0x604] ss:$8 sm:$0xf]   ;;  %v2216_v35 = vsel %vm4_vm0, %v4071_v29, %v4070_v28 }
 0x145   :  { %v4068_v33 = vld [vmem:[%s8240_s0 + $0x604] ss:$8 sm:$0xf0]   ;;  %3867 = vst.msk [vmem:[%s8241_s1 + $0x230] sm:$0xff] %vm1007_vm6, %v1467_v34   ;;  %3861 = vst.msk [vmem:[%s8241_s1 + $0x1d0] sm:$0xff] %vm1007_vm6, %v1445_v38   ;;  %2217 = vrot.lane.b32.xlu1 %v2216_v35, %s4418_s19 }
 0x146   :  { %3868 = vst.msk [vmem:[%s8241_s1 + $0x210] sm:$0xff] %vm1010_vm7, %v1467_v34   ;;  %v4076_v36 = vld [vmem:[%s8240_s0 + $0x1c4] ss:$8 sm:$0xf]   ;;  %v2205_v39 = vsel %vm4_vm0, %v4068_v33, %v4067_v32  ;;  %3862 = vst.msk [vmem:[%s8241_s1 + $0x1b0] sm:$0xff] %vm1010_vm7, %v1445_v38   ;;  %v1643_v3 = vpop.permute.xlu1 %1642  }
 0x147   :  { %v4077_v37 = vld [vmem:[%s8240_s0 + $0x1c4] ss:$8 sm:$0xf0]   ;;  %2206 = vrot.lane.b32.xlu0 %v2205_v39, %s4418_s19  ;;  %3879 = vst.msk [vmem:[%s8241_s1 + $0x2f0] sm:$0xff] %vm1007_vm6, %v1511_v42   ;;  %3873 = vst.msk [vmem:[%s8241_s1 + $0x290] sm:$0xff] %vm1007_vm6, %v1489_v46  }
 0x148   :  { %v4073_v40 = vld [vmem:[%s8240_s0 + $0xc4] ss:$8 sm:$0xf]   ;;  %v2238_v43 = vsel %vm4_vm0, %v4077_v37, %v4076_v36  ;;  %3880 = vst.msk [vmem:[%s8241_s1 + $0x2d0] sm:$0xff] %vm1010_vm7, %v1511_v42   ;;  %3874 = vst.msk [vmem:[%s8241_s1 + $0x270] sm:$0xff] %vm1010_vm7, %v1489_v46  }
 0x149   :  { %v4074_v41 = vld [vmem:[%s8240_s0 + $0xc4] ss:$8 sm:$0xf0]   ;;  %2239 = vrot.lane.b32.xlu1 %v2238_v43, %s4418_s19  ;;  %3891 = vst.msk [vmem:[%s8241_s1 + $0x98] sm:$0xff] %vm1007_vm6, %v1555_v50   ;;  %3885 = vst.msk [vmem:[%s8241_s1 + $0x38] sm:$0xff] %vm1007_vm6, %v1533_v54  }
 0x14a   :  { %v4082_v44 = vld [vmem:[%s8240_s0 + $0x3c4] ss:$8 sm:$0xf]   ;;  %v2227_v47 = vsel %vm4_vm0, %v4074_v41, %v4073_v40  ;;  %3892 = vst.msk [vmem:[%s8241_s1 + $0x78] sm:$0xff] %vm1010_vm7, %v1555_v50   ;;  %3886 = vst.msk [vmem:[%s8241_s1 + $0x18] sm:$0xff] %vm1010_vm7, %v1533_v54   ;;  %v1621_v7 = vpop.permute.xlu0 %1620  }
 0x14b   :  { %v4083_v45 = vld [vmem:[%s8240_s0 + $0x3c4] ss:$8 sm:$0xf0]   ;;  %2228 = vrot.lane.b32.xlu0 %v2227_v47, %s4418_s19  ;;  %3903 = vst.msk [vmem:[%s8241_s1 + $0x158] sm:$0xff] %vm1007_vm6, %v1599_v59   ;;  %3897 = vst.msk [vmem:[%s8241_s1 + $0xf8] sm:$0xff] %vm1007_vm6, %v1577_v63  }
 0x14c   :  { %v4079_v48 = vld [vmem:[%s8240_s0 + $0x2c4] ss:$8 sm:$0xf]   ;;  %v2260_v51 = vsel %vm4_vm0, %v4083_v45, %v4082_v44  ;;  %3904 = vst.msk [vmem:[%s8241_s1 + $0x138] sm:$0xff] %vm1010_vm7, %v1599_v59   ;;  %3898 = vst.msk [vmem:[%s8241_s1 + $0xd8] sm:$0xff] %vm1010_vm7, %v1577_v63  }
 0x14d   :  { %v4080_v49 = vld [vmem:[%s8240_s0 + $0x2c4] ss:$8 sm:$0xf0]   ;;  %2261 = vrot.lane.b32.xlu1 %v2260_v51, %s4418_s19  ;;  %3915 = vst.msk [vmem:[%s8241_s1 + $0x218] sm:$0xff] %vm1007_vm6, %v1643_v3   ;;  %3909 = vst.msk [vmem:[%s8241_s1 + $0x1b8] sm:$0xff] %vm1007_vm6, %v1621_v7  }
 0x14e   :  { %v4088_v52 = vld [vmem:[%s8240_s0 + $0x5c4] ss:$8 sm:$0xf]   ;;  %v2249_v55 = vsel %vm4_vm0, %v4080_v49, %v4079_v48  ;;  %3916 = vst.msk [vmem:[%s8241_s1 + $0x1f8] sm:$0xff] %vm1010_vm7, %v1643_v3   ;;  %3910 = vst.msk [vmem:[%s8241_s1 + $0x198] sm:$0xff] %vm1010_vm7, %v1621_v7   ;;  %v1687_v11 = vpop.permute.xlu1 %1686  }
 0x14f   :  { %v4089_v53 = vld [vmem:[%s8240_s0 + $0x5c4] ss:$8 sm:$0xf0]   ;;  %2250 = vrot.lane.b32.xlu0 %v2249_v55, %s4418_s19  ;;  %3927 = vst.msk [vmem:[%s8241_s1 + $0x2d8] sm:$0xff] %vm1007_vm6, %v1687_v11  }
 0x150   :  { %v4085_v56 = vld [vmem:[%s8240_s0 + $0x4c4] ss:$8 sm:$0xf]   ;;  %v2282_v58 = vsel %vm4_vm0, %v4089_v53, %v4088_v52  ;;  %3928 = vst.msk [vmem:[%s8241_s1 + $0x2b8] sm:$0xff] %vm1010_vm7, %v1687_v11  }
 0x151   :  { %v4086_v57 = vld [vmem:[%s8240_s0 + $0x4c4] ss:$8 sm:$0xf0]   ;;  %2283 = vrot.lane.b32.xlu1 %v2282_v58, %s4418_s19  ;;  %v4123_v36 = vld [vmem:[%s8240_s0 + $0x101] ss:$8 sm:$0xf]  }
 0x152   :  { %v4094_v60 = vld [vmem:[%s8240_s0 + $0x7c4] ss:$8 sm:$0xf]   ;;  %v2271_v62 = vsel %vm4_vm0, %v4086_v57, %v4085_v56  ;;  %v1665_v15 = vpop.permute.xlu0 %1664   ;;  %v1712_v19 = vpop.permute.xlu1 %1711   ;;  %v4124_v37 = vld [vmem:[%s8240_s0 + $0x101] ss:$8 sm:$0xf0]  }
 0x153   :  { %v4095_v61 = vld [vmem:[%s8240_s0 + $0x7c4] ss:$8 sm:$0xf0]   ;;  %2272 = vrot.lane.b32.xlu0 %v2271_v62, %s4418_s19  ;;  %3921 = vst.msk [vmem:[%s8241_s1 + $0x278] sm:$0xff] %vm1007_vm6, %v1665_v15   ;;  %v2413_v42 = vsel %vm4_vm0, %v4124_v37, %v4123_v36 }
 0x154   :  { %v4091_v0 = vld [vmem:[%s8240_s0 + $0x6c4] ss:$8 sm:$0xf]   ;;  %v2304_v2 = vsel %vm4_vm0, %v4095_v61, %v4094_v60  ;;  %3922 = vst.msk [vmem:[%s8241_s1 + $0x258] sm:$0xff] %vm1010_vm7, %v1665_v15  }
 0x155   :  { %v4092_v1 = vld [vmem:[%s8240_s0 + $0x6c4] ss:$8 sm:$0xf0]   ;;  %2305 = vrot.lane.b32.xlu1 %v2304_v2, %s4418_s19  ;;  %3934 = vst.msk [vmem:[%s8241_s1 + $0xa0] sm:$0xff] %vm1702_vm8, %v1712_v19  }
 0x156   :  { %v4100_v4 = vld [vmem:[%s8240_s0 + $0x184] ss:$8 sm:$0xf]   ;;  %v2293_v6 = vsel %vm4_vm0, %v4092_v1, %v4091_v0  ;;  %v1701_v23 = vpop.permute.xlu0 %1700   ;;  %v1734_v27 = vpop.permute.xlu1 %1733   ;;  %v4121_v40 = vld [vmem:[%s8240_s0 + $0x1] ss:$8 sm:$0xf]  }
 0x157   :  { %v4101_v5 = vld [vmem:[%s8240_s0 + $0x184] ss:$8 sm:$0xf0]   ;;  %2294 = vrot.lane.b32.xlu0 %v2293_v6, %s4418_s19  ;;  %3931 = vst.msk [vmem:[%s8241_s1 + $0x40] sm:$0xff] %vm1702_vm8, %v1701_v23   ;;  %3940 = vst.msk [vmem:[%s8241_s1 + $0x160] sm:$0xff] %vm1702_vm8, %v1734_v27  }
 0x158   :  { %v4097_v8 = vld [vmem:[%s8240_s0 + $0x84] ss:$8 sm:$0xf]   ;;  %v2326_v10 = vsel %vm4_vm0, %v4101_v5, %v4100_v4  ;;  %v4122_v41 = vld [vmem:[%s8240_s0 + $0x1] ss:$8 sm:$0xf0]  }
 0x159   :  { %v4098_v9 = vld [vmem:[%s8240_s0 + $0x84] ss:$8 sm:$0xf0]   ;;  %2327 = vrot.lane.b32.xlu1 %v2326_v10, %s4418_s19  ;;  %v4129_v44 = vld [vmem:[%s8240_s0 + $0x301] ss:$8 sm:$0xf]   ;;  %v2403_v46 = vsel %vm4_vm0, %v4122_v41, %v4121_v40 }
 0x15a   :  { %v4106_v12 = vld [vmem:[%s8240_s0 + $0x384] ss:$8 sm:$0xf]   ;;  %v2315_v14 = vsel %vm4_vm0, %v4098_v9, %v4097_v8  ;;  %v1723_v31 = vpop.permute.xlu0 %1722   ;;  %v1756_v35 = vpop.permute.xlu1 %1755   ;;  %v4130_v45 = vld [vmem:[%s8240_s0 + $0x301] ss:$8 sm:$0xf0]  }
 0x15b   :  { %v4107_v13 = vld [vmem:[%s8240_s0 + $0x384] ss:$8 sm:$0xf0]   ;;  %2316 = vrot.lane.b32.xlu0 %v2315_v14, %s4418_s19  ;;  %3937 = vst.msk [vmem:[%s8241_s1 + $0x100] sm:$0xff] %vm1702_vm8, %v1723_v31   ;;  %3946 = vst.msk [vmem:[%s8241_s1 + $0x220] sm:$0xff] %vm1702_vm8, %v1756_v35   ;;  %v2435_v50 = vsel %vm4_vm0, %v4130_v45, %v4129_v44 }
 0x15c   :  { %v4103_v16 = vld [vmem:[%s8240_s0 + $0x284] ss:$8 sm:$0xf]   ;;  %v2348_v18 = vsel %vm4_vm0, %v4107_v13, %v4106_v12  ;;  %v4126_v48 = vld [vmem:[%s8240_s0 + $0x201] ss:$8 sm:$0xf]  }
 0x15d   :  { %v4104_v17 = vld [vmem:[%s8240_s0 + $0x284] ss:$8 sm:$0xf0]   ;;  %2349 = vrot.lane.b32.xlu1 %v2348_v18, %s4418_s19  ;;  %v4127_v49 = vld [vmem:[%s8240_s0 + $0x201] ss:$8 sm:$0xf0]  }
 0x15e   :  { %v4112_v20 = vld [vmem:[%s8240_s0 + $0x584] ss:$8 sm:$0xf]   ;;  %v2337_v22 = vsel %vm4_vm0, %v4104_v17, %v4103_v16  ;;  %v1745_v39 = vpop.permute.xlu0 %1744   ;;  %v1778_v43 = vpop.permute.xlu1 %1777   ;;  %v4135_v52 = vld [vmem:[%s8240_s0 + $0x501] ss:$8 sm:$0xf]   ;;  %v2424_v54 = vsel %vm4_vm0, %v4127_v49, %v4126_v48 }
 0x15f   :  { %v4113_v21 = vld [vmem:[%s8240_s0 + $0x584] ss:$8 sm:$0xf0]   ;;  %2338 = vrot.lane.b32.xlu0 %v2337_v22, %s4418_s19  ;;  %3943 = vst.msk [vmem:[%s8241_s1 + $0x1c0] sm:$0xff] %vm1702_vm8, %v1745_v39   ;;  %3952 = vst.msk [vmem:[%s8241_s1 + $0x2e0] sm:$0xff] %vm1702_vm8, %v1778_v43  }
 0x160   :  { %v4109_v24 = vld [vmem:[%s8240_s0 + $0x484] ss:$8 sm:$0xf]   ;;  %v2370_v26 = vsel %vm4_vm0, %v4113_v21, %v4112_v20  ;;  %v4136_v53 = vld [vmem:[%s8240_s0 + $0x501] ss:$8 sm:$0xf0]  }
 0x161   :  { %v4110_v25 = vld [vmem:[%s8240_s0 + $0x484] ss:$8 sm:$0xf0]   ;;  %2371 = vrot.lane.b32.xlu1 %v2370_v26, %s4418_s19  ;;  %v4132_v56 = vld [vmem:[%s8240_s0 + $0x401] ss:$8 sm:$0xf]   ;;  %v2457_v58 = vsel %vm4_vm0, %v4136_v53, %v4135_v52 }
 0x162   :  { %v4118_v28 = vld [vmem:[%s8240_s0 + $0x784] ss:$8 sm:$0xf]   ;;  %v2359_v30 = vsel %vm4_vm0, %v4110_v25, %v4109_v24  ;;  %v1767_v47 = vpop.permute.xlu0 %1766   ;;  %v1800_v51 = vpop.permute.xlu1 %1799   ;;  %v4133_v57 = vld [vmem:[%s8240_s0 + $0x401] ss:$8 sm:$0xf0]  }
 0x163   :  { %v4119_v29 = vld [vmem:[%s8240_s0 + $0x784] ss:$8 sm:$0xf0]   ;;  %2360 = vrot.lane.b32.xlu0 %v2359_v30, %s4418_s19  ;;  %3949 = vst.msk [vmem:[%s8241_s1 + $0x280] sm:$0xff] %vm1702_vm8, %v1767_v47   ;;  %3958 = vst.msk [vmem:[%s8241_s1 + $0x88] sm:$0xff] %vm1702_vm8, %v1800_v51   ;;  %v2446_v62 = vsel %vm4_vm0, %v4133_v57, %v4132_v56 }
 0x164   :  { %v4115_v32 = vld [vmem:[%s8240_s0 + $0x684] ss:$8 sm:$0xf]   ;;  %v2392_v34 = vsel %vm4_vm0, %v4119_v29, %v4118_v28  ;;  %v4141_v60 = vld [vmem:[%s8240_s0 + $0x701] ss:$8 sm:$0xf]  }
 0x165   :  { %v4116_v33 = vld [vmem:[%s8240_s0 + $0x684] ss:$8 sm:$0xf0]   ;;  %2393 = vrot.lane.b32.xlu1 %v2392_v34, %s4418_s19  ;;  %v4142_v61 = vld [vmem:[%s8240_s0 + $0x701] ss:$8 sm:$0xf0]  }
 0x166   :  { %v2381_v38 = vsel %vm4_vm0, %v4116_v33, %v4115_v32  ;;  %v1789_v55 = vpop.permute.xlu0 %1788   ;;  %v1822_v59 = vpop.permute.xlu1 %1821   ;;  %v4138_v0 = vld [vmem:[%s8240_s0 + $0x601] ss:$8 sm:$0xf]   ;;  %v2479_v2 = vsel %vm4_vm0, %v4142_v61, %v4141_v60 }
 0x167   :  { %2382 = vrot.lane.b32.xlu0 %v2381_v38, %s4418_s19  ;;  %3955 = vst.msk [vmem:[%s8241_s1 + $0x28] sm:$0xff] %vm1702_vm8, %v1789_v55   ;;  %3964 = vst.msk [vmem:[%s8241_s1 + $0x148] sm:$0xff] %vm1702_vm8, %v1822_v59   ;;  %v4139_v1 = vld [vmem:[%s8240_s0 + $0x601] ss:$8 sm:$0xf0]  }
 0x168   :  { %v4147_v4 = vld [vmem:[%s8240_s0 + $0x1c1] ss:$8 sm:$0xf]   ;;  %v2468_v6 = vsel %vm4_vm0, %v4139_v1, %v4138_v0 }
 0x169   :  { %2414 = vrot.lane.b32.xlu1 %v2413_v42, %s4419_s14  ;;  %v4148_v5 = vld [vmem:[%s8240_s0 + $0x1c1] ss:$8 sm:$0xf0]  }
 0x16a   :  { %v1811_v63 = vpop.permute.xlu0 %1810   ;;  %v1844_v3 = vpop.permute.xlu1 %1843   ;;  %v4144_v8 = vld [vmem:[%s8240_s0 + $0xc1] ss:$8 sm:$0xf]   ;;  %v2501_v10 = vsel %vm4_vm0, %v4148_v5, %v4147_v4 }
 0x16b   :  { %2404 = vrot.lane.b32.xlu0 %v2403_v46, %s4419_s14  ;;  %3961 = vst.msk [vmem:[%s8241_s1 + $0xe8] sm:$0xff] %vm1702_vm8, %v1811_v63   ;;  %3970 = vst.msk [vmem:[%s8241_s1 + $0x208] sm:$0xff] %vm1702_vm8, %v1844_v3   ;;  %v4145_v9 = vld [vmem:[%s8240_s0 + $0xc1] ss:$8 sm:$0xf0]  }
 0x16c   :  { %v4153_v12 = vld [vmem:[%s8240_s0 + $0x3c1] ss:$8 sm:$0xf]   ;;  %v2490_v14 = vsel %vm4_vm0, %v4145_v9, %v4144_v8 }
 0x16d   :  { %2436 = vrot.lane.b32.xlu1 %v2435_v50, %s4419_s14  ;;  %v4154_v13 = vld [vmem:[%s8240_s0 + $0x3c1] ss:$8 sm:$0xf0]  }
 0x16e   :  { %v1833_v7 = vpop.permute.xlu0 %1832   ;;  %v1866_v11 = vpop.permute.xlu1 %1865   ;;  %v4150_v16 = vld [vmem:[%s8240_s0 + $0x2c1] ss:$8 sm:$0xf]   ;;  %v2523_v18 = vsel %vm4_vm0, %v4154_v13, %v4153_v12 }
 0x16f   :  { %2425 = vrot.lane.b32.xlu0 %v2424_v54, %s4419_s14  ;;  %3967 = vst.msk [vmem:[%s8241_s1 + $0x1a8] sm:$0xff] %vm1702_vm8, %v1833_v7   ;;  %3976 = vst.msk [vmem:[%s8241_s1 + $0x2c8] sm:$0xff] %vm1702_vm8, %v1866_v11   ;;  %v4151_v17 = vld [vmem:[%s8240_s0 + $0x2c1] ss:$8 sm:$0xf0]  }
 0x170   :  { %v4159_v20 = vld [vmem:[%s8240_s0 + $0x5c1] ss:$8 sm:$0xf]   ;;  %v2512_v22 = vsel %vm4_vm0, %v4151_v17, %v4150_v16 }
 0x171   :  { %2458 = vrot.lane.b32.xlu1 %v2457_v58, %s4419_s14  ;;  %v4160_v21 = vld [vmem:[%s8240_s0 + $0x5c1] ss:$8 sm:$0xf0]  }
 0x172   :  { %v1855_v15 = vpop.permute.xlu0 %1854   ;;  %v1888_v19 = vpop.permute.xlu1 %1887   ;;  %v4156_v24 = vld [vmem:[%s8240_s0 + $0x4c1] ss:$8 sm:$0xf]   ;;  %v2545_v26 = vsel %vm4_vm0, %v4160_v21, %v4159_v20 }
 0x173   :  { %2447 = vrot.lane.b32.xlu0 %v2446_v62, %s4419_s14  ;;  %3973 = vst.msk [vmem:[%s8241_s1 + $0x268] sm:$0xff] %vm1702_vm8, %v1855_v15   ;;  %3982 = vst.msk [vmem:[%s8241_s1 + $0x70] sm:$0xff] %vm1702_vm8, %v1888_v19   ;;  %v4157_v25 = vld [vmem:[%s8240_s0 + $0x4c1] ss:$8 sm:$0xf0]  }
 0x174   :  { %v4165_v28 = vld [vmem:[%s8240_s0 + $0x7c1] ss:$8 sm:$0xf]   ;;  %v2534_v30 = vsel %vm4_vm0, %v4157_v25, %v4156_v24 }
 0x175   :  { %2480 = vrot.lane.b32.xlu1 %v2479_v2, %s4419_s14  ;;  %v4166_v29 = vld [vmem:[%s8240_s0 + $0x7c1] ss:$8 sm:$0xf0]  }
 0x176   :  { %v1877_v23 = vpop.permute.xlu0 %1876   ;;  %v1910_v27 = vpop.permute.xlu1 %1909   ;;  %v4162_v32 = vld [vmem:[%s8240_s0 + $0x6c1] ss:$8 sm:$0xf]   ;;  %v2567_v34 = vsel %vm4_vm0, %v4166_v29, %v4165_v28 }
 0x177   :  { %2469 = vrot.lane.b32.xlu0 %v2468_v6, %s4419_s14  ;;  %3979 = vst.msk [vmem:[%s8241_s1 + $0x10] sm:$0xff] %vm1702_vm8, %v1877_v23   ;;  %3988 = vst.msk [vmem:[%s8241_s1 + $0x130] sm:$0xff] %vm1702_vm8, %v1910_v27   ;;  %v4163_v33 = vld [vmem:[%s8240_s0 + $0x6c1] ss:$8 sm:$0xf0]  }
 0x178   :  { %v4171_v36 = vld [vmem:[%s8240_s0 + $0x181] ss:$8 sm:$0xf]   ;;  %v2556_v38 = vsel %vm4_vm0, %v4163_v33, %v4162_v32 }
 0x179   :  { %2502 = vrot.lane.b32.xlu1 %v2501_v10, %s4419_s14  ;;  %v4172_v37 = vld [vmem:[%s8240_s0 + $0x181] ss:$8 sm:$0xf0]  }
 0x17a   :  { %v1899_v31 = vpop.permute.xlu0 %1898   ;;  %v1932_v35 = vpop.permute.xlu1 %1931   ;;  %v4168_v40 = vld [vmem:[%s8240_s0 + $0x81] ss:$8 sm:$0xf]   ;;  %v2589_v42 = vsel %vm4_vm0, %v4172_v37, %v4171_v36  ;;  %v4219_v36 = vld [vmem:[%s8240_s0 + $0x186] ss:$8 sm:$0xf]  }
 0x17b   :  { %2491 = vrot.lane.b32.xlu0 %v2490_v14, %s4419_s14  ;;  %3985 = vst.msk [vmem:[%s8241_s1 + $0xd0] sm:$0xff] %vm1702_vm8, %v1899_v31   ;;  %3994 = vst.msk [vmem:[%s8241_s1 + $0x1f0] sm:$0xff] %vm1702_vm8, %v1932_v35   ;;  %v4169_v41 = vld [vmem:[%s8240_s0 + $0x81] ss:$8 sm:$0xf0]  }
 0x17c   :  { %v4177_v44 = vld [vmem:[%s8240_s0 + $0x381] ss:$8 sm:$0xf]   ;;  %v2578_v46 = vsel %vm4_vm0, %v4169_v41, %v4168_v40  ;;  %v4220_v37 = vld [vmem:[%s8240_s0 + $0x186] ss:$8 sm:$0xf0]  }
 0x17d   :  { %2524 = vrot.lane.b32.xlu1 %v2523_v18, %s4419_s14  ;;  %v4178_v45 = vld [vmem:[%s8240_s0 + $0x381] ss:$8 sm:$0xf0]   ;;  %v4216_v40 = vld [vmem:[%s8240_s0 + $0x86] ss:$8 sm:$0xf]  }
 0x17e   :  { %v1921_v39 = vpop.permute.xlu0 %1920   ;;  %v1954_v43 = vpop.permute.xlu1 %1953   ;;  %v4174_v48 = vld [vmem:[%s8240_s0 + $0x281] ss:$8 sm:$0xf]   ;;  %v2611_v50 = vsel %vm4_vm0, %v4178_v45, %v4177_v44  ;;  %v4217_v41 = vld [vmem:[%s8240_s0 + $0x86] ss:$8 sm:$0xf0]  }
 0x17f   :  { %2513 = vrot.lane.b32.xlu0 %v2512_v22, %s4419_s14  ;;  %3991 = vst.msk [vmem:[%s8241_s1 + $0x190] sm:$0xff] %vm1702_vm8, %v1921_v39   ;;  %4000 = vst.msk [vmem:[%s8241_s1 + $0x2b0] sm:$0xff] %vm1702_vm8, %v1954_v43   ;;  %v4175_v49 = vld [vmem:[%s8240_s0 + $0x281] ss:$8 sm:$0xf0]  }
 0x180   :  { %v4183_v52 = vld [vmem:[%s8240_s0 + $0x581] ss:$8 sm:$0xf]   ;;  %v2600_v54 = vsel %vm4_vm0, %v4175_v49, %v4174_v48  ;;  %v4225_v44 = vld [vmem:[%s8240_s0 + $0x386] ss:$8 sm:$0xf]  }
 0x181   :  { %2546 = vrot.lane.b32.xlu1 %v2545_v26, %s4419_s14  ;;  %v4184_v53 = vld [vmem:[%s8240_s0 + $0x581] ss:$8 sm:$0xf0]   ;;  %v4226_v45 = vld [vmem:[%s8240_s0 + $0x386] ss:$8 sm:$0xf0]  }
 0x182   :  { %v1943_v47 = vpop.permute.xlu0 %1942   ;;  %v1976_v51 = vpop.permute.xlu1 %1975   ;;  %v4180_v56 = vld [vmem:[%s8240_s0 + $0x481] ss:$8 sm:$0xf]   ;;  %v2633_v58 = vsel %vm4_vm0, %v4184_v53, %v4183_v52  ;;  %v4222_v48 = vld [vmem:[%s8240_s0 + $0x286] ss:$8 sm:$0xf]  }
 0x183   :  { %2535 = vrot.lane.b32.xlu0 %v2534_v30, %s4419_s14  ;;  %3997 = vst.msk [vmem:[%s8241_s1 + $0x250] sm:$0xff] %vm1702_vm8, %v1943_v47   ;;  %4006 = vst.msk [vmem:[%s8241_s1 + $0xb8] sm:$0xff] %vm1702_vm8, %v1976_v51   ;;  %v4181_v57 = vld [vmem:[%s8240_s0 + $0x481] ss:$8 sm:$0xf0]  }
 0x184   :  { %v4189_v60 = vld [vmem:[%s8240_s0 + $0x781] ss:$8 sm:$0xf]   ;;  %v2622_v62 = vsel %vm4_vm0, %v4181_v57, %v4180_v56  ;;  %v4223_v49 = vld [vmem:[%s8240_s0 + $0x286] ss:$8 sm:$0xf0]  }
 0x185   :  { %2568 = vrot.lane.b32.xlu1 %v2567_v34, %s4419_s14  ;;  %v4190_v61 = vld [vmem:[%s8240_s0 + $0x781] ss:$8 sm:$0xf0]   ;;  %v4231_v52 = vld [vmem:[%s8240_s0 + $0x586] ss:$8 sm:$0xf]  }
 0x186   :  { %v1965_v55 = vpop.permute.xlu0 %1964   ;;  %v1998_v59 = vpop.permute.xlu1 %1997   ;;  %v4186_v0 = vld [vmem:[%s8240_s0 + $0x681] ss:$8 sm:$0xf]   ;;  %v2655_v2 = vsel %vm4_vm0, %v4190_v61, %v4189_v60  ;;  %v4232_v53 = vld [vmem:[%s8240_s0 + $0x586] ss:$8 sm:$0xf0]  }
 0x187   :  { %2557 = vrot.lane.b32.xlu0 %v2556_v38, %s4419_s14  ;;  %4003 = vst.msk [vmem:[%s8241_s1 + $0x58] sm:$0xff] %vm1702_vm8, %v1965_v55   ;;  %4012 = vst.msk [vmem:[%s8241_s1 + $0x178] sm:$0xff] %vm1702_vm8, %v1998_v59   ;;  %v4187_v1 = vld [vmem:[%s8240_s0 + $0x681] ss:$8 sm:$0xf0]  }
 0x188   :  { %v4195_v4 = vld [vmem:[%s8240_s0 + $0x141] ss:$8 sm:$0xf]   ;;  %v2644_v6 = vsel %vm4_vm0, %v4187_v1, %v4186_v0  ;;  %v4228_v56 = vld [vmem:[%s8240_s0 + $0x486] ss:$8 sm:$0xf]  }
 0x189   :  { %2590 = vrot.lane.b32.xlu1 %v2589_v42, %s4419_s14  ;;  %v4196_v5 = vld [vmem:[%s8240_s0 + $0x141] ss:$8 sm:$0xf0]   ;;  %v2765_v42 = vsel %vm4_vm0, %v4220_v37, %v4219_v36  ;;  %v4229_v57 = vld [vmem:[%s8240_s0 + $0x486] ss:$8 sm:$0xf0]  }
 0x18a   :  { %v1987_v63 = vpop.permute.xlu0 %1986   ;;  %v2020_v3 = vpop.permute.xlu1 %2019   ;;  %v4192_v8 = vld [vmem:[%s8240_s0 + $0x41] ss:$8 sm:$0xf]   ;;  %v2677_v10 = vsel %vm4_vm0, %v4196_v5, %v4195_v4  ;;  %v4237_v60 = vld [vmem:[%s8240_s0 + $0x786] ss:$8 sm:$0xf]  }
 0x18b   :  { %2579 = vrot.lane.b32.xlu0 %v2578_v46, %s4419_s14  ;;  %4009 = vst.msk [vmem:[%s8241_s1 + $0x118] sm:$0xff] %vm1702_vm8, %v1987_v63   ;;  %4018 = vst.msk [vmem:[%s8241_s1 + $0x238] sm:$0xff] %vm1702_vm8, %v2020_v3   ;;  %v4193_v9 = vld [vmem:[%s8240_s0 + $0x41] ss:$8 sm:$0xf0]   ;;  %v2754_v46 = vsel %vm4_vm0, %v4217_v41, %v4216_v40 }
 0x18c   :  { %v4201_v12 = vld [vmem:[%s8240_s0 + $0x341] ss:$8 sm:$0xf]   ;;  %v2666_v14 = vsel %vm4_vm0, %v4193_v9, %v4192_v8  ;;  %v4238_v61 = vld [vmem:[%s8240_s0 + $0x786] ss:$8 sm:$0xf0]  }
 0x18d   :  { %2612 = vrot.lane.b32.xlu1 %v2611_v50, %s4419_s14  ;;  %v4202_v13 = vld [vmem:[%s8240_s0 + $0x341] ss:$8 sm:$0xf0]   ;;  %v2787_v50 = vsel %vm4_vm0, %v4226_v45, %v4225_v44  ;;  %v4234_v0 = vld [vmem:[%s8240_s0 + $0x686] ss:$8 sm:$0xf]  }
 0x18e   :  { %v2009_v7 = vpop.permute.xlu0 %2008   ;;  %v2042_v11 = vpop.permute.xlu1 %2041   ;;  %v4198_v16 = vld [vmem:[%s8240_s0 + $0x241] ss:$8 sm:$0xf]   ;;  %v2699_v18 = vsel %vm4_vm0, %v4202_v13, %v4201_v12  ;;  %v4235_v1 = vld [vmem:[%s8240_s0 + $0x686] ss:$8 sm:$0xf0]  }
 0x18f   :  { %2601 = vrot.lane.b32.xlu0 %v2600_v54, %s4419_s14  ;;  %4015 = vst.msk [vmem:[%s8241_s1 + $0x1d8] sm:$0xff] %vm1702_vm8, %v2009_v7   ;;  %4024 = vst.msk [vmem:[%s8241_s1 + $0x2f8] sm:$0xff] %vm1702_vm8, %v2042_v11   ;;  %v4199_v17 = vld [vmem:[%s8240_s0 + $0x241] ss:$8 sm:$0xf0]   ;;  %v2776_v54 = vsel %vm4_vm0, %v4223_v49, %v4222_v48 }
 0x190   :  { %v4207_v20 = vld [vmem:[%s8240_s0 + $0x541] ss:$8 sm:$0xf]   ;;  %v2688_v22 = vsel %vm4_vm0, %v4199_v17, %v4198_v16  ;;  %v4243_v4 = vld [vmem:[%s8240_s0 + $0x146] ss:$8 sm:$0xf]  }
 0x191   :  { %2634 = vrot.lane.b32.xlu1 %v2633_v58, %s4419_s14  ;;  %v4208_v21 = vld [vmem:[%s8240_s0 + $0x541] ss:$8 sm:$0xf0]   ;;  %v2809_v58 = vsel %vm4_vm0, %v4232_v53, %v4231_v52  ;;  %v4244_v5 = vld [vmem:[%s8240_s0 + $0x146] ss:$8 sm:$0xf0]  }
 0x192   :  { %v2031_v15 = vpop.permute.xlu0 %2030   ;;  %v2064_v19 = vpop.permute.xlu1 %2063   ;;  %v4204_v24 = vld [vmem:[%s8240_s0 + $0x441] ss:$8 sm:$0xf]   ;;  %v2721_v26 = vsel %vm4_vm0, %v4208_v21, %v4207_v20  ;;  %v4240_v8 = vld [vmem:[%s8240_s0 + $0x46] ss:$8 sm:$0xf]  }
 0x193   :  { %2623 = vrot.lane.b32.xlu0 %v2622_v62, %s4419_s14  ;;  %4021 = vst.msk [vmem:[%s8241_s1 + $0x298] sm:$0xff] %vm1702_vm8, %v2031_v15   ;;  %v4205_v25 = vld [vmem:[%s8240_s0 + $0x441] ss:$8 sm:$0xf0]   ;;  %v2798_v62 = vsel %vm4_vm0, %v4229_v57, %v4228_v56 }
 0x194   :  { %4030 = vst.msk [vmem:[%s8241_s1 + $0x80] sm:$0xff] %vm2054_vm9, %v2064_v19   ;;  %v4213_v28 = vld [vmem:[%s8240_s0 + $0x741] ss:$8 sm:$0xf]   ;;  %v2710_v30 = vsel %vm4_vm0, %v4205_v25, %v4204_v24 }
 0x195   :  { %2656 = vrot.lane.b32.xlu1 %v2655_v2, %s4419_s14  ;;  %v4214_v29 = vld [vmem:[%s8240_s0 + $0x741] ss:$8 sm:$0xf0]   ;;  %v2831_v2 = vsel %vm4_vm0, %v4238_v61, %v4237_v60  ;;  %v4241_v9 = vld [vmem:[%s8240_s0 + $0x46] ss:$8 sm:$0xf0]  }
 0x196   :  { %v2053_v23 = vpop.permute.xlu0 %2052   ;;  %v4210_v32 = vld [vmem:[%s8240_s0 + $0x641] ss:$8 sm:$0xf]   ;;  %v2743_v34 = vsel %vm4_vm0, %v4214_v29, %v4213_v28  ;;  %v4249_v12 = vld [vmem:[%s8240_s0 + $0x346] ss:$8 sm:$0xf]  }
 0x197   :  { %2645 = vrot.lane.b32.xlu0 %v2644_v6, %s4419_s14  ;;  %4027 = vst.msk [vmem:[%s8241_s1 + $0x20] sm:$0xff] %vm2054_vm9, %v2053_v23   ;;  %v2086_v27 = vpop.permute.xlu1 %2085   ;;  %v4211_v33 = vld [vmem:[%s8240_s0 + $0x641] ss:$8 sm:$0xf0]   ;;  %v2820_v6 = vsel %vm4_vm0, %v4235_v1, %v4234_v0 }
 0x198   :  { %4036 = vst.msk [vmem:[%s8241_s1 + $0x140] sm:$0xff] %vm2054_vm9, %v2086_v27   ;;  %v2732_v38 = vsel %vm4_vm0, %v4211_v33, %v4210_v32  ;;  %v4250_v13 = vld [vmem:[%s8240_s0 + $0x346] ss:$8 sm:$0xf0]  }
 0x199   :  { %2678 = vrot.lane.b32.xlu1 %v2677_v10, %s4419_s14  ;;  %v2853_v10 = vsel %vm4_vm0, %v4244_v5, %v4243_v4  ;;  %v4246_v16 = vld [vmem:[%s8240_s0 + $0x246] ss:$8 sm:$0xf]  }
 0x19a   :  { %v2075_v31 = vpop.permute.xlu0 %2074   ;;  %v4247_v17 = vld [vmem:[%s8240_s0 + $0x246] ss:$8 sm:$0xf0]  }
 0x19b   :  { %2667 = vrot.lane.b32.xlu0 %v2666_v14, %s4419_s14  ;;  %4033 = vst.msk [vmem:[%s8241_s1 + $0xe0] sm:$0xff] %vm2054_vm9, %v2075_v31   ;;  %v2108_v35 = vpop.permute.xlu1 %2107   ;;  %v2842_v14 = vsel %vm4_vm0, %v4241_v9, %v4240_v8  ;;  %v4255_v20 = vld [vmem:[%s8240_s0 + $0x546] ss:$8 sm:$0xf]  }
 0x19c   :  { %4042 = vst.msk [vmem:[%s8241_s1 + $0x200] sm:$0xff] %vm2054_vm9, %v2108_v35   ;;  %v4256_v21 = vld [vmem:[%s8240_s0 + $0x546] ss:$8 sm:$0xf0]  }
 0x19d   :  { %2700 = vrot.lane.b32.xlu1 %v2699_v18, %s4419_s14  ;;  %v2875_v18 = vsel %vm4_vm0, %v4250_v13, %v4249_v12  ;;  %v4252_v24 = vld [vmem:[%s8240_s0 + $0x446] ss:$8 sm:$0xf]  }
 0x19e   :  { %v2097_v39 = vpop.permute.xlu0 %2096   ;;  %v4253_v25 = vld [vmem:[%s8240_s0 + $0x446] ss:$8 sm:$0xf0]  }
 0x19f   :  { %2689 = vrot.lane.b32.xlu0 %v2688_v22, %s4419_s14  ;;  %4039 = vst.msk [vmem:[%s8241_s1 + $0x1a0] sm:$0xff] %vm2054_vm9, %v2097_v39   ;;  %v2130_v43 = vpop.permute.xlu1 %2129   ;;  %v2864_v22 = vsel %vm4_vm0, %v4247_v17, %v4246_v16  ;;  %v4261_v28 = vld [vmem:[%s8240_s0 + $0x746] ss:$8 sm:$0xf]  }
 0x1a0   :  { %4048 = vst.msk [vmem:[%s8241_s1 + $0x2c0] sm:$0xff] %vm2054_vm9, %v2130_v43   ;;  %v4262_v29 = vld [vmem:[%s8240_s0 + $0x746] ss:$8 sm:$0xf0]  }
 0x1a1   :  { %2722 = vrot.lane.b32.xlu1 %v2721_v26, %s4419_s14  ;;  %v2897_v26 = vsel %vm4_vm0, %v4256_v21, %v4255_v20  ;;  %v4258_v32 = vld [vmem:[%s8240_s0 + $0x646] ss:$8 sm:$0xf]  }
 0x1a2   :  { %v2119_v47 = vpop.permute.xlu0 %2118   ;;  %v4259_v33 = vld [vmem:[%s8240_s0 + $0x646] ss:$8 sm:$0xf0]  }
 0x1a3   :  { %2711 = vrot.lane.b32.xlu0 %v2710_v30, %s4419_s14  ;;  %4045 = vst.msk [vmem:[%s8241_s1 + $0x260] sm:$0xff] %vm2054_vm9, %v2119_v47   ;;  %v2886_v30 = vsel %vm4_vm0, %v4253_v25, %v4252_v24  ;;  %v4267_v36 = vld [vmem:[%s8240_s0 + $0x106] ss:$8 sm:$0xf]  }
 0x1a4   :  { %v4268_v37 = vld [vmem:[%s8240_s0 + $0x106] ss:$8 sm:$0xf0]  }
 0x1a5   :  { %2744 = vrot.lane.b32.xlu1 %v2743_v34, %s4419_s14  ;;  %v2152_v51 = vpop.permute.xlu1 %2151   ;;  %v2919_v34 = vsel %vm4_vm0, %v4262_v29, %v4261_v28  ;;  %v4264_v40 = vld [vmem:[%s8240_s0 + $0x6] ss:$8 sm:$0xf]  }
 0x1a6   :  { %4054 = vst.msk [vmem:[%s8241_s1 + $0x68] sm:$0xff] %vm2054_vm9, %v2152_v51   ;;  %v4265_v41 = vld [vmem:[%s8240_s0 + $0x6] ss:$8 sm:$0xf0]  }
 0x1a7   :  { %2733 = vrot.lane.b32.xlu0 %v2732_v38, %s4419_s14  ;;  %v2908_v38 = vsel %vm4_vm0, %v4259_v33, %v4258_v32  ;;  %v4273_v44 = vld [vmem:[%s8240_s0 + $0x306] ss:$8 sm:$0xf]  }
 0x1a8   :  { %v2141_v55 = vpop.permute.xlu0 %2140   ;;  %v4274_v45 = vld [vmem:[%s8240_s0 + $0x306] ss:$8 sm:$0xf0]  }
 0x1a9   :  { %2766 = vrot.lane.b32.xlu1 %v2765_v42, %s4420_s9  ;;  %4051 = vst.msk [vmem:[%s8241_s1 + $0x8] sm:$0xff] %vm2054_vm9, %v2141_v55   ;;  %v2941_v42 = vsel %vm4_vm0, %v4268_v37, %v4267_v36  ;;  %v4270_v48 = vld [vmem:[%s8240_s0 + $0x206] ss:$8 sm:$0xf]  }
 0x1aa   :  { %v4271_v49 = vld [vmem:[%s8240_s0 + $0x206] ss:$8 sm:$0xf0]   ;;  %v4315_v36 = vld [vmem:[%s8240_s0 + $0x143] ss:$8 sm:$0xf]  }
 0x1ab   :  { %2755 = vrot.lane.b32.xlu0 %v2754_v46, %s4420_s9  ;;  %v2174_v59 = vpop.permute.xlu1 %2173   ;;  %v2930_v46 = vsel %vm4_vm0, %v4265_v41, %v4264_v40  ;;  %v4279_v52 = vld [vmem:[%s8240_s0 + $0x506] ss:$8 sm:$0xf]   ;;  %v4316_v37 = vld [vmem:[%s8240_s0 + $0x143] ss:$8 sm:$0xf0]  }
 0x1ac   :  { %4060 = vst.msk [vmem:[%s8241_s1 + $0x128] sm:$0xff] %vm2054_vm9, %v2174_v59   ;;  %v4280_v53 = vld [vmem:[%s8240_s0 + $0x506] ss:$8 sm:$0xf0]  }
 0x1ad   :  { %2788 = vrot.lane.b32.xlu1 %v2787_v50, %s4420_s9  ;;  %v2963_v50 = vsel %vm4_vm0, %v4274_v45, %v4273_v44  ;;  %v4276_v56 = vld [vmem:[%s8240_s0 + $0x406] ss:$8 sm:$0xf]   ;;  %v4312_v40 = vld [vmem:[%s8240_s0 + $0x43] ss:$8 sm:$0xf]  }
 0x1ae   :  { %v2163_v63 = vpop.permute.xlu0 %2162   ;;  %v4277_v57 = vld [vmem:[%s8240_s0 + $0x406] ss:$8 sm:$0xf0]   ;;  %v4313_v41 = vld [vmem:[%s8240_s0 + $0x43] ss:$8 sm:$0xf0]  }
 0x1af   :  { %2777 = vrot.lane.b32.xlu0 %v2776_v54, %s4420_s9  ;;  %4057 = vst.msk [vmem:[%s8241_s1 + $0xc8] sm:$0xff] %vm2054_vm9, %v2163_v63   ;;  %v2952_v54 = vsel %vm4_vm0, %v4271_v49, %v4270_v48  ;;  %v4285_v60 = vld [vmem:[%s8240_s0 + $0x706] ss:$8 sm:$0xf]  }
 0x1b0   :  { %v4286_v61 = vld [vmem:[%s8240_s0 + $0x706] ss:$8 sm:$0xf0]   ;;  %v4321_v44 = vld [vmem:[%s8240_s0 + $0x343] ss:$8 sm:$0xf]  }
 0x1b1   :  { %2810 = vrot.lane.b32.xlu1 %v2809_v58, %s4420_s9  ;;  %v2196_v3 = vpop.permute.xlu1 %2195   ;;  %v2985_v58 = vsel %vm4_vm0, %v4280_v53, %v4279_v52  ;;  %v4282_v0 = vld [vmem:[%s8240_s0 + $0x606] ss:$8 sm:$0xf]   ;;  %v4322_v45 = vld [vmem:[%s8240_s0 + $0x343] ss:$8 sm:$0xf0]  }
 0x1b2   :  { %4066 = vst.msk [vmem:[%s8241_s1 + $0x1e8] sm:$0xff] %vm2054_vm9, %v2196_v3   ;;  %v4283_v1 = vld [vmem:[%s8240_s0 + $0x606] ss:$8 sm:$0xf0]  }
 0x1b3   :  { %2799 = vrot.lane.b32.xlu0 %v2798_v62, %s4420_s9  ;;  %v2974_v62 = vsel %vm4_vm0, %v4277_v57, %v4276_v56  ;;  %v4291_v4 = vld [vmem:[%s8240_s0 + $0x1c6] ss:$8 sm:$0xf]   ;;  %v4318_v48 = vld [vmem:[%s8240_s0 + $0x243] ss:$8 sm:$0xf]  }
 0x1b4   :  { %v2185_v7 = vpop.permute.xlu0 %2184   ;;  %v4292_v5 = vld [vmem:[%s8240_s0 + $0x1c6] ss:$8 sm:$0xf0]   ;;  %v4319_v49 = vld [vmem:[%s8240_s0 + $0x243] ss:$8 sm:$0xf0]  }
 0x1b5   :  { %2832 = vrot.lane.b32.xlu1 %v2831_v2, %s4420_s9  ;;  %4063 = vst.msk [vmem:[%s8241_s1 + $0x188] sm:$0xff] %vm2054_vm9, %v2185_v7   ;;  %v3007_v2 = vsel %vm4_vm0, %v4286_v61, %v4285_v60  ;;  %v4288_v8 = vld [vmem:[%s8240_s0 + $0xc6] ss:$8 sm:$0xf]  }
 0x1b6   :  { %v4289_v9 = vld [vmem:[%s8240_s0 + $0xc6] ss:$8 sm:$0xf0]   ;;  %v4327_v52 = vld [vmem:[%s8240_s0 + $0x543] ss:$8 sm:$0xf]  }
 0x1b7   :  { %2821 = vrot.lane.b32.xlu0 %v2820_v6, %s4420_s9  ;;  %v2218_v11 = vpop.permute.xlu1 %2217   ;;  %v2996_v6 = vsel %vm4_vm0, %v4283_v1, %v4282_v0  ;;  %v4297_v12 = vld [vmem:[%s8240_s0 + $0x3c6] ss:$8 sm:$0xf]   ;;  %v4328_v53 = vld [vmem:[%s8240_s0 + $0x543] ss:$8 sm:$0xf0]  }
 0x1b8   :  { %4072 = vst.msk [vmem:[%s8241_s1 + $0x2a8] sm:$0xff] %vm2054_vm9, %v2218_v11   ;;  %v4298_v13 = vld [vmem:[%s8240_s0 + $0x3c6] ss:$8 sm:$0xf0]  }
 0x1b9   :  { %v2207_v15 = vpop.permute.xlu0 %2206   ;;  %2854 = vrot.lane.b32.xlu1 %v2853_v10, %s4420_s9  ;;  %v3029_v10 = vsel %vm4_vm0, %v4292_v5, %v4291_v4  ;;  %v4294_v16 = vld [vmem:[%s8240_s0 + $0x2c6] ss:$8 sm:$0xf]   ;;  %v4324_v56 = vld [vmem:[%s8240_s0 + $0x443] ss:$8 sm:$0xf]  }
 0x1ba   :  { %4069 = vst.msk [vmem:[%s8241_s1 + $0x248] sm:$0xff] %vm2054_vm9, %v2207_v15   ;;  %v4295_v17 = vld [vmem:[%s8240_s0 + $0x2c6] ss:$8 sm:$0xf0]  }
 0x1bb   :  { %2843 = vrot.lane.b32.xlu0 %v2842_v14, %s4420_s9  ;;  %v2240_v19 = vpop.permute.xlu1 %2239   ;;  %v3018_v14 = vsel %vm4_vm0, %v4289_v9, %v4288_v8  ;;  %v4303_v20 = vld [vmem:[%s8240_s0 + $0x5c6] ss:$8 sm:$0xf]   ;;  %v4325_v57 = vld [vmem:[%s8240_s0 + $0x443] ss:$8 sm:$0xf0]  }
 0x1bc   :  { %4078 = vst.msk [vmem:[%s8241_s1 + $0xb0] sm:$0xff] %vm2054_vm9, %v2240_v19   ;;  %v4304_v21 = vld [vmem:[%s8240_s0 + $0x5c6] ss:$8 sm:$0xf0]  }
 0x1bd   :  { %v2229_v23 = vpop.permute.xlu0 %2228   ;;  %2876 = vrot.lane.b32.xlu1 %v2875_v18, %s4420_s9  ;;  %v3051_v18 = vsel %vm4_vm0, %v4298_v13, %v4297_v12  ;;  %v4300_v24 = vld [vmem:[%s8240_s0 + $0x4c6] ss:$8 sm:$0xf]   ;;  %v4333_v60 = vld [vmem:[%s8240_s0 + $0x743] ss:$8 sm:$0xf]  }
 0x1be   :  { %4075 = vst.msk [vmem:[%s8241_s1 + $0x50] sm:$0xff] %vm2054_vm9, %v2229_v23   ;;  %v4301_v25 = vld [vmem:[%s8240_s0 + $0x4c6] ss:$8 sm:$0xf0]  }
 0x1bf   :  { %2865 = vrot.lane.b32.xlu0 %v2864_v22, %s4420_s9  ;;  %v2262_v27 = vpop.permute.xlu1 %2261   ;;  %v3040_v22 = vsel %vm4_vm0, %v4295_v17, %v4294_v16  ;;  %v4309_v28 = vld [vmem:[%s8240_s0 + $0x7c6] ss:$8 sm:$0xf]   ;;  %v4334_v61 = vld [vmem:[%s8240_s0 + $0x743] ss:$8 sm:$0xf0]  }
 0x1c0   :  { %4084 = vst.msk [vmem:[%s8241_s1 + $0x170] sm:$0xff] %vm2054_vm9, %v2262_v27   ;;  %v4310_v29 = vld [vmem:[%s8240_s0 + $0x7c6] ss:$8 sm:$0xf0]  }
 0x1c1   :  { %v2251_v31 = vpop.permute.xlu0 %2250   ;;  %2898 = vrot.lane.b32.xlu1 %v2897_v26, %s4420_s9  ;;  %v3073_v26 = vsel %vm4_vm0, %v4304_v21, %v4303_v20  ;;  %v4306_v32 = vld [vmem:[%s8240_s0 + $0x6c6] ss:$8 sm:$0xf]   ;;  %v4330_v0 = vld [vmem:[%s8240_s0 + $0x643] ss:$8 sm:$0xf]  }
 0x1c2   :  { %4081 = vst.msk [vmem:[%s8241_s1 + $0x110] sm:$0xff] %vm2054_vm9, %v2251_v31   ;;  %v4307_v33 = vld [vmem:[%s8240_s0 + $0x6c6] ss:$8 sm:$0xf0]  }
 0x1c3   :  { %2887 = vrot.lane.b32.xlu0 %v2886_v30, %s4420_s9  ;;  %v2284_v35 = vpop.permute.xlu1 %2283   ;;  %v3062_v30 = vsel %vm4_vm0, %v4301_v25, %v4300_v24  ;;  %v4331_v1 = vld [vmem:[%s8240_s0 + $0x643] ss:$8 sm:$0xf0]  }
 0x1c4   :  { %4090 = vst.msk [vmem:[%s8241_s1 + $0x230] sm:$0xff] %vm2054_vm9, %v2284_v35   ;;  %v4339_v4 = vld [vmem:[%s8240_s0 + $0x103] ss:$8 sm:$0xf]  }
 0x1c5   :  { %v2273_v39 = vpop.permute.xlu0 %2272   ;;  %2920 = vrot.lane.b32.xlu1 %v2919_v34, %s4420_s9  ;;  %v3095_v34 = vsel %vm4_vm0, %v4310_v29, %v4309_v28  ;;  %v4340_v5 = vld [vmem:[%s8240_s0 + $0x103] ss:$8 sm:$0xf0]  }
 0x1c6   :  { %4087 = vst.msk [vmem:[%s8241_s1 + $0x1d0] sm:$0xff] %vm2054_vm9, %v2273_v39   ;;  %v4336_v8 = vld [vmem:[%s8240_s0 + $0x3] ss:$8 sm:$0xf]  }
 0x1c7   :  { %2909 = vrot.lane.b32.xlu0 %v2908_v38, %s4420_s9  ;;  %v2306_v43 = vpop.permute.xlu1 %2305   ;;  %v3084_v38 = vsel %vm4_vm0, %v4307_v33, %v4306_v32  ;;  %v4337_v9 = vld [vmem:[%s8240_s0 + $0x3] ss:$8 sm:$0xf0]  }
 0x1c8   :  { %4096 = vst.msk [vmem:[%s8241_s1 + $0x2f0] sm:$0xff] %vm2054_vm9, %v2306_v43   ;;  %v4345_v12 = vld [vmem:[%s8240_s0 + $0x303] ss:$8 sm:$0xf]  }
 0x1c9   :  { %v2295_v47 = vpop.permute.xlu0 %2294   ;;  %2942 = vrot.lane.b32.xlu1 %v2941_v42, %s4420_s9  ;;  %v3117_v42 = vsel %vm4_vm0, %v4316_v37, %v4315_v36  ;;  %v4346_v13 = vld [vmem:[%s8240_s0 + $0x303] ss:$8 sm:$0xf0]  }
 0x1ca   :  { %4093 = vst.msk [vmem:[%s8241_s1 + $0x290] sm:$0xff] %vm2054_vm9, %v2295_v47   ;;  %v4342_v16 = vld [vmem:[%s8240_s0 + $0x203] ss:$8 sm:$0xf]  }
 0x1cb   :  { %2931 = vrot.lane.b32.xlu0 %v2930_v46, %s4420_s9  ;;  %v2328_v51 = vpop.permute.xlu1 %2327   ;;  %v3106_v46 = vsel %vm4_vm0, %v4313_v41, %v4312_v40  ;;  %v4343_v17 = vld [vmem:[%s8240_s0 + $0x203] ss:$8 sm:$0xf0]  }
 0x1cc   :  { %4102 = vst.msk [vmem:[%s8241_s1 + $0x98] sm:$0xff] %vm2054_vm9, %v2328_v51   ;;  %v4351_v20 = vld [vmem:[%s8240_s0 + $0x503] ss:$8 sm:$0xf]  }
 0x1cd   :  { %v2317_v55 = vpop.permute.xlu0 %2316   ;;  %2964 = vrot.lane.b32.xlu1 %v2963_v50, %s4420_s9  ;;  %v3139_v50 = vsel %vm4_vm0, %v4322_v45, %v4321_v44  ;;  %v4352_v21 = vld [vmem:[%s8240_s0 + $0x503] ss:$8 sm:$0xf0]  }
 0x1ce   :  { %4099 = vst.msk [vmem:[%s8241_s1 + $0x38] sm:$0xff] %vm2054_vm9, %v2317_v55   ;;  %v4348_v24 = vld [vmem:[%s8240_s0 + $0x403] ss:$8 sm:$0xf]  }
 0x1cf   :  { %2953 = vrot.lane.b32.xlu0 %v2952_v54, %s4420_s9  ;;  %v2350_v59 = vpop.permute.xlu1 %2349   ;;  %v3128_v54 = vsel %vm4_vm0, %v4319_v49, %v4318_v48  ;;  %v4349_v25 = vld [vmem:[%s8240_s0 + $0x403] ss:$8 sm:$0xf0]  }
 0x1d0   :  { %4108 = vst.msk [vmem:[%s8241_s1 + $0x158] sm:$0xff] %vm2054_vm9, %v2350_v59   ;;  %v4357_v28 = vld [vmem:[%s8240_s0 + $0x703] ss:$8 sm:$0xf]  }
 0x1d1   :  { %v2339_v63 = vpop.permute.xlu0 %2338   ;;  %2986 = vrot.lane.b32.xlu1 %v2985_v58, %s4420_s9  ;;  %v3161_v58 = vsel %vm4_vm0, %v4328_v53, %v4327_v52  ;;  %v4358_v29 = vld [vmem:[%s8240_s0 + $0x703] ss:$8 sm:$0xf0]  }
 0x1d2   :  { %4105 = vst.msk [vmem:[%s8241_s1 + $0xf8] sm:$0xff] %vm2054_vm9, %v2339_v63   ;;  %v4354_v32 = vld [vmem:[%s8240_s0 + $0x603] ss:$8 sm:$0xf]  }
 0x1d3   :  { %2975 = vrot.lane.b32.xlu0 %v2974_v62, %s4420_s9  ;;  %v2372_v3 = vpop.permute.xlu1 %2371   ;;  %v3150_v62 = vsel %vm4_vm0, %v4325_v57, %v4324_v56  ;;  %v4355_v33 = vld [vmem:[%s8240_s0 + $0x603] ss:$8 sm:$0xf0]  }
 0x1d4   :  { %4114 = vst.msk [vmem:[%s8241_s1 + $0x218] sm:$0xff] %vm2054_vm9, %v2372_v3   ;;  %v4363_v36 = vld [vmem:[%s8240_s0 + $0x1c3] ss:$8 sm:$0xf]  }
 0x1d5   :  { %v2361_v7 = vpop.permute.xlu0 %2360   ;;  %3008 = vrot.lane.b32.xlu1 %v3007_v2, %s4420_s9  ;;  %v3183_v2 = vsel %vm4_vm0, %v4334_v61, %v4333_v60  ;;  %v4364_v37 = vld [vmem:[%s8240_s0 + $0x1c3] ss:$8 sm:$0xf0]  }
 0x1d6   :  { %4111 = vst.msk [vmem:[%s8241_s1 + $0x1b8] sm:$0xff] %vm2054_vm9, %v2361_v7   ;;  %v4360_v40 = vld [vmem:[%s8240_s0 + $0xc3] ss:$8 sm:$0xf]  }
 0x1d7   :  { %2997 = vrot.lane.b32.xlu0 %v2996_v6, %s4420_s9  ;;  %v2394_v11 = vpop.permute.xlu1 %2393   ;;  %v3172_v6 = vsel %vm4_vm0, %v4331_v1, %v4330_v0  ;;  %v4361_v41 = vld [vmem:[%s8240_s0 + $0xc3] ss:$8 sm:$0xf0]  }
 0x1d8   :  { %4120 = vst.msk [vmem:[%s8241_s1 + $0x2d8] sm:$0xff] %vm2054_vm9, %v2394_v11   ;;  %v4369_v44 = vld [vmem:[%s8240_s0 + $0x3c3] ss:$8 sm:$0xf]  }
 0x1d9   :  { %v2383_v15 = vpop.permute.xlu0 %2382   ;;  %3030 = vrot.lane.b32.xlu1 %v3029_v10, %s4420_s9  ;;  %v3205_v10 = vsel %vm4_vm0, %v4340_v5, %v4339_v4  ;;  %v4370_v45 = vld [vmem:[%s8240_s0 + $0x3c3] ss:$8 sm:$0xf0]  }
 0x1da   :  { %4117 = vst.msk [vmem:[%s8241_s1 + $0x278] sm:$0xff] %vm2054_vm9, %v2383_v15   ;;  %v4366_v48 = vld [vmem:[%s8240_s0 + $0x2c3] ss:$8 sm:$0xf]  }
 0x1db   :  { %3019 = vrot.lane.b32.xlu0 %v3018_v14, %s4420_s9  ;;  %v2415_v19 = vpop.permute.xlu1 %2414   ;;  %v3194_v14 = vsel %vm4_vm0, %v4337_v9, %v4336_v8  ;;  %v4367_v49 = vld [vmem:[%s8240_s0 + $0x2c3] ss:$8 sm:$0xf0]  }
 0x1dc   :  { %4125 = vst.msk [vmem:[%s8241_s1 + $0x60] sm:$0xff] %vm2406_vm10, %v2415_v19   ;;  %v4375_v52 = vld [vmem:[%s8240_s0 + $0x5c3] ss:$8 sm:$0xf]  }
 0x1dd   :  { %v2405_v23 = vpop.permute.xlu0 %2404   ;;  %3052 = vrot.lane.b32.xlu1 %v3051_v18, %s4420_s9  ;;  %v3227_v18 = vsel %vm4_vm0, %v4346_v13, %v4345_v12  ;;  %v4376_v53 = vld [vmem:[%s8240_s0 + $0x5c3] ss:$8 sm:$0xf0]  }
 0x1de   :  { %2407 = vst.msk [vmem:[%s8241_s1] sm:$0xff] %vm2406_vm10, %v2405_v23   ;;  %v4372_v56 = vld [vmem:[%s8240_s0 + $0x4c3] ss:$8 sm:$0xf]  }
 0x1df   :  { %3041 = vrot.lane.b32.xlu0 %v3040_v22, %s4420_s9  ;;  %v2437_v27 = vpop.permute.xlu1 %2436   ;;  %v3216_v22 = vsel %vm4_vm0, %v4343_v17, %v4342_v16  ;;  %v4373_v57 = vld [vmem:[%s8240_s0 + $0x4c3] ss:$8 sm:$0xf0]  }
 0x1e0   :  { %4131 = vst.msk [vmem:[%s8241_s1 + $0x120] sm:$0xff] %vm2406_vm10, %v2437_v27   ;;  %v4381_v60 = vld [vmem:[%s8240_s0 + $0x7c3] ss:$8 sm:$0xf]  }
 0x1e1   :  { %v2426_v31 = vpop.permute.xlu0 %2425   ;;  %3074 = vrot.lane.b32.xlu1 %v3073_v26, %s4420_s9  ;;  %v3249_v26 = vsel %vm4_vm0, %v4352_v21, %v4351_v20  ;;  %v4382_v61 = vld [vmem:[%s8240_s0 + $0x7c3] ss:$8 sm:$0xf0]  }
 0x1e2   :  { %4128 = vst.msk [vmem:[%s8241_s1 + $0xc0] sm:$0xff] %vm2406_vm10, %v2426_v31   ;;  %v4378_v0 = vld [vmem:[%s8240_s0 + $0x6c3] ss:$8 sm:$0xf]  }
 0x1e3   :  { %3063 = vrot.lane.b32.xlu0 %v3062_v30, %s4420_s9  ;;  %v2459_v35 = vpop.permute.xlu1 %2458   ;;  %v3238_v30 = vsel %vm4_vm0, %v4349_v25, %v4348_v24  ;;  %v4379_v1 = vld [vmem:[%s8240_s0 + $0x6c3] ss:$8 sm:$0xf0]  }
 0x1e4   :  { %4137 = vst.msk [vmem:[%s8241_s1 + $0x1e0] sm:$0xff] %vm2406_vm10, %v2459_v35   ;;  %v4387_v4 = vld [vmem:[%s8240_s0 + $0x183] ss:$8 sm:$0xf]  }
 0x1e5   :  { %v2448_v39 = vpop.permute.xlu0 %2447   ;;  %3096 = vrot.lane.b32.xlu1 %v3095_v34, %s4420_s9  ;;  %v3271_v34 = vsel %vm4_vm0, %v4358_v29, %v4357_v28  ;;  %v4388_v5 = vld [vmem:[%s8240_s0 + $0x183] ss:$8 sm:$0xf0]  }
 0x1e6   :  { %4134 = vst.msk [vmem:[%s8241_s1 + $0x180] sm:$0xff] %vm2406_vm10, %v2448_v39   ;;  %v4384_v8 = vld [vmem:[%s8240_s0 + $0x83] ss:$8 sm:$0xf]  }
 0x1e7   :  { %3085 = vrot.lane.b32.xlu0 %v3084_v38, %s4420_s9  ;;  %v2481_v43 = vpop.permute.xlu1 %2480   ;;  %v3260_v38 = vsel %vm4_vm0, %v4355_v33, %v4354_v32  ;;  %v4385_v9 = vld [vmem:[%s8240_s0 + $0x83] ss:$8 sm:$0xf0]  }
 0x1e8   :  { %4143 = vst.msk [vmem:[%s8241_s1 + $0x2a0] sm:$0xff] %vm2406_vm10, %v2481_v43   ;;  %v4393_v12 = vld [vmem:[%s8240_s0 + $0x383] ss:$8 sm:$0xf]  }
 0x1e9   :  { %v2470_v47 = vpop.permute.xlu0 %2469   ;;  %3118 = vrot.lane.b32.xlu1 %v3117_v42, %s4421_s30  ;;  %v3293_v42 = vsel %vm4_vm0, %v4364_v37, %v4363_v36  ;;  %v4394_v13 = vld [vmem:[%s8240_s0 + $0x383] ss:$8 sm:$0xf0]  }
 0x1ea   :  { %4140 = vst.msk [vmem:[%s8241_s1 + $0x240] sm:$0xff] %vm2406_vm10, %v2470_v47   ;;  %v4390_v16 = vld [vmem:[%s8240_s0 + $0x283] ss:$8 sm:$0xf]  }
 0x1eb   :  { %3107 = vrot.lane.b32.xlu0 %v3106_v46, %s4421_s30  ;;  %v2503_v51 = vpop.permute.xlu1 %2502   ;;  %v3282_v46 = vsel %vm4_vm0, %v4361_v41, %v4360_v40  ;;  %v4391_v17 = vld [vmem:[%s8240_s0 + $0x283] ss:$8 sm:$0xf0]  }
 0x1ec   :  { %4149 = vst.msk [vmem:[%s8241_s1 + $0xa8] sm:$0xff] %vm2406_vm10, %v2503_v51   ;;  %v4399_v20 = vld [vmem:[%s8240_s0 + $0x583] ss:$8 sm:$0xf]  }
 0x1ed   :  { %v2492_v55 = vpop.permute.xlu0 %2491   ;;  %3140 = vrot.lane.b32.xlu1 %v3139_v50, %s4421_s30  ;;  %v3315_v50 = vsel %vm4_vm0, %v4370_v45, %v4369_v44  ;;  %v4400_v21 = vld [vmem:[%s8240_s0 + $0x583] ss:$8 sm:$0xf0]  }
 0x1ee   :  { %4146 = vst.msk [vmem:[%s8241_s1 + $0x48] sm:$0xff] %vm2406_vm10, %v2492_v55   ;;  %v4396_v24 = vld [vmem:[%s8240_s0 + $0x483] ss:$8 sm:$0xf]  }
 0x1ef   :  { %3129 = vrot.lane.b32.xlu0 %v3128_v54, %s4421_s30  ;;  %v2525_v59 = vpop.permute.xlu1 %2524   ;;  %v3304_v54 = vsel %vm4_vm0, %v4367_v49, %v4366_v48  ;;  %v4397_v25 = vld [vmem:[%s8240_s0 + $0x483] ss:$8 sm:$0xf0]  }
 0x1f0   :  { %4155 = vst.msk [vmem:[%s8241_s1 + $0x168] sm:$0xff] %vm2406_vm10, %v2525_v59   ;;  %v4405_v28 = vld [vmem:[%s8240_s0 + $0x783] ss:$8 sm:$0xf]  }
 0x1f1   :  { %v2514_v63 = vpop.permute.xlu0 %2513   ;;  %3162 = vrot.lane.b32.xlu1 %v3161_v58, %s4421_s30  ;;  %v3337_v58 = vsel %vm4_vm0, %v4376_v53, %v4375_v52  ;;  %v4406_v29 = vld [vmem:[%s8240_s0 + $0x783] ss:$8 sm:$0xf0]  }
 0x1f2   :  { %4152 = vst.msk [vmem:[%s8241_s1 + $0x108] sm:$0xff] %vm2406_vm10, %v2514_v63   ;;  %v4402_v32 = vld [vmem:[%s8240_s0 + $0x683] ss:$8 sm:$0xf]  }
 0x1f3   :  { %3151 = vrot.lane.b32.xlu0 %v3150_v62, %s4421_s30  ;;  %v2547_v3 = vpop.permute.xlu1 %2546   ;;  %v3326_v62 = vsel %vm4_vm0, %v4373_v57, %v4372_v56  ;;  %v4403_v33 = vld [vmem:[%s8240_s0 + $0x683] ss:$8 sm:$0xf0]  }
 0x1f4   :  { %4161 = vst.msk [vmem:[%s8241_s1 + $0x228] sm:$0xff] %vm2406_vm10, %v2547_v3   ;;  %v3436_v36 = vsel %vm4_vm0, %v4403_v33, %v4402_v32 }
 0x1f5   :  { %v2536_v7 = vpop.permute.xlu0 %2535   ;;  %3184 = vrot.lane.b32.xlu1 %v3183_v2, %s4421_s30  ;;  %v3359_v2 = vsel %vm4_vm0, %v4382_v61, %v4381_v60 }
 0x1f6   :  { %4158 = vst.msk [vmem:[%s8241_s1 + $0x1c8] sm:$0xff] %vm2406_vm10, %v2536_v7  }
 0x1f7   :  { %3173 = vrot.lane.b32.xlu0 %v3172_v6, %s4421_s30  ;;  %v2569_v11 = vpop.permute.xlu1 %2568   ;;  %v3348_v6 = vsel %vm4_vm0, %v4379_v1, %v4378_v0 }
 0x1f8   :  { %4167 = vst.msk [vmem:[%s8241_s1 + $0x2e8] sm:$0xff] %vm2406_vm10, %v2569_v11  }
 0x1f9   :  { %v2558_v15 = vpop.permute.xlu0 %2557   ;;  %3206 = vrot.lane.b32.xlu1 %v3205_v10, %s4421_s30  ;;  %v3381_v10 = vsel %vm4_vm0, %v4388_v5, %v4387_v4 }
 0x1fa   :  { %4164 = vst.msk [vmem:[%s8241_s1 + $0x288] sm:$0xff] %vm2406_vm10, %v2558_v15  }
 0x1fb   :  { %3195 = vrot.lane.b32.xlu0 %v3194_v14, %s4421_s30  ;;  %v2591_v19 = vpop.permute.xlu1 %2590   ;;  %v3370_v14 = vsel %vm4_vm0, %v4385_v9, %v4384_v8 }
 0x1fc   :  { %4173 = vst.msk [vmem:[%s8241_s1 + $0x90] sm:$0xff] %vm2406_vm10, %v2591_v19  }
 0x1fd   :  { %v2580_v23 = vpop.permute.xlu0 %2579   ;;  %3228 = vrot.lane.b32.xlu1 %v3227_v18, %s4421_s30  ;;  %v3403_v18 = vsel %vm4_vm0, %v4394_v13, %v4393_v12 }
 0x1fe   :  { %4170 = vst.msk [vmem:[%s8241_s1 + $0x30] sm:$0xff] %vm2406_vm10, %v2580_v23  }
 0x1ff   :  { %3217 = vrot.lane.b32.xlu0 %v3216_v22, %s4421_s30  ;;  %v2613_v27 = vpop.permute.xlu1 %2612   ;;  %v3392_v22 = vsel %vm4_vm0, %v4391_v17, %v4390_v16 }
 0x200   :  { %4179 = vst.msk [vmem:[%s8241_s1 + $0x150] sm:$0xff] %vm2406_vm10, %v2613_v27  }
 0x201   :  { %v2602_v31 = vpop.permute.xlu0 %2601   ;;  %3250 = vrot.lane.b32.xlu1 %v3249_v26, %s4421_s30  ;;  %v3425_v26 = vsel %vm4_vm0, %v4400_v21, %v4399_v20 }
 0x202   :  { %4176 = vst.msk [vmem:[%s8241_s1 + $0xf0] sm:$0xff] %vm2406_vm10, %v2602_v31  }
 0x203   :  { %3239 = vrot.lane.b32.xlu0 %v3238_v30, %s4421_s30  ;;  %v2635_v35 = vpop.permute.xlu1 %2634   ;;  %v3414_v30 = vsel %vm4_vm0, %v4397_v25, %v4396_v24 }
 0x204   :  { %4185 = vst.msk [vmem:[%s8241_s1 + $0x210] sm:$0xff] %vm2406_vm10, %v2635_v35  }
 0x205   :  { %v2624_v39 = vpop.permute.xlu0 %2623   ;;  %3272 = vrot.lane.b32.xlu1 %v3271_v34, %s4421_s30  ;;  %v3447_v34 = vsel %vm4_vm0, %v4406_v29, %v4405_v28 }
 0x206   :  { %4182 = vst.msk [vmem:[%s8241_s1 + $0x1b0] sm:$0xff] %vm2406_vm10, %v2624_v39  }
 0x207   :  { %3261 = vrot.lane.b32.xlu0 %v3260_v38, %s4421_s30  ;;  %v2657_v43 = vpop.permute.xlu1 %2656  }
 0x208   :  { %4191 = vst.msk [vmem:[%s8241_s1 + $0x2d0] sm:$0xff] %vm2406_vm10, %v2657_v43  }
 0x209   :  { %v2646_v47 = vpop.permute.xlu0 %2645   ;;  %3294 = vrot.lane.b32.xlu1 %v3293_v42, %s4421_s30 }
 0x20a   :  { %4188 = vst.msk [vmem:[%s8241_s1 + $0x270] sm:$0xff] %vm2406_vm10, %v2646_v47  }
 0x20b   :  { %3283 = vrot.lane.b32.xlu0 %v3282_v46, %s4421_s30  ;;  %v2679_v51 = vpop.permute.xlu1 %2678  }
 0x20c   :  { %4197 = vst.msk [vmem:[%s8241_s1 + $0x78] sm:$0xff] %vm2406_vm10, %v2679_v51  }
 0x20d   :  { %v2668_v55 = vpop.permute.xlu0 %2667   ;;  %3316 = vrot.lane.b32.xlu1 %v3315_v50, %s4421_s30 }
 0x20e   :  { %4194 = vst.msk [vmem:[%s8241_s1 + $0x18] sm:$0xff] %vm2406_vm10, %v2668_v55  }
 0x20f   :  { %3305 = vrot.lane.b32.xlu0 %v3304_v54, %s4421_s30  ;;  %v2701_v59 = vpop.permute.xlu1 %2700  }
 0x210   :  { %4203 = vst.msk [vmem:[%s8241_s1 + $0x138] sm:$0xff] %vm2406_vm10, %v2701_v59  }
 0x211   :  { %v2690_v63 = vpop.permute.xlu0 %2689   ;;  %3338 = vrot.lane.b32.xlu1 %v3337_v58, %s4421_s30 }
 0x212   :  { %4200 = vst.msk [vmem:[%s8241_s1 + $0xd8] sm:$0xff] %vm2406_vm10, %v2690_v63  }
 0x213   :  { %3327 = vrot.lane.b32.xlu0 %v3326_v62, %s4421_s30  ;;  %v2723_v3 = vpop.permute.xlu1 %2722  }
 0x214   :  { %4209 = vst.msk [vmem:[%s8241_s1 + $0x1f8] sm:$0xff] %vm2406_vm10, %v2723_v3  }
 0x215   :  { %v2712_v7 = vpop.permute.xlu0 %2711   ;;  %3360 = vrot.lane.b32.xlu1 %v3359_v2, %s4421_s30 }
 0x216   :  { %4206 = vst.msk [vmem:[%s8241_s1 + $0x198] sm:$0xff] %vm2406_vm10, %v2712_v7  }
 0x217   :  { %3349 = vrot.lane.b32.xlu0 %v3348_v6, %s4421_s30  ;;  %v2745_v11 = vpop.permute.xlu1 %2744  }
 0x218   :  { %4215 = vst.msk [vmem:[%s8241_s1 + $0x2b8] sm:$0xff] %vm2406_vm10, %v2745_v11  }
 0x219   :  { %v2734_v15 = vpop.permute.xlu0 %2733   ;;  %3382 = vrot.lane.b32.xlu1 %v3381_v10, %s4421_s30 }
 0x21a   :  { %4212 = vst.msk [vmem:[%s8241_s1 + $0x258] sm:$0xff] %vm2406_vm10, %v2734_v15  }
 0x21b   :  { %3371 = vrot.lane.b32.xlu0 %v3370_v14, %s4421_s30  ;;  %v2767_v19 = vpop.permute.xlu1 %2766  }
 0x21c   :  { %4221 = vst.msk [vmem:[%s8241_s1 + $0xa0] sm:$0xff] %vm2757_vm11, %v2767_v19  }
 0x21d   :  { %v2756_v23 = vpop.permute.xlu0 %2755   ;;  %3404 = vrot.lane.b32.xlu1 %v3403_v18, %s4421_s30 }
 0x21e   :  { %4218 = vst.msk [vmem:[%s8241_s1 + $0x40] sm:$0xff] %vm2757_vm11, %v2756_v23  }
 0x21f   :  { %3393 = vrot.lane.b32.xlu0 %v3392_v22, %s4421_s30  ;;  %v2789_v27 = vpop.permute.xlu1 %2788  }
 0x220   :  { %4227 = vst.msk [vmem:[%s8241_s1 + $0x160] sm:$0xff] %vm2757_vm11, %v2789_v27  }
 0x221   :  { %v2778_v31 = vpop.permute.xlu0 %2777   ;;  %3426 = vrot.lane.b32.xlu1 %v3425_v26, %s4421_s30 }
 0x222   :  { %4224 = vst.msk [vmem:[%s8241_s1 + $0x100] sm:$0xff] %vm2757_vm11, %v2778_v31  }
 0x223   :  { %3415 = vrot.lane.b32.xlu0 %v3414_v30, %s4421_s30  ;;  %v2811_v35 = vpop.permute.xlu1 %2810  }
 0x224   :  { %4233 = vst.msk [vmem:[%s8241_s1 + $0x220] sm:$0xff] %vm2757_vm11, %v2811_v35  }
 0x225   :  { %v2800_v37 = vpop.permute.xlu0 %2799   ;;  %3448 = vrot.lane.b32.xlu1 %v3447_v34, %s4421_s30 }
 0x226   :  { %4230 = vst.msk [vmem:[%s8241_s1 + $0x1c0] sm:$0xff] %vm2757_vm11, %v2800_v37  }
 0x227   :  { %3437 = vrot.lane.b32.xlu0 %v3436_v36, %s4421_s30  ;;  %v2833_v38 = vpop.permute.xlu1 %2832  }
 0x228   :  { %4239 = vst.msk [vmem:[%s8241_s1 + $0x2e0] sm:$0xff] %vm2757_vm11, %v2833_v38  }
 0x229   :  { %v2822_v39 = vpop.permute.xlu0 %2821  }
 0x22a   :  { %4236 = vst.msk [vmem:[%s8241_s1 + $0x280] sm:$0xff] %vm2757_vm11, %v2822_v39  }
 0x22b   :  { %v2855_v40 = vpop.permute.xlu1 %2854  }
 0x22c   :  { %4245 = vst.msk [vmem:[%s8241_s1 + $0x88] sm:$0xff] %vm2757_vm11, %v2855_v40  }
 0x22d   :  { %v2844_v41 = vpop.permute.xlu0 %2843  }
 0x22e   :  { %4242 = vst.msk [vmem:[%s8241_s1 + $0x28] sm:$0xff] %vm2757_vm11, %v2844_v41  }
 0x22f   :  { %v2877_v42 = vpop.permute.xlu1 %2876  }
 0x230   :  { %4251 = vst.msk [vmem:[%s8241_s1 + $0x148] sm:$0xff] %vm2757_vm11, %v2877_v42  }
 0x231   :  { %v2866_v43 = vpop.permute.xlu0 %2865  }
 0x232   :  { %4248 = vst.msk [vmem:[%s8241_s1 + $0xe8] sm:$0xff] %vm2757_vm11, %v2866_v43  }
 0x233   :  { %v2899_v44 = vpop.permute.xlu1 %2898  }
 0x234   :  { %4257 = vst.msk [vmem:[%s8241_s1 + $0x208] sm:$0xff] %vm2757_vm11, %v2899_v44  }
 0x235   :  { %v2888_v45 = vpop.permute.xlu0 %2887  }
 0x236   :  { %4254 = vst.msk [vmem:[%s8241_s1 + $0x1a8] sm:$0xff] %vm2757_vm11, %v2888_v45  }
 0x237   :  { %v2921_v46 = vpop.permute.xlu1 %2920  }
 0x238   :  { %4263 = vst.msk [vmem:[%s8241_s1 + $0x2c8] sm:$0xff] %vm2757_vm11, %v2921_v46  }
 0x239   :  { %v2910_v47 = vpop.permute.xlu0 %2909  }
 0x23a   :  { %4260 = vst.msk [vmem:[%s8241_s1 + $0x268] sm:$0xff] %vm2757_vm11, %v2910_v47  }
 0x23b   :  { %v2943_v48 = vpop.permute.xlu1 %2942  }
 0x23c   :  { %4269 = vst.msk [vmem:[%s8241_s1 + $0x70] sm:$0xff] %vm2757_vm11, %v2943_v48  }
 0x23d   :  { %v2932_v49 = vpop.permute.xlu0 %2931  }
 0x23e   :  { %4266 = vst.msk [vmem:[%s8241_s1 + $0x10] sm:$0xff] %vm2757_vm11, %v2932_v49  }
 0x23f   :  { %v2965_v50 = vpop.permute.xlu1 %2964  }
 0x240   :  { %4275 = vst.msk [vmem:[%s8241_s1 + $0x130] sm:$0xff] %vm2757_vm11, %v2965_v50  }
 0x241   :  { %v2954_v51 = vpop.permute.xlu0 %2953  }
 0x242   :  { %4272 = vst.msk [vmem:[%s8241_s1 + $0xd0] sm:$0xff] %vm2757_vm11, %v2954_v51  }
 0x243   :  { %v2987_v52 = vpop.permute.xlu1 %2986  }
 0x244   :  { %4281 = vst.msk [vmem:[%s8241_s1 + $0x1f0] sm:$0xff] %vm2757_vm11, %v2987_v52  }
 0x245   :  { %v2976_v53 = vpop.permute.xlu0 %2975  }
 0x246   :  { %4278 = vst.msk [vmem:[%s8241_s1 + $0x190] sm:$0xff] %vm2757_vm11, %v2976_v53  }
 0x247   :  { %v3009_v54 = vpop.permute.xlu1 %3008  }
 0x248   :  { %4287 = vst.msk [vmem:[%s8241_s1 + $0x2b0] sm:$0xff] %vm2757_vm11, %v3009_v54  }
 0x249   :  { %v2998_v55 = vpop.permute.xlu0 %2997  }
 0x24a   :  { %4284 = vst.msk [vmem:[%s8241_s1 + $0x250] sm:$0xff] %vm2757_vm11, %v2998_v55  }
 0x24b   :  { %v3031_v56 = vpop.permute.xlu1 %3030  }
 0x24c   :  { %4293 = vst.msk [vmem:[%s8241_s1 + $0xb8] sm:$0xff] %vm2757_vm11, %v3031_v56  }
 0x24d   :  { %v3020_v57 = vpop.permute.xlu0 %3019  }
 0x24e   :  { %4290 = vst.msk [vmem:[%s8241_s1 + $0x58] sm:$0xff] %vm2757_vm11, %v3020_v57  }
 0x24f   :  { %v3053_v58 = vpop.permute.xlu1 %3052  }
 0x250   :  { %4299 = vst.msk [vmem:[%s8241_s1 + $0x178] sm:$0xff] %vm2757_vm11, %v3053_v58  }
 0x251   :  { %v3042_v59 = vpop.permute.xlu0 %3041  }
 0x252   :  { %4296 = vst.msk [vmem:[%s8241_s1 + $0x118] sm:$0xff] %vm2757_vm11, %v3042_v59  }
 0x253   :  { %v3075_v60 = vpop.permute.xlu1 %3074  }
 0x254   :  { %4305 = vst.msk [vmem:[%s8241_s1 + $0x238] sm:$0xff] %vm2757_vm11, %v3075_v60  }
 0x255   :  { %v3064_v61 = vpop.permute.xlu0 %3063  }
 0x256   :  { %4302 = vst.msk [vmem:[%s8241_s1 + $0x1d8] sm:$0xff] %vm2757_vm11, %v3064_v61  }
 0x257   :  { %v3097_v62 = vpop.permute.xlu1 %3096  }
 0x258   :  { %4311 = vst.msk [vmem:[%s8241_s1 + $0x2f8] sm:$0xff] %vm2757_vm11, %v3097_v62  }
 0x259   :  { %v3086_v63 = vpop.permute.xlu0 %3085  }
 0x25a   :  { %4308 = vst.msk [vmem:[%s8241_s1 + $0x298] sm:$0xff] %vm2757_vm11, %v3086_v63  }
 0x25b   :  { %v3119_v0 = vpop.permute.xlu1 %3118  }
 0x25c   :  { %4317 = vst.msk [vmem:[%s8241_s1 + $0x80] sm:$0xff] %vm3109_vm12, %v3119_v0  }
 0x25d   :  { %v3108_v1 = vpop.permute.xlu0 %3107  }
 0x25e   :  { %4314 = vst.msk [vmem:[%s8241_s1 + $0x20] sm:$0xff] %vm3109_vm12, %v3108_v1  }
 0x25f   :  { %v3141_v2 = vpop.permute.xlu1 %3140  }
 0x260   :  { %4323 = vst.msk [vmem:[%s8241_s1 + $0x140] sm:$0xff] %vm3109_vm12, %v3141_v2  }
 0x261   :  { %v3130_v3 = vpop.permute.xlu0 %3129  }
 0x262   :  { %4320 = vst.msk [vmem:[%s8241_s1 + $0xe0] sm:$0xff] %vm3109_vm12, %v3130_v3  }
 0x263   :  { %v3163_v4 = vpop.permute.xlu1 %3162  }
 0x264   :  { %4329 = vst.msk [vmem:[%s8241_s1 + $0x200] sm:$0xff] %vm3109_vm12, %v3163_v4  }
 0x265   :  { %v3152_v5 = vpop.permute.xlu0 %3151  }
 0x266   :  { %4326 = vst.msk [vmem:[%s8241_s1 + $0x1a0] sm:$0xff] %vm3109_vm12, %v3152_v5  }
 0x267   :  { %v3185_v6 = vpop.permute.xlu1 %3184  }
 0x268   :  { %4335 = vst.msk [vmem:[%s8241_s1 + $0x2c0] sm:$0xff] %vm3109_vm12, %v3185_v6  }
 0x269   :  { %v3174_v7 = vpop.permute.xlu0 %3173  }
 0x26a   :  { %4332 = vst.msk [vmem:[%s8241_s1 + $0x260] sm:$0xff] %vm3109_vm12, %v3174_v7  }
 0x26b   :  { %v3207_v8 = vpop.permute.xlu1 %3206  }
 0x26c   :  { %4341 = vst.msk [vmem:[%s8241_s1 + $0x68] sm:$0xff] %vm3109_vm12, %v3207_v8  }
 0x26d   :  { %v3196_v9 = vpop.permute.xlu0 %3195  }
 0x26e   :  { %4338 = vst.msk [vmem:[%s8241_s1 + $0x8] sm:$0xff] %vm3109_vm12, %v3196_v9  }
 0x26f   :  { %v3229_v10 = vpop.permute.xlu1 %3228  }
 0x270   :  { %4347 = vst.msk [vmem:[%s8241_s1 + $0x128] sm:$0xff] %vm3109_vm12, %v3229_v10  }
 0x271   :  { %v3218_v11 = vpop.permute.xlu0 %3217  }
 0x272   :  { %4344 = vst.msk [vmem:[%s8241_s1 + $0xc8] sm:$0xff] %vm3109_vm12, %v3218_v11  }
 0x273   :  { %v3251_v12 = vpop.permute.xlu1 %3250  }
 0x274   :  { %4353 = vst.msk [vmem:[%s8241_s1 + $0x1e8] sm:$0xff] %vm3109_vm12, %v3251_v12  }
 0x275   :  { %v3240_v13 = vpop.permute.xlu0 %3239  }
 0x276   :  { %4350 = vst.msk [vmem:[%s8241_s1 + $0x188] sm:$0xff] %vm3109_vm12, %v3240_v13  }
 0x277   :  { %v3273_v14 = vpop.permute.xlu1 %3272  }
 0x278   :  { %4359 = vst.msk [vmem:[%s8241_s1 + $0x2a8] sm:$0xff] %vm3109_vm12, %v3273_v14  }
 0x279   :  { %v3262_v15 = vpop.permute.xlu0 %3261  }
 0x27a   :  { %4356 = vst.msk [vmem:[%s8241_s1 + $0x248] sm:$0xff] %vm3109_vm12, %v3262_v15  }
 0x27b   :  { %v3295_v16 = vpop.permute.xlu1 %3294  }
 0x27c   :  { %4365 = vst.msk [vmem:[%s8241_s1 + $0xb0] sm:$0xff] %vm3109_vm12, %v3295_v16  }
 0x27d   :  { %v3284_v17 = vpop.permute.xlu0 %3283  }
 0x27e   :  { %4362 = vst.msk [vmem:[%s8241_s1 + $0x50] sm:$0xff] %vm3109_vm12, %v3284_v17  }
 0x27f   :  { %v3317_v18 = vpop.permute.xlu1 %3316  }
 0x280   :  { %4371 = vst.msk [vmem:[%s8241_s1 + $0x170] sm:$0xff] %vm3109_vm12, %v3317_v18  }
 0x281   :  { %v3306_v19 = vpop.permute.xlu0 %3305  }
 0x282   :  { %4368 = vst.msk [vmem:[%s8241_s1 + $0x110] sm:$0xff] %vm3109_vm12, %v3306_v19  }
 0x283   :  { %v3339_v20 = vpop.permute.xlu1 %3338  }
 0x284   :  { %4377 = vst.msk [vmem:[%s8241_s1 + $0x230] sm:$0xff] %vm3109_vm12, %v3339_v20  }
 0x285   :  { %v3328_v21 = vpop.permute.xlu0 %3327  }
 0x286   :  { %4374 = vst.msk [vmem:[%s8241_s1 + $0x1d0] sm:$0xff] %vm3109_vm12, %v3328_v21  }
 0x287   :  { %v3361_v22 = vpop.permute.xlu1 %3360  }
 0x288   :  { %4383 = vst.msk [vmem:[%s8241_s1 + $0x2f0] sm:$0xff] %vm3109_vm12, %v3361_v22  }
 0x289   :  { %v3350_v23 = vpop.permute.xlu0 %3349  }
 0x28a   :  { %4380 = vst.msk [vmem:[%s8241_s1 + $0x290] sm:$0xff] %vm3109_vm12, %v3350_v23  }
 0x28b   :  { %v3383_v24 = vpop.permute.xlu1 %3382  }
 0x28c   :  { %4389 = vst.msk [vmem:[%s8241_s1 + $0x98] sm:$0xff] %vm3109_vm12, %v3383_v24  }
 0x28d   :  { %v3372_v25 = vpop.permute.xlu0 %3371  }
 0x28e   :  { %4386 = vst.msk [vmem:[%s8241_s1 + $0x38] sm:$0xff] %vm3109_vm12, %v3372_v25  }
 0x28f   :  { %v3405_v26 = vpop.permute.xlu1 %3404  }
 0x290   :  { %4395 = vst.msk [vmem:[%s8241_s1 + $0x158] sm:$0xff] %vm3109_vm12, %v3405_v26  }
 0x291   :  { %v3394_v27 = vpop.permute.xlu0 %3393  }
 0x292   :  { %4392 = vst.msk [vmem:[%s8241_s1 + $0xf8] sm:$0xff] %vm3109_vm12, %v3394_v27  }
 0x293   :  { %v3427_v28 = vpop.permute.xlu1 %3426  }
 0x294   :  { %4401 = vst.msk [vmem:[%s8241_s1 + $0x218] sm:$0xff] %vm3109_vm12, %v3427_v28  }
 0x295   :  { %v3416_v29 = vpop.permute.xlu0 %3415  }
 0x296   :  { %4398 = vst.msk [vmem:[%s8241_s1 + $0x1b8] sm:$0xff] %vm3109_vm12, %v3416_v29  }
 0x297   :  { %v3449_v30 = vpop.permute.xlu1 %3448  }
 0x298   :  { %4407 = vst.msk [vmem:[%s8241_s1 + $0x2d8] sm:$0xff] %vm3109_vm12, %v3449_v30  }
 0x299   :  { %v3438_v31 = vpop.permute.xlu0 %3437  }
 0x29a   :  { %4404 = vst.msk [vmem:[%s8241_s1 + $0x278] sm:$0xff] %vm3109_vm12, %v3438_v31  }

// kernel: audio_encoder_forward.1
= control target key start
LH: loop header
LB: loop body
LE: loop exit
PB: predicated region body
PF: predicated region fallthrough
CT: control target
= control target key end

     0   :  { %v12848_v0 = vmov 0.0   ;;  %vm7592_vm0 = vmmov 0   ;;  %vm930_vm1 = vcmask 1046528   ;;  %vm2131_vm2 = vcmask 523264   ;;  %s12837_s1 = inlined_call_operand.vmem [shape: f32[3,128,64], index: 1, kind: input, shape index: {}]   ;;  %s12838_s0 = inlined_call_operand.vmem [shape: f32[360,256], index: 0, kind: input, shape index: {}]   ;;  %s12839_s3 = inlined_call_operand.vmem [shape: f32[3,64,32], index: 3, kind: input, shape index: {}]   ;;  %s12840_s2 = inlined_call_operand.vmem [shape: f32[1,64], index: 2, kind: input, shape index: {}]   ;;  %s12841_s4 = inlined_call_operand.vmem [shape: f32[1,32], index: 4, kind: input, shape index: {}]   ;;  %s12842_s5 = inlined_call_operand.vmem [shape: f32[8,360,32], index: 5, kind: input, shape index: {}]   ;;  %s12843_s6 = inlined_call_operand.vmem [shape: f32[1,8], index: 6, kind: input, shape index: {}]   ;;  %s12844_s7 = inlined_call_operand.vmem [shape: f32[8,8], index: 7, kind: output, shape index: {}]  }
   0x1   :  { %6529 = vmatprep.subr.bf16.mxu0 %v12848_v0  ;;  %7477 = vmatprep.subr.bf16.mxu1 %v12848_v0  ;;  %v5827_v1 = vld [vmem:[%s12837_s1 + $0x80] sm:$0xff]  ;;  %v5828_v2 = vld [vmem:[%s12837_s1 + $0x88] sm:$0xff]  ;;  %v5829_v3 = vld [vmem:[%s12837_s1 + $0x90] sm:$0xff]  ;;  %vm3088_vm3 = vcmask 1045504   ;;  %vm3457_vm4 = vcmask 261120   ;;  %vm5175_vm5 = vcmask 7168  }
   0x2   :  { %v7644_v4 = vpack.c.bf16 %v5828_v2, %v5827_v1  ;;  %v5830_v5 = vld [vmem:[%s12837_s1 + $0x98] sm:$0xff]  ;;  %6545 = vmatprep.mubr.msk.bf16.mxu0 %vm7592_vm0, %v12848_v0  ;;  %6593 = vmatprep.mubr.msk.bf16.mxu1 %vm7592_vm0, %v12848_v0  ;;  %v5831_v7 = vld [vmem:[%s12837_s1 + $0xa0] sm:$0xff]  ;;  %v5832_v8 = vld [vmem:[%s12837_s1 + $0xa8] sm:$0xff]  ;;  %vm5221_vm6 = vcmask 15360   ;;  %vm5267_vm7 = vcmask 23552   ;;  %vm5313_vm8 = vcmask 31744  }
   0x3   :  { %v7655_v6 = vpack.c.bf16 %v5830_v5, %v5829_v3  ;;  %v7667_v9 = vpack.c.bf16 %v5832_v8, %v5831_v7  ;;  %v5833_v10 = vld [vmem:[%s12837_s1 + $0xb0] sm:$0xff]  ;;  %v5834_v11 = vld [vmem:[%s12837_s1 + $0xb8] sm:$0xff]  ;;  %v5835_v13 = vld [vmem:[%s12837_s1 + $0xc0] sm:$0xff]  ;;  %vm5359_vm9 = vcmask 39936   ;;  %vm5405_vm10 = vcmask 48128  }
   0x4   :  { %6530 = vmatpush3.bf16.msra.mxu0 %v7644_v4  ;;  %7485 = vmatpush3.bf16.msra.mxu1 %v7644_v4  ;;  %v7679_v12 = vpack.c.bf16 %v5834_v11, %v5833_v10  ;;  %v5836_v14 = vld [vmem:[%s12837_s1 + $0xc8] sm:$0xff]  ;;  %v5837_v16 = vld [vmem:[%s12837_s1 + $0xd0] sm:$0xff]  ;;  %v5838_v17 = vld [vmem:[%s12837_s1 + $0xd8] sm:$0xff]  ;;  %vm5451_vm11 = vcmask 56320   ;;  %vm5497_vm12 = vcmask 64512   ;;  %vm5507_vm13 = vcmask 61440  }
   0x5   :  { %6531 = vmatprep.subr.bf16.mxu0 %v12848_v0  ;;  %7478 = vmatprep.subr.bf16.mxu1 %v12848_v0  ;;  %v7691_v15 = vpack.c.bf16 %v5836_v14, %v5835_v13  ;;  %v7703_v18 = vpack.c.bf16 %v5838_v17, %v5837_v16  ;;  %v5839_v19 = vld [vmem:[%s12837_s1 + $0xe0] sm:$0xff]  ;;  %v5840_v20 = vld [vmem:[%s12837_s1 + $0xe8] sm:$0xff]  ;;  %v5841_v22 = vld [vmem:[%s12837_s1 + $0xf0] sm:$0xff]  ;;  %vm5523_vm14 = vcmask 1042432   ;;  %vm5605_vm15 = vcmask 1040384  }
   0x6   :  { %v7715_v21 = vpack.c.bf16 %v5840_v20, %v5839_v19  ;;  %v5842_v23 = vld [vmem:[%s12837_s1 + $0xf8] sm:$0xff]  ;;  %v28_v24 = vld [vmem:[%s12838_s0 + $0x8] sm:$0xff]  ;;  %v163_v29 = vld [vmem:[%s12837_s1] sm:$0xff] }
   0x7   :  { %v7730_v25 = vpack.c.bf16 %v5842_v23, %v5841_v22  ;;  %v30_v26 = vld [vmem:[%s12838_s0 + $0x18] sm:$0xff]  ;;  %v76_v27 = vld [vmem:[%s12838_s0 + $0x188] sm:$0xff]  ;;  %v5843_v33 = vld [vmem:[%s12837_s1 + $0x100] sm:$0xff] }
   0x8   :  { %6532 = vmatpush3.bf16.msra.mxu0 %v7655_v6  ;;  %7486 = vmatpush3.bf16.msra.mxu1 %v7655_v6  ;;  %v78_v28 = vld [vmem:[%s12838_s0 + $0x198] sm:$0xff]  ;;  %v164_v30 = vld [vmem:[%s12837_s1 + $0x8] sm:$0xff]  ;;  %v7749_v31 = vpack.c.bf16 %v30_v26, %v28_v24  ;;  %v165_v36 = vld [vmem:[%s12837_s1 + $0x10] sm:$0xff] }
   0x9   :  { %6533 = vmatprep.subr.bf16.mxu0 %v12848_v0  ;;  %7479 = vmatprep.subr.bf16.mxu1 %v12848_v0  ;;  %v7751_v32 = vpack.c.bf16 %v78_v28, %v76_v27  ;;  %v5844_v34 = vld [vmem:[%s12837_s1 + $0x108] sm:$0xff]  ;;  %v7761_v35 = vpack.c.bf16 %v164_v30, %v163_v29  ;;  %v166_v37 = vld [vmem:[%s12837_s1 + $0x18] sm:$0xff]  ;;  %v5845_v40 = vld [vmem:[%s12837_s1 + $0x110] sm:$0xff] }
   0xa   :  { %v7771_v38 = vpack.c.bf16 %v5844_v34, %v5843_v33  ;;  %v32_v39 = vld [vmem:[%s12838_s0 + $0x28] sm:$0xff]  ;;  %v5846_v41 = vld [vmem:[%s12837_s1 + $0x118] sm:$0xff]  ;;  %v7796_v45 = vpack.c.bf16 %v166_v37, %v165_v36  ;;  %v167_v46 = vld [vmem:[%s12837_s1 + $0x20] sm:$0xff] }
   0xb   :  { %v34_v42 = vld [vmem:[%s12838_s0 + $0x38] sm:$0xff]  ;;  %v80_v43 = vld [vmem:[%s12838_s0 + $0x1a8] sm:$0xff]  ;;  %v7808_v48 = vpack.c.bf16 %v5846_v41, %v5845_v40  ;;  %v5847_v51 = vld [vmem:[%s12837_s1 + $0x120] sm:$0xff] }
   0xc   :  { %6534 = vmatpush3.bf16.msra.mxu0 %v7667_v9  ;;  %7487 = vmatpush3.bf16.msra.mxu1 %v7667_v9  ;;  %v82_v44 = vld [vmem:[%s12838_s0 + $0x1b8] sm:$0xff]  ;;  %v168_v47 = vld [vmem:[%s12837_s1 + $0x28] sm:$0xff]  ;;  %v7810_v49 = vpack.c.bf16 %v34_v42, %v32_v39  ;;  %v169_v54 = vld [vmem:[%s12837_s1 + $0x30] sm:$0xff] }
   0xd   :  { %6535 = vmatprep.subr.bf16.mxu0 %v12848_v0  ;;  %7480 = vmatprep.subr.bf16.mxu1 %v12848_v0  ;;  %v7812_v50 = vpack.c.bf16 %v82_v44, %v80_v43  ;;  %v5848_v52 = vld [vmem:[%s12837_s1 + $0x128] sm:$0xff]  ;;  %v7823_v53 = vpack.c.bf16 %v168_v47, %v167_v46  ;;  %v170_v55 = vld [vmem:[%s12837_s1 + $0x38] sm:$0xff]  ;;  %v5849_v58 = vld [vmem:[%s12837_s1 + $0x130] sm:$0xff] }
   0xe   :  { %v7832_v56 = vpack.c.bf16 %v5848_v52, %v5847_v51  ;;  %v36_v57 = vld [vmem:[%s12838_s0 + $0x48] sm:$0xff]  ;;  %v5850_v59 = vld [vmem:[%s12837_s1 + $0x138] sm:$0xff]  ;;  %v7859_v63 = vpack.c.bf16 %v170_v55, %v169_v54  ;;  %v171_v1 = vld [vmem:[%s12837_s1 + $0x40] sm:$0xff] }
   0xf   :  { %v38_v60 = vld [vmem:[%s12838_s0 + $0x58] sm:$0xff]  ;;  %v84_v61 = vld [vmem:[%s12838_s0 + $0x1c8] sm:$0xff]  ;;  %v7870_v3 = vpack.c.bf16 %v5850_v59, %v5849_v58  ;;  %v5851_v8 = vld [vmem:[%s12837_s1 + $0x140] sm:$0xff] }
  0x10   :  { %6536 = vmatpush3.bf16.msra.mxu0 %v7679_v12  ;;  %7488 = vmatpush3.bf16.msra.mxu1 %v7679_v12  ;;  %v86_v62 = vld [vmem:[%s12838_s0 + $0x1d8] sm:$0xff]  ;;  %v172_v2 = vld [vmem:[%s12837_s1 + $0x48] sm:$0xff]  ;;  %v7872_v5 = vpack.c.bf16 %v38_v60, %v36_v57  ;;  %v173_v13 = vld [vmem:[%s12837_s1 + $0x50] sm:$0xff] }
  0x11   :  { %6537 = vmatprep.subr.bf16.mxu0 %v12848_v0  ;;  %7481 = vmatprep.subr.bf16.mxu1 %v12848_v0  ;;  %v7874_v7 = vpack.c.bf16 %v86_v62, %v84_v61  ;;  %v5852_v10 = vld [vmem:[%s12837_s1 + $0x148] sm:$0xff]  ;;  %v7884_v11 = vpack.c.bf16 %v172_v2, %v171_v1  ;;  %v174_v14 = vld [vmem:[%s12837_s1 + $0x58] sm:$0xff]  ;;  %v5853_v19 = vld [vmem:[%s12837_s1 + $0x150] sm:$0xff] }
  0x12   :  { %v7894_v16 = vpack.c.bf16 %v5852_v10, %v5851_v8  ;;  %v40_v17 = vld [vmem:[%s12838_s0 + $0x68] sm:$0xff]  ;;  %v5854_v20 = vld [vmem:[%s12837_s1 + $0x158] sm:$0xff]  ;;  %v7921_v26 = vpack.c.bf16 %v174_v14, %v173_v13  ;;  %v175_v27 = vld [vmem:[%s12837_s1 + $0x60] sm:$0xff] }
  0x13   :  { %v42_v22 = vld [vmem:[%s12838_s0 + $0x78] sm:$0xff]  ;;  %v88_v23 = vld [vmem:[%s12838_s0 + $0x1e8] sm:$0xff]  ;;  %v7932_v29 = vpack.c.bf16 %v5854_v20, %v5853_v19  ;;  %v5855_v34 = vld [vmem:[%s12837_s1 + $0x160] sm:$0xff] }
  0x14   :  { %6538 = vmatpush3.bf16.msra.mxu0 %v7691_v15  ;;  %7489 = vmatpush3.bf16.msra.mxu1 %v7691_v15  ;;  %v90_v24 = vld [vmem:[%s12838_s0 + $0x1f8] sm:$0xff]  ;;  %v176_v28 = vld [vmem:[%s12837_s1 + $0x68] sm:$0xff]  ;;  %v7934_v30 = vpack.c.bf16 %v42_v22, %v40_v17  ;;  %v177_v39 = vld [vmem:[%s12837_s1 + $0x70] sm:$0xff] }
  0x15   :  { %6539 = vmatprep.subr.bf16.mxu0 %v12848_v0  ;;  %7482 = vmatprep.subr.bf16.mxu1 %v12848_v0  ;;  %v7936_v33 = vpack.c.bf16 %v90_v24, %v88_v23  ;;  %v5856_v36 = vld [vmem:[%s12837_s1 + $0x168] sm:$0xff]  ;;  %v7946_v37 = vpack.c.bf16 %v176_v28, %v175_v27  ;;  %v178_v40 = vld [vmem:[%s12837_s1 + $0x78] sm:$0xff]  ;;  %v5857_v43 = vld [vmem:[%s12837_s1 + $0x170] sm:$0xff] }
  0x16   :  { %v7956_v41 = vpack.c.bf16 %v5856_v36, %v5855_v34  ;;  %v44_v42 = vld [vmem:[%s12838_s0 + $0x88] sm:$0xff]  ;;  %v5858_v44 = vld [vmem:[%s12837_s1 + $0x178] sm:$0xff]  ;;  %v7983_v52 = vpack.c.bf16 %v178_v40, %v177_v39 }
  0x17   :  { %v46_v46 = vld [vmem:[%s12838_s0 + $0x98] sm:$0xff]  ;;  %v92_v47 = vld [vmem:[%s12838_s0 + $0x208] sm:$0xff]  ;;  %v7988_v54 = vpack.c.bf16 %v5858_v44, %v5857_v43 }
  0x18   :  { %6540 = vmatpush3.bf16.msra.mxu0 %v7703_v18  ;;  %7490 = vmatpush3.bf16.msra.mxu1 %v7703_v18  ;;  %v94_v51 = vld [vmem:[%s12838_s0 + $0x218] sm:$0xff]  ;;  %v7990_v55 = vpack.c.bf16 %v46_v46, %v44_v42  ;;  %v48_v58 = vld [vmem:[%s12838_s0 + $0xa8] sm:$0xff] }
  0x19   :  { %6541 = vmatprep.subr.bf16.mxu0 %v12848_v0  ;;  %7483 = vmatprep.subr.bf16.mxu1 %v12848_v0  ;;  %v7992_v57 = vpack.c.bf16 %v94_v51, %v92_v47  ;;  %v50_v59 = vld [vmem:[%s12838_s0 + $0xb8] sm:$0xff]  ;;  %v96_v60 = vld [vmem:[%s12838_s0 + $0x228] sm:$0xff] }
  0x1a   :  { %v98_v61 = vld [vmem:[%s12838_s0 + $0x238] sm:$0xff]  ;;  %v8017_v62 = vpack.c.bf16 %v50_v59, %v48_v58  ;;  %v52_v2 = vld [vmem:[%s12838_s0 + $0xc8] sm:$0xff] }
  0x1b   :  { %v8019_v1 = vpack.c.bf16 %v98_v61, %v96_v60  ;;  %v54_v8 = vld [vmem:[%s12838_s0 + $0xd8] sm:$0xff]  ;;  %v100_v10 = vld [vmem:[%s12838_s0 + $0x248] sm:$0xff] }
  0x1c   :  { %6542 = vmatpush3.bf16.msra.mxu0 %v7715_v21  ;;  %7491 = vmatpush3.bf16.msra.mxu1 %v7715_v21  ;;  %v102_v13 = vld [vmem:[%s12838_s0 + $0x258] sm:$0xff]  ;;  %v8039_v14 = vpack.c.bf16 %v54_v8, %v52_v2  ;;  %v56_v19 = vld [vmem:[%s12838_s0 + $0xe8] sm:$0xff] }
  0x1d   :  { %6543 = vmatprep.subr.bf16.mxu0 %v12848_v0  ;;  %7484 = vmatprep.subr.bf16.mxu1 %v12848_v0  ;;  %v8041_v17 = vpack.c.bf16 %v102_v13, %v100_v10  ;;  %v58_v20 = vld [vmem:[%s12838_s0 + $0xf8] sm:$0xff]  ;;  %v104_v22 = vld [vmem:[%s12838_s0 + $0x268] sm:$0xff] }
  0x1e   :  { %v106_v23 = vld [vmem:[%s12838_s0 + $0x278] sm:$0xff]  ;;  %v8061_v24 = vpack.c.bf16 %v58_v20, %v56_v19  ;;  %v60_v28 = vld [vmem:[%s12838_s0 + $0x108] sm:$0xff]  ;;  %v27_v19 = vld [vmem:[%s12838_s0] sm:$0xff] }
  0x1f   :  { %v8063_v27 = vpack.c.bf16 %v106_v23, %v104_v22  ;;  %v62_v34 = vld [vmem:[%s12838_s0 + $0x118] sm:$0xff]  ;;  %v108_v36 = vld [vmem:[%s12838_s0 + $0x288] sm:$0xff]  ;;  %v29_v20 = vld [vmem:[%s12838_s0 + $0x10] sm:$0xff] }
  0x20   :  { %6544 = vmatpush3.bf16.msra.mxu0 %v7730_v25  ;;  %7492 = vmatpush3.bf16.msra.mxu1 %v7730_v25  ;;  %v110_v39 = vld [vmem:[%s12838_s0 + $0x298] sm:$0xff]  ;;  %v8083_v40 = vpack.c.bf16 %v62_v34, %v60_v28  ;;  %v64_v43 = vld [vmem:[%s12838_s0 + $0x128] sm:$0xff]  ;;  %v8148_v23 = vpack.c.bf16 %v29_v20, %v27_v19  ;;  %v31_v28 = vld [vmem:[%s12838_s0 + $0x20] sm:$0xff] }
  0x21   :  { %6637 = vmatprep.subr.bf16.mxu1 %v12848_v0  ;;  %6745 = vmatprep.subr.bf16.mxu0 %v12848_v0  ;;  %12892 = vst [vmem:[#allocation2_spill] sm:$0xff] %v8063_v27  ;;  %v8085_v42 = vpack.c.bf16 %v110_v39, %v108_v36  ;;  %v66_v44 = vld [vmem:[%s12838_s0 + $0x138] sm:$0xff]  ;;  %v112_v46 = vld [vmem:[%s12838_s0 + $0x2a8] sm:$0xff]  ;;  %v33_v34 = vld [vmem:[%s12838_s0 + $0x30] sm:$0xff] }
  0x22   :  { %v114_v47 = vld [vmem:[%s12838_s0 + $0x2b8] sm:$0xff]  ;;  %v8105_v51 = vpack.c.bf16 %v66_v44, %v64_v43  ;;  %v68_v59 = vld [vmem:[%s12838_s0 + $0x148] sm:$0xff]  ;;  %12896 = vst [vmem:[#allocation6_spill] sm:$0xff] %v8148_v23  ;;  %v8164_v36 = vpack.c.bf16 %v33_v34, %v31_v28  ;;  %v59_v44 = vld [vmem:[%s12838_s0 + $0x100] sm:$0xff] }
  0x23   :  { %6546 = vmatmul.mubr.bf16.vlgmr.msra.gmra.mrb[0].mxu0 %v7749_v31  ;;  %6594 = vmatmul.mubr.bf16.vlgmr.msra.gmra.mrb[0].mxu1 %v7751_v32  ;;  %12893 = vst [vmem:[#allocation3_spill] sm:$0xff] %v8085_v42  ;;  %v8107_v58 = vpack.c.bf16 %v114_v47, %v112_v46  ;;  %v70_v60 = vld [vmem:[%s12838_s0 + $0x158] sm:$0xff]  ;;  %v116_v61 = vld [vmem:[%s12838_s0 + $0x2c8] sm:$0xff]  ;;  %v61_v46 = vld [vmem:[%s12838_s0 + $0x110] sm:$0xff] }
  0x24   :  { %6638 = vmatpush3.bf16.msra.mxu1 %v7761_v35  ;;  %6549 = vmatprep.mubr.msk.bf16.mxu0 %vm7592_vm0, %v12848_v0  ;;  %v8124_v2 = vpack.c.bf16 %v70_v60, %v68_v59  ;;  %v8126_v8 = vpack.c.bf16 %v116_v61, %v116_v61  ;;  %v72_v10 = vld [vmem:[%s12838_s0 + $0x168] sm:$0xff]  ;;  %v74_v13 = vld [vmem:[%s12838_s0 + $0x178] sm:$0xff]  ;;  %12897 = vst [vmem:[#allocation7_spill] sm:$0xff] %v8164_v36  ;;  %v63_v59 = vld [vmem:[%s12838_s0 + $0x120] sm:$0xff] }
  0x25   :  { %6597 = vmatprep.mubr.msk.bf16.mxu1 %vm7592_vm0, %v12848_v0  ;;  %6639 = vmatprep.subr.bf16.mxu1 %v12848_v0  ;;  %12894 = vst [vmem:[#allocation4_spill] sm:$0xff] %v8107_v58  ;;  %v8146_v22 = vpack.c.bf16 %v74_v13, %v72_v10  ;;  %v8292_v47 = vpack.c.bf16 %v61_v46, %v59_v44  ;;  %v65_v60 = vld [vmem:[%s12838_s0 + $0x130] sm:$0xff]  ;;  %v67_v10 = vld [vmem:[%s12838_s0 + $0x140] sm:$0xff] }
  0x26   :  { %6746 = vmatpush3.bf16.msra.mxu0 %v7771_v38  ;;  %12895 = vst [vmem:[#allocation5_spill] sm:$0xff] %v8126_v8  ;;  %v8306_v61 = vpack.c.bf16 %v65_v60, %v63_v59  ;;  %v69_v13 = vld [vmem:[%s12838_s0 + $0x150] sm:$0xff]  ;;  %v71_v20 = vld [vmem:[%s12838_s0 + $0x160] sm:$0xff] }
  0x27   :  { %6747 = vmatprep.subr.bf16.mxu0 %v12848_v0  ;;  %12904 = vst [vmem:[#allocation14_spill] sm:$0xff] %v8292_v47  ;;  %v8320_v19 = vpack.c.bf16 %v69_v13, %v67_v10  ;;  %v73_v28 = vld [vmem:[%s12838_s0 + $0x170] sm:$0xff]  ;;  %v91_v44 = vld [vmem:[%s12838_s0 + $0x200] sm:$0xff] }
  0x28   :  { %6640 = vmatpush3.bf16.msra.mxu1 %v7796_v45  ;;  %12905 = vst [vmem:[#allocation15_spill] sm:$0xff] %v8306_v61  ;;  %v8334_v34 = vpack.c.bf16 %v73_v28, %v71_v20  ;;  %v93_v46 = vld [vmem:[%s12838_s0 + $0x210] sm:$0xff] }
  0x29   :  { %6641 = vmatprep.subr.bf16.mxu1 %v12848_v0  ;;  %12906 = vst [vmem:[#allocation16_spill] sm:$0xff] %v8320_v19  ;;  %v8408_v13 = vpack.c.bf16 %v93_v46, %v91_v44 }
  0x2a   :  { %6748 = vmatpush3.bf16.msra.mxu0 %v7808_v48  ;;  %12907 = vst [vmem:[#allocation17_spill] sm:$0xff] %v8334_v34 }
  0x2b   :  { %6550 = vmatmul.mubr.bf16.gmra.mrb[4].mxu0 %v7810_v49  ;;  %6598 = vmatmul.mubr.bf16.gmra.mrb[4].mxu1 %v7812_v50  ;;  %12912 = vst [vmem:[#allocation22_spill] sm:$0xff] %v8408_v13 }
  0x2c   :  { %6553 = vmatprep.mubr.msk.bf16.mxu0 %vm7592_vm0, %v12848_v0  ;;  %6601 = vmatprep.mubr.msk.bf16.mxu1 %vm7592_vm0, %v12848_v0 }
  0x2d   :  { %6642 = vmatpush3.bf16.msra.mxu1 %v7823_v53  ;;  %6749 = vmatprep.subr.bf16.mxu0 %v12848_v0 }
  0x2e   :  { %6643 = vmatprep.subr.bf16.mxu1 %v12848_v0  ;;  %6750 = vmatpush3.bf16.msra.mxu0 %v7832_v56 }
  0x2f   :  { %6751 = vmatprep.subr.bf16.mxu0 %v12848_v0 }
  0x31   :  { %6644 = vmatpush3.bf16.msra.mxu1 %v7859_v63 }
  0x32   :  { %6645 = vmatprep.subr.bf16.mxu1 %v12848_v0  ;;  %6752 = vmatpush3.bf16.msra.mxu0 %v7870_v3 }
  0x33   :  { %6554 = vmatmul.mubr.bf16.gmra.mrb[8].mxu0 %v7872_v5  ;;  %6602 = vmatmul.mubr.bf16.gmra.mrb[8].mxu1 %v7874_v7 }
  0x34   :  { %6557 = vmatprep.mubr.msk.bf16.mxu0 %vm7592_vm0, %v12848_v0  ;;  %6605 = vmatprep.mubr.msk.bf16.mxu1 %vm7592_vm0, %v12848_v0 }
  0x35   :  { %6646 = vmatpush3.bf16.msra.mxu1 %v7884_v11  ;;  %6753 = vmatprep.subr.bf16.mxu0 %v12848_v0 }
  0x36   :  { %6647 = vmatprep.subr.bf16.mxu1 %v12848_v0  ;;  %6754 = vmatpush3.bf16.msra.mxu0 %v7894_v16 }
  0x37   :  { %6755 = vmatprep.subr.bf16.mxu0 %v12848_v0 }
  0x39   :  { %6648 = vmatpush3.bf16.msra.mxu1 %v7921_v26 }
  0x3a   :  { %6649 = vmatprep.subr.bf16.mxu1 %v12848_v0  ;;  %6756 = vmatpush3.bf16.msra.mxu0 %v7932_v29 }
  0x3b   :  { %6558 = vmatmul.mubr.bf16.gmra.mrb[12].mxu0 %v7934_v30  ;;  %6606 = vmatmul.mubr.bf16.gmra.mrb[12].mxu1 %v7936_v33 }
  0x3c   :  { %6561 = vmatprep.mubr.msk.bf16.mxu0 %vm7592_vm0, %v12848_v0  ;;  %6609 = vmatprep.mubr.msk.bf16.mxu1 %vm7592_vm0, %v12848_v0 }
  0x3d   :  { %6650 = vmatpush3.bf16.msra.mxu1 %v7946_v37  ;;  %6757 = vmatprep.subr.bf16.mxu0 %v12848_v0 }
  0x3e   :  { %6651 = vmatprep.subr.bf16.mxu1 %v12848_v0  ;;  %6758 = vmatpush3.bf16.msra.mxu0 %v7956_v41 }
  0x3f   :  { %6759 = vmatprep.subr.bf16.mxu0 %v12848_v0 }
  0x41   :  { %6652 = vmatpush3.bf16.msra.mxu1 %v7983_v52 }
  0x42   :  { %6853 = vmatprep.subr.bf16.mxu1 %v12848_v0  ;;  %6760 = vmatpush3.bf16.msra.mxu0 %v7988_v54 }
  0x43   :  { %6562 = vmatmul.mubr.bf16.gmra.mrb[16].mxu0 %v7990_v55  ;;  %6610 = vmatmul.mubr.bf16.gmra.mrb[16].mxu1 %v7992_v57 }
  0x44   :  { %6565 = vmatprep.mubr.msk.bf16.mxu0 %vm7592_vm0, %v12848_v0  ;;  %6613 = vmatprep.mubr.msk.bf16.mxu1 %vm7592_vm0, %v12848_v0 }
  0x45   :  { %7069 = vmatprep.subr.bf16.mxu0 %v12848_v0 }
  0x4b   :  { %6566 = vmatmul.mubr.bf16.gmra.mrb[20].mxu0 %v8017_v62  ;;  %6614 = vmatmul.mubr.bf16.gmra.mrb[20].mxu1 %v8019_v1 }
  0x4c   :  { %6569 = vmatprep.mubr.msk.bf16.mxu0 %vm7592_vm0, %v12848_v0  ;;  %6617 = vmatprep.mubr.msk.bf16.mxu1 %vm7592_vm0, %v12848_v0 }
  0x53   :  { %6570 = vmatmul.mubr.bf16.gmra.mrb[24].mxu0 %v8039_v14  ;;  %6618 = vmatmul.mubr.bf16.gmra.mrb[24].mxu1 %v8041_v17 }
  0x54   :  { %6573 = vmatprep.mubr.msk.bf16.mxu0 %vm7592_vm0, %v12848_v0  ;;  %6621 = vmatprep.mubr.msk.bf16.mxu1 %vm7592_vm0, %v12848_v0 }
  0x5b   :  { %6574 = vmatmul.mubr.bf16.gmra.mrb[28].mxu0 %v8061_v24  ;;  %6622 = vmatmul.mubr.bf16.gmra.mrb[28].mxu1 %v8063_v27 }
  0x5c   :  { %6577 = vmatprep.mubr.msk.bf16.mxu0 %vm7592_vm0, %v12848_v0  ;;  %6625 = vmatprep.mubr.msk.bf16.mxu1 %vm7592_vm0, %v12848_v0 }
  0x63   :  { %6578 = vmatmul.mubr.bf16.gmra.mrb[32].mxu0 %v8083_v40  ;;  %6626 = vmatmul.mubr.bf16.gmra.mrb[32].mxu1 %v8085_v42 }
  0x64   :  { %6581 = vmatprep.mubr.msk.bf16.mxu0 %vm7592_vm0, %v12848_v0  ;;  %6629 = vmatprep.mubr.msk.bf16.mxu1 %vm7592_vm0, %v12848_v0 }
  0x6b   :  { %6582 = vmatmul.mubr.bf16.gmra.mrb[36].mxu0 %v8105_v51  ;;  %6630 = vmatmul.mubr.bf16.gmra.mrb[36].mxu1 %v8107_v58 }
  0x6c   :  { %6585 = vmatprep.mubr.msk.bf16.mxu0 %vm7592_vm0, %v12848_v0  ;;  %6633 = vmatprep.mubr.msk.bf16.mxu1 %vm7592_vm0, %v12848_v0 }
  0x73   :  { %6586 = vmatmul.mubr.bf16.gmra.mrb[40].mxu0 %v8124_v2  ;;  %6634 = vmatmul.mubr.bf16.gmra.mrb[40].mxu1 %v8126_v8 }
  0x74   :  { %6589 = vmatprep.mubr.msk.bf16.mxu0 %vm7592_vm0, %v12848_v0  ;;  %6653 = vmatprep.mubr.msk.bf16.mxu1 %vm7592_vm0, %v12848_v0 }
  0x7b   :  { %6590 = vmatmul.mubr.bf16.gmra.mrb[44].mxu0 %v8146_v22  ;;  %6654 = vmatmul.mubr.bf16.vlgmr.msra.gmra.mrb[44].mxu1 %v8148_v23 }
  0x7c   :  { %6854 = vmatpush3.bf16.msra.mxu1 %v7771_v38  ;;  %6657 = vmatprep.mubr.msk.bf16.mxu1 %vm7592_vm0, %v12848_v0  ;;  %v35_v38 = vld [vmem:[%s12838_s0 + $0x40] sm:$0xff] }
  0x7d   :  { %6761 = vmatprep.mubr.msk.bf16.mxu0 %vm7592_vm0, %v12848_v0  ;;  %6855 = vmatprep.subr.bf16.mxu1 %v12848_v0 }
  0x80   :  { %6856 = vmatpush3.bf16.msra.mxu1 %v7808_v48  ;;  %v37_v48 = vld [vmem:[%s12838_s0 + $0x50] sm:$0xff] }
  0x81   :  { %6857 = vmatprep.subr.bf16.mxu1 %v12848_v0  ;;  %v8184_v39 = vpack.c.bf16 %v37_v48, %v35_v38  ;;  %v75_v38 = vld [vmem:[%s12838_s0 + $0x180] sm:$0xff]  ;;  %v77_v48 = vld [vmem:[%s12838_s0 + $0x190] sm:$0xff] }
  0x83   :  { %6658 = vmatmul.mubr.bf16.gmra.mrb[48].mxu1 %v8164_v36  ;;  %6762 = vmatmul.mubr.bf16.vlgmr.msra.gmra.mrb[48].mxu0 %v8148_v23  ;;  %12898 = vst [vmem:[#allocation8_spill] sm:$0xff] %v8184_v39 }
  0x84   :  { %6661 = vmatprep.mubr.msk.bf16.mxu1 %vm7592_vm0, %v12848_v0  ;;  %6765 = vmatprep.mubr.msk.bf16.mxu0 %vm7592_vm0, %v12848_v0 }
  0x85   :  { %6858 = vmatpush3.bf16.msra.mxu1 %v7832_v56  ;;  %7070 = vmatpush3.bf16.msra.mxu0 %v7761_v35  ;;  %v39_v35 = vld [vmem:[%s12838_s0 + $0x60] sm:$0xff] }
  0x86   :  { %6859 = vmatprep.subr.bf16.mxu1 %v12848_v0  ;;  %7071 = vmatprep.subr.bf16.mxu0 %v12848_v0 }
  0x89   :  { %6860 = vmatpush3.bf16.msra.mxu1 %v7870_v3  ;;  %7072 = vmatpush3.bf16.msra.mxu0 %v7796_v45  ;;  %v41_v45 = vld [vmem:[%s12838_s0 + $0x70] sm:$0xff] }
  0x8a   :  { %6861 = vmatprep.subr.bf16.mxu1 %v12848_v0  ;;  %7073 = vmatprep.subr.bf16.mxu0 %v12848_v0  ;;  %v8206_v56 = vpack.c.bf16 %v41_v45, %v39_v35  ;;  %v8348_v35 = vpack.c.bf16 %v77_v48, %v75_v38  ;;  %v79_v45 = vld [vmem:[%s12838_s0 + $0x1a0] sm:$0xff] }
  0x8b   :  { %6662 = vmatmul.mubr.bf16.gmra.mrb[52].mxu1 %v8184_v39  ;;  %6766 = vmatmul.mubr.bf16.gmra.mrb[52].mxu0 %v8164_v36 }
  0x8c   :  { %6665 = vmatprep.mubr.msk.bf16.mxu1 %vm7592_vm0, %v12848_v0  ;;  %6769 = vmatprep.mubr.msk.bf16.mxu0 %vm7592_vm0, %v12848_v0  ;;  %12899 = vst [vmem:[#allocation9_spill] sm:$0xff] %v8206_v56  ;;  %12908 = vst [vmem:[#allocation18_spill] sm:$0xff] %v8348_v35 }
  0x8d   :  { %6862 = vmatpush3.bf16.msra.mxu1 %v7894_v16  ;;  %7074 = vmatpush3.bf16.msra.mxu0 %v7823_v53  ;;  %v43_v53 = vld [vmem:[%s12838_s0 + $0x80] sm:$0xff]  ;;  %v49_v16 = vld [vmem:[%s12838_s0 + $0xb0] sm:$0xff] }
  0x8e   :  { %6863 = vmatprep.subr.bf16.mxu1 %v12848_v0  ;;  %7075 = vmatprep.subr.bf16.mxu0 %v12848_v0 }
  0x91   :  { %6864 = vmatpush3.bf16.msra.mxu1 %v7932_v29  ;;  %7076 = vmatpush3.bf16.msra.mxu0 %v7859_v63  ;;  %v45_v63 = vld [vmem:[%s12838_s0 + $0x90] sm:$0xff]  ;;  %v51_v29 = vld [vmem:[%s12838_s0 + $0xc0] sm:$0xff] }
  0x92   :  { %6865 = vmatprep.subr.bf16.mxu1 %v12848_v0  ;;  %7077 = vmatprep.subr.bf16.mxu0 %v12848_v0  ;;  %v8228_v3 = vpack.c.bf16 %v45_v63, %v43_v53  ;;  %v81_v53 = vld [vmem:[%s12838_s0 + $0x1b0] sm:$0xff] }
  0x93   :  { %6666 = vmatmul.mubr.bf16.gmra.mrb[56].mxu1 %v8206_v56  ;;  %6770 = vmatmul.mubr.bf16.gmra.mrb[56].mxu0 %v8184_v39  ;;  %v8362_v63 = vpack.c.bf16 %v81_v53, %v79_v45  ;;  %v95_v53 = vld [vmem:[%s12838_s0 + $0x220] sm:$0xff] }
  0x94   :  { %6669 = vmatprep.mubr.msk.bf16.mxu1 %vm7592_vm0, %v12848_v0  ;;  %6773 = vmatprep.mubr.msk.bf16.mxu0 %vm7592_vm0, %v12848_v0  ;;  %12900 = vst [vmem:[#allocation10_spill] sm:$0xff] %v8228_v3 }
  0x95   :  { %6866 = vmatpush3.bf16.msra.mxu1 %v7956_v41  ;;  %7078 = vmatpush3.bf16.msra.mxu0 %v7884_v11  ;;  %v47_v11 = vld [vmem:[%s12838_s0 + $0xa0] sm:$0xff]  ;;  %12909 = vst [vmem:[#allocation19_spill] sm:$0xff] %v8362_v63 }
  0x96   :  { %6867 = vmatprep.subr.bf16.mxu1 %v12848_v0  ;;  %7079 = vmatprep.subr.bf16.mxu0 %v12848_v0 }
  0x99   :  { %6868 = vmatpush3.bf16.msra.mxu1 %v7988_v54  ;;  %7080 = vmatpush3.bf16.msra.mxu0 %v7921_v26  ;;  %v8248_v26 = vpack.c.bf16 %v49_v16, %v47_v11  ;;  %v57_v54 = vld [vmem:[%s12838_s0 + $0xf0] sm:$0xff]  ;;  %v83_v11 = vld [vmem:[%s12838_s0 + $0x1c0] sm:$0xff] }
  0x9a   :  { %6961 = vmatprep.subr.bf16.mxu1 %v12848_v0  ;;  %7081 = vmatprep.subr.bf16.mxu0 %v12848_v0  ;;  %v85_v16 = vld [vmem:[%s12838_s0 + $0x1d0] sm:$0xff] }
  0x9b   :  { %6670 = vmatmul.mubr.bf16.gmra.mrb[60].mxu1 %v8228_v3  ;;  %6774 = vmatmul.mubr.bf16.gmra.mrb[60].mxu0 %v8206_v56  ;;  %12901 = vst [vmem:[#allocation11_spill] sm:$0xff] %v8248_v26 }
  0x9c   :  { %6673 = vmatprep.mubr.msk.bf16.mxu1 %vm7592_vm0, %v12848_v0  ;;  %6777 = vmatprep.mubr.msk.bf16.mxu0 %vm7592_vm0, %v12848_v0 }
  0x9d   :  { %7082 = vmatpush3.bf16.msra.mxu0 %v7946_v37  ;;  %v53_v37 = vld [vmem:[%s12838_s0 + $0xd0] sm:$0xff] }
  0x9e   :  { %7083 = vmatprep.subr.bf16.mxu0 %v12848_v0  ;;  %v8264_v41 = vpack.c.bf16 %v53_v37, %v51_v29  ;;  %v8376_v29 = vpack.c.bf16 %v85_v16, %v83_v11  ;;  %v87_v37 = vld [vmem:[%s12838_s0 + $0x1e0] sm:$0xff]  ;;  %v97_v11 = vld [vmem:[%s12838_s0 + $0x230] sm:$0xff] }
  0x9f   :  { %v8430_v44 = vpack.c.bf16 %v97_v11, %v95_v53  ;;  %v99_v53 = vld [vmem:[%s12838_s0 + $0x240] sm:$0xff]  ;;  %v101_v11 = vld [vmem:[%s12838_s0 + $0x250] sm:$0xff] }
  0xa0   :  { %12902 = vst [vmem:[#allocation12_spill] sm:$0xff] %v8264_v41  ;;  %12910 = vst [vmem:[#allocation20_spill] sm:$0xff] %v8376_v29 }
  0xa1   :  { %7084 = vmatpush3.bf16.msra.mxu0 %v7983_v52  ;;  %v55_v52 = vld [vmem:[%s12838_s0 + $0xe0] sm:$0xff]  ;;  %12913 = vst [vmem:[#allocation23_spill] sm:$0xff] %v8430_v44 }
  0xa2   :  { %7177 = vmatprep.subr.bf16.mxu0 %v12848_v0  ;;  %v8278_v43 = vpack.c.bf16 %v57_v54, %v55_v52  ;;  %v89_v52 = vld [vmem:[%s12838_s0 + $0x1f0] sm:$0xff] }
  0xa3   :  { %6674 = vmatmul.mubr.bf16.gmra.mrb[64].mxu1 %v8248_v26  ;;  %6778 = vmatmul.mubr.bf16.gmra.mrb[64].mxu0 %v8228_v3  ;;  %v8390_v54 = vpack.c.bf16 %v89_v52, %v87_v37 }
  0xa4   :  { %6677 = vmatprep.mubr.msk.bf16.mxu1 %vm7592_vm0, %v12848_v0  ;;  %6781 = vmatprep.mubr.msk.bf16.mxu0 %vm7592_vm0, %v12848_v0  ;;  %12903 = vst [vmem:[#allocation13_spill] sm:$0xff] %v8278_v43 }
  0xa5   :  { %12911 = vst [vmem:[#allocation21_spill] sm:$0xff] %v8390_v54 }
  0xab   :  { %6678 = vmatmul.mubr.bf16.gmra.mrb[68].mxu1 %v8264_v41  ;;  %6782 = vmatmul.mubr.bf16.gmra.mrb[68].mxu0 %v8248_v26 }
  0xac   :  { %6681 = vmatprep.mubr.msk.bf16.mxu1 %vm7592_vm0, %v12848_v0  ;;  %6785 = vmatprep.mubr.msk.bf16.mxu0 %vm7592_vm0, %v12848_v0 }
  0xb3   :  { %6682 = vmatmul.mubr.bf16.gmra.mrb[72].mxu1 %v8278_v43  ;;  %6786 = vmatmul.mubr.bf16.gmra.mrb[72].mxu0 %v8264_v41 }
  0xb4   :  { %6685 = vmatprep.mubr.msk.bf16.mxu1 %vm7592_vm0, %v12848_v0  ;;  %6789 = vmatprep.mubr.msk.bf16.mxu0 %vm7592_vm0, %v12848_v0 }
  0xbb   :  { %6686 = vmatmul.mubr.bf16.gmra.mrb[76].mxu1 %v8292_v47  ;;  %6790 = vmatmul.mubr.bf16.gmra.mrb[76].mxu0 %v8278_v43 }
  0xbc   :  { %6689 = vmatprep.mubr.msk.bf16.mxu1 %vm7592_vm0, %v12848_v0  ;;  %6793 = vmatprep.mubr.msk.bf16.mxu0 %vm7592_vm0, %v12848_v0 }
  0xc3   :  { %6690 = vmatmul.mubr.bf16.gmra.mrb[80].mxu1 %v8306_v61  ;;  %6794 = vmatmul.mubr.bf16.gmra.mrb[80].mxu0 %v8292_v47 }
  0xc4   :  { %6693 = vmatprep.mubr.msk.bf16.mxu1 %vm7592_vm0, %v12848_v0  ;;  %6797 = vmatprep.mubr.msk.bf16.mxu0 %vm7592_vm0, %v12848_v0 }
  0xcb   :  { %6694 = vmatmul.mubr.bf16.gmra.mrb[84].mxu1 %v8320_v19  ;;  %6798 = vmatmul.mubr.bf16.gmra.mrb[84].mxu0 %v8306_v61 }
  0xcc   :  { %6697 = vmatprep.mubr.msk.bf16.mxu1 %vm7592_vm0, %v12848_v0  ;;  %6801 = vmatprep.mubr.msk.bf16.mxu0 %vm7592_vm0, %v12848_v0 }
  0xd3   :  { %6698 = vmatmul.mubr.bf16.gmra.mrb[88].mxu1 %v8334_v34  ;;  %6802 = vmatmul.mubr.bf16.gmra.mrb[88].mxu0 %v8320_v19 }
  0xd4   :  { %6701 = vmatprep.mubr.msk.bf16.mxu1 %vm7592_vm0, %v12848_v0  ;;  %6805 = vmatprep.mubr.msk.bf16.mxu0 %vm7592_vm0, %v12848_v0 }
  0xdb   :  { %6702 = vmatmul.mubr.bf16.gmra.mrb[92].mxu1 %v8348_v35  ;;  %6806 = vmatmul.mubr.bf16.gmra.mrb[92].mxu0 %v8334_v34 }
  0xdc   :  { %6705 = vmatprep.mubr.msk.bf16.mxu1 %vm7592_vm0, %v12848_v0  ;;  %6809 = vmatprep.mubr.msk.bf16.mxu0 %vm7592_vm0, %v12848_v0 }
  0xe3   :  { %6706 = vmatmul.mubr.bf16.gmra.mrb[96].mxu1 %v8362_v63  ;;  %6810 = vmatmul.mubr.bf16.gmra.mrb[96].mxu0 %v8348_v35  ;;  %v12915_v35 = vmov 0.0  }
  0xe4   :  { %6709 = vmatprep.mubr.msk.bf16.mxu1 %vm7592_vm0, %v12848_v0  ;;  %6813 = vmatprep.mubr.msk.bf16.mxu0 %vm7592_vm0, %v12848_v0 }
  0xeb   :  { %6710 = vmatmul.mubr.bf16.gmra.mrb[100].mxu1 %v8376_v29  ;;  %6814 = vmatmul.mubr.bf16.gmra.mrb[100].mxu0 %v8362_v63 }
  0xec   :  { %6713 = vmatprep.mubr.msk.bf16.mxu1 %vm7592_vm0, %v12848_v0  ;;  %6817 = vmatprep.mubr.msk.bf16.mxu0 %vm7592_vm0, %v12848_v0 }
  0xf3   :  { %6714 = vmatmul.mubr.bf16.gmra.mrb[104].mxu1 %v8390_v54  ;;  %6818 = vmatmul.mubr.bf16.gmra.mrb[104].mxu0 %v8376_v29 }
  0xf4   :  { %6717 = vmatprep.mubr.msk.bf16.mxu1 %vm7592_vm0, %v12848_v0  ;;  %6821 = vmatprep.mubr.msk.bf16.mxu0 %vm7592_vm0, %v12848_v0 }
  0xf6   :  { %v8404_v59 = vpop.f32.mrb[0].mxu1  ;;  %v8406_v60 = vpop.f32.mrb[0].mxu0 }
  0xf7   :  { %v6595_v10 = vpop.f32.mrb[1].mxu1  ;;  %v6547_v20 = vpop.f32.mrb[1].mxu0 }
  0xf8   :  { %v8410_v28 = vpop.f32.mrb[2].mxu1  ;;  %v8412_v38 = vpop.f32.mrb[2].mxu0 }
  0xf9   :  { %v6596_v48 = vpop.f32.mrb[3].mxu1  ;;  %v6548_v45 = vpop.f32.mrb[3].mxu0 }
  0xfb   :  { %6718 = vmatmul.mubr.bf16.gmra.mrb[108].mxu1 %v8408_v13  ;;  %6822 = vmatmul.mubr.bf16.gmra.mrb[108].mxu0 %v8390_v54 }
  0xfc   :  { %6721 = vmatprep.mubr.msk.bf16.mxu1 %vm7592_vm0, %v12848_v0  ;;  %6825 = vmatprep.mubr.msk.bf16.mxu0 %vm7592_vm0, %v12848_v0 }
  0xfe   :  { %v8426_v16 = vpop.f32.mrb[4].mxu1  ;;  %v8428_v37 = vpop.f32.mrb[4].mxu0 }
  0xff   :  { %v6599_v52 = vpop.f32.mrb[5].mxu1  ;;  %v6551_v46 = vpop.f32.mrb[5].mxu0 }
 0x100   :  { %v8432_v10 = vpop.f32.mrb[6].mxu1  ;;  %v8434_v20 = vpop.f32.mrb[6].mxu0 }
 0x101   :  { %v6600_v48 = vpop.f32.mrb[7].mxu1  ;;  %v6552_v45 = vpop.f32.mrb[7].mxu0 }
 0x102   :  { %v8452_v45 = vpack.c.bf16 %v101_v11, %v99_v53  ;;  %v105_v53 = vld [vmem:[%s12838_s0 + $0x270] sm:$0xff] }
 0x103   :  { %6722 = vmatmul.mubr.bf16.gmra.mrb[112].mxu1 %v8430_v44  ;;  %6826 = vmatmul.mubr.bf16.gmra.mrb[112].mxu0 %v8408_v13 }
 0x104   :  { %6725 = vmatprep.mubr.msk.bf16.mxu1 %vm7592_vm0, %v12848_v0  ;;  %6829 = vmatprep.mubr.msk.bf16.mxu0 %vm7592_vm0, %v12848_v0  ;;  %12914 = vst [vmem:[#allocation24_spill] sm:$0xff] %v8452_v45 }
 0x106   :  { %v8448_v52 = vpop.f32.mrb[8].mxu1  ;;  %v8450_v46 = vpop.f32.mrb[8].mxu0 }
 0x107   :  { %v6603_v48 = vpop.f32.mrb[9].mxu1  ;;  %v6555_v13 = vpop.f32.mrb[9].mxu0 }
 0x108   :  { %v8454_v54 = vpop.f32.mrb[10].mxu1  ;;  %v8456_v29 = vpop.f32.mrb[10].mxu0  ;;  %v103_v13 = vld [vmem:[%s12838_s0 + $0x260] sm:$0xff] }
 0x109   :  { %v6604_v0 = vpop.f32.mrb[11].mxu1  ;;  %v6556_v63 = vpop.f32.mrb[11].mxu0  ;;  %v8474_v48 = vpack.c.bf16 %v105_v53, %v103_v13  ;;  %v109_v13 = vld [vmem:[%s12838_s0 + $0x290] sm:$0xff] }
 0x10b   :  { %6726 = vmatmul.mubr.bf16.gmra.mrb[116].mxu1 %v8452_v45  ;;  %6830 = vmatmul.mubr.bf16.gmra.mrb[116].mxu0 %v8430_v44  ;;  %12916 = vst [vmem:[#allocation25_spill] sm:$0xff] %v8474_v48 }
 0x10c   :  { %6729 = vmatprep.mubr.msk.bf16.mxu1 %vm7592_vm0, %v12915_v35  ;;  %6833 = vmatprep.mubr.msk.bf16.mxu0 %vm7592_vm0, %v12915_v35 }
 0x10e   :  { %v8470_v0 = vpop.f32.mrb[12].mxu1  ;;  %v8472_v63 = vpop.f32.mrb[12].mxu0 }
 0x10f   :  { %v6607_v11 = vpop.f32.mrb[13].mxu1  ;;  %v6559_v44 = vpop.f32.mrb[13].mxu0 }
 0x110   :  { %v8476_v34 = vpop.f32.mrb[14].mxu1  ;;  %v8478_v19 = vpop.f32.mrb[14].mxu0  ;;  %v107_v44 = vld [vmem:[%s12838_s0 + $0x280] sm:$0xff] }
 0x111   :  { %v6608_v61 = vpop.f32.mrb[15].mxu1  ;;  %v6560_v47 = vpop.f32.mrb[15].mxu0  ;;  %v8496_v11 = vpack.c.bf16 %v109_v13, %v107_v44  ;;  %v113_v44 = vld [vmem:[%s12838_s0 + $0x2b0] sm:$0xff] }
 0x113   :  { %6730 = vmatmul.mubr.bf16.gmra.mrb[120].mxu1 %v8474_v48  ;;  %6834 = vmatmul.mubr.bf16.gmra.mrb[120].mxu0 %v8452_v45  ;;  %12918 = vst [vmem:[#allocation27_spill] sm:$0xff] %v8496_v11 }
 0x114   :  { %6733 = vmatprep.mubr.msk.bf16.mxu1 %vm7592_vm0, %v12915_v35  ;;  %6837 = vmatprep.mubr.msk.bf16.mxu0 %vm7592_vm0, %v12915_v35 }
 0x116   :  { %v8492_v61 = vpop.f32.mrb[16].mxu1  ;;  %v8494_v47 = vpop.f32.mrb[16].mxu0 }
 0x117   :  { %12917 = vst [vmem:[#allocation26_spill] sm:$0xff] %v8492_v61  ;;  %v6611_v53 = vpop.f32.mrb[17].mxu1  ;;  %v6563_v45 = vpop.f32.mrb[17].mxu0 }
 0x118   :  { %v8498_v43 = vpop.f32.mrb[18].mxu1  ;;  %v8500_v41 = vpop.f32.mrb[18].mxu0  ;;  %v111_v45 = vld [vmem:[%s12838_s0 + $0x2a0] sm:$0xff] }
 0x119   :  { %12919 = vst [vmem:[#allocation28_spill] sm:$0xff] %v8498_v43  ;;  %v6612_v26 = vpop.f32.mrb[19].mxu1  ;;  %v6564_v3 = vpop.f32.mrb[19].mxu0  ;;  %v8518_v53 = vpack.c.bf16 %v113_v44, %v111_v45 }
 0x11b   :  { %6734 = vmatmul.mubr.bf16.gmra.mrb[124].mxu1 %v8496_v11  ;;  %6838 = vmatmul.mubr.bf16.gmra.mrb[124].mxu0 %v8474_v48  ;;  %12921 = vst [vmem:[#allocation30_spill] sm:$0xff] %v8518_v53 }
 0x11c   :  { %6737 = vmatprep.mubr.msk.bf16.mxu1 %vm7592_vm0, %v12915_v35  ;;  %6841 = vmatprep.mubr.msk.bf16.mxu0 %vm7592_vm0, %v12915_v35 }
 0x11e   :  { %v8514_v26 = vpop.f32.mrb[20].mxu1  ;;  %v8516_v3 = vpop.f32.mrb[20].mxu0 }
 0x11f   :  { %12920 = vst [vmem:[#allocation29_spill] sm:$0xff] %v8514_v26  ;;  %v6615_v13 = vpop.f32.mrb[21].mxu1  ;;  %v6567_v48 = vpop.f32.mrb[21].mxu0 }
 0x120   :  { %v8520_v56 = vpop.f32.mrb[22].mxu1  ;;  %v8522_v39 = vpop.f32.mrb[22].mxu0  ;;  %v115_v48 = vld [vmem:[%s12838_s0 + $0x2c0] sm:$0xff] }
 0x121   :  { %12922 = vst [vmem:[#allocation31_spill] sm:$0xff] %v8520_v56  ;;  %v6616_v36 = vpop.f32.mrb[23].mxu1  ;;  %v6568_v23 = vpop.f32.mrb[23].mxu0 }
 0x122   :  { %v8537_v23 = vpack.c.bf16 %v115_v48, %v115_v48 }
 0x123   :  { %6738 = vmatmul.mubr.bf16.gmra.mrb[128].mxu1 %v8518_v53  ;;  %6842 = vmatmul.mubr.bf16.gmra.mrb[128].mxu0 %v8496_v11 }
 0x124   :  { %6741 = vmatprep.mubr.msk.bf16.mxu1 %vm7592_vm0, %v12915_v35  ;;  %6845 = vmatprep.mubr.msk.bf16.mxu0 %vm7592_vm0, %v12915_v35  ;;  %12924 = vst [vmem:[#allocation33_spill] sm:$0xff] %v8537_v23 }
 0x126   :  { %v8533_v45 = vpop.f32.mrb[24].mxu1  ;;  %v8535_v44 = vpop.f32.mrb[24].mxu0 }
 0x127   :  { %12923 = vst [vmem:[#allocation32_spill] sm:$0xff] %v8533_v45  ;;  %v6619_v36 = vpop.f32.mrb[25].mxu1  ;;  %v6571_v13 = vpop.f32.mrb[25].mxu0 }
 0x128   :  { %v8539_v8 = vpop.f32.mrb[26].mxu1  ;;  %v8541_v11 = vpop.f32.mrb[26].mxu0 }
 0x129   :  { %12925 = vst [vmem:[#allocation34_spill] sm:$0xff] %v8539_v8  ;;  %v6620_v58 = vpop.f32.mrb[27].mxu1  ;;  %v6572_v56 = vpop.f32.mrb[27].mxu0 }
 0x12b   :  { %6742 = vmatmul.mubr.bf16.gmra.mrb[132].mxu1 %v8537_v23  ;;  %6846 = vmatmul.mubr.bf16.gmra.mrb[132].mxu0 %v8518_v53 }
 0x12c   :  { %6849 = vmatprep.mubr.msk.bf16.mxu0 %vm7592_vm0, %v12915_v35  ;;  %6869 = vmatprep.mubr.msk.bf16.mxu1 %vm7592_vm0, %v12915_v35 }
 0x12e   :  { %v8549_v36 = vpop.f32.mrb[28].mxu1  ;;  %v8551_v48 = vpop.f32.mrb[28].mxu0 }
 0x12f   :  { %12926 = vst [vmem:[#allocation35_spill] sm:$0xff] %v8549_v36  ;;  %v6623_v13 = vpop.f32.mrb[29].mxu1  ;;  %v6575_v8 = vpop.f32.mrb[29].mxu0 }
 0x130   :  { %v8553_v45 = vpop.f32.mrb[30].mxu1  ;;  %v8555_v58 = vpop.f32.mrb[30].mxu0 }
 0x131   :  { %12927 = vst [vmem:[#allocation36_spill] sm:$0xff] %v8553_v45  ;;  %v6624_v56 = vpop.f32.mrb[31].mxu1  ;;  %v6576_v26 = vpop.f32.mrb[31].mxu0 }
 0x133   :  { %6850 = vmatmul.mubr.bf16.gmra.mrb[136].mxu0 %v8537_v23  ;;  %6870 = vmatmul.mubr.bf16.vlgmr.msra.gmra.mrb[136].mxu1 %v7749_v31 }
 0x134   :  { %6962 = vmatpush3.bf16.msra.mxu1 %v7644_v4  ;;  %6873 = vmatprep.mubr.msk.bf16.mxu1 %vm7592_vm0, %v12915_v35 }
 0x135   :  { %6963 = vmatprep.subr.bf16.mxu1 %v12915_v35  ;;  %7085 = vmatprep.mubr.msk.bf16.mxu0 %vm7592_vm0, %v12915_v35 }
 0x136   :  { %v8565_v8 = vpop.f32.mrb[32].mxu1  ;;  %v8567_v13 = vpop.f32.mrb[32].mxu0 }
 0x137   :  { %12928 = vst [vmem:[#allocation37_spill] sm:$0xff] %v8565_v8  ;;  %v6627_v56 = vpop.f32.mrb[33].mxu1  ;;  %v6579_v26 = vpop.f32.mrb[33].mxu0 }
 0x138   :  { %v8569_v53 = vpop.f32.mrb[34].mxu1  ;;  %v8571_v23 = vpop.f32.mrb[34].mxu0  ;;  %6964 = vmatpush3.bf16.msra.mxu1 %v7655_v6 }
 0x139   :  { %12929 = vst [vmem:[#allocation38_spill] sm:$0xff] %v8569_v53  ;;  %v6628_v4 = vpop.f32.mrb[35].mxu1  ;;  %v6580_v45 = vpop.f32.mrb[35].mxu0  ;;  %6965 = vmatprep.subr.bf16.mxu1 %v12915_v35 }
 0x13b   :  { %6874 = vmatmul.mubr.bf16.gmra.mrb[140].mxu1 %v7810_v49  ;;  %7086 = vmatmul.mubr.bf16.vlgmr.msra.gmra.mrb[140].mxu0 %v7749_v31 }
 0x13c   :  { %6877 = vmatprep.mubr.msk.bf16.mxu1 %vm7592_vm0, %v12915_v35  ;;  %6966 = vmatpush3.bf16.msra.mxu1 %v7667_v9 }
 0x13d   :  { %6967 = vmatprep.subr.bf16.mxu1 %v12915_v35  ;;  %7089 = vmatprep.mubr.msk.bf16.mxu0 %vm7592_vm0, %v12915_v35 }
 0x13e   :  { %v8583_v56 = vpop.f32.mrb[36].mxu1  ;;  %v8585_v6 = vpop.f32.mrb[36].mxu0 }
 0x13f   :  { %12930 = vst [vmem:[#allocation39_spill] sm:$0xff] %v8583_v56  ;;  %v6631_v45 = vpop.f32.mrb[37].mxu1  ;;  %v6583_v26 = vpop.f32.mrb[37].mxu0 }
 0x140   :  { %v8587_v4 = vpop.f32.mrb[38].mxu1  ;;  %v8589_v53 = vpop.f32.mrb[38].mxu0  ;;  %6968 = vmatpush3.bf16.msra.mxu1 %v7679_v12 }
 0x141   :  { %12931 = vst [vmem:[#allocation40_spill] sm:$0xff] %v8587_v4  ;;  %v6632_v31 = vpop.f32.mrb[39].mxu1  ;;  %v6584_v8 = vpop.f32.mrb[39].mxu0  ;;  %6969 = vmatprep.subr.bf16.mxu1 %v12915_v35 }
 0x143   :  { %6878 = vmatmul.mubr.bf16.gmra.mrb[144].mxu1 %v7872_v5  ;;  %7090 = vmatmul.mubr.bf16.gmra.mrb[144].mxu0 %v7810_v49 }
 0x144   :  { %6881 = vmatprep.mubr.msk.bf16.mxu1 %vm7592_vm0, %v12915_v35  ;;  %6970 = vmatpush3.bf16.msra.mxu1 %v7691_v15 }
 0x145   :  { %6971 = vmatprep.subr.bf16.mxu1 %v12915_v35  ;;  %7093 = vmatprep.mubr.msk.bf16.mxu0 %vm7592_vm0, %v12915_v35 }
 0x146   :  { %v8601_v9 = vpop.f32.mrb[40].mxu1  ;;  %v8603_v12 = vpop.f32.mrb[40].mxu0 }
 0x147   :  { %12932 = vst [vmem:[#allocation41_spill] sm:$0xff] %v8601_v9  ;;  %v6635_v8 = vpop.f32.mrb[41].mxu1  ;;  %v6587_v45 = vpop.f32.mrb[41].mxu0 }
 0x148   :  { %v450_v26 = vpop.f32.mrb[42].mxu1  ;;  %v8605_v31 = vpop.f32.mrb[42].mxu0  ;;  %6972 = vmatpush3.bf16.msra.mxu1 %v7703_v18 }
 0x149   :  { %v6636_v49 = vpop.f32.mrb[43].mxu1  ;;  %v6588_v4 = vpop.f32.mrb[43].mxu0  ;;  %6973 = vmatprep.subr.bf16.mxu1 %v12915_v35 }
 0x14b   :  { %6882 = vmatmul.mubr.bf16.gmra.mrb[148].mxu1 %v7934_v30  ;;  %7094 = vmatmul.mubr.bf16.gmra.mrb[148].mxu0 %v7872_v5 }
 0x14c   :  { %6885 = vmatprep.mubr.msk.bf16.mxu1 %vm7592_vm0, %v12915_v35  ;;  %6974 = vmatpush3.bf16.msra.mxu1 %v7715_v21 }
 0x14d   :  { %6975 = vmatprep.subr.bf16.mxu1 %v12915_v35  ;;  %7097 = vmatprep.mubr.msk.bf16.mxu0 %vm7592_vm0, %v12915_v35 }
 0x14e   :  { %v487_v15 = vpop.f32.mrb[44].mxu1  ;;  %v8617_v18 = vpop.f32.mrb[44].mxu0 }
 0x14f   :  { %v488_v4 = vadd.f32 %v487_v15, %v8406_v60  ;;  %v6655_v8 = vpop.f32.mrb[45].mxu1  ;;  %v6591_v45 = vpop.f32.mrb[45].mxu0 }
 0x150   :  { %v490_v26 = vpop.f32.mrb[46].mxu1  ;;  %v8620_v49 = vpop.f32.mrb[46].mxu0  ;;  %6976 = vmatpush3.bf16.msra.mxu1 %v7730_v25 }
 0x151   :  { %v491_v5 = vadd.f32 %v490_v26, %v8412_v38  ;;  %v6656_v21 = vpop.f32.mrb[47].mxu1  ;;  %v6592_v9 = vpop.f32.mrb[47].mxu0  ;;  %7277 = vmatprep.subr.bf16.mxu1 %v12915_v35 }
 0x153   :  { %6886 = vmatmul.mubr.bf16.gmra.mrb[152].mxu1 %v7990_v55  ;;  %7098 = vmatmul.mubr.bf16.gmra.mrb[152].mxu0 %v7934_v30 }
 0x154   :  { %6889 = vmatprep.mubr.msk.bf16.mxu1 %vm7592_vm0, %v12915_v35  ;;  %7101 = vmatprep.mubr.msk.bf16.mxu0 %vm7592_vm0, %v12915_v35 }
 0x156   :  { %v495_v60 = vpop.f32.mrb[48].mxu1  ;;  %v8631_v15 = vpop.f32.mrb[48].mxu0 }
 0x157   :  { %12933 = vst [vmem:[#allocation42_spill] sm:$0xff] %v8631_v15  ;;  %v496_v25 = vadd.f32 %v495_v60, %v8428_v37  ;;  %v12876_v38 = vrot.slane %v8631_v15, 1  ;;  %v6659_v9 = vpop.f32.mrb[49].mxu1  ;;  %v6763_v8 = vpop.f32.mrb[49].mxu0 }
 0x158   :  { %v498_v45 = vpop.f32.mrb[50].mxu1  ;;  %v706_v26 = vpop.f32.mrb[50].mxu0 }
 0x159   :  { %v499_v30 = vadd.f32 %v498_v45, %v8434_v20  ;;  %v932_v21 = vrot.slane %v706_v26, 1  ;;  %v6660_v56 = vpop.f32.mrb[51].mxu1  ;;  %v6764_v36 = vpop.f32.mrb[51].mxu0 }
 0x15b   :  { %v933_v42 = vsel %vm930_vm1, %v12876_v38, %v932_v21  ;;  %6890 = vmatmul.mubr.bf16.gmra.mrb[156].mxu1 %v8017_v62  ;;  %7102 = vmatmul.mubr.bf16.gmra.mrb[156].mxu0 %v7990_v55 }
 0x15c   :  { %6893 = vmatprep.mubr.msk.bf16.mxu1 %vm7592_vm0, %v12915_v35  ;;  %7105 = vmatprep.mubr.msk.bf16.mxu0 %vm7592_vm0, %v12915_v35  ;;  %v8645_v37 = vadd.f32 %v933_v42, %v488_v4 }
 0x15e   :  { %v503_v20 = vpop.f32.mrb[52].mxu1  ;;  %v711_v60 = vpop.f32.mrb[52].mxu0 }
 0x15f   :  { %v504_v36 = vadd.f32 %v503_v20, %v8450_v46  ;;  %v934_v56 = vrot.slane %v711_v60, 1  ;;  %v6663_v9 = vpop.f32.mrb[53].mxu1  ;;  %v6767_v8 = vpop.f32.mrb[53].mxu0 }
 0x160   :  { %v506_v45 = vpop.f32.mrb[54].mxu1  ;;  %v714_v26 = vpop.f32.mrb[54].mxu0 }
 0x161   :  { %v935_v38 = vsel %vm930_vm1, %v932_v21, %v934_v56  ;;  %v507_v55 = vadd.f32 %v506_v45, %v8456_v29  ;;  %v936_v15 = vrot.slane %v714_v26, 1  ;;  %v6664_v43 = vpop.f32.mrb[55].mxu1  ;;  %v6768_v61 = vpop.f32.mrb[55].mxu0 }
 0x162   :  { %v8650_v27 = vadd.f32 %v935_v38, %v491_v5 }
 0x163   :  { %v937_v42 = vsel %vm930_vm1, %v934_v56, %v936_v15  ;;  %6894 = vmatmul.mubr.bf16.gmra.mrb[160].mxu1 %v8039_v14  ;;  %7106 = vmatmul.mubr.bf16.gmra.mrb[160].mxu0 %v8017_v62 }
 0x164   :  { %6897 = vmatprep.mubr.msk.bf16.mxu1 %vm7592_vm0, %v12915_v35  ;;  %7109 = vmatprep.mubr.msk.bf16.mxu0 %vm7592_vm0, %v12915_v35  ;;  %v8659_v46 = vadd.f32 %v937_v42, %v496_v25 }
 0x166   :  { %v511_v29 = vpop.f32.mrb[56].mxu1  ;;  %v719_v4 = vpop.f32.mrb[56].mxu0 }
 0x167   :  { %v512_v43 = vadd.f32 %v511_v29, %v8472_v63  ;;  %v938_v61 = vrot.slane %v719_v4, 1  ;;  %v6667_v5 = vpop.f32.mrb[57].mxu1  ;;  %v6771_v38 = vpop.f32.mrb[57].mxu0 }
 0x168   :  { %v514_v21 = vpop.f32.mrb[58].mxu1  ;;  %v722_v20 = vpop.f32.mrb[58].mxu0 }
 0x169   :  { %v939_v60 = vsel %vm930_vm1, %v936_v15, %v938_v61  ;;  %v515_v62 = vadd.f32 %v514_v21, %v8478_v19  ;;  %v940_v56 = vrot.slane %v722_v20, 1  ;;  %v6668_v9 = vpop.f32.mrb[59].mxu1  ;;  %v6772_v8 = vpop.f32.mrb[59].mxu0 }
 0x16a   :  { %v8664_v45 = vadd.f32 %v939_v60, %v499_v30 }
 0x16b   :  { %v941_v25 = vsel %vm930_vm1, %v938_v61, %v940_v56  ;;  %6898 = vmatmul.mubr.bf16.gmra.mrb[164].mxu1 %v8061_v24  ;;  %7110 = vmatmul.mubr.bf16.gmra.mrb[164].mxu0 %v8039_v14 }
 0x16c   :  { %6901 = vmatprep.mubr.msk.bf16.mxu1 %vm7592_vm0, %v12915_v35  ;;  %7113 = vmatprep.mubr.msk.bf16.mxu0 %vm7592_vm0, %v12915_v35  ;;  %v8673_v63 = vadd.f32 %v941_v25, %v504_v36 }
 0x16e   :  { %v519_v19 = vpop.f32.mrb[60].mxu1  ;;  %v727_v15 = vpop.f32.mrb[60].mxu0 }
 0x16f   :  { %v520_v26 = vadd.f32 %v519_v19, %v8494_v47  ;;  %v942_v30 = vrot.slane %v727_v15, 1  ;;  %v6671_v42 = vpop.f32.mrb[61].mxu1  ;;  %v6775_v29 = vpop.f32.mrb[61].mxu0 }
 0x170   :  { %v522_v4 = vpop.f32.mrb[62].mxu1  ;;  %v730_v61 = vpop.f32.mrb[62].mxu0 }
 0x171   :  { %v943_v5 = vsel %vm930_vm1, %v940_v56, %v942_v30  ;;  %v523_v14 = vadd.f32 %v522_v4, %v8500_v41  ;;  %v944_v38 = vrot.slane %v730_v61, 1  ;;  %v6672_v21 = vpop.f32.mrb[63].mxu1  ;;  %v6776_v20 = vpop.f32.mrb[63].mxu0 }
 0x172   :  { %v8678_v60 = vadd.f32 %v943_v5, %v507_v55 }
 0x173   :  { %v945_v36 = vsel %vm930_vm1, %v942_v30, %v944_v38  ;;  %6902 = vmatmul.mubr.bf16.gmra.mrb[168].mxu1 %v8083_v40  ;;  %7114 = vmatmul.mubr.bf16.gmra.mrb[168].mxu0 %v8061_v24 }
 0x174   :  { %6905 = vmatprep.mubr.msk.bf16.mxu1 %vm7592_vm0, %v12915_v35  ;;  %7117 = vmatprep.mubr.msk.bf16.mxu0 %vm7592_vm0, %v12915_v35  ;;  %v8687_v47 = vadd.f32 %v945_v36, %v512_v43 }
 0x176   :  { %v527_v41 = vpop.f32.mrb[64].mxu1  ;;  %v735_v56 = vpop.f32.mrb[64].mxu0 }
 0x177   :  { %v528_v9 = vadd.f32 %v527_v41, %v8516_v3  ;;  %v946_v55 = vrot.slane %v735_v56, 1  ;;  %v6675_v8 = vpop.f32.mrb[65].mxu1  ;;  %v6779_v25 = vpop.f32.mrb[65].mxu0 }
 0x178   :  { %v530_v19 = vpop.f32.mrb[66].mxu1  ;;  %v738_v15 = vpop.f32.mrb[66].mxu0 }
 0x179   :  { %v947_v30 = vsel %vm930_vm1, %v944_v38, %v946_v55  ;;  %v531_v24 = vadd.f32 %v530_v19, %v8522_v39  ;;  %v948_v42 = vrot.slane %v738_v15, 1  ;;  %v6676_v29 = vpop.f32.mrb[67].mxu1  ;;  %v6780_v4 = vpop.f32.mrb[67].mxu0 }
 0x17a   :  { %v8692_v61 = vadd.f32 %v947_v30, %v515_v62 }
 0x17b   :  { %v949_v43 = vsel %vm930_vm1, %v946_v55, %v948_v42  ;;  %6906 = vmatmul.mubr.bf16.gmra.mrb[172].mxu1 %v8105_v51  ;;  %7118 = vmatmul.mubr.bf16.gmra.mrb[172].mxu0 %v8083_v40 }
 0x17c   :  { %6909 = vmatprep.mubr.msk.bf16.mxu1 %vm7592_vm0, %v12915_v35  ;;  %7121 = vmatprep.mubr.msk.bf16.mxu0 %vm7592_vm0, %v12915_v35  ;;  %v8701_v3 = vadd.f32 %v949_v43, %v520_v26 }
 0x17e   :  { %v535_v39 = vpop.f32.mrb[68].mxu1  ;;  %v743_v5 = vpop.f32.mrb[68].mxu0 }
 0x17f   :  { %v536_v38 = vadd.f32 %v535_v39, %v8535_v44  ;;  %v950_v62 = vrot.slane %v743_v5, 1  ;;  %v6679_v21 = vpop.f32.mrb[69].mxu1  ;;  %v6783_v20 = vpop.f32.mrb[69].mxu0 }
 0x180   :  { %v538_v36 = vpop.f32.mrb[70].mxu1  ;;  %v746_v41 = vpop.f32.mrb[70].mxu0 }
 0x181   :  { %v951_v56 = vsel %vm930_vm1, %v948_v42, %v950_v62  ;;  %v539_v40 = vadd.f32 %v538_v36, %v8541_v11  ;;  %v952_v55 = vrot.slane %v746_v41, 1  ;;  %v6680_v8 = vpop.f32.mrb[71].mxu1  ;;  %v6784_v25 = vpop.f32.mrb[71].mxu0 }
 0x182   :  { %v8706_v19 = vadd.f32 %v951_v56, %v523_v14 }
 0x183   :  { %6910 = vmatmul.mubr.bf16.gmra.mrb[176].mxu1 %v8124_v2  ;;  %7122 = vmatmul.mubr.bf16.gmra.mrb[176].mxu0 %v8105_v51  ;;  %v953_v44 = vsel %vm930_vm1, %v950_v62, %v952_v55 }
 0x184   :  { %6913 = vmatprep.mubr.msk.bf16.mxu1 %vm7592_vm0, %v12915_v35  ;;  %7125 = vmatprep.mubr.msk.bf16.mxu0 %vm7592_vm0, %v12915_v35  ;;  %v8715_v26 = vadd.f32 %v953_v44, %v528_v9 }
 0x186   :  { %v543_v11 = vpop.f32.mrb[72].mxu1  ;;  %v751_v15 = vpop.f32.mrb[72].mxu0 }
 0x187   :  { %v544_v30 = vadd.f32 %v543_v11, %v8551_v48  ;;  %v954_v14 = vrot.slane %v751_v15, 1  ;;  %v6683_v42 = vpop.f32.mrb[73].mxu1  ;;  %v6787_v29 = vpop.f32.mrb[73].mxu0 }
 0x188   :  { %v546_v4 = vpop.f32.mrb[74].mxu1  ;;  %v754_v43 = vpop.f32.mrb[74].mxu0 }
 0x189   :  { %v547_v51 = vadd.f32 %v546_v4, %v8555_v58  ;;  %v956_v39 = vrot.slane %v754_v43, 1  ;;  %v6684_v5 = vpop.f32.mrb[75].mxu1  ;;  %v6788_v62 = vpop.f32.mrb[75].mxu0  ;;  %v955_v21 = vsel %vm930_vm1, %v952_v55, %v954_v14 }
 0x18a   :  { %v8720_v20 = vadd.f32 %v955_v21, %v531_v24 }
 0x18b   :  { %6914 = vmatmul.mubr.bf16.gmra.mrb[180].mxu1 %v8146_v22  ;;  %7126 = vmatmul.mubr.bf16.gmra.mrb[180].mxu0 %v8124_v2  ;;  %v957_v48 = vsel %vm930_vm1, %v954_v14, %v956_v39 }
 0x18c   :  { %6917 = vmatprep.mubr.msk.bf16.mxu1 %vm7592_vm0, %v12915_v35  ;;  %7129 = vmatprep.mubr.msk.bf16.mxu0 %vm7592_vm0, %v12915_v35  ;;  %v8729_v58 = vadd.f32 %v957_v48, %v536_v38 }
 0x18e   :  { %v551_v9 = vpop.f32.mrb[76].mxu1  ;;  %v759_v36 = vpop.f32.mrb[76].mxu0 }
 0x18f   :  { %v552_v41 = vadd.f32 %v551_v9, %v8567_v13  ;;  %v958_v24 = vrot.slane %v759_v36, 1  ;;  %v6687_v56 = vpop.f32.mrb[77].mxu1  ;;  %v6791_v55 = vpop.f32.mrb[77].mxu0 }
 0x190   :  { %v554_v8 = vpop.f32.mrb[78].mxu1  ;;  %v762_v25 = vpop.f32.mrb[78].mxu0 }
 0x191   :  { %v555_v2 = vadd.f32 %v554_v8, %v8571_v23  ;;  %v960_v44 = vrot.slane %v762_v25, 1  ;;  %v6688_v11 = vpop.f32.mrb[79].mxu1  ;;  %v6792_v15 = vpop.f32.mrb[79].mxu0  ;;  %v959_v14 = vsel %vm930_vm1, %v956_v39, %v958_v24 }
 0x192   :  { %v8734_v42 = vadd.f32 %v959_v14, %v539_v40 }
 0x193   :  { %6918 = vmatmul.mubr.bf16.gmra.mrb[184].mxu1 %v7751_v32  ;;  %7130 = vmatmul.mubr.bf16.gmra.mrb[184].mxu0 %v8146_v22  ;;  %v961_v13 = vsel %vm930_vm1, %v958_v24, %v960_v44 }
 0x194   :  { %6921 = vmatprep.mubr.msk.bf16.mxu1 %vm7592_vm0, %v12915_v35  ;;  %7133 = vmatprep.mubr.msk.bf16.mxu0 %vm7592_vm0, %v12915_v35  ;;  %v8743_v23 = vadd.f32 %v961_v13, %v544_v30  ;;  %v5861_v30 = vld [vmem:[%s12839_s3 + $0x48] sm:$0xff] }
 0x196   :  { %v559_v38 = vpop.f32.mrb[80].mxu1  ;;  %v767_v29 = vpop.f32.mrb[80].mxu0 }
 0x197   :  { %v560_v4 = vadd.f32 %v559_v38, %v8585_v6  ;;  %v962_v40 = vrot.slane %v767_v29, 1  ;;  %v6691_v43 = vpop.f32.mrb[81].mxu1  ;;  %v6795_v39 = vpop.f32.mrb[81].mxu0 }
 0x198   :  { %v562_v5 = vpop.f32.mrb[82].mxu1  ;;  %v770_v62 = vpop.f32.mrb[82].mxu0 }
 0x199   :  { %v563_v22 = vadd.f32 %v562_v5, %v8589_v53  ;;  %v964_v21 = vrot.slane %v770_v62, 1  ;;  %v6692_v48 = vpop.f32.mrb[83].mxu1  ;;  %v6796_v9 = vpop.f32.mrb[83].mxu0  ;;  %v963_v36 = vsel %vm930_vm1, %v960_v44, %v962_v40  ;;  %v5860_v53 = vld [vmem:[%s12839_s3 + $0x40] sm:$0xff] }
 0x19a   :  { %v8748_v24 = vadd.f32 %v963_v36, %v547_v51  ;;  %v2127_v56 = vpack.c.bf16 %v5861_v30, %v5860_v53 }
 0x19b   :  { %6922 = vmatmul.mubr.bf16.gmra.mrb[188].mxu1 %v7812_v50  ;;  %7134 = vmatmul.mubr.bf16.gmra.mrb[188].mxu0 %v7751_v32  ;;  %v965_v6 = vsel %vm930_vm1, %v962_v40, %v964_v21 }
 0x19c   :  { %6925 = vmatprep.mubr.msk.bf16.mxu1 %vm7592_vm0, %v12915_v35  ;;  %7137 = vmatprep.mubr.msk.bf16.mxu0 %vm7592_vm0, %v12915_v35  ;;  %v8763_v51 = vadd.f32 %v965_v6, %v552_v41 }
 0x19d   :  { %7178 = vmatpush3.bf16.msra.mxu0 %v2127_v56 }
 0x19e   :  { %v567_v32 = vpop.f32.mrb[84].mxu1  ;;  %v775_v55 = vpop.f32.mrb[84].mxu0  ;;  %7179 = vmatprep.subr.bf16.mxu0 %v12915_v35 }
 0x19f   :  { %v568_v8 = vadd.f32 %v567_v32, %v8603_v12  ;;  %v966_v25 = vrot.slane %v775_v55, 1  ;;  %v6695_v44 = vpop.f32.mrb[85].mxu1  ;;  %v6799_v11 = vpop.f32.mrb[85].mxu0 }
 0x1a0   :  { %v570_v15 = vpop.f32.mrb[86].mxu1  ;;  %v778_v14 = vpop.f32.mrb[86].mxu0 }
 0x1a1   :  { %v571_v13 = vadd.f32 %v570_v15, %v8605_v31  ;;  %v968_v38 = vrot.slane %v778_v14, 1  ;;  %v6696_v29 = vpop.f32.mrb[87].mxu1  ;;  %v6800_v40 = vpop.f32.mrb[87].mxu0  ;;  %v967_v41 = vsel %vm930_vm1, %v964_v21, %v966_v25 }
 0x1a2   :  { %v8769_v43 = vadd.f32 %v967_v41, %v555_v2 }
 0x1a3   :  { %6926 = vmatmul.mubr.bf16.gmra.mrb[192].mxu1 %v7874_v7  ;;  %7138 = vmatmul.mubr.bf16.gmra.mrb[192].mxu0 %v7812_v50  ;;  %v969_v12 = vsel %vm930_vm1, %v966_v25, %v968_v38 }
 0x1a4   :  { %6929 = vmatprep.mubr.msk.bf16.mxu1 %vm7592_vm0, %v12915_v35  ;;  %7141 = vmatprep.mubr.msk.bf16.mxu0 %vm7592_vm0, %v12915_v35  ;;  %v8778_v31 = vadd.f32 %v969_v12, %v560_v4 }
 0x1a6   :  { %v575_v39 = vpop.f32.mrb[88].mxu1  ;;  %v783_v5 = vpop.f32.mrb[88].mxu0 }
 0x1a7   :  { %v576_v62 = vadd.f32 %v575_v39, %v8617_v18  ;;  %v970_v2 = vrot.slane %v783_v5, 1  ;;  %v6699_v21 = vpop.f32.mrb[89].mxu1  ;;  %v6803_v48 = vpop.f32.mrb[89].mxu0 }
 0x1a8   :  { %v578_v9 = vpop.f32.mrb[90].mxu1  ;;  %v786_v36 = vpop.f32.mrb[90].mxu0 }
 0x1a9   :  { %v579_v50 = vadd.f32 %v578_v9, %v8620_v49  ;;  %v972_v6 = vrot.slane %v786_v36, 1  ;;  %v6700_v53 = vpop.f32.mrb[91].mxu1  ;;  %v6804_v30 = vpop.f32.mrb[91].mxu0  ;;  %v971_v56 = vsel %vm930_vm1, %v968_v38, %v970_v2 }
 0x1aa   :  { %v8783_v32 = vadd.f32 %v971_v56, %v563_v22 }
 0x1ab   :  { %6930 = vmatmul.mubr.bf16.gmra.mrb[196].mxu1 %v7936_v33  ;;  %7142 = vmatmul.mubr.bf16.gmra.mrb[196].mxu0 %v7874_v7  ;;  %v973_v18 = vsel %vm930_vm1, %v970_v2, %v972_v6 }
 0x1ac   :  { %6933 = vmatprep.mubr.msk.bf16.mxu1 %vm7592_vm0, %v12915_v35  ;;  %7145 = vmatprep.mubr.msk.bf16.mxu0 %vm7592_vm0, %v12915_v35  ;;  %v8792_v49 = vadd.f32 %v973_v18, %v568_v8 }
 0x1ae   :  { %v583_v4 = vpop.f32.mrb[92].mxu1  ;;  %v791_v55 = vpop.f32.mrb[92].mxu0 }
 0x1af   :  { %v584_v25 = vadd.f32 %v583_v4, %v8404_v59  ;;  %v974_v22 = vrot.slane %v791_v55, 1  ;;  %v6703_v44 = vpop.f32.mrb[93].mxu1  ;;  %v6807_v11 = vpop.f32.mrb[93].mxu0 }
 0x1b0   :  { %v586_v15 = vpop.f32.mrb[94].mxu1  ;;  %v794_v14 = vpop.f32.mrb[94].mxu0 }
 0x1b1   :  { %v587_v7 = vadd.f32 %v586_v15, %v8410_v28  ;;  %v976_v38 = vrot.slane %v794_v14, 1  ;;  %v6704_v29 = vpop.f32.mrb[95].mxu1  ;;  %v6808_v40 = vpop.f32.mrb[95].mxu0  ;;  %v975_v41 = vsel %vm930_vm1, %v972_v6, %v974_v22 }
 0x1b2   :  { %v8797_v12 = vadd.f32 %v975_v41, %v571_v13 }
 0x1b3   :  { %6934 = vmatmul.mubr.bf16.gmra.mrb[200].mxu1 %v7992_v57  ;;  %7146 = vmatmul.mubr.bf16.gmra.mrb[200].mxu0 %v7936_v33  ;;  %v977_v59 = vsel %vm930_vm1, %v974_v22, %v976_v38 }
 0x1b4   :  { %6937 = vmatprep.mubr.msk.bf16.mxu1 %vm7592_vm0, %v12915_v35  ;;  %7149 = vmatprep.mubr.msk.bf16.mxu0 %vm7592_vm0, %v12915_v35  ;;  %v8806_v28 = vadd.f32 %v977_v59, %v576_v62 }
 0x1b6   :  { %v591_v8 = vpop.f32.mrb[96].mxu1  ;;  %v799_v39 = vpop.f32.mrb[96].mxu0 }
 0x1b7   :  { %v592_v5 = vadd.f32 %v591_v8, %v8426_v16  ;;  %v978_v13 = vrot.slane %v799_v39, 1  ;;  %v6707_v2 = vpop.f32.mrb[97].mxu1  ;;  %v6811_v21 = vpop.f32.mrb[97].mxu0 }
 0x1b8   :  { %v594_v48 = vpop.f32.mrb[98].mxu1  ;;  %v802_v9 = vpop.f32.mrb[98].mxu0 }
 0x1b9   :  { %v595_v33 = vadd.f32 %v594_v48, %v8432_v10  ;;  %v980_v36 = vrot.slane %v802_v9, 1  ;;  %v6708_v6 = vpop.f32.mrb[99].mxu1  ;;  %v6812_v53 = vpop.f32.mrb[99].mxu0  ;;  %v979_v30 = vsel %vm930_vm1, %v976_v38, %v978_v13 }
 0x1ba   :  { %v8811_v56 = vadd.f32 %v979_v30, %v579_v50  ;;  %v5863_v53 = vld [vmem:[%s12839_s3 + $0x58] sm:$0xff] }
 0x1bb   :  { %6938 = vmatmul.mubr.bf16.gmra.mrb[204].mxu1 %v8019_v1  ;;  %7150 = vmatmul.mubr.bf16.gmra.mrb[204].mxu0 %v7992_v57  ;;  %v981_v16 = vsel %vm930_vm1, %v978_v13, %v980_v36 }
 0x1bc   :  { %12934 = vst [vmem:[#allocation43_spill] sm:$0xff] %v8811_v56  ;;  %6941 = vmatprep.mubr.msk.bf16.mxu1 %vm7592_vm0, %v12915_v35  ;;  %7153 = vmatprep.mubr.msk.bf16.mxu0 %vm7592_vm0, %v12915_v35  ;;  %v8820_v10 = vadd.f32 %v981_v16, %v584_v25 }
 0x1be   :  { %12935 = vst [vmem:[#allocation44_spill] sm:$0xff] %v8820_v10  ;;  %v599_v62 = vpop.f32.mrb[100].mxu1  ;;  %v807_v18 = vpop.f32.mrb[100].mxu0 }
 0x1bf   :  { %v600_v4 = vadd.f32 %v599_v62, %v8448_v52  ;;  %v982_v50 = vrot.slane %v807_v18, 1  ;;  %v6711_v55 = vpop.f32.mrb[101].mxu1  ;;  %v6815_v22 = vpop.f32.mrb[101].mxu0  ;;  %v12941_v18 = vld [vmem:[#allocation26_spill] sm:$0xff] }
 0x1c0   :  { %v602_v44 = vpop.f32.mrb[102].mxu1  ;;  %v810_v11 = vpop.f32.mrb[102].mxu0 }
 0x1c1   :  { %v603_v57 = vadd.f32 %v602_v44, %v8454_v54  ;;  %v984_v15 = vrot.slane %v810_v11, 1  ;;  %v6712_v14 = vpop.f32.mrb[103].mxu1  ;;  %v6816_v38 = vpop.f32.mrb[103].mxu0  ;;  %v983_v29 = vsel %vm930_vm1, %v980_v36, %v982_v50 }
 0x1c2   :  { %v8825_v40 = vadd.f32 %v983_v29, %v587_v7 }
 0x1c3   :  { %6942 = vmatmul.mubr.bf16.gmra.mrb[208].mxu1 %v8041_v17  ;;  %7154 = vmatmul.mubr.bf16.gmra.mrb[208].mxu0 %v8019_v1  ;;  %v985_v52 = vsel %vm930_vm1, %v982_v50, %v984_v15 }
 0x1c4   :  { %12936 = vst [vmem:[#allocation45_spill] sm:$0xff] %v8825_v40  ;;  %6945 = vmatprep.mubr.msk.bf16.mxu1 %vm7592_vm0, %v12915_v35  ;;  %7157 = vmatprep.mubr.msk.bf16.mxu0 %vm7592_vm0, %v12915_v35  ;;  %v8834_v54 = vadd.f32 %v985_v52, %v592_v5  ;;  %v12939_v5 = vld [vmem:[#allocation2_spill] sm:$0xff] }
 0x1c6   :  { %12937 = vst [vmem:[#allocation46_spill] sm:$0xff] %v8834_v54  ;;  %v607_v25 = vpop.f32.mrb[104].mxu1  ;;  %v815_v41 = vpop.f32.mrb[104].mxu0 }
 0x1c7   :  { %v608_v59 = vadd.f32 %v607_v25, %v8470_v0  ;;  %v986_v7 = vrot.slane %v815_v41, 1  ;;  %v6715_v8 = vpop.f32.mrb[105].mxu1  ;;  %v6819_v39 = vpop.f32.mrb[105].mxu0  ;;  %v5862_v0 = vld [vmem:[%s12839_s3 + $0x50] sm:$0xff]  ;;  %v12944_v41 = vld [vmem:[#allocation3_spill] sm:$0xff] }
 0x1c8   :  { %v610_v13 = vpop.f32.mrb[106].mxu1  ;;  %v818_v2 = vpop.f32.mrb[106].mxu0  ;;  %v2128_v30 = vpack.c.bf16 %v5863_v53, %v5862_v0 }
 0x1c9   :  { %v611_v1 = vadd.f32 %v610_v13, %v8476_v34  ;;  %v988_v21 = vrot.slane %v818_v2, 1  ;;  %v6716_v48 = vpop.f32.mrb[107].mxu1  ;;  %v6820_v9 = vpop.f32.mrb[107].mxu0  ;;  %v987_v36 = vsel %vm930_vm1, %v984_v15, %v986_v7  ;;  %v12942_v15 = vld [vmem:[#allocation28_spill] sm:$0xff]  ;;  %v12946_v2 = vld [vmem:[#allocation29_spill] sm:$0xff] }
 0x1ca   :  { %v8839_v6 = vadd.f32 %v987_v36, %v595_v33  ;;  %7180 = vmatpush3.bf16.msra.mxu0 %v2128_v30 }
 0x1cb   :  { %6946 = vmatmul.mubr.bf16.gmra.mrb[212].mxu1 %v12939_v5  ;;  %7158 = vmatmul.mubr.bf16.gmra.mrb[212].mxu0 %v8041_v17  ;;  %v989_v34 = vsel %vm930_vm1, %v986_v7, %v988_v21 }
 0x1cc   :  { %12938 = vst [vmem:[#allocation47_spill] sm:$0xff] %v8839_v6  ;;  %6949 = vmatprep.mubr.msk.bf16.mxu1 %vm7592_vm0, %v12915_v35  ;;  %7161 = vmatprep.mubr.msk.bf16.mxu0 %vm7592_vm0, %v12915_v35  ;;  %v8854_v33 = vadd.f32 %v989_v34, %v600_v4 }
 0x1cd   :  { %7181 = vmatprep.subr.bf16.mxu0 %v12915_v35 }
 0x1ce   :  { %12940 = vst [vmem:[#allocation2_spill] sm:$0xff] %v8854_v33  ;;  %v615_v16 = vpop.f32.mrb[108].mxu1  ;;  %v823_v62 = vpop.f32.mrb[108].mxu0 }
 0x1cf   :  { %v616_v50 = vadd.f32 %v615_v16, %v12941_v18  ;;  %v990_v55 = vrot.slane %v823_v62, 1  ;;  %v6719_v22 = vpop.f32.mrb[109].mxu1  ;;  %v6823_v44 = vpop.f32.mrb[109].mxu0 }
 0x1d0   :  { %v618_v17 = vpop.f32.mrb[110].mxu1  ;;  %v826_v11 = vpop.f32.mrb[110].mxu0 }
 0x1d1   :  { %v619_v14 = vadd.f32 %v618_v17, %v12942_v15  ;;  %v992_v38 = vrot.slane %v826_v11, 1  ;;  %v6720_v29 = vpop.f32.mrb[111].mxu1  ;;  %v6824_v52 = vpop.f32.mrb[111].mxu0  ;;  %v991_v4 = vsel %vm930_vm1, %v988_v21, %v990_v55  ;;  %v12951_v11 = vld [vmem:[#allocation32_spill] sm:$0xff] }
 0x1d2   :  { %v8860_v25 = vadd.f32 %v991_v4, %v603_v57 }
 0x1d3   :  { %6950 = vmatmul.mubr.bf16.gmra.mrb[216].mxu1 %v12944_v41  ;;  %7162 = vmatmul.mubr.bf16.gmra.mrb[216].mxu0 %v12939_v5  ;;  %v993_v7 = vsel %vm930_vm1, %v990_v55, %v992_v38  ;;  %v12947_v5 = vld [vmem:[#allocation31_spill] sm:$0xff] }
 0x1d4   :  { %12943 = vst [vmem:[#allocation26_spill] sm:$0xff] %v8860_v25  ;;  %6953 = vmatprep.mubr.msk.bf16.mxu1 %vm7592_vm0, %v12915_v35  ;;  %7165 = vmatprep.mubr.msk.bf16.mxu0 %vm7592_vm0, %v12915_v35  ;;  %v8869_v8 = vadd.f32 %v993_v7, %v608_v59  ;;  %v12949_v59 = vld [vmem:[#allocation4_spill] sm:$0xff] }
 0x1d6   :  { %12945 = vst [vmem:[#allocation28_spill] sm:$0xff] %v8869_v8  ;;  %v623_v39 = vpop.f32.mrb[112].mxu1  ;;  %v831_v13 = vpop.f32.mrb[112].mxu0 }
 0x1d7   :  { %v624_v21 = vadd.f32 %v623_v39, %v12946_v2  ;;  %v994_v57 = vrot.slane %v831_v13, 1  ;;  %v6723_v48 = vpop.f32.mrb[113].mxu1  ;;  %v6827_v9 = vpop.f32.mrb[113].mxu0 }
 0x1d8   :  { %v626_v36 = vpop.f32.mrb[114].mxu1  ;;  %v834_v0 = vpop.f32.mrb[114].mxu0 }
 0x1d9   :  { %v627_v53 = vadd.f32 %v626_v36, %v12947_v5  ;;  %v996_v34 = vrot.slane %v834_v0, 1  ;;  %v6724_v30 = vpop.f32.mrb[115].mxu1  ;;  %v6828_v16 = vpop.f32.mrb[115].mxu0  ;;  %v995_v62 = vsel %vm930_vm1, %v992_v38, %v994_v57 }
 0x1da   :  { %v8874_v18 = vadd.f32 %v995_v62, %v611_v1  ;;  %v12956_v30 = vld [vmem:[#allocation35_spill] sm:$0xff] }
 0x1db   :  { %6954 = vmatmul.mubr.bf16.gmra.mrb[220].mxu1 %v12949_v59  ;;  %7166 = vmatmul.mubr.bf16.gmra.mrb[220].mxu0 %v12944_v41  ;;  %v997_v55 = vsel %vm930_vm1, %v994_v57, %v996_v34  ;;  %v12952_v41 = vld [vmem:[#allocation34_spill] sm:$0xff] }
 0x1dc   :  { %12948 = vst [vmem:[#allocation3_spill] sm:$0xff] %v8874_v18  ;;  %6957 = vmatprep.mubr.msk.bf16.mxu1 %vm7592_vm0, %v12915_v35  ;;  %7169 = vmatprep.mubr.msk.bf16.mxu0 %vm7592_vm0, %v12915_v35  ;;  %v8883_v22 = vadd.f32 %v997_v55, %v616_v50  ;;  %v12954_v50 = vld [vmem:[#allocation5_spill] sm:$0xff] }
 0x1de   :  { %12950 = vst [vmem:[#allocation29_spill] sm:$0xff] %v8883_v22  ;;  %v631_v44 = vpop.f32.mrb[116].mxu1  ;;  %v839_v17 = vpop.f32.mrb[116].mxu0 }
 0x1df   :  { %v632_v15 = vadd.f32 %v631_v44, %v12951_v11  ;;  %v998_v1 = vrot.slane %v839_v17, 1  ;;  %v6727_v38 = vpop.f32.mrb[117].mxu1  ;;  %v6831_v29 = vpop.f32.mrb[117].mxu0 }
 0x1e0   :  { %v634_v52 = vpop.f32.mrb[118].mxu1  ;;  %v842_v4 = vpop.f32.mrb[118].mxu0 }
 0x1e1   :  { %v635_v7 = vadd.f32 %v634_v52, %v12952_v41  ;;  %v1000_v39 = vrot.slane %v842_v4, 1  ;;  %v6728_v13 = vpop.f32.mrb[119].mxu1  ;;  %v6832_v2 = vpop.f32.mrb[119].mxu0  ;;  %v999_v57 = vsel %vm930_vm1, %v996_v34, %v998_v1 }
 0x1e2   :  { %v8888_v48 = vadd.f32 %v999_v57, %v619_v14  ;;  %v12961_v57 = vld [vmem:[#allocation37_spill] sm:$0xff] }
 0x1e3   :  { %6958 = vmatmul.mubr.bf16.gmra.mrb[224].mxu1 %v12954_v50  ;;  %7170 = vmatmul.mubr.bf16.gmra.mrb[224].mxu0 %v12949_v59  ;;  %v1001_v9 = vsel %vm930_vm1, %v998_v1, %v1000_v39  ;;  %v12957_v59 = vld [vmem:[#allocation36_spill] sm:$0xff] }
 0x1e4   :  { %12953 = vst [vmem:[#allocation31_spill] sm:$0xff] %v8888_v48  ;;  %6977 = vmatprep.mubr.msk.bf16.mxu1 %vm7592_vm0, %v12915_v35  ;;  %7173 = vmatprep.mubr.msk.bf16.mxu0 %vm7592_vm0, %v12915_v35  ;;  %v8897_v36 = vadd.f32 %v1001_v9, %v624_v21  ;;  %v12959_v21 = vld [vmem:[#allocation6_spill] sm:$0xff] }
 0x1e6   :  { %12955 = vst [vmem:[#allocation4_spill] sm:$0xff] %v8897_v36  ;;  %v639_v0 = vpop.f32.mrb[120].mxu1  ;;  %v847_v5 = vpop.f32.mrb[120].mxu0 }
 0x1e7   :  { %v640_v34 = vadd.f32 %v639_v0, %v12956_v30  ;;  %v1002_v14 = vrot.slane %v847_v5, 1  ;;  %v6731_v16 = vpop.f32.mrb[121].mxu1  ;;  %v6835_v62 = vpop.f32.mrb[121].mxu0 }
 0x1e8   :  { %v642_v55 = vpop.f32.mrb[122].mxu1  ;;  %v850_v44 = vpop.f32.mrb[122].mxu0 }
 0x1e9   :  { %v643_v17 = vadd.f32 %v642_v55, %v12957_v59  ;;  %v1004_v11 = vrot.slane %v850_v44, 1  ;;  %v6732_v1 = vpop.f32.mrb[123].mxu1  ;;  %v6836_v38 = vpop.f32.mrb[123].mxu0  ;;  %v1003_v29 = vsel %vm930_vm1, %v1000_v39, %v1002_v14 }
 0x1ea   :  { %v8902_v52 = vadd.f32 %v1003_v29, %v627_v53  ;;  %v5864_v1 = vld [vmem:[%s12839_s3 + $0x60] sm:$0xff]  ;;  %v5865_v38 = vld [vmem:[%s12839_s3 + $0x68] sm:$0xff] }
 0x1eb   :  { %6978 = vmatmul.mubr.bf16.vlgmr.msra.gmra.mrb[136].mxu1 %v12959_v21  ;;  %7174 = vmatmul.mubr.bf16.gmra.mrb[228].mxu0 %v12954_v50  ;;  %v1005_v4 = vsel %vm930_vm1, %v1002_v14, %v1004_v11  ;;  %v12962_v50 = vld [vmem:[#allocation38_spill] sm:$0xff]  ;;  %v2129_v21 = vpack.c.bf16 %v5865_v38, %v5864_v1  ;;  %v12969_v1 = vld [vmem:[#allocation8_spill] sm:$0xff] }
 0x1ec   :  { %12958 = vst [vmem:[#allocation32_spill] sm:$0xff] %v8902_v52  ;;  %6981 = vmatprep.mubr.msk.bf16.mxu1 %vm7592_vm0, %v12915_v35  ;;  %7185 = vmatprep.mubr.msk.bf16.mxu0 %vm7592_vm0, %v12915_v35  ;;  %v8911_v41 = vadd.f32 %v1005_v4, %v632_v15  ;;  %v12964_v15 = vld [vmem:[#allocation7_spill] sm:$0xff]  ;;  %v12997_v52 = vld [vmem:[#allocation33_spill] sm:$0xff] }
 0x1ed   :  { %7182 = vmatpush3.bf16.msra.mxu0 %v2129_v21 }
 0x1ee   :  { %12960 = vst [vmem:[#allocation34_spill] sm:$0xff] %v8911_v41  ;;  %v647_v13 = vpop.f32.mrb[124].mxu1  ;;  %v855_v2 = vpop.f32.mrb[124].mxu0  ;;  %7183 = vmatprep.subr.bf16.mxu0 %v12915_v35 }
 0x1ef   :  { %v648_v39 = vadd.f32 %v647_v13, %v12961_v57  ;;  %v1006_v53 = vrot.slane %v855_v2, 1  ;;  %v6735_v9 = vpop.f32.mrb[125].mxu1  ;;  %v6839_v0 = vpop.f32.mrb[125].mxu0  ;;  %v12966_v13 = vld [vmem:[#allocation39_spill] sm:$0xff] }
 0x1f0   :  { %v650_v5 = vpop.f32.mrb[126].mxu1  ;;  %v858_v30 = vpop.f32.mrb[126].mxu0 }
 0x1f1   :  { %v651_v16 = vadd.f32 %v650_v5, %v12962_v50  ;;  %v1008_v14 = vrot.slane %v858_v30, 1  ;;  %v6736_v62 = vpop.f32.mrb[127].mxu1  ;;  %v6840_v55 = vpop.f32.mrb[127].mxu0  ;;  %v1007_v44 = vsel %vm930_vm1, %v1004_v11, %v1006_v53  ;;  %v12967_v50 = vld [vmem:[#allocation40_spill] sm:$0xff] }
 0x1f2   :  { %v8916_v59 = vadd.f32 %v1007_v44, %v635_v7 }
 0x1f3   :  { %6982 = vmatmul.mubr.bf16.gmra.mrb[140].mxu1 %v12964_v15  ;;  %v1009_v29 = vsel %vm930_vm1, %v1006_v53, %v1008_v14 }
 0x1f4   :  { %12963 = vst [vmem:[#allocation5_spill] sm:$0xff] %v8916_v59  ;;  %6985 = vmatprep.mubr.msk.bf16.mxu1 %vm7592_vm0, %v12915_v35  ;;  %v8928_v4 = vadd.f32 %v1009_v29, %v640_v34  ;;  %v12996_v59 = vld [vmem:[#allocation30_spill] sm:$0xff] }
 0x1f6   :  { %12965 = vst [vmem:[#allocation35_spill] sm:$0xff] %v8928_v4  ;;  %v655_v7 = vpop.f32.mrb[128].mxu1  ;;  %v863_v11 = vpop.f32.mrb[128].mxu0 }
 0x1f7   :  { %v656_v2 = vadd.f32 %v655_v7, %v12966_v13  ;;  %v1010_v57 = vrot.slane %v863_v11, 1  ;;  %v6739_v9 = vpop.f32.mrb[129].mxu1  ;;  %v6843_v0 = vpop.f32.mrb[129].mxu0  ;;  %v12971_v11 = vld [vmem:[#allocation41_spill] sm:$0xff] }
 0x1f8   :  { %v658_v5 = vpop.f32.mrb[130].mxu1  ;;  %v866_v30 = vpop.f32.mrb[130].mxu0 }
 0x1f9   :  { %v659_v53 = vadd.f32 %v658_v5, %v12967_v50  ;;  %v1012_v62 = vrot.slane %v866_v30, 1  ;;  %v6740_v55 = vpop.f32.mrb[131].mxu1  ;;  %v6844_v44 = vpop.f32.mrb[131].mxu0  ;;  %v1011_v34 = vsel %vm930_vm1, %v1008_v14, %v1010_v57 }
 0x1fa   :  { %v8934_v15 = vadd.f32 %v1011_v34, %v643_v17  ;;  %v12973_v34 = vld [vmem:[#allocation9_spill] sm:$0xff] }
 0x1fb   :  { %6986 = vmatmul.mubr.bf16.gmra.mrb[144].mxu1 %v12969_v1  ;;  %v1013_v38 = vsel %vm930_vm1, %v1010_v57, %v1012_v62 }
 0x1fc   :  { %12968 = vst [vmem:[#allocation36_spill] sm:$0xff] %v8934_v15  ;;  %6989 = vmatprep.mubr.msk.bf16.mxu1 %vm7592_vm0, %v12915_v35  ;;  %v8940_v29 = vadd.f32 %v1013_v38, %v648_v39  ;;  %v12995_v15 = vld [vmem:[#allocation27_spill] sm:$0xff] }
 0x1fe   :  { %12970 = vst [vmem:[#allocation6_spill] sm:$0xff] %v8940_v29  ;;  %v663_v21 = vpop.f32.mrb[132].mxu1  ;;  %v871_v7 = vpop.f32.mrb[132].mxu0 }
 0x1ff   :  { %v664_v13 = vadd.f32 %v663_v21, %v12971_v11  ;;  %v1014_v9 = vrot.slane %v871_v7, 1  ;;  %v6743_v0 = vpop.f32.mrb[133].mxu1  ;;  %v6847_v5 = vpop.f32.mrb[133].mxu0 }
 0x200   :  { %v666_v30 = vpop.f32.mrb[134].mxu1  ;;  %v874_v14 = vpop.f32.mrb[134].mxu0 }
 0x201   :  { %v1016_v17 = vrot.slane %v874_v14, 1  ;;  %v6744_v50 = vpop.f32.mrb[135].mxu1  ;;  %v6848_v55 = vpop.f32.mrb[135].mxu0  ;;  %v1015_v44 = vsel %vm930_vm1, %v1012_v62, %v1014_v9  ;;  %v12975_v30 = vld [vmem:[#allocation42_spill] sm:$0xff] }
 0x202   :  { %v8944_v57 = vadd.f32 %v1015_v44, %v651_v16  ;;  %v12976_v62 = vrot.slane %v12975_v30, 1  ;;  %v12981_v55 = vld [vmem:[#allocation12_spill] sm:$0xff]  ;;  %v12982_v44 = vld [vmem:[#allocation13_spill] sm:$0xff] }
 0x203   :  { %6990 = vmatmul.mubr.bf16.gmra.mrb[148].mxu1 %v12973_v34  ;;  %v1017_v39 = vsel %vm930_vm1, %v1014_v9, %v1016_v17  ;;  %v12979_v9 = vld [vmem:[#allocation10_spill] sm:$0xff] }
 0x204   :  { %12972 = vst [vmem:[#allocation37_spill] sm:$0xff] %v8944_v57  ;;  %6993 = vmatprep.mubr.msk.bf16.mxu1 %vm7592_vm0, %v12915_v35  ;;  %v8950_v1 = vadd.f32 %v1017_v39, %v656_v2  ;;  %v12980_v2 = vld [vmem:[#allocation11_spill] sm:$0xff]  ;;  %v12983_v34 = vld [vmem:[#allocation14_spill] sm:$0xff]  ;;  %v12994_v57 = vld [vmem:[#allocation25_spill] sm:$0xff] }
 0x205   :  { %v12984_v39 = vld [vmem:[#allocation15_spill] sm:$0xff] }
 0x206   :  { %12974 = vst [vmem:[#allocation38_spill] sm:$0xff] %v8950_v1  ;;  %v879_v38 = vpop.f32.mrb[136].mxu0 }
 0x207   :  { %v1018_v21 = vrot.slane %v879_v38, 1  ;;  %v6851_v7 = vpop.f32.mrb[137].mxu0  ;;  %v12985_v38 = vld [vmem:[#allocation16_spill] sm:$0xff] }
 0x208   :  { %v882_v11 = vpop.f32.mrb[138].mxu0  ;;  %v5892_v7 = vld [vmem:[%s12839_s3 + $0x88] sm:$0xff] }
 0x209   :  { %v6852_v0 = vpop.f32.mrb[139].mxu0  ;;  %v1019_v5 = vsel %vm930_vm1, %v1016_v17, %v1018_v21  ;;  %v1066_v16 = vsel %vm930_vm1, %v1018_v21, %v12976_v62  ;;  %v5866_v17 = vld [vmem:[%s12839_s3 + $0x70] sm:$0xff]  ;;  %v5891_v21 = vld [vmem:[%s12839_s3 + $0x80] sm:$0xff]  ;;  %v12986_v11 = vld [vmem:[#allocation17_spill] sm:$0xff] }
 0x20a   :  { %v8956_v14 = vadd.f32 %v1019_v5, %v659_v53  ;;  %v8958_v50 = vadd.f32 %v1066_v16, %v664_v13  ;;  %v5867_v53 = vld [vmem:[%s12839_s3 + $0x78] sm:$0xff]  ;;  %v2426_v5 = vpack.c.bf16 %v5892_v7, %v5891_v21  ;;  %v5893_v16 = vld [vmem:[%s12839_s3 + $0x90] sm:$0xff] }
 0x20b   :  { %6994 = vmatmul.mubr.bf16.gmra.mrb[152].mxu1 %v12979_v9  ;;  %v2130_v13 = vpack.c.bf16 %v5867_v53, %v5866_v17  ;;  %v5894_v9 = vld [vmem:[%s12839_s3 + $0x98] sm:$0xff]  ;;  %v5895_v17 = vld [vmem:[%s12839_s3 + $0xa0] sm:$0xff]  ;;  %v5896_v53 = vld [vmem:[%s12839_s3 + $0xa8] sm:$0xff] }
 0x20c   :  { %12977 = vst [vmem:[#allocation7_spill] sm:$0xff] %v8956_v14  ;;  %12978 = vst [vmem:[#allocation39_spill] sm:$0xff] %v8958_v50  ;;  %6997 = vmatprep.mubr.msk.bf16.mxu1 %vm7592_vm0, %v12915_v35  ;;  %7278 = vmatpush3.bf16.msra.mxu1 %v2426_v5  ;;  %v5897_v21 = vld [vmem:[%s12839_s3 + $0xb0] sm:$0xff]  ;;  %v5898_v7 = vld [vmem:[%s12839_s3 + $0xb8] sm:$0xff] }
 0x20d   :  { %7184 = vmatpush3.bf16.msra.mxu0 %v2130_v13  ;;  %7279 = vmatprep.subr.bf16.mxu1 %v12915_v35  ;;  %v12987_v13 = vld [vmem:[#allocation18_spill] sm:$0xff]  ;;  %v2429_v5 = vpack.c.bf16 %v5898_v7, %v5897_v21  ;;  %v12990_v21 = vld [vmem:[#allocation21_spill] sm:$0xff]  ;;  %v12993_v14 = vld [vmem:[#allocation24_spill] sm:$0xff] }
 0x20e   :  { %7377 = vmatprep.subr.bf16.mxu0 %v12915_v35  ;;  %v8995_v0 = vpop.f32.mrb[140].mxu0 }
 0x20f   :  { %v7087_v30 = vpop.f32.mrb[141].mxu0 }
 0x210   :  { %v8999_v62 = vpop.f32.mrb[142].mxu0  ;;  %v12988_v30 = vld [vmem:[#allocation19_spill] sm:$0xff] }
 0x213   :  { %6998 = vmatmul.mubr.bf16.gmra.mrb[156].mxu1 %v12980_v2  ;;  %v7088_v2 = vpop.f32.mrb[143].mxu0 }
 0x214   :  { %7001 = vmatprep.mubr.msk.bf16.mxu1 %vm7592_vm0, %v12915_v35 }
 0x21b   :  { %7002 = vmatmul.mubr.bf16.gmra.mrb[160].mxu1 %v12981_v55  ;;  %v2427_v55 = vpack.c.bf16 %v5894_v9, %v5893_v16 }
 0x21c   :  { %7005 = vmatprep.mubr.msk.bf16.mxu1 %vm7592_vm0, %v12915_v35 }
 0x21d   :  { %7280 = vmatpush3.bf16.msra.mxu1 %v2427_v55 }
 0x21e   :  { %7281 = vmatprep.subr.bf16.mxu1 %v12915_v35 }
 0x223   :  { %7006 = vmatmul.mubr.bf16.gmra.mrb[164].mxu1 %v12982_v44  ;;  %v9016_v44 = vpop.f32.mrb[144].mxu0 }
 0x224   :  { %7009 = vmatprep.mubr.msk.bf16.mxu1 %vm7592_vm0, %v12915_v35 }
 0x22b   :  { %7010 = vmatmul.mubr.bf16.gmra.mrb[168].mxu1 %v12983_v34  ;;  %v2428_v34 = vpack.c.bf16 %v5896_v53, %v5895_v17  ;;  %v12989_v17 = vld [vmem:[#allocation20_spill] sm:$0xff] }
 0x22c   :  { %7013 = vmatprep.mubr.msk.bf16.mxu1 %vm7592_vm0, %v12915_v35 }
 0x22d   :  { %7282 = vmatpush3.bf16.msra.mxu1 %v2428_v34 }
 0x22e   :  { %7283 = vmatprep.subr.bf16.mxu1 %v12915_v35 }
 0x231   :  { %7284 = vmatpush3.bf16.msra.mxu1 %v2429_v5 }
 0x233   :  { %7014 = vmatmul.mubr.bf16.gmra.mrb[172].mxu1 %v12984_v39  ;;  %v7091_v39 = vpop.f32.mrb[145].mxu0 }
 0x234   :  { %7017 = vmatprep.mubr.msk.bf16.mxu1 %vm7592_vm0, %v12915_v35 }
 0x23b   :  { %7018 = vmatmul.mubr.bf16.gmra.mrb[176].mxu1 %v12985_v38  ;;  %v9020_v38 = vpop.f32.mrb[146].mxu0 }
 0x23c   :  { %7021 = vmatprep.mubr.msk.bf16.mxu1 %vm7592_vm0, %v12915_v35 }
 0x243   :  { %7022 = vmatmul.mubr.bf16.gmra.mrb[180].mxu1 %v12986_v11  ;;  %v7092_v11 = vpop.f32.mrb[147].mxu0 }
 0x244   :  { %7025 = vmatprep.mubr.msk.bf16.mxu1 %vm7592_vm0, %v12915_v35  ;;  %v9030_v16 = vpop.f32.mrb[148].mxu0 }
 0x245   :  { %v7095_v9 = vpop.f32.mrb[149].mxu0 }
 0x246   :  { %v9034_v2 = vpop.f32.mrb[150].mxu0  ;;  %v12991_v9 = vld [vmem:[#allocation22_spill] sm:$0xff] }
 0x247   :  { %v7096_v55 = vpop.f32.mrb[151].mxu0 }
 0x248   :  { %v9037_v53 = vpop.f32.mrb[152].mxu0 }
 0x24b   :  { %7026 = vmatmul.mubr.bf16.gmra.mrb[184].mxu1 %v12987_v13  ;;  %v7099_v13 = vpop.f32.mrb[153].mxu0 }
 0x24c   :  { %7029 = vmatprep.mubr.msk.bf16.mxu1 %vm7592_vm0, %v12915_v35  ;;  %v9041_v34 = vpop.f32.mrb[154].mxu0 }
 0x24d   :  { %v7100_v39 = vpop.f32.mrb[155].mxu0 }
 0x24e   :  { %v9044_v7 = vpop.f32.mrb[156].mxu0 }
 0x24f   :  { %v7103_v11 = vpop.f32.mrb[157].mxu0 }
 0x250   :  { %v9048_v5 = vpop.f32.mrb[158].mxu0 }
 0x253   :  { %7030 = vmatmul.mubr.bf16.gmra.mrb[188].mxu1 %v12988_v30  ;;  %v7104_v30 = vpop.f32.mrb[159].mxu0 }
 0x254   :  { %7033 = vmatprep.mubr.msk.bf16.mxu1 %vm7592_vm0, %v12915_v35  ;;  %v9051_v55 = vpop.f32.mrb[160].mxu0 }
 0x25b   :  { %7034 = vmatmul.mubr.bf16.gmra.mrb[192].mxu1 %v12989_v17  ;;  %v7107_v17 = vpop.f32.mrb[161].mxu0 }
 0x25c   :  { %7037 = vmatprep.mubr.msk.bf16.mxu1 %vm7592_vm0, %v12915_v35  ;;  %v9055_v13 = vpop.f32.mrb[162].mxu0 }
 0x25d   :  { %v7108_v39 = vpop.f32.mrb[163].mxu0 }
 0x25e   :  { %v9058_v50 = vpop.f32.mrb[164].mxu0 }
 0x25f   :  { %v7111_v11 = vpop.f32.mrb[165].mxu0 }
 0x260   :  { %v9062_v30 = vpop.f32.mrb[166].mxu0 }
 0x263   :  { %7038 = vmatmul.mubr.bf16.gmra.mrb[196].mxu1 %v12990_v21  ;;  %v12992_v21 = vld [vmem:[#allocation23_spill] sm:$0xff] }
 0x264   :  { %7041 = vmatprep.mubr.msk.bf16.mxu1 %vm7592_vm0, %v12915_v35 }
 0x26b   :  { %7042 = vmatmul.mubr.bf16.gmra.mrb[200].mxu1 %v12991_v9  ;;  %v7112_v9 = vpop.f32.mrb[167].mxu0 }
 0x26c   :  { %7045 = vmatprep.mubr.msk.bf16.mxu1 %vm7592_vm0, %v12915_v35  ;;  %v9065_v1 = vpop.f32.mrb[168].mxu0 }
 0x26d   :  { %v7115_v17 = vpop.f32.mrb[169].mxu0 }
 0x26e   :  { %v9069_v39 = vpop.f32.mrb[170].mxu0 }
 0x273   :  { %7046 = vmatmul.mubr.bf16.gmra.mrb[204].mxu1 %v12992_v21  ;;  %v7116_v21 = vpop.f32.mrb[171].mxu0 }
 0x274   :  { %7049 = vmatprep.mubr.msk.bf16.mxu1 %vm7592_vm0, %v12915_v35  ;;  %v9072_v29 = vpop.f32.mrb[172].mxu0 }
 0x275   :  { %v7119_v11 = vpop.f32.mrb[173].mxu0 }
 0x276   :  { %v9076_v9 = vpop.f32.mrb[174].mxu0 }
 0x27b   :  { %7050 = vmatmul.mubr.bf16.gmra.mrb[208].mxu1 %v12993_v14  ;;  %v7120_v14 = vpop.f32.mrb[175].mxu0 }
 0x27c   :  { %7053 = vmatprep.mubr.msk.bf16.mxu1 %vm7592_vm0, %v12915_v35  ;;  %v9079_v4 = vpop.f32.mrb[176].mxu0 }
 0x27d   :  { %v7123_v17 = vpop.f32.mrb[177].mxu0 }
 0x27e   :  { %v9083_v21 = vpop.f32.mrb[178].mxu0 }
 0x283   :  { %7054 = vmatmul.mubr.bf16.gmra.mrb[212].mxu1 %v12994_v57  ;;  %v7124_v57 = vpop.f32.mrb[179].mxu0 }
 0x284   :  { %7057 = vmatprep.mubr.msk.bf16.mxu1 %vm7592_vm0, %v12915_v35  ;;  %v9086_v41 = vpop.f32.mrb[180].mxu0 }
 0x285   :  { %v7127_v11 = vpop.f32.mrb[181].mxu0 }
 0x286   :  { %v9090_v14 = vpop.f32.mrb[182].mxu0 }
 0x28b   :  { %7058 = vmatmul.mubr.bf16.gmra.mrb[216].mxu1 %v12995_v15  ;;  %v7128_v15 = vpop.f32.mrb[183].mxu0 }
 0x28c   :  { %7061 = vmatprep.mubr.msk.bf16.mxu1 %vm7592_vm0, %v12915_v35  ;;  %v9093_v36 = vpop.f32.mrb[184].mxu0 }
 0x28d   :  { %v7131_v17 = vpop.f32.mrb[185].mxu0 }
 0x28e   :  { %v9097_v57 = vpop.f32.mrb[186].mxu0 }
 0x293   :  { %7062 = vmatmul.mubr.bf16.gmra.mrb[220].mxu1 %v12996_v59  ;;  %v7132_v59 = vpop.f32.mrb[187].mxu0 }
 0x294   :  { %7065 = vmatprep.mubr.msk.bf16.mxu1 %vm7592_vm0, %v12915_v35  ;;  %v9099_v48 = vpop.f32.mrb[188].mxu0 }
 0x295   :  { %12998 = vst [vmem:[#allocation40_spill] sm:$0xff] %v9099_v48  ;;  %v7135_v22 = vpop.f32.mrb[189].mxu0 }
 0x296   :  { %v9101_v18 = vpop.f32.mrb[190].mxu0 }
 0x297   :  { %12999 = vst [vmem:[#allocation8_spill] sm:$0xff] %v9101_v18  ;;  %v7136_v11 = vpop.f32.mrb[191].mxu0 }
 0x298   :  { %v9103_v8 = vpop.f32.mrb[192].mxu0 }
 0x299   :  { %13000 = vst [vmem:[#allocation41_spill] sm:$0xff] %v9103_v8  ;;  %v7139_v15 = vpop.f32.mrb[193].mxu0 }
 0x29a   :  { %v9105_v25 = vpop.f32.mrb[194].mxu0 }
 0x29b   :  { %7066 = vmatmul.mubr.bf16.gmra.mrb[224].mxu1 %v12997_v52  ;;  %13001 = vst [vmem:[#allocation9_spill] sm:$0xff] %v9105_v25  ;;  %v7140_v52 = vpop.f32.mrb[195].mxu0 }
 0x29c   :  { %7285 = vmatprep.mubr.msk.bf16.mxu1 %vm7592_vm0, %v12915_v35  ;;  %v9107_v33 = vpop.f32.mrb[196].mxu0 }
 0x29d   :  { %13002 = vst [vmem:[#allocation42_spill] sm:$0xff] %v9107_v33  ;;  %v7143_v6 = vpop.f32.mrb[197].mxu0 }
 0x29e   :  { %v9109_v54 = vpop.f32.mrb[198].mxu0 }
 0x29f   :  { %13003 = vst [vmem:[#allocation10_spill] sm:$0xff] %v9109_v54  ;;  %v7144_v17 = vpop.f32.mrb[199].mxu0 }
 0x2a0   :  { %v9111_v40 = vpop.f32.mrb[200].mxu0 }
 0x2a1   :  { %13004 = vst [vmem:[#allocation11_spill] sm:$0xff] %v9111_v40  ;;  %v7147_v59 = vpop.f32.mrb[201].mxu0 }
 0x2a2   :  { %v9115_v22 = vpop.f32.mrb[202].mxu0 }
 0x2a3   :  { %13006 = vst [vmem:[#allocation13_spill] sm:$0xff] %v9115_v22  ;;  %v7148_v18 = vpop.f32.mrb[203].mxu0 }
 0x2a4   :  { %v9121_v54 = vpop.f32.mrb[204].mxu0 }
 0x2a5   :  { %v7151_v59 = vpop.f32.mrb[205].mxu0 }
 0x2a6   :  { %v9125_v22 = vpop.f32.mrb[206].mxu0 }
 0x2a7   :  { %13007 = vst [vmem:[#allocation14_spill] sm:$0xff] %v9125_v22  ;;  %v7152_v48 = vpop.f32.mrb[207].mxu0 }
 0x2be   :  { %v9113_v10 = vpop.f32.mrb[136].mxu1 }
 0x2bf   :  { %13005 = vst [vmem:[#allocation12_spill] sm:$0xff] %v9113_v10  ;;  %v6979_v11 = vpop.f32.mrb[137].mxu1  ;;  %v12880_v15 = vrot.slane %v9113_v10, 1 }
 0x2c0   :  { %v1365_v8 = vpop.f32.mrb[138].mxu1 }
 0x2c1   :  { %v1590_v25 = vrot.slane %v1365_v8, 1  ;;  %v6980_v52 = vpop.f32.mrb[139].mxu1  ;;  %v9130_v8 = vld [vmem:[%s12840_s2] ss:$0 sm:$0xff] }
 0x2c3   :  { %v1591_v6 = vsel %vm930_vm1, %v12880_v15, %v1590_v25 }
 0x2c4   :  { %v1760_v17 = vadd.f32 %v8995_v0, %v1591_v6  ;;  %v9135_v6 = vpop.f32.mrb[208].mxu0 }
 0x2c5   :  { %13008 = vst [vmem:[#allocation15_spill] sm:$0xff] %v9135_v6  ;;  %v7155_v59 = vpop.f32.mrb[209].mxu0 }
 0x2c6   :  { %v1941_v40 = vmax.f32 %v8645_v37, %v1760_v17  ;;  %v1370_v33 = vpop.f32.mrb[140].mxu1 }
 0x2c7   :  { %v1592_v18 = vrot.slane %v1370_v33, 1  ;;  %v6983_v11 = vpop.f32.mrb[141].mxu1 }
 0x2c8   :  { %v1373_v56 = vpop.f32.mrb[142].mxu1  ;;  %v1993_v33 = vadd.f32 %v9130_v8, %v1941_v40 }
 0x2c9   :  { %v1593_v52 = vsel %vm930_vm1, %v1590_v25, %v1592_v18  ;;  %v1594_v15 = vrot.slane %v1373_v56, 1  ;;  %v6984_v10 = vpop.f32.mrb[143].mxu1  ;;  %v2106_v56 = vld [vmem:[%s12839_s3] sm:$0xff] }
 0x2ca   :  { %v1763_v0 = vadd.f32 %v8999_v62, %v1593_v52  ;;  %v2107_v10 = vld [vmem:[%s12839_s3 + $0x8] sm:$0xff]  ;;  %v9148_v62 = vpop.f32.mrb[210].mxu0 }
 0x2cb   :  { %v1595_v37 = vsel %vm930_vm1, %v1592_v18, %v1594_v15  ;;  %13009 = vst [vmem:[#allocation16_spill] sm:$0xff] %v9148_v62  ;;  %v7156_v18 = vpop.f32.mrb[211].mxu0  ;;  %v2108_v62 = vld [vmem:[%s12839_s3 + $0x10] sm:$0xff] }
 0x2cc   :  { %v1942_v48 = vmax.f32 %v8650_v27, %v1763_v0  ;;  %v1768_v17 = vadd.f32 %v9016_v44, %v1595_v37  ;;  %v2038_v44 = vmax.f32 %v1993_v33, 0.0  ;;  %v2109_v33 = vld [vmem:[%s12839_s3 + $0x18] sm:$0xff] }
 0x2ce   :  { %v1994_v11 = vadd.f32 %v9130_v8, %v1942_v48  ;;  %v1943_v22 = vmax.f32 %v8659_v46, %v1768_v17  ;;  %v1378_v25 = vpop.f32.mrb[144].mxu1  ;;  %v2114_v17 = vpack.c.bf16 %v2107_v10, %v2106_v56 }
 0x2cf   :  { %v1596_v40 = vrot.slane %v1378_v25, 1  ;;  %v6987_v27 = vpop.f32.mrb[145].mxu1  ;;  %v9161_v25 = vpop.f32.mrb[212].mxu0 }
 0x2d0   :  { %v2039_v52 = vmax.f32 %v1994_v11, 0.0  ;;  %v1381_v0 = vpop.f32.mrb[146].mxu1 }
 0x2d1   :  { %v1597_v37 = vsel %vm930_vm1, %v1594_v15, %v1596_v40  ;;  %v1598_v46 = vrot.slane %v1381_v0, 1  ;;  %v6988_v48 = vpop.f32.mrb[147].mxu1  ;;  %v1995_v15 = vadd.f32 %v9130_v8, %v1943_v22 }
 0x2d2   :  { %v9151_v59 = vpack.c.bf16 %v2039_v52, %v2038_v44  ;;  %v1771_v6 = vadd.f32 %v9020_v38, %v1597_v37  ;;  %v7159_v38 = vpop.f32.mrb[213].mxu0  ;;  %v2110_v44 = vld [vmem:[%s12839_s3 + $0x20] sm:$0xff] }
 0x2d3   :  { %v1599_v11 = vsel %vm930_vm1, %v1596_v40, %v1598_v46  ;;  %v2115_v40 = vpack.c.bf16 %v2109_v33, %v2108_v62  ;;  %v2111_v62 = vld [vmem:[%s12839_s3 + $0x28] sm:$0xff] }
 0x2d4   :  { %v1944_v56 = vmax.f32 %v8664_v45, %v1771_v6  ;;  %v1776_v10 = vadd.f32 %v9030_v16, %v1599_v11  ;;  %7186 = vmatmul.mubr.msk.bf16.vlgmr.msra.gmra.mrb[232].mxu0 %vm2131_vm2, %v9151_v59  ;;  %7286 = vmatmul.mubr.msk.bf16.vlgmr.msra.gmra.mrb[228].mxu1 %vm2131_vm2, %v9151_v59  ;;  %v9177_v45 = vpop.f32.mrb[214].mxu0 }
 0x2d5   :  { %7378 = vmatpush3.bf16.msra.mxu0 %v2114_v17  ;;  %7189 = vmatprep.mubr.msk.bf16.mxu0 %vm7592_vm0, %v12915_v35  ;;  %v7160_v52 = vpop.f32.mrb[215].mxu0 }
 0x2d6   :  { %v1996_v27 = vadd.f32 %v9130_v8, %v1944_v56  ;;  %v1945_v22 = vmax.f32 %v8673_v63, %v1776_v10  ;;  %v1386_v18 = vpop.f32.mrb[148].mxu1  ;;  %7289 = vmatprep.mubr.msk.bf16.mxu1 %vm7592_vm0, %v12915_v35  ;;  %7379 = vmatprep.subr.bf16.mxu0 %v12915_v35  ;;  %v2040_v63 = vmax.f32 %v1995_v15, 0.0  ;;  %v2116_v10 = vpack.c.bf16 %v2111_v62, %v2110_v44 }
 0x2d7   :  { %v1600_v16 = vrot.slane %v1386_v18, 1  ;;  %v6991_v6 = vpop.f32.mrb[149].mxu1  ;;  %v9191_v18 = vpop.f32.mrb[216].mxu0 }
 0x2d8   :  { %v2041_v0 = vmax.f32 %v1996_v27, 0.0  ;;  %v1389_v37 = vpop.f32.mrb[150].mxu1  ;;  %v1997_v15 = vadd.f32 %v9130_v8, %v1945_v22 }
 0x2d9   :  { %v1601_v48 = vsel %vm930_vm1, %v1598_v46, %v1600_v16  ;;  %v1602_v17 = vrot.slane %v1389_v37, 1  ;;  %v6992_v33 = vpop.f32.mrb[151].mxu1  ;;  %7380 = vmatpush3.bf16.msra.mxu0 %v2115_v40 }
 0x2da   :  { %v1779_v11 = vadd.f32 %v9034_v2, %v1601_v48  ;;  %v9187_v56 = vpack.c.bf16 %v2041_v0, %v2040_v63  ;;  %7381 = vmatprep.subr.bf16.mxu0 %v12915_v35  ;;  %v7163_v2 = vpop.f32.mrb[217].mxu0  ;;  %v2042_v62 = vmax.f32 %v1997_v15, 0.0 }
 0x2db   :  { %v1603_v38 = vsel %vm930_vm1, %v1600_v16, %v1602_v17 }
 0x2dc   :  { %v1946_v27 = vmax.f32 %v8678_v60, %v1779_v11  ;;  %v1784_v46 = vadd.f32 %v9037_v53, %v1603_v38  ;;  %7190 = vmatmul.mubr.msk.bf16.gmra.mrb[236].mxu0 %vm2131_vm2, %v9187_v56  ;;  %7290 = vmatmul.mubr.msk.bf16.gmra.mrb[232].mxu1 %vm2131_vm2, %v9187_v56  ;;  %v9206_v53 = vpop.f32.mrb[218].mxu0 }
 0x2dd   :  { %7193 = vmatprep.mubr.msk.bf16.mxu0 %vm7592_vm0, %v12915_v35  ;;  %7293 = vmatprep.mubr.msk.bf16.mxu1 %vm7592_vm0, %v12915_v35  ;;  %v7164_v44 = vpop.f32.mrb[219].mxu0 }
 0x2de   :  { %v1998_v40 = vadd.f32 %v9130_v8, %v1946_v27  ;;  %v1947_v22 = vmax.f32 %v8687_v47, %v1784_v46  ;;  %v1394_v60 = vpop.f32.mrb[152].mxu1  ;;  %7382 = vmatpush3.bf16.msra.mxu0 %v2116_v10  ;;  %v9214_v10 = vpop.f32.mrb[220].mxu0 }
 0x2df   :  { %v1604_v16 = vrot.slane %v1394_v60, 1  ;;  %v6995_v6 = vpop.f32.mrb[153].mxu1  ;;  %7383 = vmatprep.subr.bf16.mxu0 %v12915_v35 }
 0x2e0   :  { %v2043_v52 = vmax.f32 %v1998_v40, 0.0  ;;  %v1397_v63 = vpop.f32.mrb[154].mxu1  ;;  %v1999_v38 = vadd.f32 %v9130_v8, %v1947_v22 }
 0x2e1   :  { %v1605_v0 = vsel %vm930_vm1, %v1602_v17, %v1604_v16  ;;  %v1606_v37 = vrot.slane %v1397_v63, 1  ;;  %v6996_v48 = vpop.f32.mrb[155].mxu1  ;;  %v7167_v17 = vpop.f32.mrb[221].mxu0 }
 0x2e2   :  { %v1787_v33 = vadd.f32 %v9041_v34, %v1605_v0  ;;  %v9211_v11 = vpack.c.bf16 %v2043_v52, %v2042_v62  ;;  %v9229_v2 = vpop.f32.mrb[222].mxu0  ;;  %v2044_v60 = vmax.f32 %v1999_v38, 0.0  ;;  %v2113_v48 = vld [vmem:[%s12839_s3 + $0x38] sm:$0xff] }
 0x2e3   :  { %v1607_v47 = vsel %vm930_vm1, %v1604_v16, %v1606_v37  ;;  %v7168_v22 = vpop.f32.mrb[223].mxu0 }
 0x2e4   :  { %v1948_v27 = vmax.f32 %v8692_v61, %v1787_v33  ;;  %v1792_v15 = vadd.f32 %v9044_v7, %v1607_v47  ;;  %7194 = vmatmul.mubr.msk.bf16.gmra.mrb[240].mxu0 %vm2131_vm2, %v9211_v11  ;;  %7294 = vmatmul.mubr.msk.bf16.gmra.mrb[236].mxu1 %vm2131_vm2, %v9211_v11  ;;  %v9242_v38 = vpop.f32.mrb[224].mxu0 }
 0x2e5   :  { %7197 = vmatprep.mubr.msk.bf16.mxu0 %vm7592_vm0, %v12915_v35  ;;  %7297 = vmatprep.mubr.msk.bf16.mxu1 %vm7592_vm0, %v12915_v35 }
 0x2e6   :  { %v2000_v34 = vadd.f32 %v9130_v8, %v1948_v27  ;;  %v1949_v46 = vmax.f32 %v8701_v3, %v1792_v15  ;;  %v1402_v61 = vpop.f32.mrb[156].mxu1  ;;  %v2112_v3 = vld [vmem:[%s12839_s3 + $0x30] sm:$0xff]  ;;  %v7171_v15 = vpop.f32.mrb[225].mxu0 }
 0x2e7   :  { %v1608_v7 = vrot.slane %v1402_v61, 1  ;;  %v6999_v40 = vpop.f32.mrb[157].mxu1  ;;  %v2117_v47 = vpack.c.bf16 %v2113_v48, %v2112_v3 }
 0x2e8   :  { %v2045_v16 = vmax.f32 %v2000_v34, 0.0  ;;  %v1405_v6 = vpop.f32.mrb[158].mxu1 }
 0x2e9   :  { %v1609_v44 = vsel %vm930_vm1, %v1606_v37, %v1608_v7  ;;  %v1610_v62 = vrot.slane %v1405_v6, 1  ;;  %v7000_v52 = vpop.f32.mrb[159].mxu1  ;;  %v2001_v37 = vadd.f32 %v9130_v8, %v1949_v46  ;;  %7384 = vmatpush3.bf16.msra.mxu0 %v2117_v47 }
 0x2ea   :  { %v1795_v63 = vadd.f32 %v9048_v5, %v1609_v44  ;;  %v9233_v0 = vpack.c.bf16 %v2045_v16, %v2044_v60 }
 0x2eb   :  { %v1611_v33 = vsel %vm930_vm1, %v1608_v7, %v1610_v62  ;;  %v2046_v40 = vmax.f32 %v2001_v37, 0.0 }
 0x2ec   :  { %v1950_v27 = vmax.f32 %v8706_v19, %v1795_v63  ;;  %v1800_v5 = vadd.f32 %v9051_v55, %v1611_v33  ;;  %7198 = vmatmul.mubr.msk.bf16.gmra.mrb[244].mxu0 %vm2131_vm2, %v9233_v0  ;;  %7298 = vmatmul.mubr.msk.bf16.gmra.mrb[240].mxu1 %vm2131_vm2, %v9233_v0  ;;  %v9257_v55 = vpop.f32.mrb[226].mxu0 }
 0x2ed   :  { %7201 = vmatprep.mubr.msk.bf16.mxu0 %vm7592_vm0, %v12915_v35  ;;  %7301 = vmatprep.mubr.msk.bf16.mxu1 %vm7592_vm0, %v12915_v35  ;;  %v7172_v7 = vpop.f32.mrb[227].mxu0 }
 0x2ee   :  { %v2002_v17 = vadd.f32 %v9130_v8, %v1950_v27  ;;  %v1951_v34 = vmax.f32 %v8715_v26, %v1800_v5  ;;  %v1410_v19 = vpop.f32.mrb[160].mxu1  ;;  %v9260_v52 = vpop.f32.mrb[228].mxu0 }
 0x2ef   :  { %v1612_v46 = vrot.slane %v1410_v19, 1  ;;  %v7003_v61 = vpop.f32.mrb[161].mxu1  ;;  %v7175_v26 = vpop.f32.mrb[229].mxu0 }
 0x2f0   :  { %v2047_v22 = vmax.f32 %v2002_v17, 0.0  ;;  %v1413_v60 = vpop.f32.mrb[162].mxu1  ;;  %v1938_v33 = vpop.f32.mrb[230].mxu0  ;;  %v2003_v47 = vadd.f32 %v9130_v8, %v1951_v34 }
 0x2f1   :  { %v1613_v16 = vsel %vm930_vm1, %v1610_v62, %v1612_v46  ;;  %v1614_v6 = vrot.slane %v1413_v60, 1  ;;  %v7004_v44 = vpop.f32.mrb[163].mxu1  ;;  %v7176_v62 = vpop.f32.mrb[231].mxu0 }
 0x2f2   :  { %v1803_v63 = vadd.f32 %v9055_v13, %v1613_v16  ;;  %v9263_v3 = vpack.c.bf16 %v2047_v22, %v2046_v40  ;;  %v2048_v17 = vmax.f32 %v2003_v47, 0.0 }
 0x2f3   :  { %v1615_v48 = vsel %vm930_vm1, %v1612_v46, %v1614_v6 }
 0x2f4   :  { %v1952_v37 = vmax.f32 %v8720_v20, %v1803_v63  ;;  %v1808_v27 = vadd.f32 %v9058_v50, %v1615_v48  ;;  %7202 = vmatmul.mubr.msk.bf16.gmra.mrb[248].mxu0 %vm2131_vm2, %v9263_v3  ;;  %7302 = vmatmul.mubr.msk.bf16.gmra.mrb[244].mxu1 %vm2131_vm2, %v9263_v3 }
 0x2f5   :  { %7205 = vmatprep.mubr.msk.bf16.mxu0 %vm7592_vm0, %v12915_v35  ;;  %7305 = vmatprep.mubr.msk.bf16.mxu1 %vm7592_vm0, %v12915_v35 }
 0x2f6   :  { %v2004_v13 = vadd.f32 %v9130_v8, %v1952_v37  ;;  %v1953_v5 = vmax.f32 %v8729_v58, %v1808_v27  ;;  %v1418_v20 = vpop.f32.mrb[164].mxu1 }
 0x2f7   :  { %v1616_v15 = vrot.slane %v1418_v20, 1  ;;  %v7007_v50 = vpop.f32.mrb[165].mxu1 }
 0x2f8   :  { %v2049_v34 = vmax.f32 %v2004_v13, 0.0  ;;  %v1421_v19 = vpop.f32.mrb[166].mxu1  ;;  %v2005_v16 = vadd.f32 %v9130_v8, %v1953_v5 }
 0x2f9   :  { %v1617_v46 = vsel %vm930_vm1, %v1614_v6, %v1616_v15  ;;  %v1618_v61 = vrot.slane %v1421_v19, 1  ;;  %v7008_v7 = vpop.f32.mrb[167].mxu1 }
 0x2fa   :  { %v9280_v40 = vpack.c.bf16 %v2049_v34, %v2048_v17  ;;  %v1811_v22 = vadd.f32 %v9062_v30, %v1617_v46 }
 0x2fb   :  { %v1619_v60 = vsel %vm930_vm1, %v1616_v15, %v1618_v61 }
 0x2fc   :  { %v1954_v58 = vmax.f32 %v8734_v42, %v1811_v22  ;;  %v1816_v44 = vadd.f32 %v9065_v1, %v1619_v60  ;;  %7206 = vmatmul.mubr.msk.bf16.gmra.mrb[252].mxu0 %vm2131_vm2, %v9280_v40  ;;  %7306 = vmatmul.mubr.msk.bf16.gmra.mrb[248].mxu1 %vm2131_vm2, %v9280_v40  ;;  %v2050_v1 = vmax.f32 %v2005_v16, 0.0 }
 0x2fd   :  { %7209 = vmatprep.mubr.msk.bf16.mxu0 %vm7592_vm0, %v12915_v35  ;;  %7309 = vmatprep.mubr.msk.bf16.mxu1 %vm7592_vm0, %v12915_v35 }
 0x2fe   :  { %v2006_v30 = vadd.f32 %v9130_v8, %v1954_v58  ;;  %v1955_v6 = vmax.f32 %v8743_v23, %v1816_v44  ;;  %v1426_v63 = vpop.f32.mrb[168].mxu1 }
 0x2ff   :  { %v1620_v42 = vrot.slane %v1426_v63, 1  ;;  %v7011_v26 = vpop.f32.mrb[169].mxu1 }
 0x300   :  { %v2051_v48 = vmax.f32 %v2006_v30, 0.0  ;;  %v1429_v33 = vpop.f32.mrb[170].mxu1  ;;  %v2007_v20 = vadd.f32 %v9130_v8, %v1955_v6 }
 0x301   :  { %v1621_v47 = vsel %vm930_vm1, %v1618_v61, %v1620_v42  ;;  %v1622_v37 = vrot.slane %v1429_v33, 1  ;;  %v7012_v27 = vpop.f32.mrb[171].mxu1 }
 0x302   :  { %v9298_v62 = vpack.c.bf16 %v2051_v48, %v2050_v1  ;;  %v1819_v13 = vadd.f32 %v9069_v39, %v1621_v47 }
 0x303   :  { %v1623_v5 = vsel %vm930_vm1, %v1620_v42, %v1622_v37 }
 0x304   :  { %v1956_v23 = vmax.f32 %v8748_v24, %v1819_v13  ;;  %v1824_v15 = vadd.f32 %v9072_v29, %v1623_v5  ;;  %7210 = vmatmul.mubr.msk.bf16.gmra.mrb[0].mxu0 %vm2131_vm2, %v9298_v62  ;;  %7310 = vmatmul.mubr.msk.bf16.gmra.mrb[252].mxu1 %vm2131_vm2, %v9298_v62  ;;  %v2052_v29 = vmax.f32 %v2007_v20, 0.0 }
 0x305   :  { %7213 = vmatprep.mubr.msk.bf16.mxu0 %vm7592_vm0, %v12915_v35  ;;  %7313 = vmatprep.mubr.msk.bf16.mxu1 %vm7592_vm0, %v12915_v35 }
 0x306   :  { %v2008_v39 = vadd.f32 %v9130_v8, %v1956_v23  ;;  %v1957_v50 = vmax.f32 %v8763_v51, %v1824_v15  ;;  %v1434_v17 = vpop.f32.mrb[172].mxu1 }
 0x307   :  { %v1624_v24 = vrot.slane %v1434_v17, 1  ;;  %v7015_v34 = vpop.f32.mrb[173].mxu1 }
 0x308   :  { %v2053_v19 = vmax.f32 %v2008_v39, 0.0  ;;  %v1437_v46 = vpop.f32.mrb[174].mxu1  ;;  %v2009_v44 = vadd.f32 %v9130_v8, %v1957_v50 }
 0x309   :  { %v1625_v61 = vsel %vm930_vm1, %v1622_v37, %v1624_v24  ;;  %v1626_v7 = vrot.slane %v1437_v46, 1  ;;  %v7016_v22 = vpop.f32.mrb[175].mxu1 }
 0x30a   :  { %v9316_v60 = vpack.c.bf16 %v2053_v19, %v2052_v29  ;;  %v1827_v16 = vadd.f32 %v9076_v9, %v1625_v61 }
 0x30b   :  { %v1627_v58 = vsel %vm930_vm1, %v1624_v24, %v1626_v7 }
 0x30c   :  { %v1958_v51 = vmax.f32 %v8769_v43, %v1827_v16  ;;  %v1832_v30 = vadd.f32 %v9079_v4, %v1627_v58  ;;  %7214 = vmatmul.mubr.msk.bf16.gmra.mrb[4].mxu0 %vm2131_vm2, %v9316_v60  ;;  %7314 = vmatmul.mubr.msk.bf16.gmra.mrb[0].mxu1 %vm2131_vm2, %v9316_v60  ;;  %v2054_v4 = vmax.f32 %v2009_v44, 0.0 }
 0x30d   :  { %7217 = vmatprep.mubr.msk.bf16.mxu0 %vm7592_vm0, %v12915_v35  ;;  %7317 = vmatprep.mubr.msk.bf16.mxu1 %vm7592_vm0, %v12915_v35 }
 0x30e   :  { %v2010_v9 = vadd.f32 %v9130_v8, %v1958_v51  ;;  %v1959_v6 = vmax.f32 %v8778_v31, %v1832_v30  ;;  %v1442_v63 = vpop.f32.mrb[176].mxu1 }
 0x30f   :  { %v1628_v43 = vrot.slane %v1442_v63, 1  ;;  %v7019_v42 = vpop.f32.mrb[177].mxu1 }
 0x310   :  { %v2055_v26 = vmax.f32 %v2010_v9, 0.0  ;;  %v1445_v1 = vpop.f32.mrb[178].mxu1  ;;  %v2011_v5 = vadd.f32 %v9130_v8, %v1959_v6 }
 0x311   :  { %v1629_v48 = vsel %vm930_vm1, %v1626_v7, %v1628_v43  ;;  %v1630_v33 = vrot.slane %v1445_v1, 1  ;;  %v7020_v47 = vpop.f32.mrb[179].mxu1  ;;  %v13010_v1 = vld [vmem:[#allocation43_spill] sm:$0xff] }
 0x312   :  { %v9334_v37 = vpack.c.bf16 %v2055_v26, %v2054_v4  ;;  %v1835_v27 = vadd.f32 %v9083_v21, %v1629_v48  ;;  %v13011_v48 = vld [vmem:[#allocation40_spill] sm:$0xff] }
 0x313   :  { %v1631_v13 = vsel %vm930_vm1, %v1628_v43, %v1630_v33  ;;  %v13012_v47 = vld [vmem:[#allocation44_spill] sm:$0xff] }
 0x314   :  { %v1960_v31 = vmax.f32 %v8783_v32, %v1835_v27  ;;  %v1840_v20 = vadd.f32 %v9086_v41, %v1631_v13  ;;  %7218 = vmatmul.mubr.msk.bf16.gmra.mrb[8].mxu0 %vm2131_vm2, %v9334_v37  ;;  %7318 = vmatmul.mubr.msk.bf16.gmra.mrb[4].mxu1 %vm2131_vm2, %v9334_v37  ;;  %v2056_v41 = vmax.f32 %v2011_v5, 0.0 }
 0x315   :  { %7221 = vmatprep.mubr.msk.bf16.mxu0 %vm7592_vm0, %v12915_v35  ;;  %7321 = vmatprep.mubr.msk.bf16.mxu1 %vm7592_vm0, %v12915_v35 }
 0x316   :  { %v2012_v21 = vadd.f32 %v9130_v8, %v1960_v31  ;;  %v1961_v23 = vmax.f32 %v8792_v49, %v1840_v20  ;;  %v1450_v15 = vpop.f32.mrb[180].mxu1 }
 0x317   :  { %v1632_v32 = vrot.slane %v1450_v15, 1  ;;  %v7023_v39 = vpop.f32.mrb[181].mxu1 }
 0x318   :  { %v2057_v50 = vmax.f32 %v2012_v21, 0.0  ;;  %v1453_v17 = vpop.f32.mrb[182].mxu1  ;;  %v2013_v7 = vadd.f32 %v9130_v8, %v1961_v23 }
 0x319   :  { %v1633_v24 = vsel %vm930_vm1, %v1630_v33, %v1632_v32  ;;  %v1634_v34 = vrot.slane %v1453_v17, 1  ;;  %v7024_v29 = vpop.f32.mrb[183].mxu1 }
 0x31a   :  { %v9352_v19 = vpack.c.bf16 %v2057_v50, %v2056_v41  ;;  %v1843_v46 = vadd.f32 %v9090_v14, %v1633_v24  ;;  %v13013_v50 = vld [vmem:[#allocation8_spill] sm:$0xff]  ;;  %v13014_v29 = vld [vmem:[#allocation45_spill] sm:$0xff] }
 0x31b   :  { %v1635_v61 = vsel %vm930_vm1, %v1632_v32, %v1634_v34 }
 0x31c   :  { %v1962_v49 = vmax.f32 %v8797_v12, %v1843_v46  ;;  %v1848_v22 = vadd.f32 %v9093_v36, %v1635_v61  ;;  %7222 = vmatmul.mubr.msk.bf16.gmra.mrb[12].mxu0 %vm2131_vm2, %v9352_v19  ;;  %7322 = vmatmul.mubr.msk.bf16.gmra.mrb[8].mxu1 %vm2131_vm2, %v9352_v19  ;;  %v2058_v36 = vmax.f32 %v2013_v7, 0.0  ;;  %v13015_v61 = vld [vmem:[#allocation41_spill] sm:$0xff] }
 0x31d   :  { %7225 = vmatprep.mubr.msk.bf16.mxu0 %vm7592_vm0, %v12915_v35  ;;  %7325 = vmatprep.mubr.msk.bf16.mxu1 %vm7592_vm0, %v12915_v35 }
 0x31e   :  { %v2014_v14 = vadd.f32 %v9130_v8, %v1962_v49  ;;  %v1963_v16 = vmax.f32 %v8806_v28, %v1848_v22  ;;  %v1458_v58 = vpop.f32.mrb[184].mxu1  ;;  %v13016_v22 = vld [vmem:[#allocation46_spill] sm:$0xff] }
 0x31f   :  { %v1636_v12 = vrot.slane %v1458_v58, 1  ;;  %v7027_v44 = vpop.f32.mrb[185].mxu1 }
 0x320   :  { %v2059_v51 = vmax.f32 %v2014_v14, 0.0  ;;  %v1461_v30 = vpop.f32.mrb[186].mxu1  ;;  %v2015_v26 = vadd.f32 %v9130_v8, %v1963_v16 }
 0x321   :  { %v1637_v9 = vsel %vm930_vm1, %v1634_v34, %v1636_v12  ;;  %v1638_v6 = vrot.slane %v1461_v30, 1  ;;  %v7028_v63 = vpop.f32.mrb[187].mxu1 }
 0x322   :  { %v9370_v43 = vpack.c.bf16 %v2059_v51, %v2058_v36  ;;  %v1851_v42 = vadd.f32 %v9097_v57, %v1637_v9  ;;  %v2060_v20 = vmax.f32 %v2015_v26, 0.0 }
 0x323   :  { %v1639_v4 = vsel %vm930_vm1, %v1636_v12, %v1638_v6 }
 0x324   :  { %v1964_v28 = vmax.f32 %v13010_v1, %v1851_v42  ;;  %v1856_v33 = vadd.f32 %v13011_v48, %v1639_v4  ;;  %7226 = vmatmul.mubr.msk.bf16.gmra.mrb[16].mxu0 %vm2131_vm2, %v9370_v43  ;;  %7326 = vmatmul.mubr.msk.bf16.gmra.mrb[12].mxu1 %vm2131_vm2, %v9370_v43  ;;  %v13017_v42 = vld [vmem:[#allocation9_spill] sm:$0xff] }
 0x325   :  { %7229 = vmatprep.mubr.msk.bf16.mxu0 %vm7592_vm0, %v12915_v35  ;;  %7329 = vmatprep.mubr.msk.bf16.mxu1 %vm7592_vm0, %v12915_v35 }
 0x326   :  { %v2016_v57 = vadd.f32 %v9130_v8, %v1964_v28  ;;  %v1965_v27 = vmax.f32 %v13012_v47, %v1856_v33  ;;  %v1466_v13 = vpop.f32.mrb[188].mxu1  ;;  %v13018_v28 = vld [vmem:[#allocation47_spill] sm:$0xff]  ;;  %v13019_v33 = vld [vmem:[#allocation42_spill] sm:$0xff] }
 0x327   :  { %v1640_v5 = vrot.slane %v1466_v13, 1  ;;  %v7031_v31 = vpop.f32.mrb[189].mxu1 }
 0x328   :  { %v2061_v21 = vmax.f32 %v2016_v57, 0.0  ;;  %v1469_v23 = vpop.f32.mrb[190].mxu1  ;;  %v2017_v34 = vadd.f32 %v9130_v8, %v1965_v27  ;;  %v13020_v27 = vld [vmem:[#allocation2_spill] sm:$0xff] }
 0x329   :  { %v1641_v15 = vsel %vm930_vm1, %v1638_v6, %v1640_v5  ;;  %v1642_v32 = vrot.slane %v1469_v23, 1  ;;  %v7032_v39 = vpop.f32.mrb[191].mxu1 }
 0x32a   :  { %v9388_v41 = vpack.c.bf16 %v2061_v21, %v2060_v20  ;;  %v1859_v17 = vadd.f32 %v13013_v50, %v1641_v15  ;;  %v2062_v44 = vmax.f32 %v2017_v34, 0.0 }
 0x32b   :  { %v1643_v24 = vsel %vm930_vm1, %v1640_v5, %v1642_v32 }
 0x32c   :  { %v1966_v46 = vmax.f32 %v13014_v29, %v1859_v17  ;;  %v1864_v7 = vadd.f32 %v13015_v61, %v1643_v24  ;;  %7230 = vmatmul.mubr.msk.bf16.gmra.mrb[20].mxu0 %vm2131_vm2, %v9388_v41  ;;  %7330 = vmatmul.mubr.msk.bf16.gmra.mrb[16].mxu1 %vm2131_vm2, %v9388_v41  ;;  %v13021_v24 = vld [vmem:[#allocation10_spill] sm:$0xff] }
 0x32d   :  { %7233 = vmatprep.mubr.msk.bf16.mxu0 %vm7592_vm0, %v12915_v35  ;;  %7333 = vmatprep.mubr.msk.bf16.mxu1 %vm7592_vm0, %v12915_v35  ;;  %v13022_v61 = vld [vmem:[#allocation26_spill] sm:$0xff] }
 0x32e   :  { %v2018_v49 = vadd.f32 %v9130_v8, %v1966_v46  ;;  %v1967_v14 = vmax.f32 %v13016_v22, %v1864_v7  ;;  %v1474_v16 = vpop.f32.mrb[192].mxu1 }
 0x32f   :  { %v1644_v58 = vrot.slane %v1474_v16, 1  ;;  %v7035_v12 = vpop.f32.mrb[193].mxu1  ;;  %v13024_v16 = vld [vmem:[#allocation28_spill] sm:$0xff] }
 0x330   :  { %v2063_v36 = vmax.f32 %v2018_v49, 0.0  ;;  %v1477_v51 = vpop.f32.mrb[194].mxu1  ;;  %v2019_v1 = vadd.f32 %v9130_v8, %v1967_v14  ;;  %v13023_v49 = vld [vmem:[#allocation11_spill] sm:$0xff] }
 0x331   :  { %v1645_v30 = vsel %vm930_vm1, %v1642_v32, %v1644_v58  ;;  %v1646_v9 = vrot.slane %v1477_v51, 1  ;;  %v7036_v6 = vpop.f32.mrb[195].mxu1 }
 0x332   :  { %v9406_v63 = vpack.c.bf16 %v2063_v36, %v2062_v44  ;;  %v1867_v4 = vadd.f32 %v13017_v42, %v1645_v30  ;;  %v2064_v21 = vmax.f32 %v2019_v1, 0.0  ;;  %v13025_v1 = vld [vmem:[#allocation13_spill] sm:$0xff] }
 0x333   :  { %v1647_v26 = vsel %vm930_vm1, %v1644_v58, %v1646_v9 }
 0x334   :  { %v1968_v48 = vmax.f32 %v13018_v28, %v1867_v4  ;;  %v1872_v57 = vadd.f32 %v13019_v33, %v1647_v26  ;;  %7234 = vmatmul.mubr.msk.bf16.gmra.mrb[24].mxu0 %vm2131_vm2, %v9406_v63  ;;  %7334 = vmatmul.mubr.msk.bf16.gmra.mrb[20].mxu1 %vm2131_vm2, %v9406_v63 }
 0x335   :  { %7237 = vmatprep.mubr.msk.bf16.mxu0 %vm7592_vm0, %v12915_v35  ;;  %7337 = vmatprep.mubr.msk.bf16.mxu1 %vm7592_vm0, %v12915_v35 }
 0x336   :  { %v2020_v47 = vadd.f32 %v9130_v8, %v1968_v48  ;;  %v1969_v13 = vmax.f32 %v13020_v27, %v1872_v57  ;;  %v1482_v5 = vpop.f32.mrb[196].mxu1  ;;  %v13026_v57 = vld [vmem:[#allocation3_spill] sm:$0xff] }
 0x337   :  { %v1648_v31 = vrot.slane %v1482_v5, 1  ;;  %v7039_v20 = vpop.f32.mrb[197].mxu1  ;;  %v13027_v5 = vld [vmem:[#allocation29_spill] sm:$0xff] }
 0x338   :  { %v2065_v23 = vmax.f32 %v2020_v47, 0.0  ;;  %v1485_v15 = vpop.f32.mrb[198].mxu1  ;;  %v2021_v46 = vadd.f32 %v9130_v8, %v1969_v13 }
 0x339   :  { %v1649_v32 = vsel %vm930_vm1, %v1646_v9, %v1648_v31  ;;  %v1650_v39 = vrot.slane %v1485_v15, 1  ;;  %v7040_v50 = vpop.f32.mrb[199].mxu1 }
 0x33a   :  { %v9424_v17 = vpack.c.bf16 %v2065_v23, %v2064_v21  ;;  %v1875_v34 = vadd.f32 %v13021_v24, %v1649_v32  ;;  %v2066_v51 = vmax.f32 %v2021_v46, 0.0 }
 0x33b   :  { %v1651_v29 = vsel %vm930_vm1, %v1648_v31, %v1650_v39 }
 0x33c   :  { %v1970_v7 = vmax.f32 %v13022_v61, %v1875_v34  ;;  %v1880_v22 = vadd.f32 %v13023_v49, %v1651_v29  ;;  %7238 = vmatmul.mubr.msk.bf16.gmra.mrb[28].mxu0 %vm2131_vm2, %v9424_v17  ;;  %7338 = vmatmul.mubr.msk.bf16.gmra.mrb[24].mxu1 %vm2131_vm2, %v9424_v17  ;;  %v13028_v29 = vld [vmem:[#allocation14_spill] sm:$0xff]  ;;  %v13029_v49 = vld [vmem:[#allocation31_spill] sm:$0xff] }
 0x33d   :  { %7241 = vmatprep.mubr.msk.bf16.mxu0 %vm7592_vm0, %v12915_v35  ;;  %7341 = vmatprep.mubr.msk.bf16.mxu1 %vm7592_vm0, %v12915_v35 }
 0x33e   :  { %v2022_v14 = vadd.f32 %v9130_v8, %v1970_v7  ;;  %v1971_v58 = vmax.f32 %v13024_v16, %v1880_v22  ;;  %v1490_v12 = vpop.f32.mrb[200].mxu1 }
 0x33f   :  { %v1652_v44 = vrot.slane %v1490_v12, 1  ;;  %v7043_v36 = vpop.f32.mrb[201].mxu1  ;;  %v13031_v12 = vld [vmem:[#allocation4_spill] sm:$0xff] }
 0x340   :  { %v2067_v30 = vmax.f32 %v2022_v14, 0.0  ;;  %v1493_v9 = vpop.f32.mrb[202].mxu1  ;;  %v2023_v33 = vadd.f32 %v9130_v8, %v1971_v58  ;;  %v13030_v14 = vld [vmem:[#allocation15_spill] sm:$0xff] }
 0x341   :  { %v1653_v6 = vsel %vm930_vm1, %v1650_v39, %v1652_v44  ;;  %v1654_v42 = vrot.slane %v1493_v9, 1  ;;  %v7044_v4 = vpop.f32.mrb[203].mxu1 }
 0x342   :  { %v9442_v26 = vpack.c.bf16 %v2067_v30, %v2066_v51  ;;  %v1883_v28 = vadd.f32 %v13025_v1, %v1653_v6 }
 0x343   :  { %v1655_v48 = vsel %vm930_vm1, %v1652_v44, %v1654_v42 }
 0x344   :  { %v1972_v47 = vmax.f32 %v13026_v57, %v1883_v28  ;;  %v1888_v27 = vadd.f32 %v9121_v54, %v1655_v48  ;;  %7242 = vmatmul.mubr.msk.bf16.gmra.mrb[32].mxu0 %vm2131_vm2, %v9442_v26  ;;  %7342 = vmatmul.mubr.msk.bf16.gmra.mrb[28].mxu1 %vm2131_vm2, %v9442_v26  ;;  %v2068_v54 = vmax.f32 %v2023_v33, 0.0  ;;  %v13032_v33 = vld [vmem:[#allocation16_spill] sm:$0xff] }
 0x345   :  { %7245 = vmatprep.mubr.msk.bf16.mxu0 %vm7592_vm0, %v12915_v35  ;;  %7345 = vmatprep.mubr.msk.bf16.mxu1 %vm7592_vm0, %v12915_v35 }
 0x346   :  { %v2024_v13 = vadd.f32 %v9130_v8, %v1972_v47  ;;  %v1973_v31 = vmax.f32 %v13027_v5, %v1888_v27  ;;  %v1498_v20 = vpop.f32.mrb[204].mxu1 }
 0x347   :  { %v1656_v21 = vrot.slane %v1498_v20, 1  ;;  %v7047_v23 = vpop.f32.mrb[205].mxu1 }
 0x348   :  { %v2069_v15 = vmax.f32 %v2024_v13, 0.0  ;;  %v1501_v32 = vpop.f32.mrb[206].mxu1  ;;  %v2025_v7 = vadd.f32 %v9130_v8, %v1973_v31  ;;  %v13033_v13 = vld [vmem:[#allocation32_spill] sm:$0xff] }
 0x349   :  { %v1657_v39 = vsel %vm930_vm1, %v1654_v42, %v1656_v21  ;;  %v1658_v50 = vrot.slane %v1501_v32, 1  ;;  %v7048_v24 = vpop.f32.mrb[207].mxu1 }
 0x34a   :  { %v9460_v34 = vpack.c.bf16 %v2069_v15, %v2068_v54  ;;  %v1891_v46 = vadd.f32 %v13028_v29, %v1657_v39  ;;  %v2070_v9 = vmax.f32 %v2025_v7, 0.0 }
 0x34b   :  { %v1659_v61 = vsel %vm930_vm1, %v1656_v21, %v1658_v50  ;;  %v13034_v21 = vld [vmem:[#allocation34_spill] sm:$0xff] }
 0x34c   :  { %v1974_v22 = vmax.f32 %v13029_v49, %v1891_v46  ;;  %v1896_v16 = vadd.f32 %v13030_v14, %v1659_v61  ;;  %7246 = vmatmul.mubr.msk.bf16.gmra.mrb[36].mxu0 %vm2131_vm2, %v9460_v34  ;;  %7346 = vmatmul.mubr.msk.bf16.gmra.mrb[32].mxu1 %vm2131_vm2, %v9460_v34  ;;  %v13035_v14 = vld [vmem:[#allocation5_spill] sm:$0xff] }
 0x34d   :  { %7249 = vmatprep.mubr.msk.bf16.mxu0 %vm7592_vm0, %v12915_v35  ;;  %7349 = vmatprep.mubr.msk.bf16.mxu1 %vm7592_vm0, %v12915_v35 }
 0x34e   :  { %v2026_v58 = vadd.f32 %v9130_v8, %v1974_v22  ;;  %v1975_v44 = vmax.f32 %v13031_v12, %v1896_v16  ;;  %v1506_v36 = vpop.f32.mrb[208].mxu1  ;;  %v13036_v12 = vld [vmem:[#allocation35_spill] sm:$0xff] }
 0x34f   :  { %v1660_v51 = vrot.slane %v1506_v36, 1  ;;  %v7051_v30 = vpop.f32.mrb[209].mxu1 }
 0x350   :  { %v2071_v6 = vmax.f32 %v2026_v58, 0.0  ;;  %v1509_v42 = vpop.f32.mrb[210].mxu1  ;;  %v2027_v27 = vadd.f32 %v9130_v8, %v1975_v44 }
 0x351   :  { %v1661_v4 = vsel %vm930_vm1, %v1658_v50, %v1660_v51  ;;  %v1662_v1 = vrot.slane %v1509_v42, 1  ;;  %v7052_v28 = vpop.f32.mrb[211].mxu1 }
 0x352   :  { %v9478_v48 = vpack.c.bf16 %v2071_v6, %v2070_v9  ;;  %v1899_v57 = vadd.f32 %v13032_v33, %v1661_v4 }
 0x353   :  { %v1663_v47 = vsel %vm930_vm1, %v1660_v51, %v1662_v1 }
 0x354   :  { %v1976_v5 = vmax.f32 %v13033_v13, %v1899_v57  ;;  %v1904_v31 = vadd.f32 %v9161_v25, %v1663_v47  ;;  %7250 = vmatmul.mubr.msk.bf16.gmra.mrb[40].mxu0 %vm2131_vm2, %v9478_v48  ;;  %7350 = vmatmul.mubr.msk.bf16.gmra.mrb[36].mxu1 %vm2131_vm2, %v9478_v48  ;;  %v2072_v25 = vmax.f32 %v2027_v27, 0.0  ;;  %v13037_v27 = vld [vmem:[#allocation36_spill] sm:$0xff] }
 0x355   :  { %7253 = vmatprep.mubr.msk.bf16.mxu0 %vm7592_vm0, %v12915_v35  ;;  %7353 = vmatprep.mubr.msk.bf16.mxu1 %vm7592_vm0, %v12915_v35 }
 0x356   :  { %v2028_v20 = vadd.f32 %v9130_v8, %v1976_v5  ;;  %v1977_v23 = vmax.f32 %v13034_v21, %v1904_v31  ;;  %v1514_v54 = vpop.f32.mrb[212].mxu1  ;;  %v13038_v31 = vld [vmem:[#allocation6_spill] sm:$0xff] }
 0x357   :  { %v1664_v15 = vrot.slane %v1514_v54, 1  ;;  %v7055_v32 = vpop.f32.mrb[213].mxu1 }
 0x358   :  { %v2073_v39 = vmax.f32 %v2028_v20, 0.0  ;;  %v1517_v50 = vpop.f32.mrb[214].mxu1  ;;  %v2029_v22 = vadd.f32 %v9130_v8, %v1977_v23 }
 0x359   :  { %v1665_v24 = vsel %vm930_vm1, %v1662_v1, %v1664_v15  ;;  %v1666_v29 = vrot.slane %v1517_v50, 1  ;;  %v7056_v46 = vpop.f32.mrb[215].mxu1 }
 0x35a   :  { %v9496_v61 = vpack.c.bf16 %v2073_v39, %v2072_v25  ;;  %v1907_v7 = vadd.f32 %v9177_v45, %v1665_v24 }
 0x35b   :  { %v1667_v49 = vsel %vm930_vm1, %v1664_v15, %v1666_v29 }
 0x35c   :  { %v1978_v16 = vmax.f32 %v13035_v14, %v1907_v7  ;;  %v1912_v58 = vadd.f32 %v9191_v18, %v1667_v49  ;;  %7254 = vmatmul.mubr.msk.bf16.gmra.mrb[44].mxu0 %vm2131_vm2, %v9496_v61  ;;  %7354 = vmatmul.mubr.msk.bf16.gmra.mrb[40].mxu1 %vm2131_vm2, %v9496_v61  ;;  %v2074_v18 = vmax.f32 %v2029_v22, 0.0  ;;  %v13039_v49 = vld [vmem:[#allocation37_spill] sm:$0xff] }
 0x35d   :  { %7257 = vmatprep.mubr.msk.bf16.mxu0 %vm7592_vm0, %v12915_v35  ;;  %7357 = vmatprep.mubr.msk.bf16.mxu1 %vm7592_vm0, %v12915_v35 }
 0x35e   :  { %v2030_v45 = vadd.f32 %v9130_v8, %v1978_v16  ;;  %v1979_v44 = vmax.f32 %v13036_v12, %v1912_v58  ;;  %v1522_v36 = vpop.f32.mrb[216].mxu1  ;;  %v13040_v16 = vld [vmem:[#allocation38_spill] sm:$0xff] }
 0x35f   :  { %v1668_v51 = vrot.slane %v1522_v36, 1  ;;  %v7059_v30 = vpop.f32.mrb[217].mxu1 }
 0x360   :  { %v2075_v9 = vmax.f32 %v2030_v45, 0.0  ;;  %v1525_v6 = vpop.f32.mrb[218].mxu1  ;;  %v2031_v47 = vadd.f32 %v9130_v8, %v1979_v44 }
 0x361   :  { %v1669_v42 = vsel %vm930_vm1, %v1666_v29, %v1668_v51  ;;  %v1670_v4 = vrot.slane %v1525_v6, 1  ;;  %v7060_v1 = vpop.f32.mrb[219].mxu1 }
 0x362   :  { %v9514_v28 = vpack.c.bf16 %v2075_v9, %v2074_v18  ;;  %v1915_v33 = vadd.f32 %v9206_v53, %v1669_v42  ;;  %v13041_v9 = vld [vmem:[#allocation12_spill] sm:$0xff] }
 0x363   :  { %v1671_v57 = vsel %vm930_vm1, %v1668_v51, %v1670_v4  ;;  %v13042_v6 = vrot.slane %v13041_v9, 1 }
 0x364   :  { %v1980_v13 = vmax.f32 %v13037_v27, %v1915_v33  ;;  %v1920_v5 = vadd.f32 %v9214_v10, %v1671_v57  ;;  %7258 = vmatmul.mubr.msk.bf16.gmra.mrb[48].mxu0 %vm2131_vm2, %v9514_v28  ;;  %7358 = vmatmul.mubr.msk.bf16.gmra.mrb[44].mxu1 %vm2131_vm2, %v9514_v28  ;;  %v2076_v10 = vmax.f32 %v2031_v47, 0.0  ;;  %v13043_v47 = vld [vmem:[#allocation7_spill] sm:$0xff] }
 0x365   :  { %7261 = vmatprep.mubr.msk.bf16.mxu0 %vm7592_vm0, %v12915_v35  ;;  %7361 = vmatprep.mubr.msk.bf16.mxu1 %vm7592_vm0, %v12915_v35 }
 0x366   :  { %v2032_v53 = vadd.f32 %v9130_v8, %v1980_v13  ;;  %v1981_v20 = vmax.f32 %v13038_v31, %v1920_v5  ;;  %v1530_v21 = vpop.f32.mrb[220].mxu1  ;;  %v13044_v13 = vld [vmem:[#allocation39_spill] sm:$0xff] }
 0x367   :  { %v1672_v23 = vrot.slane %v1530_v21, 1  ;;  %v7063_v54 = vpop.f32.mrb[221].mxu1 }
 0x368   :  { %v2077_v15 = vmax.f32 %v2032_v53, 0.0  ;;  %v1533_v32 = vpop.f32.mrb[222].mxu1  ;;  %v2033_v7 = vadd.f32 %v9130_v8, %v1981_v20 }
 0x369   :  { %v1673_v25 = vsel %vm930_vm1, %v1670_v4, %v1672_v23  ;;  %v1674_v39 = vrot.slane %v1533_v32, 1  ;;  %v7064_v50 = vpop.f32.mrb[223].mxu1 }
 0x36a   :  { %v9532_v24 = vpack.c.bf16 %v2077_v15, %v2076_v10  ;;  %v1923_v29 = vadd.f32 %v9229_v2, %v1673_v25 }
 0x36b   :  { %v1675_v46 = vsel %vm930_vm1, %v1672_v23, %v1674_v39 }
 0x36c   :  { %v1982_v22 = vmax.f32 %v13039_v49, %v1923_v29  ;;  %v1928_v14 = vadd.f32 %v9242_v38, %v1675_v46  ;;  %7262 = vmatmul.mubr.msk.bf16.gmra.mrb[52].mxu0 %vm2131_vm2, %v9532_v24  ;;  %7362 = vmatmul.mubr.msk.bf16.gmra.mrb[48].mxu1 %vm2131_vm2, %v9532_v24  ;;  %v2078_v38 = vmax.f32 %v2033_v7, 0.0 }
 0x36d   :  { %7265 = vmatprep.mubr.msk.bf16.mxu0 %vm7592_vm0, %v12915_v35  ;;  %7365 = vmatprep.mubr.msk.bf16.mxu1 %vm7592_vm0, %v12915_v35 }
 0x36e   :  { %v2034_v2 = vadd.f32 %v9130_v8, %v1982_v22  ;;  %v1983_v58 = vmax.f32 %v13040_v16, %v1928_v14  ;;  %v1538_v45 = vpop.f32.mrb[224].mxu1 }
 0x36f   :  { %v1676_v12 = vrot.slane %v1538_v45, 1  ;;  %v7067_v44 = vpop.f32.mrb[225].mxu1 }
 0x370   :  { %v2079_v36 = vmax.f32 %v2034_v2, 0.0  ;;  %v1541_v51 = vpop.f32.mrb[226].mxu1  ;;  %v2035_v57 = vadd.f32 %v9130_v8, %v1983_v58 }
 0x371   :  { %v1677_v30 = vsel %vm930_vm1, %v1674_v39, %v1676_v12  ;;  %v7068_v18 = vpop.f32.mrb[227].mxu1  ;;  %v1724_v42 = vsel %vm930_vm1, %v1676_v12, %v13042_v6 }
 0x372   :  { %v9553_v4 = vpack.c.bf16 %v2079_v36, %v2078_v38  ;;  %v1931_v1 = vadd.f32 %v9257_v55, %v1677_v30  ;;  %v1936_v33 = vadd.f32 %v9260_v52, %v1724_v42  ;;  %v2080_v52 = vmax.f32 %v2035_v57, 0.0 }
 0x374   :  { %v1984_v27 = vmax.f32 %v13043_v47, %v1931_v1  ;;  %v1985_v5 = vmax.f32 %v13044_v13, %v1936_v33  ;;  %7266 = vmatmul.mubr.msk.bf16.gmra.mrb[56].mxu0 %vm2131_vm2, %v9553_v4  ;;  %7366 = vmatmul.mubr.msk.bf16.gmra.mrb[52].mxu1 %vm2131_vm2, %v9553_v4 }
 0x375   :  { %7269 = vmatprep.mubr.msk.bf16.mxu0 %vm7592_vm0, %v12915_v35  ;;  %7369 = vmatprep.mubr.msk.bf16.mxu1 %vm7592_vm0, %v12915_v35 }
 0x376   :  { %v2036_v55 = vadd.f32 %v9130_v8, %v1984_v27  ;;  %v2037_v20 = vadd.f32 %v9130_v8, %v1985_v5 }
 0x378   :  { %v2081_v53 = vmax.f32 %v2036_v55, 0.0  ;;  %v2082_v21 = vmax.f32 %v2037_v20, 0.0 }
 0x37a   :  { %v9569_v31 = vpack.c.bf16 %v2081_v53, %v2080_v52  ;;  %v9580_v23 = vpack.c.bf16 %v2082_v21, %v2082_v21 }
 0x37c   :  { %7270 = vmatmul.mubr.msk.bf16.gmra.mrb[60].mxu0 %vm2131_vm2, %v9569_v31  ;;  %7370 = vmatmul.mubr.msk.bf16.gmra.mrb[56].mxu1 %vm2131_vm2, %v9569_v31 }
 0x37d   :  { %7273 = vmatprep.mubr.msk.bf16.mxu0 %vm7592_vm0, %v12915_v35  ;;  %7373 = vmatprep.mubr.msk.bf16.mxu1 %vm7592_vm0, %v12915_v35 }
 0x384   :  { %7274 = vmatmul.mubr.msk.bf16.gmra.mrb[64].mxu0 %vm2131_vm2, %v9580_v23  ;;  %7374 = vmatmul.mubr.msk.bf16.gmra.mrb[60].mxu1 %vm2131_vm2, %v9580_v23 }
 0x385   :  { %7385 = vmatprep.mubr.msk.bf16.mxu0 %vm7592_vm0, %v12915_v35 }
 0x38c   :  { %7386 = vmatmul.mubr.msk.bf16.vlgmr.msra.gmra.mrb[68].mxu0 %vm2131_vm2, %v9151_v59 }
 0x38d   :  { %7389 = vmatprep.mubr.msk.bf16.mxu0 %vm7592_vm0, %v12915_v35 }
 0x394   :  { %7390 = vmatmul.mubr.msk.bf16.gmra.mrb[72].mxu0 %vm2131_vm2, %v9187_v56 }
 0x395   :  { %7393 = vmatprep.mubr.msk.bf16.mxu0 %vm7592_vm0, %v12915_v35 }
 0x39c   :  { %7394 = vmatmul.mubr.msk.bf16.gmra.mrb[76].mxu0 %vm2131_vm2, %v9211_v11 }
 0x39d   :  { %7397 = vmatprep.mubr.msk.bf16.mxu0 %vm7592_vm0, %v12915_v35 }
 0x3a4   :  { %7398 = vmatmul.mubr.msk.bf16.gmra.mrb[80].mxu0 %vm2131_vm2, %v9233_v0 }
 0x3a5   :  { %7401 = vmatprep.mubr.msk.bf16.mxu0 %vm7592_vm0, %v12915_v35 }
 0x3a7   :  { %v9604_v8 = vpop.f32.mrb[232].mxu0  ;;  %v9606_v59 = vpop.f32.mrb[228].mxu1 }
 0x3a8   :  { %13045 = vst [vmem:[#allocation17_spill] sm:$0xff] %v9604_v8  ;;  %13046 = vst [vmem:[#allocation18_spill] sm:$0xff] %v9606_v59  ;;  %v7187_v56 = vpop.f32.mrb[233].mxu0  ;;  %v7287_v54 = vpop.f32.mrb[229].mxu1 }
 0x3a9   :  { %v9608_v10 = vpop.f32.mrb[234].mxu0  ;;  %v9610_v15 = vpop.f32.mrb[230].mxu1 }
 0x3aa   :  { %v7188_v11 = vpop.f32.mrb[235].mxu0  ;;  %v7288_v32 = vpop.f32.mrb[231].mxu1  ;;  %v12883_v39 = vrot.slane %v9608_v10, 1  ;;  %v12882_v50 = vrot.slane %v9610_v15, 2 }
 0x3ac   :  { %7402 = vmatmul.mubr.msk.bf16.gmra.mrb[84].mxu0 %vm2131_vm2, %v9263_v3 }
 0x3ad   :  { %7405 = vmatprep.mubr.msk.bf16.mxu0 %vm7592_vm0, %v12915_v35 }
 0x3af   :  { %v2243_v0 = vpop.f32.mrb[236].mxu0  ;;  %v2472_v25 = vpop.f32.mrb[232].mxu1 }
 0x3b0   :  { %v2694_v29 = vrot.slane %v2243_v0, 1  ;;  %v3092_v46 = vrot.slane %v2472_v25, 2  ;;  %v7191_v7 = vpop.f32.mrb[237].mxu0  ;;  %v7291_v49 = vpop.f32.mrb[233].mxu1 }
 0x3b1   :  { %v2246_v22 = vpop.f32.mrb[238].mxu0  ;;  %v2475_v14 = vpop.f32.mrb[234].mxu1 }
 0x3b2   :  { %v2696_v2 = vrot.slane %v2246_v22, 1  ;;  %v3094_v16 = vrot.slane %v2475_v14, 2  ;;  %v7192_v58 = vpop.f32.mrb[239].mxu0  ;;  %v7292_v3 = vpop.f32.mrb[235].mxu1  ;;  %v9621_v45 = vsel %vm930_vm1, %v12883_v39, %v2694_v29  ;;  %v9626_v12 = vsel %vm3088_vm3, %v12882_v50, %v3092_v46 }
 0x3b4   :  { %7406 = vmatmul.mubr.msk.bf16.gmra.mrb[88].mxu0 %vm2131_vm2, %v9280_v40  ;;  %v9631_v44 = vsel %vm930_vm1, %v2694_v29, %v2696_v2  ;;  %v9634_v38 = vsel %vm3088_vm3, %v3092_v46, %v3094_v16 }
 0x3b5   :  { %7409 = vmatprep.mubr.msk.bf16.mxu0 %vm7592_vm0, %v12915_v35 }
 0x3b7   :  { %v2251_v36 = vpop.f32.mrb[240].mxu0  ;;  %v2480_v51 = vpop.f32.mrb[236].mxu1 }
 0x3b8   :  { %v2698_v30 = vrot.slane %v2251_v36, 1  ;;  %v3096_v18 = vrot.slane %v2480_v51, 2  ;;  %v7195_v9 = vpop.f32.mrb[241].mxu0  ;;  %v7295_v6 = vpop.f32.mrb[237].mxu1 }
 0x3b9   :  { %v2254_v42 = vpop.f32.mrb[242].mxu0  ;;  %v2483_v1 = vpop.f32.mrb[238].mxu1 }
 0x3ba   :  { %v2700_v33 = vrot.slane %v2254_v42, 1  ;;  %v3098_v57 = vrot.slane %v2483_v1, 2  ;;  %v7196_v40 = vpop.f32.mrb[243].mxu0  ;;  %v7296_v47 = vpop.f32.mrb[239].mxu1  ;;  %v9639_v27 = vsel %vm930_vm1, %v2696_v2, %v2698_v30  ;;  %v9642_v13 = vsel %vm3088_vm3, %v3094_v16, %v3096_v18 }
 0x3bc   :  { %7410 = vmatmul.mubr.msk.bf16.gmra.mrb[92].mxu0 %vm2131_vm2, %v9298_v62  ;;  %v9647_v5 = vsel %vm930_vm1, %v2698_v30, %v2700_v33  ;;  %v9650_v55 = vsel %vm3088_vm3, %v3096_v18, %v3098_v57 }
 0x3bd   :  { %7413 = vmatprep.mubr.msk.bf16.mxu0 %vm7592_vm0, %v12915_v35 }
 0x3bf   :  { %v2259_v52 = vpop.f32.mrb[244].mxu0  ;;  %v2488_v53 = vpop.f32.mrb[240].mxu1 }
 0x3c0   :  { %v2702_v20 = vrot.slane %v2259_v52, 1  ;;  %v3100_v21 = vrot.slane %v2488_v53, 2  ;;  %v7199_v56 = vpop.f32.mrb[245].mxu0  ;;  %v7299_v54 = vpop.f32.mrb[241].mxu1 }
 0x3c1   :  { %v2262_v11 = vpop.f32.mrb[246].mxu0  ;;  %v2491_v32 = vpop.f32.mrb[242].mxu1 }
 0x3c2   :  { %v2704_v0 = vrot.slane %v2262_v11, 1  ;;  %v3102_v25 = vrot.slane %v2491_v32, 2  ;;  %v7200_v62 = vpop.f32.mrb[247].mxu0  ;;  %v7300_v29 = vpop.f32.mrb[243].mxu1  ;;  %v9655_v46 = vsel %vm930_vm1, %v2700_v33, %v2702_v20  ;;  %v9658_v7 = vsel %vm3088_vm3, %v3098_v57, %v3100_v21 }
 0x3c4   :  { %7414 = vmatmul.mubr.msk.bf16.gmra.mrb[96].mxu0 %vm2131_vm2, %v9316_v60  ;;  %v9663_v49 = vsel %vm930_vm1, %v2702_v20, %v2704_v0  ;;  %v9666_v22 = vsel %vm3088_vm3, %v3100_v21, %v3102_v25 }
 0x3c5   :  { %7417 = vmatprep.mubr.msk.bf16.mxu0 %vm7592_vm0, %v12915_v35 }
 0x3c7   :  { %v2267_v14 = vpop.f32.mrb[248].mxu0  ;;  %v2496_v2 = vpop.f32.mrb[244].mxu1 }
 0x3c8   :  { %v2706_v16 = vrot.slane %v2267_v14, 1  ;;  %v3104_v58 = vrot.slane %v2496_v2, 2  ;;  %v7203_v3 = vpop.f32.mrb[249].mxu0  ;;  %v7303_v36 = vpop.f32.mrb[245].mxu1 }
 0x3c9   :  { %v2270_v51 = vpop.f32.mrb[250].mxu0  ;;  %v2499_v30 = vpop.f32.mrb[246].mxu1 }
 0x3ca   :  { %v2708_v18 = vrot.slane %v2270_v51, 1  ;;  %v3106_v9 = vrot.slane %v2499_v30, 2  ;;  %v7204_v60 = vpop.f32.mrb[251].mxu0  ;;  %v7304_v6 = vpop.f32.mrb[247].mxu1  ;;  %v9671_v42 = vsel %vm930_vm1, %v2704_v0, %v2706_v16  ;;  %v9674_v1 = vsel %vm3088_vm3, %v3102_v25, %v3104_v58 }
 0x3cc   :  { %7418 = vmatmul.mubr.msk.bf16.gmra.mrb[100].mxu0 %vm2131_vm2, %v9334_v37  ;;  %v9679_v33 = vsel %vm930_vm1, %v2706_v16, %v2708_v18  ;;  %v9682_v57 = vsel %vm3088_vm3, %v3104_v58, %v3106_v9 }
 0x3cd   :  { %7421 = vmatprep.mubr.msk.bf16.mxu0 %vm7592_vm0, %v12915_v35 }
 0x3cf   :  { %v2275_v40 = vpop.f32.mrb[252].mxu0  ;;  %v2504_v47 = vpop.f32.mrb[248].mxu1 }
 0x3d0   :  { %v2710_v52 = vrot.slane %v2275_v40, 1  ;;  %v3108_v53 = vrot.slane %v2504_v47, 2  ;;  %v7207_v20 = vpop.f32.mrb[253].mxu0  ;;  %v7307_v21 = vpop.f32.mrb[249].mxu1 }
 0x3d1   :  { %v2278_v56 = vpop.f32.mrb[254].mxu0  ;;  %v2507_v54 = vpop.f32.mrb[250].mxu1 }
 0x3d2   :  { %v2712_v11 = vrot.slane %v2278_v56, 1  ;;  %v3110_v32 = vrot.slane %v2507_v54, 2  ;;  %v7208_v37 = vpop.f32.mrb[255].mxu0  ;;  %v7308_v0 = vpop.f32.mrb[251].mxu1  ;;  %v9687_v25 = vsel %vm930_vm1, %v2708_v18, %v2710_v52  ;;  %v9690_v62 = vsel %vm3088_vm3, %v3106_v9, %v3108_v53 }
 0x3d4   :  { %7422 = vmatmul.mubr.msk.bf16.gmra.mrb[104].mxu0 %vm2131_vm2, %v9352_v19  ;;  %v9695_v29 = vsel %vm930_vm1, %v2710_v52, %v2712_v11  ;;  %v9698_v14 = vsel %vm3088_vm3, %v3108_v53, %v3110_v32 }
 0x3d5   :  { %7425 = vmatprep.mubr.msk.bf16.mxu0 %vm7592_vm0, %v12915_v35 }
 0x3d7   :  { %v2283_v2 = vpop.f32.mrb[0].mxu0  ;;  %v2512_v16 = vpop.f32.mrb[252].mxu1 }
 0x3d8   :  { %v2714_v58 = vrot.slane %v2283_v2, 1  ;;  %v3112_v3 = vrot.slane %v2512_v16, 2  ;;  %v7211_v36 = vpop.f32.mrb[1].mxu0  ;;  %v7311_v51 = vpop.f32.mrb[253].mxu1 }
 0x3d9   :  { %v2286_v30 = vpop.f32.mrb[2].mxu0  ;;  %v2515_v18 = vpop.f32.mrb[254].mxu1 }
 0x3da   :  { %v2716_v9 = vrot.slane %v2286_v30, 1  ;;  %v3114_v60 = vrot.slane %v2515_v18, 2  ;;  %v7212_v19 = vpop.f32.mrb[3].mxu0  ;;  %v7312_v6 = vpop.f32.mrb[255].mxu1  ;;  %v9703_v40 = vsel %vm930_vm1, %v2712_v11, %v2714_v58  ;;  %v9706_v47 = vsel %vm3088_vm3, %v3110_v32, %v3112_v3 }
 0x3dc   :  { %7426 = vmatmul.mubr.msk.bf16.gmra.mrb[108].mxu0 %vm2131_vm2, %v9370_v43  ;;  %v9711_v52 = vsel %vm930_vm1, %v2714_v58, %v2716_v9  ;;  %v9714_v53 = vsel %vm3088_vm3, %v3112_v3, %v3114_v60 }
 0x3dd   :  { %7429 = vmatprep.mubr.msk.bf16.mxu0 %vm7592_vm0, %v12915_v35 }
 0x3df   :  { %v2291_v20 = vpop.f32.mrb[4].mxu0  ;;  %v2520_v21 = vpop.f32.mrb[0].mxu1 }
 0x3e0   :  { %v2718_v56 = vrot.slane %v2291_v20, 1  ;;  %v3116_v54 = vrot.slane %v2520_v21, 2  ;;  %v7215_v11 = vpop.f32.mrb[5].mxu0  ;;  %v7315_v37 = vpop.f32.mrb[1].mxu1 }
 0x3e1   :  { %v2294_v32 = vpop.f32.mrb[6].mxu0  ;;  %v2523_v0 = vpop.f32.mrb[2].mxu1 }
 0x3e2   :  { %v2720_v2 = vrot.slane %v2294_v32, 1  ;;  %v3118_v16 = vrot.slane %v2523_v0, 2  ;;  %v7216_v43 = vpop.f32.mrb[7].mxu0  ;;  %v7316_v36 = vpop.f32.mrb[3].mxu1  ;;  %v9719_v58 = vsel %vm930_vm1, %v2716_v9, %v2718_v56  ;;  %v9722_v3 = vsel %vm3088_vm3, %v3114_v60, %v3116_v54 }
 0x3e4   :  { %7430 = vmatmul.mubr.msk.bf16.gmra.mrb[112].mxu0 %vm2131_vm2, %v9388_v41  ;;  %v9727_v51 = vsel %vm930_vm1, %v2718_v56, %v2720_v2  ;;  %v9730_v30 = vsel %vm3088_vm3, %v3116_v54, %v3118_v16 }
 0x3e5   :  { %7433 = vmatprep.mubr.msk.bf16.mxu0 %vm7592_vm0, %v12915_v35 }
 0x3e7   :  { %v2299_v18 = vpop.f32.mrb[8].mxu0  ;;  %v2528_v19 = vpop.f32.mrb[4].mxu1 }
 0x3e8   :  { %v2722_v6 = vrot.slane %v2299_v18, 1  ;;  %v3120_v9 = vrot.slane %v2528_v19, 2  ;;  %v7219_v20 = vpop.f32.mrb[9].mxu0  ;;  %v7319_v21 = vpop.f32.mrb[5].mxu1 }
 0x3e9   :  { %v2302_v60 = vpop.f32.mrb[10].mxu0  ;;  %v2531_v11 = vpop.f32.mrb[6].mxu1 }
 0x3ea   :  { %v2724_v37 = vrot.slane %v2302_v60, 1  ;;  %v3122_v32 = vrot.slane %v2531_v11, 2  ;;  %v7220_v41 = vpop.f32.mrb[11].mxu0  ;;  %v7320_v0 = vpop.f32.mrb[7].mxu1  ;;  %v9735_v56 = vsel %vm930_vm1, %v2720_v2, %v2722_v6  ;;  %v9738_v54 = vsel %vm3088_vm3, %v3118_v16, %v3120_v9 }
 0x3ec   :  { %7434 = vmatmul.mubr.msk.bf16.gmra.mrb[116].mxu0 %vm2131_vm2, %v9406_v63  ;;  %v9743_v43 = vsel %vm930_vm1, %v2722_v6, %v2724_v37  ;;  %v9746_v36 = vsel %vm3088_vm3, %v3120_v9, %v3122_v32 }
 0x3ed   :  { %7437 = vmatprep.mubr.msk.bf16.mxu0 %vm7592_vm0, %v12915_v35 }
 0x3ef   :  { %v2307_v18 = vpop.f32.mrb[12].mxu0  ;;  %v2536_v19 = vpop.f32.mrb[8].mxu1 }
 0x3f0   :  { %v2726_v20 = vrot.slane %v2307_v18, 1  ;;  %v3124_v2 = vrot.slane %v2536_v19, 2  ;;  %v7223_v21 = vpop.f32.mrb[13].mxu0  ;;  %v7323_v60 = vpop.f32.mrb[9].mxu1 }
 0x3f1   :  { %v2310_v16 = vpop.f32.mrb[14].mxu0  ;;  %v2539_v11 = vpop.f32.mrb[10].mxu1 }
 0x3f2   :  { %v2728_v41 = vrot.slane %v2310_v16, 1  ;;  %v3126_v0 = vrot.slane %v2539_v11, 2  ;;  %v7224_v63 = vpop.f32.mrb[15].mxu0  ;;  %v7324_v50 = vpop.f32.mrb[11].mxu1  ;;  %v9751_v6 = vsel %vm930_vm1, %v2724_v37, %v2726_v20  ;;  %v9754_v9 = vsel %vm3088_vm3, %v3122_v32, %v3124_v2 }
 0x3f3   :  { %13047 = vst [vmem:[#allocation19_spill] sm:$0xff] %v9751_v6  ;;  %13048 = vst [vmem:[#allocation20_spill] sm:$0xff] %v9754_v9 }
 0x3f4   :  { %7438 = vmatmul.mubr.msk.bf16.gmra.mrb[120].mxu0 %vm2131_vm2, %v9424_v17  ;;  %v9759_v18 = vsel %vm930_vm1, %v2726_v20, %v2728_v41  ;;  %v9762_v19 = vsel %vm3088_vm3, %v3124_v2, %v3126_v0 }
 0x3f5   :  { %13049 = vst [vmem:[#allocation21_spill] sm:$0xff] %v9762_v19  ;;  %7441 = vmatprep.mubr.msk.bf16.mxu0 %vm7592_vm0, %v12915_v35 }
 0x3f7   :  { %v2315_v21 = vpop.f32.mrb[16].mxu0  ;;  %v2544_v50 = vpop.f32.mrb[12].mxu1 }
 0x3f8   :  { %v2730_v60 = vrot.slane %v2315_v21, 1  ;;  %v3128_v37 = vrot.slane %v2544_v50, 2  ;;  %v7227_v16 = vpop.f32.mrb[17].mxu0  ;;  %v7327_v11 = vpop.f32.mrb[13].mxu1 }
 0x3f9   :  { %v2318_v32 = vpop.f32.mrb[18].mxu0  ;;  %v2547_v63 = vpop.f32.mrb[14].mxu1 }
 0x3fa   :  { %v2732_v39 = vrot.slane %v2318_v32, 1  ;;  %v3130_v9 = vrot.slane %v2547_v63, 2  ;;  %v7228_v17 = vpop.f32.mrb[19].mxu0  ;;  %v7328_v6 = vpop.f32.mrb[15].mxu1  ;;  %v9767_v20 = vsel %vm930_vm1, %v2728_v41, %v2730_v60  ;;  %v9770_v2 = vsel %vm3088_vm3, %v3126_v0, %v3128_v37 }
 0x3fb   :  { %13050 = vst [vmem:[#allocation22_spill] sm:$0xff] %v9767_v20  ;;  %13051 = vst [vmem:[#allocation23_spill] sm:$0xff] %v9770_v2 }
 0x3fc   :  { %7442 = vmatmul.mubr.msk.bf16.gmra.mrb[124].mxu0 %vm2131_vm2, %v9442_v26  ;;  %v9775_v21 = vsel %vm930_vm1, %v2730_v60, %v2732_v39  ;;  %v9778_v50 = vsel %vm3088_vm3, %v3128_v37, %v3130_v9 }
 0x3fd   :  { %13052 = vst [vmem:[#allocation24_spill] sm:$0xff] %v9778_v50  ;;  %7445 = vmatprep.mubr.msk.bf16.mxu0 %vm7592_vm0, %v12915_v35 }
 0x3ff   :  { %v2323_v16 = vpop.f32.mrb[20].mxu0  ;;  %v2552_v6 = vpop.f32.mrb[16].mxu1 }
 0x400   :  { %v2734_v11 = vrot.slane %v2323_v16, 1  ;;  %v3132_v41 = vrot.slane %v2552_v6, 2  ;;  %v7231_v32 = vpop.f32.mrb[21].mxu0  ;;  %v7331_v63 = vpop.f32.mrb[17].mxu1 }
 0x401   :  { %v2326_v0 = vpop.f32.mrb[22].mxu0  ;;  %v2555_v17 = vpop.f32.mrb[18].mxu1 }
 0x402   :  { %v2736_v2 = vrot.slane %v2326_v0, 1  ;;  %v3134_v20 = vrot.slane %v2555_v17, 2  ;;  %v7232_v26 = vpop.f32.mrb[23].mxu0  ;;  %v7332_v19 = vpop.f32.mrb[19].mxu1  ;;  %v9783_v60 = vsel %vm930_vm1, %v2732_v39, %v2734_v11  ;;  %v9786_v37 = vsel %vm3088_vm3, %v3130_v9, %v3132_v41 }
 0x403   :  { %13053 = vst [vmem:[#allocation25_spill] sm:$0xff] %v9783_v60  ;;  %13054 = vst [vmem:[#allocation27_spill] sm:$0xff] %v9786_v37 }
 0x404   :  { %7446 = vmatmul.mubr.msk.bf16.gmra.mrb[128].mxu0 %vm2131_vm2, %v9460_v34  ;;  %v9791_v16 = vsel %vm930_vm1, %v2734_v11, %v2736_v2  ;;  %v9794_v6 = vsel %vm3088_vm3, %v3132_v41, %v3134_v20 }
 0x405   :  { %13055 = vst [vmem:[#allocation30_spill] sm:$0xff] %v9794_v6  ;;  %7449 = vmatprep.mubr.msk.bf16.mxu0 %vm7592_vm0, %v12915_v35 }
 0x407   :  { %v2331_v32 = vpop.f32.mrb[24].mxu0  ;;  %v2560_v19 = vpop.f32.mrb[20].mxu1 }
 0x408   :  { %v2738_v63 = vrot.slane %v2331_v32, 1  ;;  %v3136_v39 = vrot.slane %v2560_v19, 2  ;;  %v7235_v0 = vpop.f32.mrb[25].mxu0  ;;  %v7335_v17 = vpop.f32.mrb[21].mxu1 }
 0x409   :  { %v2334_v9 = vpop.f32.mrb[26].mxu0  ;;  %v2563_v26 = vpop.f32.mrb[22].mxu1 }
 0x40a   :  { %v2740_v37 = vrot.slane %v2334_v9, 1  ;;  %v3138_v60 = vrot.slane %v2563_v26, 2  ;;  %v7236_v34 = vpop.f32.mrb[27].mxu0  ;;  %v7336_v50 = vpop.f32.mrb[23].mxu1  ;;  %v9799_v11 = vsel %vm930_vm1, %v2736_v2, %v2738_v63  ;;  %v9802_v41 = vsel %vm3088_vm3, %v3134_v20, %v3136_v39 }
 0x40b   :  { %13056 = vst [vmem:[#allocation33_spill] sm:$0xff] %v9799_v11  ;;  %13057 = vst [vmem:[#allocation43_spill] sm:$0xff] %v9802_v41 }
 0x40c   :  { %7450 = vmatmul.mubr.msk.bf16.gmra.mrb[132].mxu0 %vm2131_vm2, %v9478_v48  ;;  %v9807_v32 = vsel %vm930_vm1, %v2738_v63, %v2740_v37  ;;  %v9810_v19 = vsel %vm3088_vm3, %v3136_v39, %v3138_v60 }
 0x40d   :  { %13058 = vst [vmem:[#allocation40_spill] sm:$0xff] %v9810_v19  ;;  %7453 = vmatprep.mubr.msk.bf16.mxu0 %vm7592_vm0, %v12915_v35 }
 0x40f   :  { %v2339_v0 = vpop.f32.mrb[28].mxu0  ;;  %v2568_v50 = vpop.f32.mrb[24].mxu1 }
 0x410   :  { %v2742_v17 = vrot.slane %v2339_v0, 1  ;;  %v3140_v2 = vrot.slane %v2568_v50, 2  ;;  %v7239_v9 = vpop.f32.mrb[29].mxu0  ;;  %v7339_v26 = vpop.f32.mrb[25].mxu1 }
 0x411   :  { %v2342_v20 = vpop.f32.mrb[30].mxu0  ;;  %v2571_v34 = vpop.f32.mrb[26].mxu1 }
 0x412   :  { %v2744_v41 = vrot.slane %v2342_v20, 1  ;;  %v3142_v11 = vrot.slane %v2571_v34, 2  ;;  %v7240_v48 = vpop.f32.mrb[31].mxu0  ;;  %v7340_v6 = vpop.f32.mrb[27].mxu1  ;;  %v9815_v63 = vsel %vm930_vm1, %v2740_v37, %v2742_v17  ;;  %v9818_v39 = vsel %vm3088_vm3, %v3138_v60, %v3140_v2 }
 0x413   :  { %13059 = vst [vmem:[#allocation44_spill] sm:$0xff] %v9815_v63  ;;  %13060 = vst [vmem:[#allocation8_spill] sm:$0xff] %v9818_v39 }
 0x414   :  { %7454 = vmatmul.mubr.msk.bf16.gmra.mrb[136].mxu0 %vm2131_vm2, %v9496_v61  ;;  %v9823_v0 = vsel %vm930_vm1, %v2742_v17, %v2744_v41  ;;  %v9826_v50 = vsel %vm3088_vm3, %v3140_v2, %v3142_v11 }
 0x415   :  { %13061 = vst [vmem:[#allocation45_spill] sm:$0xff] %v9826_v50  ;;  %7457 = vmatprep.mubr.msk.bf16.mxu0 %vm7592_vm0, %v12915_v35 }
 0x417   :  { %v2347_v9 = vpop.f32.mrb[32].mxu0  ;;  %v2576_v6 = vpop.f32.mrb[28].mxu1 }
 0x418   :  { %v2746_v26 = vrot.slane %v2347_v9, 1  ;;  %v3144_v37 = vrot.slane %v2576_v6, 2  ;;  %v7243_v20 = vpop.f32.mrb[33].mxu0  ;;  %v7343_v34 = vpop.f32.mrb[29].mxu1 }
 0x419   :  { %v2350_v60 = vpop.f32.mrb[34].mxu0  ;;  %v2579_v48 = vpop.f32.mrb[30].mxu1 }
 0x41a   :  { %v2748_v39 = vrot.slane %v2350_v60, 1  ;;  %v3146_v63 = vrot.slane %v2579_v48, 2  ;;  %v7244_v61 = vpop.f32.mrb[35].mxu0  ;;  %v7344_v19 = vpop.f32.mrb[31].mxu1  ;;  %v9831_v17 = vsel %vm930_vm1, %v2744_v41, %v2746_v26  ;;  %v9834_v2 = vsel %vm3088_vm3, %v3142_v11, %v3144_v37 }
 0x41b   :  { %13062 = vst [vmem:[#allocation41_spill] sm:$0xff] %v9831_v17  ;;  %13063 = vst [vmem:[#allocation46_spill] sm:$0xff] %v9834_v2 }
 0x41c   :  { %7458 = vmatmul.mubr.msk.bf16.gmra.mrb[140].mxu0 %vm2131_vm2, %v9514_v28  ;;  %v9839_v9 = vsel %vm930_vm1, %v2746_v26, %v2748_v39  ;;  %v9842_v6 = vsel %vm3088_vm3, %v3144_v37, %v3146_v63 }
 0x41d   :  { %13064 = vst [vmem:[#allocation9_spill] sm:$0xff] %v9842_v6  ;;  %7461 = vmatprep.mubr.msk.bf16.mxu0 %vm7592_vm0, %v12915_v35 }
 0x41f   :  { %v2355_v20 = vpop.f32.mrb[36].mxu0  ;;  %v2584_v19 = vpop.f32.mrb[32].mxu1 }
 0x420   :  { %v2750_v34 = vrot.slane %v2355_v20, 1  ;;  %v3148_v41 = vrot.slane %v2584_v19, 2  ;;  %v7247_v60 = vpop.f32.mrb[37].mxu0  ;;  %v7347_v48 = vpop.f32.mrb[33].mxu1 }
 0x421   :  { %v2358_v11 = vpop.f32.mrb[38].mxu0  ;;  %v2587_v61 = vpop.f32.mrb[34].mxu1 }
 0x422   :  { %v2752_v2 = vrot.slane %v2358_v11, 1  ;;  %v3150_v17 = vrot.slane %v2587_v61, 2  ;;  %v7248_v28 = vpop.f32.mrb[39].mxu0  ;;  %v7348_v50 = vpop.f32.mrb[35].mxu1  ;;  %v9847_v26 = vsel %vm930_vm1, %v2748_v39, %v2750_v34  ;;  %v9850_v37 = vsel %vm3088_vm3, %v3146_v63, %v3148_v41 }
 0x423   :  { %13065 = vst [vmem:[#allocation47_spill] sm:$0xff] %v9847_v26  ;;  %13066 = vst [vmem:[#allocation42_spill] sm:$0xff] %v9850_v37 }
 0x424   :  { %7462 = vmatmul.mubr.msk.bf16.gmra.mrb[144].mxu0 %vm2131_vm2, %v9532_v24  ;;  %v9855_v20 = vsel %vm930_vm1, %v2750_v34, %v2752_v2  ;;  %v9858_v19 = vsel %vm3088_vm3, %v3148_v41, %v3150_v17 }
 0x425   :  { %13067 = vst [vmem:[#allocation2_spill] sm:$0xff] %v9858_v19  ;;  %7465 = vmatprep.mubr.msk.bf16.mxu0 %vm7592_vm0, %v12915_v35 }
 0x427   :  { %v2363_v60 = vpop.f32.mrb[40].mxu0  ;;  %v2592_v50 = vpop.f32.mrb[36].mxu1 }
 0x428   :  { %v2754_v48 = vrot.slane %v2363_v60, 1  ;;  %v3152_v39 = vrot.slane %v2592_v50, 2  ;;  %v7251_v11 = vpop.f32.mrb[41].mxu0  ;;  %v7351_v61 = vpop.f32.mrb[37].mxu1 }
 0x429   :  { %v2366_v63 = vpop.f32.mrb[42].mxu0  ;;  %v2595_v28 = vpop.f32.mrb[38].mxu1 }
 0x42a   :  { %v2756_v37 = vrot.slane %v2366_v63, 1  ;;  %v3154_v26 = vrot.slane %v2595_v28, 2  ;;  %v7252_v24 = vpop.f32.mrb[43].mxu0  ;;  %v7352_v6 = vpop.f32.mrb[39].mxu1  ;;  %v9863_v34 = vsel %vm930_vm1, %v2752_v2, %v2754_v48  ;;  %v9866_v41 = vsel %vm3088_vm3, %v3150_v17, %v3152_v39 }
 0x42b   :  { %13068 = vst [vmem:[#allocation10_spill] sm:$0xff] %v9863_v34  ;;  %13069 = vst [vmem:[#allocation26_spill] sm:$0xff] %v9866_v41 }
 0x42c   :  { %7466 = vmatmul.mubr.msk.bf16.gmra.mrb[148].mxu0 %vm2131_vm2, %v9553_v4  ;;  %v9871_v60 = vsel %vm930_vm1, %v2754_v48, %v2756_v37  ;;  %v9874_v50 = vsel %vm3088_vm3, %v3152_v39, %v3154_v26 }
 0x42d   :  { %13070 = vst [vmem:[#allocation11_spill] sm:$0xff] %v9874_v50  ;;  %7469 = vmatprep.mubr.msk.bf16.mxu0 %vm7592_vm0, %v12915_v35 }
 0x42f   :  { %v2371_v11 = vpop.f32.mrb[44].mxu0  ;;  %v2600_v6 = vpop.f32.mrb[40].mxu1 }
 0x430   :  { %v2758_v61 = vrot.slane %v2371_v11, 1  ;;  %v3156_v2 = vrot.slane %v2600_v6, 2  ;;  %v7255_v63 = vpop.f32.mrb[45].mxu0  ;;  %v7355_v28 = vpop.f32.mrb[41].mxu1 }
 0x431   :  { %v2374_v17 = vpop.f32.mrb[46].mxu0  ;;  %v2603_v24 = vpop.f32.mrb[42].mxu1 }
 0x432   :  { %v2760_v41 = vrot.slane %v2374_v17, 1  ;;  %v3158_v34 = vrot.slane %v2603_v24, 2  ;;  %v7256_v4 = vpop.f32.mrb[47].mxu0  ;;  %v7356_v19 = vpop.f32.mrb[43].mxu1  ;;  %v9879_v48 = vsel %vm930_vm1, %v2756_v37, %v2758_v61  ;;  %v9882_v39 = vsel %vm3088_vm3, %v3154_v26, %v3156_v2 }
 0x433   :  { %13071 = vst [vmem:[#allocation28_spill] sm:$0xff] %v9879_v48  ;;  %13072 = vst [vmem:[#allocation13_spill] sm:$0xff] %v9882_v39 }
 0x434   :  { %7470 = vmatmul.mubr.msk.bf16.gmra.mrb[152].mxu0 %vm2131_vm2, %v9569_v31  ;;  %v9887_v11 = vsel %vm930_vm1, %v2758_v61, %v2760_v41  ;;  %v9890_v6 = vsel %vm3088_vm3, %v3156_v2, %v3158_v34 }
 0x435   :  { %13073 = vst [vmem:[#allocation3_spill] sm:$0xff] %v9887_v11  ;;  %13074 = vst [vmem:[#allocation29_spill] sm:$0xff] %v9890_v6  ;;  %7473 = vmatprep.mubr.msk.bf16.mxu0 %vm7592_vm0, %v12915_v35  ;;  %vm5730_vm0 = vcmask 1041408  }
 0x437   :  { %v2379_v63 = vpop.f32.mrb[48].mxu0  ;;  %v2608_v19 = vpop.f32.mrb[44].mxu1 }
 0x438   :  { %v2762_v28 = vrot.slane %v2379_v63, 1  ;;  %v3160_v37 = vrot.slane %v2608_v19, 2  ;;  %v7259_v17 = vpop.f32.mrb[49].mxu0  ;;  %v7359_v24 = vpop.f32.mrb[45].mxu1 }
 0x439   :  { %v2382_v26 = vpop.f32.mrb[50].mxu0  ;;  %v2611_v4 = vpop.f32.mrb[46].mxu1 }
 0x43a   :  { %v2764_v39 = vrot.slane %v2382_v26, 1  ;;  %v3162_v48 = vrot.slane %v2611_v4, 2  ;;  %v7260_v31 = vpop.f32.mrb[51].mxu0  ;;  %v7360_v50 = vpop.f32.mrb[47].mxu1  ;;  %v9895_v61 = vsel %vm930_vm1, %v2760_v41, %v2762_v28  ;;  %v9898_v2 = vsel %vm3088_vm3, %v3158_v34, %v3160_v37 }
 0x43b   :  { %13075 = vst [vmem:[#allocation14_spill] sm:$0xff] %v9895_v61  ;;  %13076 = vst [vmem:[#allocation31_spill] sm:$0xff] %v9898_v2 }
 0x43c   :  { %7474 = vmatmul.mubr.msk.bf16.gmra.mrb[156].mxu0 %vm2131_vm2, %v9580_v23  ;;  %v9903_v35 = vsel %vm930_vm1, %v2762_v28, %v2764_v39  ;;  %v9906_v63 = vsel %vm3088_vm3, %v3160_v37, %v3162_v48  ;;  %vm5648_vm2 = vcmask 1043456  }
 0x43d   :  { %13077 = vst [vmem:[#allocation15_spill] sm:$0xff] %v9903_v35  ;;  %13078 = vst [vmem:[#allocation4_spill] sm:$0xff] %v9906_v63 }
 0x43f   :  { %v2387_v19 = vpop.f32.mrb[52].mxu0  ;;  %v2616_v17 = vpop.f32.mrb[48].mxu1 }
 0x440   :  { %v2766_v24 = vrot.slane %v2387_v19, 1  ;;  %v3164_v26 = vrot.slane %v2616_v17, 2  ;;  %v7263_v50 = vpop.f32.mrb[53].mxu0  ;;  %v7363_v4 = vpop.f32.mrb[49].mxu1 }
 0x441   :  { %v2390_v41 = vpop.f32.mrb[54].mxu0  ;;  %v2619_v31 = vpop.f32.mrb[50].mxu1 }
 0x442   :  { %v2768_v61 = vrot.slane %v2390_v41, 1  ;;  %v3166_v34 = vrot.slane %v2619_v31, 2  ;;  %v7264_v2 = vpop.f32.mrb[55].mxu0  ;;  %v7364_v6 = vpop.f32.mrb[51].mxu1  ;;  %v9909_v23 = vsel %vm930_vm1, %v2764_v39, %v2766_v24  ;;  %v9912_v28 = vsel %vm3088_vm3, %v3162_v48, %v3164_v26 }
 0x443   :  { %13079 = vst [vmem:[#allocation16_spill] sm:$0xff] %v9909_v23  ;;  %13080 = vst [vmem:[#allocation32_spill] sm:$0xff] %v9912_v28 }
 0x444   :  { %v9915_v37 = vsel %vm930_vm1, %v2766_v24, %v2768_v61  ;;  %v9918_v19 = vsel %vm3088_vm3, %v3164_v26, %v3166_v34 }
 0x445   :  { %13081 = vst [vmem:[#allocation34_spill] sm:$0xff] %v9915_v37  ;;  %13082 = vst [vmem:[#allocation5_spill] sm:$0xff] %v9918_v19 }
 0x447   :  { %v2395_v17 = vpop.f32.mrb[56].mxu0  ;;  %v2624_v50 = vpop.f32.mrb[52].mxu1 }
 0x448   :  { %v2770_v4 = vrot.slane %v2395_v17, 1  ;;  %v3168_v63 = vrot.slane %v2624_v50, 2  ;;  %v7267_v41 = vpop.f32.mrb[57].mxu0  ;;  %v7367_v31 = vpop.f32.mrb[53].mxu1 }
 0x449   :  { %v2398_v2 = vpop.f32.mrb[58].mxu0  ;;  %v2627_v6 = vpop.f32.mrb[54].mxu1 }
 0x44a   :  { %v2772_v35 = vrot.slane %v2398_v2, 1  ;;  %v3170_v39 = vrot.slane %v2627_v6, 2  ;;  %v7268_v23 = vpop.f32.mrb[59].mxu0  ;;  %v7368_v11 = vpop.f32.mrb[55].mxu1  ;;  %v9921_v48 = vsel %vm930_vm1, %v2768_v61, %v2770_v4  ;;  %v9924_v24 = vsel %vm3088_vm3, %v3166_v34, %v3168_v63 }
 0x44b   :  { %13083 = vst [vmem:[#allocation35_spill] sm:$0xff] %v9921_v48 }
 0x44c   :  { %v9927_v26 = vsel %vm930_vm1, %v2770_v4, %v2772_v35  ;;  %v9930_v17 = vsel %vm3088_vm3, %v3168_v63, %v3170_v39 }
 0x44f   :  { %v2403_v50 = vpop.f32.mrb[60].mxu0  ;;  %v2632_v41 = vpop.f32.mrb[56].mxu1 }
 0x450   :  { %v2774_v31 = vrot.slane %v2403_v50, 1  ;;  %v3172_v19 = vrot.slane %v2632_v41, 2  ;;  %v7271_v2 = vpop.f32.mrb[61].mxu0  ;;  %v7371_v6 = vpop.f32.mrb[57].mxu1 }
 0x451   :  { %v2406_v23 = vpop.f32.mrb[62].mxu0  ;;  %v2635_v11 = vpop.f32.mrb[58].mxu1 }
 0x452   :  { %v2776_v37 = vrot.slane %v2406_v23, 1  ;;  %v3174_v61 = vrot.slane %v2635_v11, 2  ;;  %v7272_v48 = vpop.f32.mrb[63].mxu0  ;;  %v7372_v28 = vpop.f32.mrb[59].mxu1  ;;  %v9933_v34 = vsel %vm930_vm1, %v2772_v35, %v2774_v31  ;;  %v9936_v4 = vsel %vm3088_vm3, %v3170_v39, %v3172_v19 }
 0x453   :  { %13084 = vst [vmem:[#allocation36_spill] sm:$0xff] %v9936_v4 }
 0x454   :  { %v9939_v63 = vsel %vm930_vm1, %v2774_v31, %v2776_v37  ;;  %v9942_v50 = vsel %vm3088_vm3, %v3172_v19, %v3174_v61 }
 0x455   :  { %13085 = vst [vmem:[#allocation6_spill] sm:$0xff] %v9939_v63  ;;  %13086 = vst [vmem:[#allocation37_spill] sm:$0xff] %v9942_v50  ;;  %v12888_v50 = vrot.slane %v9604_v8, 1  ;;  %v12887_v63 = vrot.slane %v9606_v59, 2 }
 0x457   :  { %v9944_v41 = vpop.f32.mrb[64].mxu0  ;;  %v9946_v2 = vpop.f32.mrb[60].mxu1 }
 0x458   :  { %13087 = vst [vmem:[#allocation38_spill] sm:$0xff] %v9944_v41  ;;  %13088 = vst [vmem:[#allocation12_spill] sm:$0xff] %v9946_v2  ;;  %v12885_v6 = vrot.slane %v9944_v41, 1  ;;  %v12884_v28 = vrot.slane %v9946_v2, 2  ;;  %v7275_v48 = vpop.f32.mrb[65].mxu0  ;;  %v7375_v35 = vpop.f32.mrb[61].mxu1 }
 0x459   :  { %v2414_v23 = vpop.f32.mrb[66].mxu0  ;;  %v2643_v11 = vpop.f32.mrb[62].mxu1  ;;  %v13090_v48 = vrot.slane %v9608_v10, 1 }
 0x45a   :  { %v7276_v39 = vpop.f32.mrb[67].mxu0  ;;  %v7376_v4 = vpop.f32.mrb[63].mxu1  ;;  %v9953_v31 = vsel %vm930_vm1, %v2776_v37, %v12885_v6  ;;  %v9958_v19 = vsel %vm3088_vm3, %v3174_v61, %v12884_v28  ;;  %v13091_v37 = vrot.slane %v9610_v15, 2  ;;  %v5946_v15 = vld [vmem:[%s12842_s5 + $0x168] sm:$0xff] }
 0x45b   :  { %13089 = vst [vmem:[#allocation7_spill] sm:$0xff] %v9958_v19  ;;  %v2693_v4 = vsel %vm930_vm1, %v12888_v50, %v13090_v48  ;;  %v9975_v39 = vld [vmem:[%s12841_s4] ss:$0 sm:$0xff] }
 0x45c   :  { %v3091_v61 = vsel %vm3088_vm3, %v12887_v63, %v13091_v37 }
 0x45f   :  { %v2861_v35 = vpop.f32.mrb[68].mxu0 }
 0x460   :  { %v2862_v23 = vadd.f32 %v2861_v35, %v2693_v4  ;;  %v7387_v11 = vpop.f32.mrb[69].mxu0  ;;  %v3367_v35 = vld [vmem:[%s12842_s5] sm:$0xff] }
 0x461   :  { %v2864_v28 = vpop.f32.mrb[70].mxu0 }
 0x462   :  { %v3225_v10 = vadd.f32 %v3091_v61, %v2862_v23  ;;  %v2865_v6 = vadd.f32 %v2864_v28, %v9621_v45  ;;  %v7388_v2 = vpop.f32.mrb[71].mxu0  ;;  %v6036_v23 = vld [vmem:[%s12842_s5 + $0x438] sm:$0xff]  ;;  %v5991_v45 = vld [vmem:[%s12842_s5 + $0x2d0] sm:$0xff] }
 0x464   :  { %v3277_v48 = vadd.f32 %v9975_v39, %v3225_v10  ;;  %v3226_v4 = vadd.f32 %v9626_v12, %v2865_v6 }
 0x466   :  { %v3322_v11 = vmax.f32 %v3277_v48, 0.0  ;;  %v3278_v61 = vadd.f32 %v9975_v39, %v3226_v4  ;;  %v6081_v4 = vld [vmem:[%s12842_s5 + $0x5a0] sm:$0xff] }
 0x467   :  { %v2869_v2 = vpop.f32.mrb[72].mxu0 }
 0x468   :  { %v2870_v12 = vadd.f32 %v2869_v2, %v9631_v44  ;;  %v7391_v6 = vpop.f32.mrb[73].mxu0  ;;  %v3639_v28 = vmul.f32 %v5946_v15, %v3322_v11  ;;  %v3412_v37 = vmul.f32 %v3367_v35, %v3322_v11  ;;  %v4091_v63 = vmul.f32 %v6036_v23, %v3322_v11  ;;  %v6126_v44 = vld [vmem:[%s12842_s5 + $0x708] sm:$0xff]  ;;  %v6171_v2 = vld [vmem:[%s12842_s5 + $0x870] sm:$0xff] }
 0x469   :  { %v2872_v10 = vpop.f32.mrb[74].mxu0  ;;  %v3865_v48 = vmul.f32 %v5991_v45, %v3322_v11 }
 0x46a   :  { %v3227_v50 = vadd.f32 %v9634_v38, %v2870_v12  ;;  %v2873_v59 = vadd.f32 %v2872_v10, %v9639_v27  ;;  %v7392_v41 = vpop.f32.mrb[75].mxu0  ;;  %v3684_v8 = vsel %vm3457_vm4, %v3639_v28, 0.0  ;;  %v3458_v19 = vsel %vm3457_vm4, %v3412_v37, 0.0 }
 0x46b   :  { %3685 = vadd.xlane.f32.xlu1 %v3684_v8  ;;  %3459 = vadd.xlane.f32.xlu0 %v3458_v19  ;;  %v4543_v38 = vmul.f32 %v6126_v44, %v3322_v11  ;;  %v4317_v27 = vmul.f32 %v6081_v4, %v3322_v11  ;;  %v10007_v41 = vmax.f32 %v3278_v61, 0.0  ;;  %v4136_v35 = vsel %vm3457_vm4, %v4091_v63, 0.0  ;;  %v5992_v8 = vld [vmem:[%s12842_s5 + $0x2d8] sm:$0xff] }
 0x46c   :  { %v10005_v15 = vadd.f32 %v9642_v13, %v2873_v59  ;;  %v3910_v23 = vsel %vm3457_vm4, %v3865_v48, 0.0  ;;  %v4769_v61 = vmul.f32 %v6171_v2, %v3322_v11  ;;  %v6082_v48 = vld [vmem:[%s12842_s5 + $0x5a8] sm:$0xff]  ;;  %v3279_v2 = vadd.f32 %v9975_v39, %v3227_v50  ;;  %v5947_v50 = vld [vmem:[%s12842_s5 + $0x170] sm:$0xff] }
 0x46d   :  { %v4588_v12 = vsel %vm3457_vm4, %v4543_v38, 0.0  ;;  %v4362_v63 = vsel %vm3457_vm4, %v4317_v27, 0.0  ;;  %v3866_v10 = vmul.f32 %v5992_v8, %v10007_v41  ;;  %v4318_v38 = vmul.f32 %v6082_v48, %v10007_v41  ;;  %v6172_v27 = vld [vmem:[%s12842_s5 + $0x878] sm:$0xff]  ;;  %v6037_v48 = vld [vmem:[%s12842_s5 + $0x440] sm:$0xff] }
 0x46f   :  { %v2877_v45 = vpop.f32.mrb[76].mxu0  ;;  %4137 = vadd.xlane.f32.xlu1 %v4136_v35  ;;  %3911 = vadd.xlane.f32.xlu0 %v3910_v23  ;;  %v3368_v35 = vld [vmem:[%s12842_s5 + $0x8] sm:$0xff] }
 0x470   :  { %v2878_v59 = vadd.f32 %v2877_v45, %v9647_v5  ;;  %v7395_v13 = vpop.f32.mrb[77].mxu0  ;;  %v6216_v5 = vld [vmem:[%s12842_s5 + $0x9d8] sm:$0xff] }
 0x471   :  { %v2880_v19 = vpop.f32.mrb[78].mxu0  ;;  %v4995_v4 = vmul.f32 %v6216_v5, %v3322_v11  ;;  %v4770_v11 = vmul.f32 %v6172_v27, %v10007_v41  ;;  %v3640_v5 = vmul.f32 %v5947_v50, %v10007_v41  ;;  %v4092_v27 = vmul.f32 %v6037_v48, %v10007_v41 }
 0x472   :  { %v10021_v6 = vadd.f32 %v9650_v55, %v2878_v59  ;;  %v2881_v28 = vadd.f32 %v2880_v19, %v9655_v46  ;;  %v7396_v37 = vpop.f32.mrb[79].mxu0  ;;  %v4814_v55 = vsel %vm3457_vm4, %v4769_v61, 0.0  ;;  %v3913_v46 = vsel %vm3457_vm4, %v3866_v10, 0.0 }
 0x473   :  { %4589 = vadd.xlane.f32.xlu1 %v4588_v12  ;;  %4363 = vadd.xlane.f32.xlu0 %v4362_v63  ;;  %v3413_v59 = vmul.f32 %v3368_v35, %v10007_v41  ;;  %v5040_v63 = vsel %vm3457_vm4, %v4995_v4, 0.0  ;;  %v10062_v37 = vmax.f32 %v3279_v2, 0.0  ;;  %v3280_v50 = vadd.f32 %v9975_v39, %v10005_v15  ;;  %v6128_v15 = vld [vmem:[%s12842_s5 + $0x718] sm:$0xff] }
 0x474   :  { %v10032_v44 = vadd.f32 %v9658_v7, %v2881_v28  ;;  %v4365_v28 = vsel %vm3457_vm4, %v4318_v38, 0.0 }
 0x475   :  { %v3461_v61 = vsel %vm3457_vm4, %v3413_v59, 0.0 }
 0x477   :  { %v2885_v23 = vpop.f32.mrb[80].mxu0  ;;  %4815 = vadd.xlane.f32.xlu0 %v4814_v55  ;;  %3914 = vadd.xlane.f32.xlu1 %v3913_v46  ;;  %v3369_v55 = vld [vmem:[%s12842_s5 + $0x10] sm:$0xff] }
 0x478   :  { %v2886_v7 = vadd.f32 %v2885_v23, %v9663_v49  ;;  %v7399_v45 = vpop.f32.mrb[81].mxu0  ;;  %v6217_v49 = vld [vmem:[%s12842_s5 + $0x9e0] sm:$0xff]  ;;  %v3414_v35 = vmul.f32 %v3369_v55, %v10062_v37 }
 0x479   :  { %v2888_v8 = vpop.f32.mrb[82].mxu0  ;;  %v4996_v10 = vmul.f32 %v6217_v49, %v10007_v41 }
 0x47a   :  { %v10048_v13 = vadd.f32 %v9666_v22, %v2886_v7  ;;  %v2889_v19 = vadd.f32 %v2888_v8, %v9671_v42  ;;  %v7400_v12 = vpop.f32.mrb[83].mxu0  ;;  %v4817_v42 = vsel %vm3457_vm4, %v4770_v11, 0.0  ;;  %v3687_v8 = vsel %vm3457_vm4, %v3640_v5, 0.0  ;;  %v5948_v11 = vld [vmem:[%s12842_s5 + $0x178] sm:$0xff] }
 0x47b   :  { %5041 = vadd.xlane.f32.xlu0 %v5040_v63  ;;  %4366 = vadd.xlane.f32.xlu1 %v4365_v28  ;;  %v5043_v2 = vsel %vm3457_vm4, %v4996_v10, 0.0  ;;  %v3641_v59 = vmul.f32 %v5948_v11, %v10062_v37  ;;  %v3464_v12 = vsel %vm3457_vm4, %v3414_v35, 0.0  ;;  %v5993_v28 = vld [vmem:[%s12842_s5 + $0x2e0] sm:$0xff]  ;;  %v4545_v35 = vmul.f32 %v6128_v15, %v10062_v37 }
 0x47c   :  { %v10060_v22 = vadd.f32 %v9674_v1, %v2889_v19  ;;  %v4139_v19 = vsel %vm3457_vm4, %v4092_v27, 0.0 }
 0x47d   :  { %v3690_v10 = vsel %vm3457_vm4, %v3641_v59, 0.0 }
 0x47f   :  { %v2893_v1 = vpop.f32.mrb[84].mxu0  ;;  %4818 = vadd.xlane.f32.xlu1 %v4817_v42  ;;  %3462 = vadd.xlane.f32.xlu0 %v3461_v61 }
 0x480   :  { %v2894_v46 = vadd.f32 %v2893_v1, %v9679_v33  ;;  %v7403_v4 = vpop.f32.mrb[85].mxu0  ;;  %v6127_v33 = vld [vmem:[%s12842_s5 + $0x710] sm:$0xff]  ;;  %v3867_v1 = vmul.f32 %v5993_v28, %v10062_v37  ;;  %v4594_v28 = vsel %vm3457_vm4, %v4545_v35, 0.0 }
 0x481   :  { %v2896_v38 = vpop.f32.mrb[86].mxu0  ;;  %v10122_v4 = vmax.f32 %v3280_v50, 0.0 }
 0x482   :  { %v10078_v23 = vadd.f32 %v9682_v57, %v2894_v46  ;;  %v2897_v7 = vadd.f32 %v2896_v38, %v9687_v25  ;;  %v7404_v45 = vpop.f32.mrb[87].mxu0  ;;  %v4544_v25 = vmul.f32 %v6127_v33, %v10007_v41 }
 0x483   :  { %5044 = vadd.xlane.f32.xlu1 %v5043_v2  ;;  %3688 = vadd.xlane.f32.xlu0 %v3687_v8  ;;  %v3370_v45 = vld [vmem:[%s12842_s5 + $0x18] sm:$0xff] }
 0x484   :  { %v10090_v57 = vadd.f32 %v9690_v62, %v2897_v7  ;;  %v6038_v62 = vld [vmem:[%s12842_s5 + $0x448] sm:$0xff]  ;;  %v4591_v61 = vsel %vm3457_vm4, %v4544_v25, 0.0  ;;  %v6173_v7 = vld [vmem:[%s12842_s5 + $0x880] sm:$0xff]  ;;  %v3415_v25 = vmul.f32 %v3370_v45, %v10122_v4 }
 0x485   :  { %v4093_v46 = vmul.f32 %v6038_v62, %v10062_v37  ;;  %v4771_v11 = vmul.f32 %v6173_v7, %v10062_v37  ;;  %v5994_v62 = vld [vmem:[%s12842_s5 + $0x2e8] sm:$0xff] }
 0x486   :  { %v3868_v50 = vmul.f32 %v5994_v62, %v10122_v4 }
 0x487   :  { %v2901_v63 = vpop.f32.mrb[88].mxu0  ;;  %4140 = vadd.xlane.f32.xlu0 %v4139_v19  ;;  %3465 = vadd.xlane.f32.xlu1 %v3464_v12  ;;  %v4142_v38 = vsel %vm3457_vm4, %v4093_v46, 0.0 }
 0x488   :  { %v2902_v49 = vadd.f32 %v2901_v63, %v9695_v29  ;;  %v7407_v41 = vpop.f32.mrb[89].mxu0  ;;  %v6083_v29 = vld [vmem:[%s12842_s5 + $0x5b0] sm:$0xff] }
 0x489   :  { %v2904_v42 = vpop.f32.mrb[90].mxu0  ;;  %v4319_v27 = vmul.f32 %v6083_v29, %v10062_v37 }
 0x48a   :  { %v10108_v5 = vadd.f32 %v9698_v14, %v2902_v49  ;;  %v2905_v48 = vadd.f32 %v2904_v42, %v9703_v40  ;;  %v7408_v55 = vpop.f32.mrb[91].mxu0  ;;  %v3916_v40 = vsel %vm3457_vm4, %v3867_v1, 0.0  ;;  %v3467_v49 = vsel %vm3457_vm4, %v3415_v25, 0.0  ;;  %v5949_v42 = vld [vmem:[%s12842_s5 + $0x180] sm:$0xff] }
 0x48b   :  { %4592 = vadd.xlane.f32.xlu0 %v4591_v61  ;;  %3691 = vadd.xlane.f32.xlu1 %v3690_v10  ;;  %v4368_v63 = vsel %vm3457_vm4, %v4319_v27, 0.0  ;;  %v6084_v61 = vld [vmem:[%s12842_s5 + $0x5b8] sm:$0xff]  ;;  %v3281_v55 = vadd.f32 %v9975_v39, %v10021_v6  ;;  %v3642_v1 = vmul.f32 %v5949_v42, %v10122_v4  ;;  %v3919_v27 = vsel %vm3457_vm4, %v3868_v50, 0.0  ;;  %v6174_v6 = vld [vmem:[%s12842_s5 + $0x888] sm:$0xff]  ;;  %v13093_v50 = vld [vmem:[#allocation20_spill] sm:$0xff] }
 0x48c   :  { %v10120_v14 = vadd.f32 %v9706_v47, %v2905_v48  ;;  %v4320_v46 = vmul.f32 %v6084_v61, %v10122_v4  ;;  %v4772_v35 = vmul.f32 %v6174_v6, %v10122_v4  ;;  %v3282_v42 = vadd.f32 %v9975_v39, %v10032_v44  ;;  %v13095_v6 = vld [vmem:[#allocation22_spill] sm:$0xff] }
 0x48d   :  { %v10184_v7 = vmax.f32 %v3281_v55, 0.0  ;;  %v3693_v45 = vsel %vm3457_vm4, %v3642_v1, 0.0  ;;  %v6130_v55 = vld [vmem:[%s12842_s5 + $0x728] sm:$0xff] }
 0x48f   :  { %v2909_v47 = vpop.f32.mrb[92].mxu0  ;;  %3917 = vadd.xlane.f32.xlu0 %v3916_v40  ;;  %4143 = vadd.xlane.f32.xlu1 %v4142_v38 }
 0x490   :  { %v2910_v2 = vadd.f32 %v2909_v47, %v9711_v52  ;;  %v7411_v8 = vpop.f32.mrb[93].mxu0  ;;  %v6218_v52 = vld [vmem:[%s12842_s5 + $0x9e8] sm:$0xff]  ;;  %v4371_v47 = vsel %vm3457_vm4, %v4320_v46, 0.0 }
 0x491   :  { %v2912_v33 = vpop.f32.mrb[94].mxu0  ;;  %v4997_v41 = vmul.f32 %v6218_v52, %v10062_v37  ;;  %v6129_v8 = vld [vmem:[%s12842_s5 + $0x720] sm:$0xff] }
 0x492   :  { %v10138_v59 = vadd.f32 %v9714_v53, %v2910_v2  ;;  %v2913_v19 = vadd.f32 %v2912_v33, %v9719_v58  ;;  %v7412_v12 = vpop.f32.mrb[95].mxu0  ;;  %v4820_v58 = vsel %vm3457_vm4, %v4771_v11, 0.0 }
 0x493   :  { %4369 = vadd.xlane.f32.xlu0 %v4368_v63  ;;  %4595 = vadd.xlane.f32.xlu1 %v4594_v28  ;;  %v5046_v38 = vsel %vm3457_vm4, %v4997_v41, 0.0  ;;  %v4823_v12 = vsel %vm3457_vm4, %v4772_v35, 0.0  ;;  %v13092_v28 = vld [vmem:[#allocation19_spill] sm:$0xff]  ;;  %v6040_v41 = vld [vmem:[%s12842_s5 + $0x458] sm:$0xff] }
 0x494   :  { %v10150_v53 = vadd.f32 %v9722_v3, %v2913_v19 }
 0x497   :  { %v2917_v10 = vpop.f32.mrb[96].mxu0  ;;  %4821 = vadd.xlane.f32.xlu0 %v4820_v58  ;;  %3468 = vadd.xlane.f32.xlu1 %v3467_v49  ;;  %v4546_v58 = vmul.f32 %v6129_v8, %v10122_v4  ;;  %v13096_v8 = vld [vmem:[#allocation23_spill] sm:$0xff] }
 0x498   :  { %v2918_v3 = vadd.f32 %v2917_v10, %v9727_v51  ;;  %v7415_v48 = vpop.f32.mrb[97].mxu0  ;;  %v6039_v51 = vld [vmem:[%s12842_s5 + $0x450] sm:$0xff] }
 0x499   :  { %v2920_v37 = vpop.f32.mrb[98].mxu0  ;;  %v4597_v61 = vsel %vm3457_vm4, %v4546_v58, 0.0  ;;  %v4095_v48 = vmul.f32 %v6040_v41, %v10184_v7 }
 0x49a   :  { %v10168_v29 = vadd.f32 %v9730_v30, %v2918_v3  ;;  %v2921_v15 = vadd.f32 %v2920_v37, %v9735_v56  ;;  %v7416_v40 = vpop.f32.mrb[99].mxu0  ;;  %v4094_v56 = vmul.f32 %v6039_v51, %v10122_v4  ;;  %v3371_v37 = vld [vmem:[%s12842_s5 + $0x20] sm:$0xff] }
 0x49b   :  { %5047 = vadd.xlane.f32.xlu0 %v5046_v38  ;;  %3920 = vadd.xlane.f32.xlu1 %v3919_v27  ;;  %v3416_v38 = vmul.f32 %v3371_v37, %v10184_v7  ;;  %v13094_v27 = vld [vmem:[#allocation21_spill] sm:$0xff]  ;;  %v6086_v37 = vld [vmem:[%s12842_s5 + $0x5c8] sm:$0xff] }
 0x49c   :  { %v10180_v30 = vadd.f32 %v9738_v54, %v2921_v15  ;;  %v5950_v54 = vld [vmem:[%s12842_s5 + $0x188] sm:$0xff]  ;;  %v4145_v19 = vsel %vm3457_vm4, %v4094_v56, 0.0  ;;  %v10225_v15 = vmax.f32 %v3282_v42, 0.0 }
 0x49d   :  { %v3643_v49 = vmul.f32 %v5950_v54, %v10184_v7 }
 0x49f   :  { %v2925_v2 = vpop.f32.mrb[100].mxu0  ;;  %3694 = vadd.xlane.f32.xlu0 %v3693_v45  ;;  %4372 = vadd.xlane.f32.xlu1 %v4371_v47  ;;  %v3696_v10 = vsel %vm3457_vm4, %v3643_v49, 0.0  ;;  %v4148_v47 = vsel %vm3457_vm4, %v4095_v48, 0.0 }
 0x4a0   :  { %v2926_v33 = vadd.f32 %v2925_v2, %v9743_v43  ;;  %v7419_v11 = vpop.f32.mrb[101].mxu0  ;;  %v6219_v43 = vld [vmem:[%s12842_s5 + $0x9f0] sm:$0xff]  ;;  %v3372_v2 = vld [vmem:[%s12842_s5 + $0x28] sm:$0xff] }
 0x4a1   :  { %v2928_v25 = vpop.f32.mrb[102].mxu0  ;;  %v4998_v3 = vmul.f32 %v6219_v43, %v10122_v4  ;;  %v4547_v4 = vmul.f32 %v6130_v55, %v10184_v7  ;;  %v3470_v11 = vsel %vm3457_vm4, %v3416_v38, 0.0 }
 0x4a2   :  { %v10198_v63 = vadd.f32 %v9746_v36, %v2926_v33  ;;  %v2929_v52 = vadd.f32 %v2928_v25, %v13092_v28  ;;  %v7420_v62 = vpop.f32.mrb[103].mxu0  ;;  %v5996_v28 = vld [vmem:[%s12842_s5 + $0x2f8] sm:$0xff] }
 0x4a3   :  { %4146 = vadd.xlane.f32.xlu0 %v4145_v19  ;;  %4824 = vadd.xlane.f32.xlu1 %v4823_v12  ;;  %v5049_v45 = vsel %vm3457_vm4, %v4998_v3, 0.0  ;;  %v4600_v33 = vsel %vm3457_vm4, %v4547_v4, 0.0  ;;  %v3417_v19 = vmul.f32 %v3372_v2, %v10225_v15  ;;  %v6085_v12 = vld [vmem:[%s12842_s5 + $0x5c0] sm:$0xff]  ;;  %v3870_v41 = vmul.f32 %v5996_v28, %v10225_v15 }
 0x4a4   :  { %v10210_v36 = vadd.f32 %v13093_v50, %v2929_v52  ;;  %v4321_v43 = vmul.f32 %v6085_v12, %v10184_v7  ;;  %v13097_v50 = vld [vmem:[#allocation24_spill] sm:$0xff]  ;;  %v4322_v4 = vmul.f32 %v6086_v37, %v10225_v15 }
 0x4a5   :  { %v3473_v55 = vsel %vm3457_vm4, %v3417_v19, 0.0 }
 0x4a6   :  { %v4374_v38 = vsel %vm3457_vm4, %v4321_v43, 0.0 }
 0x4a7   :  { %v2933_v1 = vpop.f32.mrb[104].mxu0  ;;  %4598 = vadd.xlane.f32.xlu0 %v4597_v61  ;;  %3697 = vadd.xlane.f32.xlu1 %v3696_v10  ;;  %v13098_v61 = vld [vmem:[#allocation25_spill] sm:$0xff] }
 0x4a8   :  { %v2934_v44 = vadd.f32 %v2933_v1, %v9759_v18  ;;  %v7423_v46 = vpop.f32.mrb[105].mxu0  ;;  %v5995_v18 = vld [vmem:[%s12842_s5 + $0x2f0] sm:$0xff]  ;;  %v13099_v1 = vld [vmem:[#allocation27_spill] sm:$0xff] }
 0x4a9   :  { %v2936_v40 = vpop.f32.mrb[106].mxu0  ;;  %v3869_v25 = vmul.f32 %v5995_v18, %v10184_v7  ;;  %v3283_v46 = vadd.f32 %v9975_v39, %v10048_v13 }
 0x4aa   :  { %v10230_v51 = vadd.f32 %v13094_v27, %v2934_v44  ;;  %v2937_v56 = vadd.f32 %v2936_v40, %v13095_v6  ;;  %v7424_v35 = vpop.f32.mrb[107].mxu0  ;;  %v3925_v27 = vsel %vm3457_vm4, %v3870_v41, 0.0 }
 0x4ab   :  { %5050 = vadd.xlane.f32.xlu0 %v5049_v45  ;;  %4149 = vadd.xlane.f32.xlu1 %v4148_v47  ;;  %v3922_v48 = vsel %vm3457_vm4, %v3869_v25, 0.0  ;;  %v6176_v35 = vld [vmem:[%s12842_s5 + $0x898] sm:$0xff]  ;;  %v10285_v47 = vmax.f32 %v3283_v46, 0.0  ;;  %v13103_v46 = vld [vmem:[#allocation40_spill] sm:$0xff] }
 0x4ac   :  { %v10242_v54 = vadd.f32 %v13096_v8, %v2937_v56  ;;  %v6220_v56 = vld [vmem:[%s12842_s5 + $0x9f8] sm:$0xff]  ;;  %v4377_v8 = vsel %vm3457_vm4, %v4322_v4, 0.0  ;;  %v13104_v4 = vld [vmem:[#allocation44_spill] sm:$0xff] }
 0x4ad   :  { %v13101_v25 = vld [vmem:[#allocation33_spill] sm:$0xff]  ;;  %v4999_v28 = vmul.f32 %v6220_v56, %v10184_v7 }
 0x4af   :  { %v2941_v52 = vpop.f32.mrb[108].mxu0  ;;  %4601 = vadd.xlane.f32.xlu1 %v4600_v33  ;;  %3471 = vadd.xlane.f32.xlu0 %v3470_v11  ;;  %v13100_v33 = vld [vmem:[#allocation30_spill] sm:$0xff]  ;;  %v5052_v43 = vsel %vm3457_vm4, %v4999_v28, 0.0 }
 0x4b0   :  { %v2942_v62 = vadd.f32 %v2941_v52, %v9775_v21  ;;  %v7427_v58 = vpop.f32.mrb[109].mxu0  ;;  %v6175_v21 = vld [vmem:[%s12842_s5 + $0x890] sm:$0xff]  ;;  %v4774_v52 = vmul.f32 %v6176_v35, %v10225_v15  ;;  %v6132_v35 = vld [vmem:[%s12842_s5 + $0x738] sm:$0xff] }
 0x4b1   :  { %v2944_v49 = vpop.f32.mrb[110].mxu0  ;;  %v4773_v40 = vmul.f32 %v6175_v21, %v10184_v7  ;;  %v13102_v58 = vld [vmem:[#allocation43_spill] sm:$0xff] }
 0x4b2   :  { %v10258_v42 = vadd.f32 %v13097_v50, %v2942_v62  ;;  %v2945_v10 = vadd.f32 %v2944_v49, %v13098_v61  ;;  %v7428_v3 = vpop.f32.mrb[111].mxu0  ;;  %v5952_v62 = vld [vmem:[%s12842_s5 + $0x198] sm:$0xff]  ;;  %v4829_v41 = vsel %vm3457_vm4, %v4774_v52, 0.0  ;;  %v6041_v61 = vld [vmem:[%s12842_s5 + $0x460] sm:$0xff] }
 0x4b3   :  { %3923 = vadd.xlane.f32.xlu0 %v3922_v48  ;;  %3474 = vadd.xlane.f32.xlu1 %v3473_v55  ;;  %v4826_v2 = vsel %vm3457_vm4, %v4773_v40, 0.0  ;;  %v3645_v50 = vmul.f32 %v5952_v62, %v10285_v47  ;;  %v4096_v37 = vmul.f32 %v6041_v61, %v10225_v15 }
 0x4b4   :  { %v10270_v44 = vadd.f32 %v13099_v1, %v2945_v10  ;;  %v6042_v10 = vld [vmem:[%s12842_s5 + $0x468] sm:$0xff] }
 0x4b5   :  { %v4097_v1 = vmul.f32 %v6042_v10, %v10285_v47  ;;  %v3702_v56 = vsel %vm3457_vm4, %v3645_v50, 0.0  ;;  %v13107_v50 = vld [vmem:[#allocation41_spill] sm:$0xff] }
 0x4b7   :  { %v2949_v6 = vpop.f32.mrb[112].mxu0  ;;  %4375 = vadd.xlane.f32.xlu0 %v4374_v38  ;;  %3926 = vadd.xlane.f32.xlu1 %v3925_v27 }
 0x4b8   :  { %v2950_v13 = vadd.f32 %v2949_v6, %v9791_v16  ;;  %v7431_v45 = vpop.f32.mrb[113].mxu0  ;;  %v5951_v16 = vld [vmem:[%s12842_s5 + $0x190] sm:$0xff] }
 0x4b9   :  { %v2952_v18 = vpop.f32.mrb[114].mxu0  ;;  %v3644_v7 = vmul.f32 %v5951_v16, %v10225_v15 }
 0x4ba   :  { %v10290_v11 = vadd.f32 %v13100_v33, %v2950_v13  ;;  %v2953_v19 = vadd.f32 %v2952_v18, %v13101_v25  ;;  %v7432_v12 = vpop.f32.mrb[115].mxu0  ;;  %v13105_v13 = vld [vmem:[#allocation8_spill] sm:$0xff]  ;;  %v3284_v18 = vadd.f32 %v9975_v39, %v10060_v22  ;;  %v4549_v25 = vmul.f32 %v6132_v35, %v10285_v47 }
 0x4bb   :  { %4827 = vadd.xlane.f32.xlu0 %v4826_v2  ;;  %4378 = vadd.xlane.f32.xlu1 %v4377_v8  ;;  %v3699_v6 = vsel %vm3457_vm4, %v3644_v7, 0.0  ;;  %v4151_v2 = vsel %vm3457_vm4, %v4096_v37, 0.0  ;;  %v4154_v8 = vsel %vm3457_vm4, %v4097_v1, 0.0  ;;  %v6222_v12 = vld [vmem:[%s12842_s5 + $0xa08] sm:$0xff] }
 0x4bc   :  { %v10302_v49 = vadd.f32 %v13102_v58, %v2953_v19  ;;  %v6221_v19 = vld [vmem:[%s12842_s5 + $0xa00] sm:$0xff]  ;;  %v10345_v16 = vmax.f32 %v3284_v18, 0.0 }
 0x4bd   :  { %v5000_v58 = vmul.f32 %v6221_v19, %v10225_v15 }
 0x4bf   :  { %v2957_v3 = vpop.f32.mrb[116].mxu0  ;;  %5053 = vadd.xlane.f32.xlu0 %v5052_v43  ;;  %4830 = vadd.xlane.f32.xlu1 %v4829_v41  ;;  %v5001_v43 = vmul.f32 %v6222_v12, %v10285_v47  ;;  %v13106_v41 = vld [vmem:[#allocation45_spill] sm:$0xff] }
 0x4c0   :  { %v2958_v48 = vadd.f32 %v2957_v3, %v9807_v32  ;;  %v7435_v55 = vpop.f32.mrb[117].mxu0  ;;  %v6131_v32 = vld [vmem:[%s12842_s5 + $0x730] sm:$0xff] }
 0x4c1   :  { %v2960_v21 = vpop.f32.mrb[118].mxu0  ;;  %v4548_v33 = vmul.f32 %v6131_v32, %v10225_v15  ;;  %v3374_v15 = vld [vmem:[%s12842_s5 + $0x38] sm:$0xff]  ;;  %v13108_v55 = vld [vmem:[#allocation46_spill] sm:$0xff] }
 0x4c2   :  { %v10318_v40 = vadd.f32 %v13103_v46, %v2958_v48  ;;  %v2961_v38 = vadd.f32 %v2960_v21, %v13104_v4  ;;  %v7436_v27 = vpop.f32.mrb[119].mxu0  ;;  %v4606_v48 = vsel %vm3457_vm4, %v4549_v25, 0.0  ;;  %v3419_v1 = vmul.f32 %v3374_v15, %v10345_v16 }
 0x4c3   :  { %3700 = vadd.xlane.f32.xlu0 %v3699_v6  ;;  %3703 = vadd.xlane.f32.xlu1 %v3702_v56  ;;  %v4603_v3 = vsel %vm3457_vm4, %v4548_v33, 0.0  ;;  %v5055_v46 = vsel %vm3457_vm4, %v5000_v58, 0.0  ;;  %v5058_v4 = vsel %vm3457_vm4, %v5001_v43, 0.0  ;;  %v5997_v27 = vld [vmem:[%s12842_s5 + $0x300] sm:$0xff]  ;;  %v5998_v6 = vld [vmem:[%s12842_s5 + $0x308] sm:$0xff]  ;;  %v3285_v58 = vadd.f32 %v9975_v39, %v10078_v23 }
 0x4c4   :  { %v10330_v45 = vadd.f32 %v13105_v13, %v2961_v38  ;;  %v3479_v18 = vsel %vm3457_vm4, %v3419_v1, 0.0  ;;  %v13110_v33 = vld [vmem:[#allocation47_spill] sm:$0xff]  ;;  %v3871_v12 = vmul.f32 %v5997_v27, %v10285_v47 }
 0x4c5   :  { %v10405_v15 = vmax.f32 %v3285_v58, 0.0 }
 0x4c6   :  { %v3928_v43 = vsel %vm3457_vm4, %v3871_v12, 0.0  ;;  %v6044_v12 = vld [vmem:[%s12842_s5 + $0x478] sm:$0xff] }
 0x4c7   :  { %v2965_v28 = vpop.f32.mrb[120].mxu0  ;;  %4152 = vadd.xlane.f32.xlu0 %v4151_v2  ;;  %4155 = vadd.xlane.f32.xlu1 %v4154_v8  ;;  %v13109_v2 = vld [vmem:[#allocation9_spill] sm:$0xff] }
 0x4c8   :  { %v2966_v22 = vadd.f32 %v2965_v28, %v9823_v0  ;;  %v7439_v52 = vpop.f32.mrb[121].mxu0  ;;  %v3373_v0 = vld [vmem:[%s12842_s5 + $0x30] sm:$0xff]  ;;  %v3872_v28 = vmul.f32 %v5998_v6, %v10345_v16 }
 0x4c9   :  { %v2968_v62 = vpop.f32.mrb[122].mxu0  ;;  %v3418_v37 = vmul.f32 %v3373_v0, %v10285_v47  ;;  %v13111_v52 = vld [vmem:[#allocation42_spill] sm:$0xff] }
 0x4ca   :  { %v10350_v7 = vadd.f32 %v13106_v41, %v2966_v22  ;;  %v2969_v61 = vadd.f32 %v2968_v62, %v13107_v50  ;;  %v7440_v10 = vpop.f32.mrb[123].mxu0  ;;  %v6088_v22 = vld [vmem:[%s12842_s5 + $0x5d8] sm:$0xff]  ;;  %v3931_v41 = vsel %vm3457_vm4, %v3872_v28, 0.0 }
 0x4cb   :  { %4604 = vadd.xlane.f32.xlu0 %v4603_v3  ;;  %4607 = vadd.xlane.f32.xlu1 %v4606_v48  ;;  %v3476_v13 = vsel %vm3457_vm4, %v3418_v37, 0.0  ;;  %v6177_v10 = vld [vmem:[%s12842_s5 + $0x8a0] sm:$0xff]  ;;  %v6178_v3 = vld [vmem:[%s12842_s5 + $0x8a8] sm:$0xff] }
 0x4cc   :  { %v10362_v21 = vadd.f32 %v13108_v55, %v2969_v61  ;;  %v4324_v61 = vmul.f32 %v6088_v22, %v10345_v16  ;;  %v4775_v37 = vmul.f32 %v6177_v10, %v10285_v47  ;;  %v4776_v1 = vmul.f32 %v6178_v3, %v10345_v16  ;;  %v13116_v10 = vld [vmem:[#allocation28_spill] sm:$0xff] }
 0x4cf   :  { %v2973_v38 = vpop.f32.mrb[124].mxu0  ;;  %5056 = vadd.xlane.f32.xlu0 %v5055_v46  ;;  %5059 = vadd.xlane.f32.xlu1 %v5058_v4  ;;  %v13112_v46 = vld [vmem:[#allocation2_spill] sm:$0xff] }
 0x4d0   :  { %v2974_v56 = vadd.f32 %v2973_v38, %v9839_v9  ;;  %v7443_v32 = vpop.f32.mrb[125].mxu0  ;;  %v6087_v9 = vld [vmem:[%s12842_s5 + $0x5d0] sm:$0xff]  ;;  %v13113_v38 = vld [vmem:[#allocation10_spill] sm:$0xff] }
 0x4d1   :  { %v2976_v35 = vpop.f32.mrb[126].mxu0  ;;  %v4323_v50 = vmul.f32 %v6087_v9, %v10285_v47  ;;  %v4383_v32 = vsel %vm3457_vm4, %v4324_v61, 0.0  ;;  %v5954_v47 = vld [vmem:[%s12842_s5 + $0x1a8] sm:$0xff] }
 0x4d2   :  { %v10378_v8 = vadd.f32 %v13109_v2, %v2974_v56  ;;  %v2977_v25 = vadd.f32 %v2976_v35, %v13110_v33  ;;  %v7444_v19 = vpop.f32.mrb[127].mxu0  ;;  %v13114_v35 = vld [vmem:[#allocation26_spill] sm:$0xff]  ;;  %v4835_v2 = vsel %vm3457_vm4, %v4776_v1, 0.0 }
 0x4d3   :  { %3477 = vadd.xlane.f32.xlu0 %v3476_v13  ;;  %3480 = vadd.xlane.f32.xlu1 %v3479_v18  ;;  %v4380_v56 = vsel %vm3457_vm4, %v4323_v50, 0.0  ;;  %v4832_v18 = vsel %vm3457_vm4, %v4775_v37, 0.0  ;;  %v6043_v19 = vld [vmem:[%s12842_s5 + $0x470] sm:$0xff]  ;;  %v13115_v50 = vld [vmem:[#allocation11_spill] sm:$0xff] }
 0x4d4   :  { %v10390_v62 = vadd.f32 %v13111_v52, %v2977_v25  ;;  %v3647_v25 = vmul.f32 %v5954_v47, %v10405_v15  ;;  %v3286_v52 = vadd.f32 %v9975_v39, %v10090_v57  ;;  %v6134_v57 = vld [vmem:[%s12842_s5 + $0x748] sm:$0xff] }
 0x4d5   :  { %v13118_v47 = vld [vmem:[#allocation3_spill] sm:$0xff] }
 0x4d7   :  { %v2981_v48 = vpop.f32.mrb[128].mxu0  ;;  %3929 = vadd.xlane.f32.xlu0 %v3928_v43  ;;  %3932 = vadd.xlane.f32.xlu1 %v3931_v41  ;;  %v4098_v43 = vmul.f32 %v6043_v19, %v10345_v16  ;;  %v4099_v41 = vmul.f32 %v6044_v12, %v10405_v15  ;;  %v13119_v19 = vld [vmem:[#allocation29_spill] sm:$0xff] }
 0x4d8   :  { %v2982_v23 = vadd.f32 %v2981_v48, %v9855_v20  ;;  %v7447_v0 = vpop.f32.mrb[129].mxu0  ;;  %v5953_v20 = vld [vmem:[%s12842_s5 + $0x1a0] sm:$0xff] }
 0x4d9   :  { %v2984_v55 = vpop.f32.mrb[130].mxu0  ;;  %v3646_v33 = vmul.f32 %v5953_v20, %v10345_v16  ;;  %v3708_v0 = vsel %vm3457_vm4, %v3647_v25, 0.0  ;;  %v3376_v20 = vld [vmem:[%s12842_s5 + $0x48] sm:$0xff] }
 0x4da   :  { %v10410_v4 = vadd.f32 %v13112_v46, %v2982_v23  ;;  %v2985_v27 = vadd.f32 %v2984_v55, %v13113_v38  ;;  %v7448_v6 = vpop.f32.mrb[131].mxu0  ;;  %v13117_v55 = vld [vmem:[#allocation13_spill] sm:$0xff]  ;;  %v4551_v46 = vmul.f32 %v6134_v57, %v10405_v15  ;;  %v10456_v38 = vmax.f32 %v3286_v52, 0.0 }
 0x4db   :  { %4381 = vadd.xlane.f32.xlu0 %v4380_v56  ;;  %4384 = vadd.xlane.f32.xlu1 %v4383_v32  ;;  %v3705_v23 = vsel %vm3457_vm4, %v3646_v33, 0.0  ;;  %v4160_v6 = vsel %vm3457_vm4, %v4099_v41, 0.0  ;;  %v6223_v32 = vld [vmem:[%s12842_s5 + $0xa10] sm:$0xff]  ;;  %v6000_v41 = vld [vmem:[%s12842_s5 + $0x318] sm:$0xff] }
 0x4dc   :  { %v10422_v13 = vadd.f32 %v13114_v35, %v2985_v27  ;;  %v4157_v27 = vsel %vm3457_vm4, %v4098_v43, 0.0  ;;  %v4612_v25 = vsel %vm3457_vm4, %v4551_v46, 0.0  ;;  %v5002_v52 = vmul.f32 %v6223_v32, %v10345_v16  ;;  %v3375_v43 = vld [vmem:[%s12842_s5 + $0x40] sm:$0xff] }
 0x4df   :  { %v2989_v28 = vpop.f32.mrb[132].mxu0  ;;  %4833 = vadd.xlane.f32.xlu0 %v4832_v18  ;;  %4836 = vadd.xlane.f32.xlu1 %v4835_v2 }
 0x4e0   :  { %v2990_v9 = vadd.f32 %v2989_v28, %v9871_v60  ;;  %v7451_v22 = vpop.f32.mrb[133].mxu0  ;;  %v6133_v60 = vld [vmem:[%s12842_s5 + $0x740] sm:$0xff] }
 0x4e1   :  { %v2992_v58 = vpop.f32.mrb[134].mxu0  ;;  %v4550_v1 = vmul.f32 %v6133_v60, %v10345_v16  ;;  %v13120_v28 = vld [vmem:[#allocation14_spill] sm:$0xff]  ;;  %v3420_v16 = vmul.f32 %v3375_v43, %v10405_v15  ;;  %v6090_v60 = vld [vmem:[%s12842_s5 + $0x5e8] sm:$0xff] }
 0x4e2   :  { %v10440_v61 = vadd.f32 %v13115_v50, %v2990_v9  ;;  %v2993_v3 = vadd.f32 %v2992_v58, %v13116_v10  ;;  %v7452_v48 = vpop.f32.mrb[135].mxu0  ;;  %v3421_v58 = vmul.f32 %v3376_v20, %v10456_v38  ;;  %v13121_v50 = vld [vmem:[#allocation31_spill] sm:$0xff]  ;;  %v4326_v32 = vmul.f32 %v6090_v60, %v10456_v38  ;;  %v13123_v20 = vld [vmem:[#allocation4_spill] sm:$0xff] }
 0x4e3   :  { %3706 = vadd.xlane.f32.xlu0 %v3705_v23  ;;  %3709 = vadd.xlane.f32.xlu1 %v3708_v0  ;;  %v4609_v33 = vsel %vm3457_vm4, %v4550_v1, 0.0  ;;  %v3874_v23 = vmul.f32 %v6000_v41, %v10456_v38  ;;  %v5999_v0 = vld [vmem:[%s12842_s5 + $0x310] sm:$0xff] }
 0x4e4   :  { %v10452_v37 = vadd.f32 %v13117_v55, %v2993_v3  ;;  %v5061_v3 = vsel %vm3457_vm4, %v5002_v52, 0.0  ;;  %v3485_v48 = vsel %vm3457_vm4, %v3421_v58, 0.0  ;;  %v13122_v55 = vld [vmem:[#allocation15_spill] sm:$0xff]  ;;  %v4389_v43 = vsel %vm3457_vm4, %v4326_v32, 0.0 }
 0x4e7   :  { %v2997_v56 = vpop.f32.mrb[136].mxu0  ;;  %4158 = vadd.xlane.f32.xlu0 %v4157_v27  ;;  %4161 = vadd.xlane.f32.xlu1 %v4160_v6  ;;  %v3287_v27 = vadd.f32 %v9975_v39, %v10108_v5  ;;  %v6180_v5 = vld [vmem:[%s12842_s5 + $0x8b8] sm:$0xff] }
 0x4e8   :  { %v2998_v35 = vadd.f32 %v2997_v56, %v13118_v47  ;;  %v7455_v18 = vpop.f32.mrb[137].mxu0  ;;  %v3873_v56 = vmul.f32 %v5999_v0, %v10405_v15  ;;  %v4778_v41 = vmul.f32 %v6180_v5, %v10456_v38 }
 0x4e9   :  { %v3000_v2 = vpop.f32.mrb[138].mxu0 }
 0x4ea   :  { %v10470_v12 = vadd.f32 %v13119_v19, %v2998_v35  ;;  %v3001_v9 = vadd.f32 %v3000_v2, %v13120_v28  ;;  %v7456_v22 = vpop.f32.mrb[139].mxu0  ;;  %v13124_v35 = vld [vmem:[#allocation16_spill] sm:$0xff]  ;;  %v6089_v19 = vld [vmem:[%s12842_s5 + $0x5e0] sm:$0xff]  ;;  %v3934_v58 = vsel %vm3457_vm4, %v3873_v56, 0.0 }
 0x4eb   :  { %4610 = vadd.xlane.f32.xlu0 %v4609_v33  ;;  %4613 = vadd.xlane.f32.xlu1 %v4612_v25  ;;  %v3482_v33 = vsel %vm3457_vm4, %v3420_v16, 0.0  ;;  %v3937_v25 = vsel %vm3457_vm4, %v3874_v23, 0.0  ;;  %v13125_v28 = vld [vmem:[#allocation32_spill] sm:$0xff]  ;;  %v10514_v22 = vmax.f32 %v3287_v27, 0.0  ;;  %v4325_v52 = vmul.f32 %v6089_v19, %v10405_v15  ;;  %v13126_v16 = vld [vmem:[#allocation34_spill] sm:$0xff] }
 0x4ec   :  { %v10482_v10 = vadd.f32 %v13121_v50, %v3001_v9  ;;  %v6179_v50 = vld [vmem:[%s12842_s5 + $0x8b0] sm:$0xff] }
 0x4ef   :  { %v3005_v57 = vpop.f32.mrb[140].mxu0  ;;  %5062 = vadd.xlane.f32.xlu0 %v5061_v3  ;;  %3486 = vadd.xlane.f32.xlu1 %v3485_v48  ;;  %v5956_v3 = vld [vmem:[%s12842_s5 + $0x1b8] sm:$0xff] }
 0x4f0   :  { %v3006_v1 = vadd.f32 %v3005_v57, %v13122_v55  ;;  %v7459_v46 = vpop.f32.mrb[141].mxu0  ;;  %v3649_v27 = vmul.f32 %v5956_v3, %v10514_v22  ;;  %v5955_v3 = vld [vmem:[%s12842_s5 + $0x1b0] sm:$0xff] }
 0x4f1   :  { %v3008_v6 = vpop.f32.mrb[142].mxu0  ;;  %v4777_v46 = vmul.f32 %v6179_v50, %v10405_v15 }
 0x4f2   :  { %v10500_v47 = vadd.f32 %v13123_v20, %v3006_v1  ;;  %v3009_v18 = vadd.f32 %v3008_v6, %v13124_v35  ;;  %v7460_v2 = vpop.f32.mrb[143].mxu0  ;;  %v4386_v1 = vsel %vm3457_vm4, %v4325_v52, 0.0  ;;  %v13127_v6 = vld [vmem:[#allocation5_spill] sm:$0xff]  ;;  %v13128_v20 = vld [vmem:[#allocation35_spill] sm:$0xff] }
 0x4f3   :  { %3483 = vadd.xlane.f32.xlu0 %v3482_v33  ;;  %3938 = vadd.xlane.f32.xlu1 %v3937_v25  ;;  %v4841_v2 = vsel %vm3457_vm4, %v4778_v41, 0.0  ;;  %v6224_v33 = vld [vmem:[%s12842_s5 + $0xa18] sm:$0xff]  ;;  %v6046_v25 = vld [vmem:[%s12842_s5 + $0x488] sm:$0xff]  ;;  %v3714_v41 = vsel %vm3457_vm4, %v3649_v27, 0.0 }
 0x4f4   :  { %v10512_v9 = vadd.f32 %v13125_v28, %v3009_v18  ;;  %v5003_v52 = vmul.f32 %v6224_v33, %v10405_v15  ;;  %v4101_v50 = vmul.f32 %v6046_v25, %v10514_v22 }
 0x4f7   :  { %v3013_v48 = vpop.f32.mrb[144].mxu0  ;;  %3935 = vadd.xlane.f32.xlu0 %v3934_v58  ;;  %4390 = vadd.xlane.f32.xlu1 %v4389_v43  ;;  %v4838_v43 = vsel %vm3457_vm4, %v4777_v46, 0.0  ;;  %v3648_v46 = vmul.f32 %v5955_v3, %v10456_v38 }
 0x4f8   :  { %v3014_v23 = vadd.f32 %v3013_v48, %v13126_v16  ;;  %v7463_v0 = vpop.f32.mrb[145].mxu0  ;;  %v3686_v60 = vpop.xlane.xlu1 %3685 }
 0x4f9   :  { %v3460_v57 = vpop.xlane.xlu0 %3459  ;;  %v3016_v55 = vpop.f32.mrb[146].mxu0 }
 0x4fa   :  { %v10531_v56 = vadd.f32 %v13127_v6, %v3014_v23  ;;  %v5176_v32 = vsel %vm5175_vm5, %v3460_v57, %v3686_v60  ;;  %v3017_v35 = vadd.f32 %v3016_v55, %v13128_v20  ;;  %v7464_v18 = vpop.f32.mrb[147].mxu0  ;;  %v3288_v60 = vadd.f32 %v9975_v39, %v10120_v14  ;;  %v6045_v39 = vld [vmem:[%s12842_s5 + $0x480] sm:$0xff] }
 0x4fb   :  { %4387 = vadd.xlane.f32.xlu0 %v4386_v1  ;;  %4842 = vadd.xlane.f32.xlu1 %v4841_v2  ;;  %v5064_v1 = vsel %vm3457_vm4, %v5003_v52, 0.0  ;;  %v13129_v18 = vld [vmem:[#allocation36_spill] sm:$0xff]  ;;  %v3711_v52 = vsel %vm3457_vm4, %v3648_v46, 0.0 }
 0x4fc   :  { %v10543_v19 = vadd.f32 %v9924_v24, %v3017_v35  ;;  %v4138_v5 = vpop.xlane.xlu1 %4137  ;;  %v6136_v24 = vld [vmem:[%s12842_s5 + $0x758] sm:$0xff]  ;;  %v4166_v35 = vsel %vm3457_vm4, %v4101_v50, 0.0  ;;  %v10579_v33 = vmax.f32 %v3288_v60, 0.0 }
 0x4fd   :  { %v3912_v28 = vpop.xlane.xlu0 %3911  ;;  %v4553_v27 = vmul.f32 %v6136_v24, %v10514_v22  ;;  %v3378_v50 = vld [vmem:[%s12842_s5 + $0x58] sm:$0xff]  ;;  %v13130_v24 = vld [vmem:[#allocation6_spill] sm:$0xff] }
 0x4fe   :  { %v5222_v58 = vsel %vm5221_vm6, %v5176_v32, %v3912_v28 }
 0x4ff   :  { %v3021_v48 = vpop.f32.mrb[148].mxu0  ;;  %4839 = vadd.xlane.f32.xlu0 %v4838_v43  ;;  %3715 = vadd.xlane.f32.xlu1 %v3714_v41  ;;  %v5268_v15 = vsel %vm5267_vm7, %v5222_v58, %v4138_v5  ;;  %v4100_v5 = vmul.f32 %v6045_v39, %v10456_v38  ;;  %v4618_v58 = vsel %vm3457_vm4, %v4553_v27, 0.0  ;;  %v6135_v41 = vld [vmem:[%s12842_s5 + $0x750] sm:$0xff]  ;;  %v6002_v39 = vld [vmem:[%s12842_s5 + $0x328] sm:$0xff] }
 0x500   :  { %v3022_v16 = vadd.f32 %v3021_v48, %v9927_v26  ;;  %v7467_v23 = vpop.f32.mrb[149].mxu0  ;;  %v4590_v0 = vpop.xlane.xlu1 %4589 }
 0x501   :  { %v4364_v57 = vpop.xlane.xlu0 %4363  ;;  %v3024_v55 = vpop.f32.mrb[150].mxu0  ;;  %v4163_v60 = vsel %vm3457_vm4, %v4100_v5, 0.0  ;;  %v3876_v5 = vmul.f32 %v6002_v39, %v10579_v33 }
 0x502   :  { %v10564_v6 = vadd.f32 %v9930_v17, %v3022_v16  ;;  %v5314_v32 = vsel %vm5313_vm8, %v5268_v15, %v4364_v57  ;;  %v3025_v26 = vadd.f32 %v3024_v55, %v9933_v34  ;;  %v7468_v20 = vpop.f32.mrb[151].mxu0  ;;  %v6226_v17 = vld [vmem:[%s12842_s5 + $0xa28] sm:$0xff]  ;;  %v4552_v57 = vmul.f32 %v6135_v41, %v10456_v38  ;;  %v13135_v41 = vld [vmem:[#allocation38_spill] sm:$0xff] }
 0x503   :  { %5065 = vadd.xlane.f32.xlu0 %v5064_v1  ;;  %4167 = vadd.xlane.f32.xlu1 %v4166_v35  ;;  %v5360_v14 = vsel %vm5359_vm9, %v5314_v32, %v4590_v0  ;;  %v5005_v43 = vmul.f32 %v6226_v17, %v10514_v22  ;;  %v3423_v55 = vmul.f32 %v3378_v50, %v10579_v33  ;;  %v13131_v1 = vld [vmem:[#allocation37_spill] sm:$0xff]  ;;  %v6225_v35 = vld [vmem:[%s12842_s5 + $0xa20] sm:$0xff]  ;;  %v13136_v50 = vrot.slane %v13135_v41, 1 }
 0x504   :  { %v10577_v2 = vadd.f32 %v13129_v18, %v3025_v26  ;;  %v3915_v34 = vpop.xlane.xlu1 %3914  ;;  %v3943_v39 = vsel %vm3457_vm4, %v3876_v5, 0.0  ;;  %v6001_v41 = vld [vmem:[%s12842_s5 + $0x320] sm:$0xff] }
 0x505   :  { %v4816_v25 = vpop.xlane.xlu0 %4815  ;;  %v5070_v20 = vsel %vm3457_vm4, %v5005_v43, 0.0 }
 0x506   :  { %v5406_v28 = vsel %vm5405_vm10, %v5360_v14, %v4816_v25  ;;  %v13132_v14 = vld [vmem:[#allocation7_spill] sm:$0xff] }
 0x507   :  { %v3029_v3 = vpop.f32.mrb[152].mxu0  ;;  %3712 = vadd.xlane.f32.xlu0 %v3711_v52  ;;  %4619 = vadd.xlane.f32.xlu1 %v4618_v58  ;;  %v3491_v52 = vsel %vm3457_vm4, %v3423_v55, 0.0  ;;  %v13133_v58 = vld [vmem:[#allocation17_spill] sm:$0xff]  ;;  %v13139_v55 = vld [vmem:[#allocation12_spill] sm:$0xff] }
 0x508   :  { %v3030_v48 = vadd.f32 %v3029_v3, %v13130_v24  ;;  %v7471_v15 = vpop.f32.mrb[153].mxu0  ;;  %v4367_v16 = vpop.xlane.xlu1 %4366  ;;  %v13134_v43 = vrot.slane %v13133_v58, 1 }
 0x509   :  { %v5042_v23 = vpop.xlane.xlu0 %5041  ;;  %v3032_v0 = vpop.f32.mrb[154].mxu0 }
 0x50a   :  { %v10597_v46 = vadd.f32 %v13131_v1, %v3030_v48  ;;  %v10600_v27 = vsel %vm5451_vm11, %v5406_v28, %v5042_v23  ;;  %v3033_v32 = vadd.f32 %v3032_v0, %v9953_v31  ;;  %v7472_v26 = vpop.f32.mrb[155].mxu0  ;;  %v5004_v31 = vmul.f32 %v6225_v35, %v10456_v38  ;;  %v3377_v48 = vld [vmem:[%s12842_s5 + $0x50] sm:$0xff]  ;;  %v6092_v38 = vld [vmem:[%s12842_s5 + $0x5f8] sm:$0xff] }
 0x50b   :  { %4164 = vadd.xlane.f32.xlu0 %v4163_v60  ;;  %5071 = vadd.xlane.f32.xlu1 %v5070_v20  ;;  %v4615_v28 = vsel %vm3457_vm4, %v4552_v57, 0.0  ;;  %v2826_v3 = vsel %vm930_vm1, %v13136_v50, %v13134_v43  ;;  %v13137_v60 = vld [vmem:[#allocation18_spill] sm:$0xff]  ;;  %v13140_v1 = vrot.slane %v13139_v55, 2  ;;  %v3422_v58 = vmul.f32 %v3377_v48, %v10514_v22 }
 0x50c   :  { %v10611_v17 = vadd.f32 %v13132_v14, %v3033_v32  ;;  %v4819_v18 = vpop.xlane.xlu1 %4818  ;;  %v13138_v57 = vrot.slane %v13137_v60, 2  ;;  %v5067_v35 = vsel %vm3457_vm4, %v5004_v31, 0.0  ;;  %v4328_v43 = vmul.f32 %v6092_v38, %v10579_v33  ;;  %v6182_v31 = vld [vmem:[%s12842_s5 + $0x8c8] sm:$0xff]  ;;  %v6091_v60 = vld [vmem:[%s12842_s5 + $0x5f0] sm:$0xff] }
 0x50d   :  { %v3463_v25 = vpop.xlane.xlu0 %3462  ;;  %v3875_v48 = vmul.f32 %v6001_v41, %v10514_v22 }
 0x50e   :  { %v3224_v32 = vsel %vm3088_vm3, %v13140_v1, %v13138_v57  ;;  %v6227_v57 = vld [vmem:[%s12842_s5 + $0xa30] sm:$0xff] }
 0x50f   :  { %v3037_v24 = vpop.f32.mrb[156].mxu0  ;;  %4616 = vadd.xlane.f32.xlu0 %v4615_v28  ;;  %3492 = vadd.xlane.f32.xlu1 %v3491_v52 }
 0x510   :  { %v3038_v15 = vadd.f32 %v3037_v24, %v2826_v3  ;;  %v7475_v23 = vpop.f32.mrb[157].mxu0  ;;  %v5045_v0 = vpop.xlane.xlu1 %5044 }
 0x511   :  { %v3689_v26 = vpop.xlane.xlu0 %3688  ;;  %v3040_v20 = vpop.f32.mrb[158].mxu0  ;;  %v4780_v23 = vmul.f32 %v6182_v31, %v10579_v33  ;;  %v5498_v31 = vsel %vm5497_vm12, %v10600_v27, 0.0 }
 0x512   :  { %v10635_v14 = vadd.f32 %v3224_v32, %v3038_v15  ;;  %v5177_v28 = vsel %vm5175_vm5, %v3463_v25, %v3689_v26  ;;  %v7476_v52 = vpop.f32.mrb[159].mxu0  ;;  %v10650_v25 = vld [vmem:[%s12841_s4] ss:$0 sm:$0xff]  ;;  %v4395_v15 = vsel %vm3457_vm4, %v4328_v43, 0.0  ;;  %v4327_v20 = vmul.f32 %v6091_v60, %v10514_v22  ;;  %v5958_v43 = vld [vmem:[%s12842_s5 + $0x1c8] sm:$0xff] }
 0x513   :  { %5068 = vadd.xlane.f32.xlu0 %v5067_v35  ;;  %3944 = vadd.xlane.f32.xlu1 %v3943_v39  ;;  %v5223_v50 = vsel %vm5221_vm6, %v5177_v28, %v3915_v34  ;;  %v3289_v3 = vadd.f32 %v10650_v25, %v10138_v59  ;;  %v3488_v34 = vsel %vm3457_vm4, %v3422_v58, 0.0  ;;  %v5006_v35 = vmul.f32 %v6227_v57, %v10579_v33 }
 0x514   :  { %v3466_v5 = vpop.xlane.xlu1 %3465  ;;  %v3940_v28 = vsel %vm3457_vm4, %v3875_v48, 0.0  ;;  %v4847_v52 = vsel %vm3457_vm4, %v4780_v23, 0.0  ;;  %v6048_v23 = vld [vmem:[%s12842_s5 + $0x498] sm:$0xff]  ;;  %v3290_v57 = vadd.f32 %v10650_v25, %v10150_v53  ;;  %v6138_v53 = vld [vmem:[%s12842_s5 + $0x768] sm:$0xff] }
 0x515   :  { %v4141_v24 = vpop.xlane.xlu0 %4140  ;;  %v10666_v1 = vmax.f32 %v3289_v3, 0.0  ;;  %v4392_v3 = vsel %vm3457_vm4, %v4327_v20, 0.0 }
 0x516   :  { %v5269_v38 = vsel %vm5267_vm7, %v5223_v50, %v4141_v24 }
 0x517   :  { %3489 = vadd.xlane.f32.xlu0 %v3488_v34  ;;  %4396 = vadd.xlane.f32.xlu1 %v4395_v15  ;;  %v5315_v59 = vsel %vm5313_vm8, %v5269_v38, %v4367_v16  ;;  %v6181_v16 = vld [vmem:[%s12842_s5 + $0x8c0] sm:$0xff]  ;;  %v3651_v34 = vmul.f32 %v5958_v43, %v10666_v1  ;;  %v4103_v20 = vmul.f32 %v6048_v23, %v10666_v1 }
 0x518   :  { %v3692_v55 = vpop.xlane.xlu1 %3691  ;;  %v4779_v38 = vmul.f32 %v6181_v16, %v10514_v22  ;;  %v3379_v23 = vld [vmem:[%s12842_s5 + $0x60] sm:$0xff] }
 0x519   :  { %v4593_v32 = vpop.xlane.xlu0 %4592  ;;  %v5178_v26 = vsel %vm5175_vm5, %v3466_v5, %v3692_v55 }
 0x51a   :  { %v5361_v39 = vsel %vm5359_vm9, %v5315_v59, %v4593_v32  ;;  %v4844_v32 = vsel %vm3457_vm4, %v4779_v38, 0.0 }
 0x51b   :  { %v5407_v58 = vsel %vm5405_vm10, %v5361_v39, %v4819_v18  ;;  %3941 = vadd.xlane.f32.xlu0 %v3940_v28  ;;  %4848 = vadd.xlane.f32.xlu1 %v4847_v52  ;;  %v5073_v18 = vsel %vm3457_vm4, %v5006_v35, 0.0  ;;  %v6047_v35 = vld [vmem:[%s12842_s5 + $0x490] sm:$0xff]  ;;  %v10711_v52 = vmax.f32 %v3290_v57, 0.0  ;;  %v6004_v57 = vld [vmem:[%s12842_s5 + $0x338] sm:$0xff] }
 0x51c   :  { %v5453_v41 = vsel %vm5451_vm11, %v5407_v58, %v5045_v0  ;;  %v4144_v50 = vpop.xlane.xlu1 %4143  ;;  %v5957_v0 = vld [vmem:[%s12842_s5 + $0x1c0] sm:$0xff]  ;;  %v4102_v16 = vmul.f32 %v6047_v35, %v10579_v33 }
 0x51d   :  { %v3918_v5 = vpop.xlane.xlu0 %3917  ;;  %v5499_v24 = vsel %vm5497_vm12, %v5453_v41, 0.0  ;;  %v3650_v59 = vmul.f32 %v5957_v0, %v10579_v33  ;;  %v3878_v35 = vmul.f32 %v6004_v57, %v10711_v52  ;;  %v6183_v57 = vld [vmem:[%s12842_s5 + $0x8d0] sm:$0xff] }
 0x51e   :  { %v5224_v48 = vsel %vm5221_vm6, %v5178_v26, %v3918_v5  ;;  %v5500_v15 = vadd.f32 %v5499_v24, %v5498_v31  ;;  %v3720_v26 = vsel %vm3457_vm4, %v3651_v34, 0.0  ;;  %v4555_v31 = vmul.f32 %v6138_v53, %v10666_v1  ;;  %v6137_v5 = vld [vmem:[%s12842_s5 + $0x760] sm:$0xff]  ;;  %v6094_v53 = vld [vmem:[%s12842_s5 + $0x608] sm:$0xff] }
 0x51f   :  { %v5270_v27 = vsel %vm5267_vm7, %v5224_v48, %v4144_v50  ;;  %4393 = vadd.xlane.f32.xlu0 %v4392_v3  ;;  %5074 = vadd.xlane.f32.xlu1 %v5073_v18  ;;  %v3717_v41 = vsel %vm3457_vm4, %v3650_v59, 0.0  ;;  %v4172_v50 = vsel %vm3457_vm4, %v4103_v20, 0.0  ;;  %v3380_v3 = vld [vmem:[%s12842_s5 + $0x68] sm:$0xff]  ;;  %v4169_v48 = vsel %vm3457_vm4, %v4102_v16, 0.0 }
 0x520   :  { %v4596_v60 = vpop.xlane.xlu1 %4595  ;;  %v4624_v34 = vsel %vm3457_vm4, %v4555_v31, 0.0  ;;  %v4554_v0 = vmul.f32 %v6137_v5, %v10579_v33  ;;  %v4330_v31 = vmul.f32 %v6094_v53, %v10711_v52  ;;  %v6228_v53 = vld [vmem:[%s12842_s5 + $0xa38] sm:$0xff] }
 0x521   :  { %v4370_v22 = vpop.xlane.xlu0 %4369 }
 0x522   :  { %v5316_v55 = vsel %vm5313_vm8, %v5270_v27, %v4370_v22  ;;  %v3425_v27 = vmul.f32 %v3380_v3, %v10711_v52  ;;  %v6093_v3 = vld [vmem:[%s12842_s5 + $0x600] sm:$0xff] }
 0x523   :  { %v5362_v39 = vsel %vm5359_vm9, %v5316_v55, %v4596_v60  ;;  %4845 = vadd.xlane.f32.xlu0 %v4844_v32  ;;  %3721 = vadd.xlane.f32.xlu1 %v3720_v26  ;;  %v3424_v32 = vmul.f32 %v3379_v23, %v10666_v1  ;;  %v4621_v26 = vsel %vm3457_vm4, %v4554_v0, 0.0  ;;  %v4329_v23 = vmul.f32 %v6093_v3, %v10666_v1 }
 0x524   :  { %v3469_v28 = vpop.xlane.xlu1 %3468  ;;  %v3497_v20 = vsel %vm3457_vm4, %v3425_v27, 0.0  ;;  %v4401_v27 = vsel %vm3457_vm4, %v4330_v31, 0.0 }
 0x525   :  { %v4822_v58 = vpop.xlane.xlu0 %4821 }
 0x526   :  { %v5408_v43 = vsel %vm5405_vm10, %v5362_v39, %v4822_v58  ;;  %v6003_v39 = vld [vmem:[%s12842_s5 + $0x330] sm:$0xff] }
 0x527   :  { %3718 = vadd.xlane.f32.xlu0 %v3717_v41  ;;  %4173 = vadd.xlane.f32.xlu1 %v4172_v50  ;;  %v3877_v16 = vmul.f32 %v6003_v39, %v10666_v1  ;;  %v3494_v41 = vsel %vm3457_vm4, %v3424_v32, 0.0  ;;  %v3949_v50 = vsel %vm3457_vm4, %v3878_v35, 0.0  ;;  %v4398_v35 = vsel %vm3457_vm4, %v4329_v23, 0.0 }
 0x528   :  { %v3921_v18 = vpop.xlane.xlu1 %3920 }
 0x529   :  { %v5048_v24 = vpop.xlane.xlu0 %5047 }
 0x52a   :  { %v5454_v38 = vsel %vm5451_vm11, %v5408_v43, %v5048_v24 }
 0x52b   :  { %v5501_v60 = vsel %vm5497_vm12, %v5454_v38, 0.0  ;;  %4170 = vadd.xlane.f32.xlu0 %v4169_v48  ;;  %4625 = vadd.xlane.f32.xlu1 %v4624_v34  ;;  %v3291_v48 = vadd.f32 %v10650_v25, %v10168_v29  ;;  %v3946_v34 = vsel %vm3457_vm4, %v3877_v16, 0.0  ;;  %v6229_v29 = vld [vmem:[%s12842_s5 + $0xa40] sm:$0xff] }
 0x52c   :  { %v5502_v22 = vadd.f32 %v5501_v60, %v5500_v15  ;;  %v4373_v59 = vpop.xlane.xlu1 %4372 }
 0x52d   :  { %v3695_v55 = vpop.xlane.xlu0 %3694  ;;  %v10774_v32 = vmax.f32 %v3291_v48, 0.0  ;;  %v5959_v48 = vld [vmem:[%s12842_s5 + $0x1d0] sm:$0xff] }
 0x52e   :  { %v5179_v33 = vsel %vm5175_vm5, %v3469_v28, %v3695_v55  ;;  %v3652_v23 = vmul.f32 %v5959_v48, %v10711_v52 }
 0x52f   :  { %4622 = vadd.xlane.f32.xlu0 %v4621_v26  ;;  %3498 = vadd.xlane.f32.xlu1 %v3497_v20  ;;  %v5225_v15 = vsel %vm5221_vm6, %v5179_v33, %v3921_v18  ;;  %v6184_v18 = vld [vmem:[%s12842_s5 + $0x8d8] sm:$0xff]  ;;  %v4781_v26 = vmul.f32 %v6183_v57, %v10666_v1  ;;  %v6049_v57 = vld [vmem:[%s12842_s5 + $0x4a0] sm:$0xff] }
 0x530   :  { %v4825_v58 = vpop.xlane.xlu1 %4824  ;;  %v4782_v60 = vmul.f32 %v6184_v18, %v10711_v52 }
 0x531   :  { %v4147_v28 = vpop.xlane.xlu0 %4146 }
 0x532   :  { %v5271_v43 = vsel %vm5267_vm7, %v5225_v15, %v4147_v28  ;;  %v4853_v39 = vsel %vm3457_vm4, %v4782_v60, 0.0  ;;  %v5008_v15 = vmul.f32 %v6229_v29, %v10711_v52  ;;  %v5960_v28 = vld [vmem:[%s12842_s5 + $0x1d8] sm:$0xff] }
 0x533   :  { %3495 = vadd.xlane.f32.xlu0 %v3494_v41  ;;  %3950 = vadd.xlane.f32.xlu1 %v3949_v50  ;;  %v5317_v5 = vsel %vm5313_vm8, %v5271_v43, %v4373_v59  ;;  %v5007_v50 = vmul.f32 %v6228_v53, %v10666_v1  ;;  %v3653_v18 = vmul.f32 %v5960_v28, %v10774_v32  ;;  %v3382_v28 = vld [vmem:[%s12842_s5 + $0x78] sm:$0xff] }
 0x534   :  { %v3698_v24 = vpop.xlane.xlu1 %3697  ;;  %v5079_v3 = vsel %vm3457_vm4, %v5008_v15, 0.0  ;;  %v3292_v1 = vadd.f32 %v10650_v25, %v10180_v30  ;;  %v6140_v30 = vld [vmem:[%s12842_s5 + $0x778] sm:$0xff] }
 0x535   :  { %v4599_v38 = vpop.xlane.xlu0 %4598  ;;  %v4557_v53 = vmul.f32 %v6140_v30, %v10774_v32 }
 0x536   :  { %v5363_v0 = vsel %vm5359_vm9, %v5317_v5, %v4599_v38  ;;  %v4850_v5 = vsel %vm3457_vm4, %v4781_v26, 0.0 }
 0x537   :  { %3947 = vadd.xlane.f32.xlu0 %v3946_v34  ;;  %4402 = vadd.xlane.f32.xlu1 %v4401_v27  ;;  %v5409_v59 = vsel %vm5405_vm10, %v5363_v0, %v4825_v58  ;;  %v5076_v34 = vsel %vm3457_vm4, %v5007_v50, 0.0  ;;  %v3726_v27 = vsel %vm3457_vm4, %v3653_v18, 0.0  ;;  %v4630_v18 = vsel %vm3457_vm4, %v4557_v53, 0.0 }
 0x538   :  { %v4150_v55 = vpop.xlane.xlu1 %4149 }
 0x539   :  { %v5051_v33 = vpop.xlane.xlu0 %5050 }
 0x53a   :  { %v5455_v20 = vsel %vm5451_vm11, %v5409_v59, %v5051_v33  ;;  %v10813_v33 = vmax.f32 %v3292_v1, 0.0 }
 0x53b   :  { %v5503_v58 = vsel %vm5497_vm12, %v5455_v20, 0.0  ;;  %4399 = vadd.xlane.f32.xlu0 %v4398_v35  ;;  %4854 = vadd.xlane.f32.xlu1 %v4853_v39  ;;  %v4104_v20 = vmul.f32 %v6049_v57, %v10711_v52  ;;  %v3723_v39 = vsel %vm3457_vm4, %v3652_v23, 0.0 }
 0x53c   :  { %v5504_v16 = vadd.f32 %v5503_v58, %v5502_v22  ;;  %v4602_v43 = vpop.xlane.xlu1 %4601  ;;  %v6050_v22 = vld [vmem:[%s12842_s5 + $0x4a8] sm:$0xff]  ;;  %v3427_v48 = vmul.f32 %v3382_v28, %v10813_v33 }
 0x53d   :  { %v3472_v41 = vpop.xlane.xlu0 %3471  ;;  %v4105_v60 = vmul.f32 %v6050_v22, %v10774_v32  ;;  %v6006_v22 = vld [vmem:[%s12842_s5 + $0x348] sm:$0xff] }
 0x53e   :  { %v5180_v31 = vsel %vm5175_vm5, %v3472_v41, %v3698_v24  ;;  %v3880_v23 = vmul.f32 %v6006_v22, %v10813_v33  ;;  %v6186_v28 = vld [vmem:[%s12842_s5 + $0x8e8] sm:$0xff]  ;;  %v6185_v22 = vld [vmem:[%s12842_s5 + $0x8e0] sm:$0xff] }
 0x53f   :  { %4851 = vadd.xlane.f32.xlu0 %v4850_v5  ;;  %5080 = vadd.xlane.f32.xlu1 %v5079_v3  ;;  %v4178_v15 = vsel %vm3457_vm4, %v4105_v60, 0.0  ;;  %v4175_v3 = vsel %vm3457_vm4, %v4104_v20, 0.0  ;;  %v6005_v60 = vld [vmem:[%s12842_s5 + $0x340] sm:$0xff] }
 0x540   :  { %v3475_v38 = vpop.xlane.xlu1 %3474  ;;  %v3955_v53 = vsel %vm3457_vm4, %v3880_v23, 0.0 }
 0x541   :  { %v3924_v24 = vpop.xlane.xlu0 %3923 }
 0x542   :  { %v5226_v0 = vsel %vm5221_vm6, %v5180_v31, %v3924_v24 }
 0x543   :  { %5077 = vadd.xlane.f32.xlu0 %v5076_v34  ;;  %3727 = vadd.xlane.f32.xlu1 %v3726_v27  ;;  %v5272_v59 = vsel %vm5267_vm7, %v5226_v0, %v4150_v55  ;;  %v6139_v55 = vld [vmem:[%s12842_s5 + $0x770] sm:$0xff]  ;;  %v3503_v0 = vsel %vm3457_vm4, %v3427_v48, 0.0 }
 0x544   :  { %v3927_v29 = vpop.xlane.xlu1 %3926  ;;  %v4556_v31 = vmul.f32 %v6139_v55, %v10711_v52 }
 0x545   :  { %v4376_v26 = vpop.xlane.xlu0 %4375 }
 0x546   :  { %v5318_v35 = vsel %vm5313_vm8, %v5272_v59, %v4376_v26  ;;  %v4627_v24 = vsel %vm3457_vm4, %v4556_v31, 0.0  ;;  %v6096_v59 = vld [vmem:[%s12842_s5 + $0x618] sm:$0xff] }
 0x547   :  { %3724 = vadd.xlane.f32.xlu0 %v3723_v39  ;;  %4179 = vadd.xlane.f32.xlu1 %v4178_v15  ;;  %v5364_v58 = vsel %vm5359_vm9, %v5318_v35, %v4602_v43  ;;  %v3381_v43 = vld [vmem:[%s12842_s5 + $0x70] sm:$0xff]  ;;  %v3879_v35 = vmul.f32 %v6005_v60, %v10774_v32  ;;  %v4332_v55 = vmul.f32 %v6096_v59, %v10813_v33 }
 0x548   :  { %v4379_v41 = vpop.xlane.xlu1 %4378  ;;  %v3426_v27 = vmul.f32 %v3381_v43, %v10774_v32 }
 0x549   :  { %v4828_v50 = vpop.xlane.xlu0 %4827  ;;  %v4407_v48 = vsel %vm3457_vm4, %v4332_v55, 0.0 }
 0x54a   :  { %v5410_v5 = vsel %vm5405_vm10, %v5364_v58, %v4828_v50  ;;  %v3500_v15 = vsel %vm3457_vm4, %v3426_v27, 0.0  ;;  %v6095_v58 = vld [vmem:[%s12842_s5 + $0x610] sm:$0xff] }
 0x54b   :  { %4176 = vadd.xlane.f32.xlu0 %v4175_v3  ;;  %4631 = vadd.xlane.f32.xlu1 %v4630_v18  ;;  %v3952_v18 = vsel %vm3457_vm4, %v3879_v35, 0.0 }
 0x54c   :  { %v4831_v1 = vpop.xlane.xlu1 %4830 }
 0x54d   :  { %v5054_v52 = vpop.xlane.xlu0 %5053 }
 0x54e   :  { %v5456_v34 = vsel %vm5451_vm11, %v5410_v5, %v5054_v52  ;;  %v4331_v5 = vmul.f32 %v6095_v58, %v10774_v32 }
 0x54f   :  { %v5505_v57 = vsel %vm5497_vm12, %v5456_v34, 0.0  ;;  %4628 = vadd.xlane.f32.xlu0 %v4627_v24  ;;  %3504 = vadd.xlane.f32.xlu1 %v3503_v0 }
 0x550   :  { %v5506_v30 = vadd.f32 %v5505_v57, %v5504_v16  ;;  %v3704_v26 = vpop.xlane.xlu1 %3703  ;;  %v4404_v0 = vsel %vm3457_vm4, %v4331_v5, 0.0  ;;  %v6230_v57 = vld [vmem:[%s12842_s5 + $0xa48] sm:$0xff] }
 0x551   :  { %v3701_v20 = vpop.xlane.xlu0 %3700 }
 0x552   :  { %v5181_v39 = vsel %vm5175_vm5, %v3475_v38, %v3701_v20  ;;  %v3293_v38 = vadd.f32 %v10650_v25, %v10198_v63  ;;  %v6231_v63 = vld [vmem:[%s12842_s5 + $0xa50] sm:$0xff]  ;;  %v5962_v20 = vld [vmem:[%s12842_s5 + $0x1e8] sm:$0xff] }
 0x553   :  { %3501 = vadd.xlane.f32.xlu0 %v3500_v15  ;;  %3956 = vadd.xlane.f32.xlu1 %v3955_v53  ;;  %v5227_v16 = vsel %vm5221_vm6, %v5181_v39, %v3927_v29  ;;  %v4784_v29 = vmul.f32 %v6186_v28, %v10813_v33  ;;  %v5010_v60 = vmul.f32 %v6231_v63, %v10813_v33 }
 0x554   :  { %v10862_v50 = vpop.xlane.xlu1 %4155  ;;  %v10880_v24 = vmax.f32 %v3293_v38, 0.0  ;;  %v5009_v15 = vmul.f32 %v6230_v57, %v10774_v32  ;;  %v6141_v57 = vld [vmem:[%s12842_s5 + $0x780] sm:$0xff] }
 0x555   :  { %v4153_v31 = vpop.xlane.xlu0 %4152  ;;  %v4859_v23 = vsel %vm3457_vm4, %v4784_v29, 0.0  ;;  %v5085_v58 = vsel %vm3457_vm4, %v5010_v60, 0.0 }
 0x556   :  { %v5273_v3 = vsel %vm5267_vm7, %v5227_v16, %v4153_v31  ;;  %v3655_v16 = vmul.f32 %v5962_v20, %v10880_v24 }
 0x557   :  { %3953 = vadd.xlane.f32.xlu0 %v3952_v18  ;;  %4408 = vadd.xlane.f32.xlu1 %v4407_v48  ;;  %v5319_v43 = vsel %vm5313_vm8, %v5273_v3, %v4379_v41  ;;  %v4783_v41 = vmul.f32 %v6185_v22, %v10774_v32  ;;  %v6052_v32 = vld [vmem:[%s12842_s5 + $0x4b8] sm:$0xff]  ;;  %v5082_v48 = vsel %vm3457_vm4, %v5009_v15, 0.0  ;;  %v6051_v22 = vld [vmem:[%s12842_s5 + $0x4b0] sm:$0xff] }
 0x558   :  { %v10878_v52 = vpop.xlane.xlu1 %4607  ;;  %v3732_v29 = vsel %vm3457_vm4, %v3655_v16, 0.0 }
 0x559   :  { %v4605_v34 = vpop.xlane.xlu0 %4604  ;;  %v4856_v55 = vsel %vm3457_vm4, %v4783_v41, 0.0  ;;  %v4106_v41 = vmul.f32 %v6051_v22, %v10813_v33 }
 0x55a   :  { %v5365_v27 = vsel %vm5359_vm9, %v5319_v43, %v4605_v34  ;;  %v4107_v43 = vmul.f32 %v6052_v32, %v10880_v24  ;;  %v3384_v32 = vld [vmem:[%s12842_s5 + $0x88] sm:$0xff] }
 0x55b   :  { %4405 = vadd.xlane.f32.xlu0 %v4404_v0  ;;  %4860 = vadd.xlane.f32.xlu1 %v4859_v23  ;;  %v5411_v59 = vsel %vm5405_vm10, %v5365_v27, %v4831_v1  ;;  %v5961_v1 = vld [vmem:[%s12842_s5 + $0x1e0] sm:$0xff]  ;;  %v4181_v16 = vsel %vm3457_vm4, %v4106_v41, 0.0 }
 0x55c   :  { %v5060_v35 = vpop.xlane.xlu1 %5059  ;;  %v3654_v3 = vmul.f32 %v5961_v1, %v10813_v33  ;;  %v4184_v23 = vsel %vm3457_vm4, %v4107_v43, 0.0 }
 0x55d   :  { %v5057_v39 = vpop.xlane.xlu0 %5056 }
 0x55e   :  { %v10896_v53 = vsel %vm5451_vm11, %v5411_v59, %v5057_v39  ;;  %v3729_v0 = vsel %vm3457_vm4, %v3654_v3, 0.0  ;;  %v6232_v59 = vld [vmem:[%s12842_s5 + $0xa58] sm:$0xff] }
 0x55f   :  { %v5508_v28 = vsel %vm5507_vm13, %v10896_v53, 0.0  ;;  %4857 = vadd.xlane.f32.xlu0 %v4856_v55  ;;  %5086 = vadd.xlane.f32.xlu1 %v5085_v58  ;;  %v4558_v55 = vmul.f32 %v6141_v57, %v10813_v33 }
 0x560   :  { %v10909_v38 = vadd.f32 %v5508_v28, %v5506_v30  ;;  %v3481_v31 = vpop.xlane.xlu1 %3480  ;;  %v6142_v30 = vld [vmem:[%s12842_s5 + $0x788] sm:$0xff]  ;;  %v5011_v28 = vmul.f32 %v6232_v59, %v10880_v24 }
 0x561   :  { %v3478_v5 = vpop.xlane.xlu0 %3477  ;;  %v4559_v60 = vmul.f32 %v6142_v30, %v10880_v24  ;;  %v4633_v43 = vsel %vm3457_vm4, %v4558_v55, 0.0  ;;  %v6098_v55 = vld [vmem:[%s12842_s5 + $0x628] sm:$0xff] }
 0x562   :  { %v5182_v18 = vsel %vm5175_vm5, %v3478_v5, %v3704_v26  ;;  %v3294_v26 = vadd.f32 %v10650_v25, %v10210_v36  ;;  %v5088_v22 = vsel %vm3457_vm4, %v5011_v28, 0.0 }
 0x563   :  { %5083 = vadd.xlane.f32.xlu0 %v5082_v48  ;;  %3733 = vadd.xlane.f32.xlu1 %v3732_v29  ;;  %v4636_v1 = vsel %vm3457_vm4, %v4559_v60, 0.0 }
 0x564   :  { %v3933_v63 = vpop.xlane.xlu1 %3932  ;;  %v10937_v39 = vmax.f32 %v3294_v26, 0.0  ;;  %v6008_v26 = vld [vmem:[%s12842_s5 + $0x358] sm:$0xff] }
 0x565   :  { %v3930_v34 = vpop.xlane.xlu0 %3929 }
 0x566   :  { %v5228_v27 = vsel %vm5221_vm6, %v5182_v18, %v3930_v34  ;;  %v3429_v48 = vmul.f32 %v3384_v32, %v10937_v39  ;;  %v5524_v34 = vrot.slane %v10896_v53, 5  ;;  %v3882_v59 = vmul.f32 %v6008_v26, %v10937_v39 }
 0x567   :  { %3730 = vadd.xlane.f32.xlu0 %v3729_v0  ;;  %4185 = vadd.xlane.f32.xlu1 %v4184_v23  ;;  %v5274_v36 = vsel %vm5267_vm7, %v5228_v27, %v10862_v50  ;;  %v3383_v50 = vld [vmem:[%s12842_s5 + $0x80] sm:$0xff] }
 0x568   :  { %v4385_v20 = vpop.xlane.xlu1 %4384  ;;  %v3428_v18 = vmul.f32 %v3383_v50, %v10880_v24  ;;  %v3509_v60 = vsel %vm3457_vm4, %v3429_v48, 0.0  ;;  %v3961_v32 = vsel %vm3457_vm4, %v3882_v59, 0.0 }
 0x569   :  { %v4382_v15 = vpop.xlane.xlu0 %4381 }
 0x56a   :  { %v5320_v58 = vsel %vm5313_vm8, %v5274_v36, %v4382_v15  ;;  %v3506_v41 = vsel %vm3457_vm4, %v3428_v18, 0.0  ;;  %v6097_v15 = vld [vmem:[%s12842_s5 + $0x620] sm:$0xff] }
 0x56b   :  { %4182 = vadd.xlane.f32.xlu0 %v4181_v16  ;;  %4637 = vadd.xlane.f32.xlu1 %v4636_v1  ;;  %v5366_v33 = vsel %vm5359_vm9, %v5320_v58, %v10878_v52  ;;  %v6007_v52 = vld [vmem:[%s12842_s5 + $0x350] sm:$0xff]  ;;  %v4333_v1 = vmul.f32 %v6097_v15, %v10880_v24 }
 0x56c   :  { %v4837_v5 = vpop.xlane.xlu1 %4836  ;;  %v3881_v36 = vmul.f32 %v6007_v52, %v10880_v24 }
 0x56d   :  { %v4834_v3 = vpop.xlane.xlu0 %4833 }
 0x56e   :  { %v5412_v29 = vsel %vm5405_vm10, %v5366_v33, %v4834_v3  ;;  %v3958_v50 = vsel %vm3457_vm4, %v3881_v36, 0.0  ;;  %v6187_v33 = vld [vmem:[%s12842_s5 + $0x8f0] sm:$0xff] }
 0x56f   :  { %v5458_v30 = vsel %vm5451_vm11, %v5412_v29, %v5060_v35  ;;  %4634 = vadd.xlane.f32.xlu0 %v4633_v43  ;;  %5089 = vadd.xlane.f32.xlu1 %v5088_v22  ;;  %v4785_v43 = vmul.f32 %v6187_v33, %v10880_v24  ;;  %v5964_v24 = vld [vmem:[%s12842_s5 + $0x1f8] sm:$0xff] }
 0x570   :  { %v5525_v0 = vrot.slane %v5458_v30, 5  ;;  %v3710_v27 = vpop.xlane.xlu1 %3709  ;;  %v4410_v30 = vsel %vm3457_vm4, %v4333_v1, 0.0 }
 0x571   :  { %v3707_v23 = vpop.xlane.xlu0 %3706  ;;  %v4862_v36 = vsel %vm3457_vm4, %v4785_v43, 0.0  ;;  %v6144_v43 = vld [vmem:[%s12842_s5 + $0x798] sm:$0xff] }
 0x572   :  { %v5526_v35 = vsel %vm5523_vm14, %v5524_v34, %v5525_v0  ;;  %v5183_v57 = vsel %vm5175_vm5, %v3481_v31, %v3707_v23  ;;  %v3295_v31 = vadd.f32 %v10650_v25, %v10230_v51  ;;  %v6188_v51 = vld [vmem:[%s12842_s5 + $0x8f8] sm:$0xff] }
 0x573   :  { %3507 = vadd.xlane.f32.xlu0 %v3506_v41  ;;  %3510 = vadd.xlane.f32.xlu1 %v3509_v60  ;;  %v5229_v53 = vsel %vm5221_vm6, %v5183_v57, %v3933_v63  ;;  %v4334_v63 = vmul.f32 %v6098_v55, %v10937_v39  ;;  %v4786_v26 = vmul.f32 %v6188_v51, %v10937_v39 }
 0x574   :  { %v10978_v58 = vpop.xlane.xlu1 %4161  ;;  %v10996_v48 = vmax.f32 %v3295_v31, 0.0 }
 0x575   :  { %v4159_v16 = vpop.xlane.xlu0 %4158  ;;  %v4413_v52 = vsel %vm3457_vm4, %v4334_v63, 0.0  ;;  %v4865_v59 = vsel %vm3457_vm4, %v4786_v26, 0.0  ;;  %v5543_v63 = vsel %vm5497_vm12, %v5526_v35, 0.0  ;;  %v3296_v35 = vadd.f32 %v10650_v25, %v10242_v54  ;;  %v6233_v54 = vld [vmem:[%s12842_s5 + $0xa60] sm:$0xff] }
 0x576   :  { %v5275_v28 = vsel %vm5267_vm7, %v5229_v53, %v4159_v16  ;;  %v3657_v15 = vmul.f32 %v5964_v24, %v10996_v48  ;;  %v6054_v53 = vld [vmem:[%s12842_s5 + $0x4c8] sm:$0xff] }
 0x577   :  { %3959 = vadd.xlane.f32.xlu0 %v3958_v50  ;;  %3962 = vadd.xlane.f32.xlu1 %v3961_v32  ;;  %v5321_v3 = vsel %vm5313_vm8, %v5275_v28, %v4385_v20  ;;  %v5963_v20 = vld [vmem:[%s12842_s5 + $0x1f0] sm:$0xff]  ;;  %v4109_v32 = vmul.f32 %v6054_v53, %v10996_v48 }
 0x578   :  { %v10994_v18 = vpop.xlane.xlu1 %4613  ;;  %v3656_v60 = vmul.f32 %v5963_v20, %v10937_v39  ;;  %v3738_v51 = vsel %vm3457_vm4, %v3657_v15, 0.0 }
 0x579   :  { %v4611_v29 = vpop.xlane.xlu0 %4610  ;;  %v4190_v20 = vsel %vm3457_vm4, %v4109_v32, 0.0 }
 0x57a   :  { %v5367_v22 = vsel %vm5359_vm9, %v5321_v3, %v4611_v29  ;;  %v3735_v28 = vsel %vm3457_vm4, %v3656_v60, 0.0  ;;  %v6143_v29 = vld [vmem:[%s12842_s5 + $0x790] sm:$0xff] }
 0x57b   :  { %4411 = vadd.xlane.f32.xlu0 %v4410_v30  ;;  %4414 = vadd.xlane.f32.xlu1 %v4413_v52  ;;  %v5413_v34 = vsel %vm5405_vm10, %v5367_v22, %v4837_v5  ;;  %v6053_v5 = vld [vmem:[%s12842_s5 + $0x4c0] sm:$0xff]  ;;  %v4560_v30 = vmul.f32 %v6143_v29, %v10937_v39 }
 0x57c   :  { %v11010_v23 = vpop.xlane.xlu1 %3486  ;;  %v4108_v50 = vmul.f32 %v6053_v5, %v10937_v39 }
 0x57d   :  { %v5063_v41 = vpop.xlane.xlu0 %5062  ;;  %v4639_v15 = vsel %vm3457_vm4, %v4560_v30, 0.0 }
 0x57e   :  { %v11014_v57 = vsel %vm5451_vm11, %v5413_v34, %v5063_v41  ;;  %v4187_v26 = vsel %vm3457_vm4, %v4108_v50, 0.0  ;;  %v4561_v34 = vmul.f32 %v6144_v43, %v10996_v48  ;;  %v6234_v41 = vld [vmem:[%s12842_s5 + $0xa68] sm:$0xff]  ;;  %v3386_v50 = vld [vmem:[%s12842_s5 + $0x98] sm:$0xff] }
 0x57f   :  { %v5527_v55 = vrot.slane %v11014_v57, 5  ;;  %4863 = vadd.xlane.f32.xlu0 %v4862_v36  ;;  %4866 = vadd.xlane.f32.xlu1 %v4865_v59  ;;  %v11065_v36 = vmax.f32 %v3296_v35, 0.0  ;;  %v6010_v43 = vld [vmem:[%s12842_s5 + $0x368] sm:$0xff]  ;;  %v6189_v57 = vld [vmem:[%s12842_s5 + $0x900] sm:$0xff] }
 0x580   :  { %v11026_v31 = vpop.xlane.xlu1 %3938  ;;  %v4642_v53 = vsel %vm3457_vm4, %v4561_v34, 0.0 }
 0x581   :  { %v5528_v16 = vsel %vm5523_vm14, %v5525_v0, %v5527_v55  ;;  %v3484_v1 = vpop.xlane.xlu0 %3483  ;;  %v3431_v29 = vmul.f32 %v3386_v50, %v11065_v36 }
 0x582   :  { %v5544_v33 = vsel %vm5497_vm12, %v5528_v16, 0.0  ;;  %v5184_v3 = vsel %vm5175_vm5, %v3484_v1, %v3710_v27  ;;  %v5013_v16 = vmul.f32 %v6234_v41, %v10996_v48  ;;  %v3385_v1 = vld [vmem:[%s12842_s5 + $0x90] sm:$0xff]  ;;  %v6100_v41 = vld [vmem:[%s12842_s5 + $0x638] sm:$0xff] }
 0x583   :  { %v11041_v0 = vadd.f32 %v5544_v33, %v5543_v63  ;;  %3736 = vadd.xlane.f32.xlu0 %v3735_v28  ;;  %3739 = vadd.xlane.f32.xlu1 %v3738_v51  ;;  %v3515_v34 = vsel %vm3457_vm4, %v3431_v29, 0.0  ;;  %v4336_v50 = vmul.f32 %v6100_v41, %v11065_v36 }
 0x584   :  { %v11046_v22 = vpop.xlane.xlu1 %4390  ;;  %v5094_v51 = vsel %vm3457_vm4, %v5013_v16, 0.0 }
 0x585   :  { %v3936_v27 = vpop.xlane.xlu0 %3935 }
 0x586   :  { %v5230_v52 = vsel %vm5221_vm6, %v5184_v3, %v3936_v27 }
 0x587   :  { %4188 = vadd.xlane.f32.xlu0 %v4187_v26  ;;  %4191 = vadd.xlane.f32.xlu1 %v4190_v20  ;;  %v5276_v24 = vsel %vm5267_vm7, %v5230_v52, %v10978_v58  ;;  %v5012_v58 = vmul.f32 %v6233_v54, %v10937_v39  ;;  %v3430_v39 = vmul.f32 %v3385_v1, %v10996_v48  ;;  %v6099_v54 = vld [vmem:[%s12842_s5 + $0x630] sm:$0xff] }
 0x588   :  { %v11063_v60 = vpop.xlane.xlu1 %4842  ;;  %v3884_v52 = vmul.f32 %v6010_v43, %v11065_v36  ;;  %v5965_v43 = vld [vmem:[%s12842_s5 + $0x200] sm:$0xff] }
 0x589   :  { %v4388_v59 = vpop.xlane.xlu0 %4387  ;;  %v5091_v3 = vsel %vm3457_vm4, %v5012_v58, 0.0  ;;  %v3512_v20 = vsel %vm3457_vm4, %v3430_v39, 0.0  ;;  %v6190_v39 = vld [vmem:[%s12842_s5 + $0x908] sm:$0xff] }
 0x58a   :  { %v5322_v5 = vsel %vm5313_vm8, %v5276_v24, %v4388_v59  ;;  %v3967_v58 = vsel %vm3457_vm4, %v3884_v52, 0.0 }
 0x58b   :  { %4640 = vadd.xlane.f32.xlu0 %v4639_v15  ;;  %4643 = vadd.xlane.f32.xlu1 %v4642_v53  ;;  %v5368_v28 = vsel %vm5359_vm9, %v5322_v5, %v10994_v18  ;;  %v6009_v18 = vld [vmem:[%s12842_s5 + $0x360] sm:$0xff] }
 0x58c   :  { %v11080_v32 = vpop.xlane.xlu1 %3715  ;;  %v3883_v30 = vmul.f32 %v6009_v18, %v10996_v48  ;;  %v4419_v18 = vsel %vm3457_vm4, %v4336_v50, 0.0 }
 0x58d   :  { %v4840_v63 = vpop.xlane.xlu0 %4839 }
 0x58e   :  { %v5414_v33 = vsel %vm5405_vm10, %v5368_v28, %v4840_v63  ;;  %v3964_v53 = vsel %vm3457_vm4, %v3883_v30, 0.0  ;;  %v4335_v28 = vmul.f32 %v6099_v54, %v10996_v48 }
 0x58f   :  { %5092 = vadd.xlane.f32.xlu0 %v5091_v3  ;;  %5095 = vadd.xlane.f32.xlu1 %v5094_v51  ;;  %v4787_v51 = vmul.f32 %v6189_v57, %v10996_v48  ;;  %v6235_v48 = vld [vmem:[%s12842_s5 + $0xa70] sm:$0xff]  ;;  %v6145_v57 = vld [vmem:[%s12842_s5 + $0x7a0] sm:$0xff] }
 0x590   :  { %v11093_v35 = vpop.xlane.xlu1 %4167  ;;  %v5014_v41 = vmul.f32 %v6235_v48, %v11065_v36 }
 0x591   :  { %v5066_v27 = vpop.xlane.xlu0 %5065 }
 0x592   :  { %v11098_v26 = vsel %vm5451_vm11, %v5414_v33, %v5066_v27  ;;  %v3297_v33 = vadd.f32 %v10650_v25, %v10258_v42 }
 0x593   :  { %v5529_v24 = vrot.slane %v11098_v26, 5  ;;  %3513 = vadd.xlane.f32.xlu0 %v3512_v20  ;;  %3516 = vadd.xlane.f32.xlu1 %v3515_v34  ;;  %v3658_v26 = vmul.f32 %v5965_v43, %v11065_v36  ;;  %v4868_v34 = vsel %vm3457_vm4, %v4787_v51, 0.0 }
 0x594   :  { %v11109_v59 = vpop.xlane.xlu1 %4619  ;;  %v11149_v30 = vmax.f32 %v3297_v33, 0.0 }
 0x595   :  { %v5530_v15 = vsel %vm5523_vm14, %v5527_v55, %v5529_v24  ;;  %v3713_v5 = vpop.xlane.xlu0 %3712 }
 0x596   :  { %v5546_v16 = vsel %vm5497_vm12, %v5530_v15, 0.0  ;;  %v5185_v1 = vsel %vm5175_vm5, %v11010_v23, %v3713_v5  ;;  %v6055_v15 = vld [vmem:[%s12842_s5 + $0x4d0] sm:$0xff]  ;;  %v5966_v5 = vld [vmem:[%s12842_s5 + $0x208] sm:$0xff] }
 0x597   :  { %v5547_v55 = vadd.f32 %v5546_v16, %v11041_v0  ;;  %3965 = vadd.xlane.f32.xlu0 %v3964_v53  ;;  %3968 = vadd.xlane.f32.xlu1 %v3967_v58  ;;  %v5231_v63 = vsel %vm5221_vm6, %v5185_v1, %v11026_v31  ;;  %v4416_v0 = vsel %vm3457_vm4, %v4335_v28, 0.0  ;;  %v4788_v31 = vmul.f32 %v6190_v39, %v11065_v36 }
 0x598   :  { %v11130_v23 = vpop.xlane.xlu1 %5071  ;;  %v3741_v16 = vsel %vm3457_vm4, %v3658_v26, 0.0  ;;  %v5097_v28 = vsel %vm3457_vm4, %v5014_v41, 0.0  ;;  %v3659_v50 = vmul.f32 %v5966_v5, %v11149_v30 }
 0x599   :  { %v4165_v3 = vpop.xlane.xlu0 %4164  ;;  %v4871_v54 = vsel %vm3457_vm4, %v4788_v31, 0.0 }
 0x59a   :  { %v5277_v29 = vsel %vm5267_vm7, %v5231_v63, %v4165_v3  ;;  %v6056_v63 = vld [vmem:[%s12842_s5 + $0x4d8] sm:$0xff]  ;;  %v3298_v3 = vadd.f32 %v10650_v25, %v10270_v44  ;;  %v3744_v48 = vsel %vm3457_vm4, %v3659_v50, 0.0  ;;  %v6146_v44 = vld [vmem:[%s12842_s5 + $0x7a8] sm:$0xff] }
 0x59b   :  { %4417 = vadd.xlane.f32.xlu0 %v4416_v0  ;;  %4420 = vadd.xlane.f32.xlu1 %v4419_v18  ;;  %v5323_v42 = vsel %vm5313_vm8, %v5277_v29, %v11046_v22  ;;  %v4562_v0 = vmul.f32 %v6145_v57, %v11065_v36  ;;  %v4111_v18 = vmul.f32 %v6056_v63, %v11149_v30  ;;  %v6101_v57 = vld [vmem:[%s12842_s5 + $0x640] sm:$0xff] }
 0x59c   :  { %v11147_v27 = vpop.xlane.xlu1 %3492  ;;  %v4563_v26 = vmul.f32 %v6146_v44, %v11149_v30 }
 0x59d   :  { %v4617_v52 = vpop.xlane.xlu0 %4616 }
 0x59e   :  { %v5369_v20 = vsel %vm5359_vm9, %v5323_v42, %v4617_v52  ;;  %v11202_v52 = vmax.f32 %v3298_v3, 0.0  ;;  %v6012_v3 = vld [vmem:[%s12842_s5 + $0x378] sm:$0xff] }
 0x59f   :  { %4869 = vadd.xlane.f32.xlu0 %v4868_v34  ;;  %4872 = vadd.xlane.f32.xlu1 %v4871_v54  ;;  %v5415_v22 = vsel %vm5405_vm10, %v5369_v20, %v11063_v60  ;;  %v4110_v60 = vmul.f32 %v6055_v15, %v11065_v36  ;;  %v3387_v36 = vld [vmem:[%s12842_s5 + $0xa0] sm:$0xff]  ;;  %v4645_v34 = vsel %vm3457_vm4, %v4562_v0, 0.0  ;;  %v4196_v54 = vsel %vm3457_vm4, %v4111_v18, 0.0  ;;  %v3388_v15 = vld [vmem:[%s12842_s5 + $0xa8] sm:$0xff] }
 0x5a0   :  { %v11164_v53 = vpop.xlane.xlu1 %3944  ;;  %v4337_v0 = vmul.f32 %v6101_v57, %v11149_v30 }
 0x5a1   :  { %v5069_v58 = vpop.xlane.xlu0 %5068  ;;  %v4193_v42 = vsel %vm3457_vm4, %v4110_v60, 0.0 }
 0x5a2   :  { %v11168_v1 = vsel %vm5451_vm11, %v5415_v22, %v5069_v58  ;;  %v6011_v22 = vld [vmem:[%s12842_s5 + $0x370] sm:$0xff] }
 0x5a3   :  { %v5531_v39 = vrot.slane %v11168_v1, 5  ;;  %3742 = vadd.xlane.f32.xlu0 %v3741_v16  ;;  %5098 = vadd.xlane.f32.xlu1 %v5097_v28  ;;  %v4648_v16 = vsel %vm3457_vm4, %v4563_v26, 0.0  ;;  %v3885_v50 = vmul.f32 %v6011_v22, %v11149_v30  ;;  %v11252_v26 = vld [vmem:[%s12841_s4] ss:$0 sm:$0xff]  ;;  %v4422_v22 = vsel %vm3457_vm4, %v4337_v0, 0.0  ;;  %v6236_v1 = vld [vmem:[%s12842_s5 + $0xa78] sm:$0xff] }
 0x5a4   :  { %v11180_v33 = vpop.xlane.xlu1 %4396  ;;  %v5015_v57 = vmul.f32 %v6236_v1, %v11149_v30  ;;  %v6148_v1 = vld [vmem:[%s12842_s5 + $0x7b8] sm:$0xff] }
 0x5a5   :  { %v5532_v51 = vsel %vm5523_vm14, %v5529_v24, %v5531_v39  ;;  %v3490_v29 = vpop.xlane.xlu0 %3489 }
 0x5a6   :  { %v5548_v31 = vsel %vm5497_vm12, %v5532_v51, 0.0  ;;  %v5186_v43 = vsel %vm5175_vm5, %v3490_v29, %v11080_v32 }
 0x5a7   :  { %v5549_v25 = vadd.f32 %v5548_v31, %v5547_v55  ;;  %4194 = vadd.xlane.f32.xlu0 %v4193_v42  ;;  %3745 = vadd.xlane.f32.xlu1 %v3744_v48  ;;  %v3432_v55 = vmul.f32 %v3387_v36, %v11149_v30  ;;  %v3970_v31 = vsel %vm3457_vm4, %v3885_v50, 0.0  ;;  %v3886_v42 = vmul.f32 %v6012_v3, %v11202_v52  ;;  %v6102_v48 = vld [vmem:[%s12842_s5 + $0x648] sm:$0xff]  ;;  %v5967_v3 = vld [vmem:[%s12842_s5 + $0x210] sm:$0xff] }
 0x5a8   :  { %v11200_v24 = vpop.xlane.xlu1 %4848 }
 0x5a9   :  { %v3942_v32 = vpop.xlane.xlu0 %3941  ;;  %v3518_v60 = vsel %vm3457_vm4, %v3432_v55, 0.0  ;;  %v4338_v55 = vmul.f32 %v6102_v48, %v11202_v52 }
 0x5aa   :  { %v5232_v20 = vsel %vm5221_vm6, %v5186_v43, %v3942_v32 }
 0x5ab   :  { %4646 = vadd.xlane.f32.xlu0 %v4645_v34  ;;  %4197 = vadd.xlane.f32.xlu1 %v4196_v54  ;;  %v5278_v41 = vsel %vm5267_vm7, %v5232_v20, %v11093_v35  ;;  %v3433_v35 = vmul.f32 %v3388_v15, %v11202_v52  ;;  %v3299_v20 = vadd.f32 %v11252_v26, %v10290_v11  ;;  %v3973_v15 = vsel %vm3457_vm4, %v3886_v42, 0.0 }
 0x5ac   :  { %v11217_v5 = vpop.xlane.xlu1 %5074  ;;  %v5100_v42 = vsel %vm3457_vm4, %v5015_v57, 0.0 }
 0x5ad   :  { %v4394_v58 = vpop.xlane.xlu0 %4393  ;;  %v3521_v43 = vsel %vm3457_vm4, %v3433_v35, 0.0 }
 0x5ae   :  { %v5324_v28 = vsel %vm5313_vm8, %v5278_v41, %v4394_v58 }
 0x5af   :  { %4649 = vadd.xlane.f32.xlu1 %v4648_v16  ;;  %3519 = vadd.xlane.f32.xlu0 %v3518_v60  ;;  %v5370_v63 = vsel %vm5359_vm9, %v5324_v28, %v11109_v59  ;;  %v6191_v59 = vld [vmem:[%s12842_s5 + $0x910] sm:$0xff]  ;;  %v11276_v28 = vmax.f32 %v3299_v20, 0.0  ;;  %v6058_v20 = vld [vmem:[%s12842_s5 + $0x4e8] sm:$0xff] }
 0x5b0   :  { %v11232_v51 = vpop.xlane.xlu1 %3721  ;;  %v4789_v54 = vmul.f32 %v6191_v59, %v11149_v30 }
 0x5b1   :  { %v4846_v29 = vpop.xlane.xlu0 %4845 }
 0x5b2   :  { %v5416_v18 = vsel %vm5405_vm10, %v5370_v63, %v4846_v29  ;;  %v4874_v50 = vsel %vm3457_vm4, %v4789_v54, 0.0  ;;  %v5968_v29 = vld [vmem:[%s12842_s5 + $0x218] sm:$0xff] }
 0x5b3   :  { %v5462_v44 = vsel %vm5451_vm11, %v5416_v18, %v11130_v23  ;;  %3971 = vadd.xlane.f32.xlu0 %v3970_v31  ;;  %3522 = vadd.xlane.f32.xlu1 %v3521_v43  ;;  %v5510_v18 = vrot.slane %v10909_v38, 4  ;;  %v3660_v31 = vmul.f32 %v5967_v3, %v11202_v52  ;;  %v3661_v48 = vmul.f32 %v5968_v29, %v11276_v28  ;;  %v6237_v29 = vld [vmem:[%s12842_s5 + $0xa80] sm:$0xff] }
 0x5b4   :  { %v5533_v36 = vrot.slane %v5462_v44, 5  ;;  %v11247_v32 = vpop.xlane.xlu1 %4173 }
 0x5b5   :  { %v3719_v34 = vpop.xlane.xlu0 %3718 }
 0x5b6   :  { %v5534_v23 = vsel %vm5523_vm14, %v5531_v39, %v5533_v36  ;;  %v5187_v41 = vsel %vm5175_vm5, %v11147_v27, %v3719_v34  ;;  %v6192_v39 = vld [vmem:[%s12842_s5 + $0x918] sm:$0xff] }
 0x5b7   :  { %v5550_v58 = vsel %vm5497_vm12, %v5534_v23, 0.0  ;;  %4423 = vadd.xlane.f32.xlu0 %v4422_v22  ;;  %3974 = vadd.xlane.f32.xlu1 %v3973_v15  ;;  %v5233_v11 = vsel %vm5221_vm6, %v5187_v41, %v11164_v53  ;;  %v4425_v53 = vsel %vm3457_vm4, %v4338_v55, 0.0  ;;  %v4790_v63 = vmul.f32 %v6192_v39, %v11202_v52 }
 0x5b8   :  { %v5551_v27 = vadd.f32 %v5550_v58, %v5549_v25  ;;  %v11274_v16 = vpop.xlane.xlu1 %4625  ;;  %v5511_v55 = vadd.f32 %v5510_v18, %v10909_v38  ;;  %v3747_v15 = vsel %vm3457_vm4, %v3660_v31, 0.0  ;;  %v3750_v58 = vsel %vm3457_vm4, %v3661_v48, 0.0  ;;  %v6147_v38 = vld [vmem:[%s12842_s5 + $0x7b0] sm:$0xff] }
 0x5b9   :  { %v4171_v60 = vpop.xlane.xlu0 %4170  ;;  %v4877_v59 = vsel %vm3457_vm4, %v4790_v63, 0.0  ;;  %v4564_v3 = vmul.f32 %v6147_v38, %v11202_v52  ;;  %v5016_v48 = vmul.f32 %v6237_v29, %v11202_v52 }
 0x5ba   :  { %v5279_v35 = vsel %vm5267_vm7, %v5233_v11, %v4171_v60  ;;  %v4113_v11 = vmul.f32 %v6058_v20, %v11276_v28  ;;  %v3300_v60 = vadd.f32 %v11252_v26, %v10302_v49 }
 0x5bb   :  { %4875 = vadd.xlane.f32.xlu0 %v4874_v50  ;;  %4426 = vadd.xlane.f32.xlu1 %v4425_v53  ;;  %v5325_v25 = vsel %vm5313_vm8, %v5279_v35, %v11180_v33  ;;  %v6057_v33 = vld [vmem:[%s12842_s5 + $0x4e0] sm:$0xff]  ;;  %v5512_v50 = vrot.slane %v5511_v55, 2  ;;  %v5103_v38 = vsel %vm3457_vm4, %v5016_v48, 0.0 }
 0x5bc   :  { %v11291_v0 = vpop.xlane.xlu1 %3498  ;;  %v4112_v22 = vmul.f32 %v6057_v33, %v11202_v52  ;;  %v4202_v63 = vsel %vm3457_vm4, %v4113_v11, 0.0  ;;  %v11348_v31 = vmax.f32 %v3300_v60, 0.0  ;;  %v3390_v52 = vld [vmem:[%s12842_s5 + $0xb8] sm:$0xff]  ;;  %v6013_v60 = vld [vmem:[%s12842_s5 + $0x380] sm:$0xff] }
 0x5bd   :  { %v4623_v30 = vpop.xlane.xlu0 %4622  ;;  %v3887_v29 = vmul.f32 %v6013_v60, %v11276_v28 }
 0x5be   :  { %v5371_v43 = vsel %vm5359_vm9, %v5325_v25, %v4623_v30  ;;  %v4199_v53 = vsel %vm3457_vm4, %v4112_v22, 0.0  ;;  %v4565_v25 = vmul.f32 %v6148_v1, %v11276_v28 }
 0x5bf   :  { %v5417_v44 = vsel %vm5405_vm10, %v5371_v43, %v11200_v24  ;;  %5101 = vadd.xlane.f32.xlu0 %v5100_v42  ;;  %4878 = vadd.xlane.f32.xlu1 %v4877_v59  ;;  %v5513_v43 = vadd.f32 %v5512_v50, %v5511_v55  ;;  %v6014_v50 = vld [vmem:[%s12842_s5 + $0x388] sm:$0xff] }
 0x5c0   :  { %v11309_v34 = vsel %vm5451_vm11, %v5417_v44, %v11217_v5  ;;  %v11311_v54 = vpop.xlane.xlu1 %3950  ;;  %v4651_v44 = vsel %vm3457_vm4, %v4564_v3, 0.0  ;;  %v4654_v20 = vsel %vm3457_vm4, %v4565_v25, 0.0 }
 0x5c1   :  { %v5535_v23 = vrot.slane %v11309_v34, 5  ;;  %v3496_v41 = vpop.xlane.xlu0 %3495 }
 0x5c2   :  { %v5188_v24 = vsel %vm5175_vm5, %v3496_v41, %v11232_v51 }
 0x5c3   :  { %v5536_v5 = vsel %vm5523_vm14, %v5533_v36, %v5535_v23  ;;  %3748 = vadd.xlane.f32.xlu0 %v3747_v15  ;;  %3751 = vadd.xlane.f32.xlu1 %v3750_v58  ;;  %v3389_v23 = vld [vmem:[%s12842_s5 + $0xb0] sm:$0xff] }
 0x5c4   :  { %v5552_v51 = vsel %vm5507_vm13, %v5536_v5, 0.0  ;;  %v11329_v39 = vpop.xlane.xlu1 %4402  ;;  %v3434_v11 = vmul.f32 %v3389_v23, %v11276_v28  ;;  %v3976_v23 = vsel %vm3457_vm4, %v3887_v29, 0.0  ;;  %v6060_v29 = vld [vmem:[%s12842_s5 + $0x4f8] sm:$0xff] }
 0x5c5   :  { %v5553_v35 = vadd.f32 %v5552_v51, %v5551_v27  ;;  %v3948_v36 = vpop.xlane.xlu0 %3947  ;;  %v6238_v27 = vld [vmem:[%s12842_s5 + $0xa88] sm:$0xff]  ;;  %v3435_v51 = vmul.f32 %v3390_v52, %v11348_v31  ;;  %v6193_v52 = vld [vmem:[%s12842_s5 + $0x920] sm:$0xff] }
 0x5c6   :  { %v5234_v57 = vsel %vm5221_vm6, %v5188_v24, %v3948_v36  ;;  %v5514_v24 = vrot.slane %v5513_v43, 1 }
 0x5c7   :  { %v5554_v18 = vrot.slane %v5553_v35, 4  ;;  %4200 = vadd.xlane.f32.xlu0 %v4199_v53  ;;  %4203 = vadd.xlane.f32.xlu1 %v4202_v63  ;;  %v5280_v49 = vsel %vm5267_vm7, %v5234_v57, %v11247_v32  ;;  %v5017_v32 = vmul.f32 %v6238_v27, %v11276_v28  ;;  %v3524_v63 = vsel %vm3457_vm4, %v3434_v11, 0.0 }
 0x5c8   :  { %v11346_v30 = vpop.xlane.xlu1 %4854  ;;  %v5515_v36 = vadd.f32 %v5514_v24, %v5513_v43  ;;  %v3527_v25 = vsel %vm3457_vm4, %v3435_v51, 0.0  ;;  %v5565_v27 = vrot.slane %v11309_v34, 2  ;;  %v6104_v43 = vld [vmem:[%s12842_s5 + $0x658] sm:$0xff]  ;;  %v6194_v24 = vld [vmem:[%s12842_s5 + $0x928] sm:$0xff]  ;;  %v4791_v11 = vmul.f32 %v6193_v52, %v11276_v28 }
 0x5c9   :  { %v5555_v42 = vadd.f32 %v5554_v18, %v5553_v35  ;;  %v4400_v59 = vpop.xlane.xlu0 %4399  ;;  %v5106_v1 = vsel %vm3457_vm4, %v5017_v32, 0.0  ;;  %v3888_v18 = vmul.f32 %v6014_v50, %v11348_v31  ;;  %v4792_v51 = vmul.f32 %v6194_v24, %v11348_v31 }
 0x5ca   :  { %v5326_v33 = vsel %vm5313_vm8, %v5280_v49, %v4400_v59  ;;  %v6103_v49 = vld [vmem:[%s12842_s5 + $0x650] sm:$0xff] }
 0x5cb   :  { %v5556_v41 = vrot.slane %v5555_v42, 2  ;;  %4652 = vadd.xlane.f32.xlu0 %v4651_v44  ;;  %4655 = vadd.xlane.f32.xlu1 %v4654_v20  ;;  %v5372_v55 = vsel %vm5359_vm9, %v5326_v33, %v11274_v16  ;;  %v3301_v33 = vadd.f32 %v11252_v26, %v10318_v40  ;;  %v4339_v34 = vmul.f32 %v6103_v49, %v11276_v28  ;;  %v5970_v28 = vld [vmem:[%s12842_s5 + $0x228] sm:$0xff] }
 0x5cc   :  { %v11363_v22 = vpop.xlane.xlu1 %5080 }
 0x5cd   :  { %v5557_v15 = vadd.f32 %v5556_v41, %v5555_v42  ;;  %v4852_v58 = vpop.xlane.xlu0 %4851  ;;  %v3979_v41 = vsel %vm3457_vm4, %v3888_v18, 0.0 }
 0x5ce   :  { %v5418_v5 = vsel %vm5405_vm10, %v5372_v55, %v4852_v58  ;;  %v4340_v55 = vmul.f32 %v6104_v43, %v11348_v31 }
 0x5cf   :  { %v5558_v16 = vrot.slane %v5557_v15, 1  ;;  %5104 = vadd.xlane.f32.xlu0 %v5103_v38  ;;  %5107 = vadd.xlane.f32.xlu1 %v5106_v1  ;;  %v4428_v38 = vsel %vm3457_vm4, %v4339_v34, 0.0 }
 0x5d0   :  { %v3728_v35 = vpop.xlane.xlu1 %3727  ;;  %v4431_v1 = vsel %vm3457_vm4, %v4340_v55, 0.0 }
 0x5d1   :  { %v5559_v53 = vadd.f32 %v5558_v16, %v5557_v15  ;;  %v5078_v57 = vpop.xlane.xlu0 %5077  ;;  %v11412_v15 = vmax.f32 %v3301_v33, 0.0  ;;  %v5969_v16 = vld [vmem:[%s12842_s5 + $0x220] sm:$0xff] }
 0x5d2   :  { %v5464_v3 = vsel %vm5451_vm11, %v5418_v5, %v5078_v57  ;;  %v4883_v57 = vsel %vm3457_vm4, %v4792_v51, 0.0  ;;  %v6240_v51 = vld [vmem:[%s12842_s5 + $0xa98] sm:$0xff] }
 0x5d3   :  { %v5566_v42 = vrot.slane %v5464_v3, 2  ;;  %3525 = vadd.xlane.f32.xlu0 %v3524_v63  ;;  %3528 = vadd.xlane.f32.xlu1 %v3527_v25  ;;  %v11389_v59 = vsel %vm5605_vm15, %v5515_v36, %v5559_v53  ;;  %v4880_v36 = vsel %vm3457_vm4, %v4791_v11, 0.0  ;;  %v3662_v63 = vmul.f32 %v5969_v16, %v11348_v31  ;;  %v6059_v3 = vld [vmem:[%s12842_s5 + $0x4f0] sm:$0xff] }
 0x5d4   :  { %v11391_v48 = vpop.xlane.xlu1 %4179  ;;  %v4114_v33 = vmul.f32 %v6059_v3, %v11348_v31  ;;  %v3392_v3 = vld [vmem:[%s12842_s5 + $0xc8] sm:$0xff] }
 0x5d5   :  { %v5567_v44 = vsel %vm3088_vm3, %v5565_v27, %v5566_v42  ;;  %v3725_v20 = vpop.xlane.xlu0 %3724 }
 0x5d6   :  { %v5189_v32 = vsel %vm5175_vm5, %v11291_v0, %v3725_v20 }
 0x5d7   :  { %3977 = vadd.xlane.f32.xlu0 %v3976_v23  ;;  %3980 = vadd.xlane.f32.xlu1 %v3979_v41  ;;  %v5235_v40 = vsel %vm5221_vm6, %v5189_v32, %v11311_v54  ;;  %v4115_v32 = vmul.f32 %v6060_v29, %v11412_v15  ;;  %v5582_v41 = vsel %vm5497_vm12, %v5567_v44, 0.0 }
 0x5d8   :  { %v11410_v0 = vpop.xlane.xlu1 %4631 }
 0x5d9   :  { %v4177_v58 = vpop.xlane.xlu0 %4176 }
 0x5da   :  { %v5281_v5 = vsel %vm5267_vm7, %v5235_v40, %v4177_v58  ;;  %v3302_v40 = vadd.f32 %v11252_v26, %v10330_v45  ;;  %v6239_v45 = vld [vmem:[%s12842_s5 + $0xa90] sm:$0xff] }
 0x5db   :  { %4429 = vadd.xlane.f32.xlu0 %v4428_v38  ;;  %4432 = vadd.xlane.f32.xlu1 %v4431_v1  ;;  %v5327_v54 = vsel %vm5313_vm8, %v5281_v5, %v11329_v39  ;;  %v3663_v39 = vmul.f32 %v5970_v28, %v11412_v15  ;;  %v4205_v5 = vsel %vm3457_vm4, %v4114_v33, 0.0  ;;  %v4208_v38 = vsel %vm3457_vm4, %v4115_v32, 0.0 }
 0x5dc   :  { %v11427_v60 = vpop.xlane.xlu1 %3504  ;;  %v11484_v16 = vmax.f32 %v3302_v40, 0.0 }
 0x5dd   :  { %v4629_v50 = vpop.xlane.xlu0 %4628  ;;  %v3756_v34 = vsel %vm3457_vm4, %v3663_v39, 0.0 }
 0x5de   :  { %v5373_v53 = vsel %vm5359_vm9, %v5327_v54, %v4629_v50 }
 0x5df   :  { %v5419_v25 = vsel %vm5405_vm10, %v5373_v53, %v11346_v30  ;;  %4881 = vadd.xlane.f32.xlu0 %v4880_v36  ;;  %4884 = vadd.xlane.f32.xlu1 %v4883_v57  ;;  %v3753_v30 = vsel %vm3457_vm4, %v3662_v63, 0.0  ;;  %v5019_v57 = vmul.f32 %v6240_v51, %v11412_v15  ;;  %v3391_v63 = vld [vmem:[%s12842_s5 + $0xc0] sm:$0xff] }
 0x5e0   :  { %v11444_v18 = vsel %vm5451_vm11, %v5419_v25, %v11363_v22  ;;  %v11446_v49 = vpop.xlane.xlu1 %3956  ;;  %v6149_v22 = vld [vmem:[%s12842_s5 + $0x7c0] sm:$0xff] }
 0x5e1   :  { %v5568_v27 = vrot.slane %v11444_v18, 2  ;;  %v3502_v43 = vpop.xlane.xlu0 %3501  ;;  %v4566_v58 = vmul.f32 %v6149_v22, %v11348_v31 }
 0x5e2   :  { %v5190_v20 = vsel %vm5175_vm5, %v3502_v43, %v3728_v35  ;;  %v6150_v35 = vld [vmem:[%s12842_s5 + $0x7c8] sm:$0xff] }
 0x5e3   :  { %v5569_v23 = vsel %vm3088_vm3, %v5566_v42, %v5568_v27  ;;  %3754 = vadd.xlane.f32.xlu0 %v3753_v30  ;;  %3757 = vadd.xlane.f32.xlu1 %v3756_v34  ;;  %v4567_v1 = vmul.f32 %v6150_v35, %v11412_v15  ;;  %v4657_v50 = vsel %vm3457_vm4, %v4566_v58, 0.0  ;;  %v3437_v30 = vmul.f32 %v3392_v3, %v11484_v16  ;;  %v6016_v34 = vld [vmem:[%s12842_s5 + $0x398] sm:$0xff]  ;;  %v6105_v58 = vld [vmem:[%s12842_s5 + $0x660] sm:$0xff] }
 0x5e4   :  { %v11464_v55 = vpop.xlane.xlu1 %4408  ;;  %v5583_v52 = vsel %vm5497_vm12, %v5569_v23, 0.0  ;;  %v3890_v35 = vmul.f32 %v6016_v34, %v11484_v16 }
 0x5e5   :  { %v3954_v24 = vpop.xlane.xlu0 %3953  ;;  %v5584_v11 = vadd.f32 %v5583_v52, %v5582_v41  ;;  %v4660_v53 = vsel %vm3457_vm4, %v4567_v1, 0.0  ;;  %v3533_v40 = vsel %vm3457_vm4, %v3437_v30, 0.0 }
 0x5e6   :  { %v5236_v42 = vsel %vm5221_vm6, %v5190_v20, %v3954_v24  ;;  %v5112_v20 = vsel %vm3457_vm4, %v5019_v57, 0.0  ;;  %v3985_v51 = vsel %vm3457_vm4, %v3890_v35, 0.0  ;;  %v6061_v35 = vld [vmem:[%s12842_s5 + $0x500] sm:$0xff] }
 0x5e7   :  { %4206 = vadd.xlane.f32.xlu0 %v4205_v5  ;;  %4209 = vadd.xlane.f32.xlu1 %v4208_v38  ;;  %v5282_v44 = vsel %vm5267_vm7, %v5236_v42, %v11391_v48  ;;  %v5018_v48 = vmul.f32 %v6239_v45, %v11348_v31  ;;  %v3436_v31 = vmul.f32 %v3391_v63, %v11412_v15  ;;  %v6106_v42 = vld [vmem:[%s12842_s5 + $0x668] sm:$0xff] }
 0x5e8   :  { %v11482_v54 = vpop.xlane.xlu1 %4860  ;;  %v3303_v38 = vadd.f32 %v11252_v26, %v10350_v7  ;;  %v6195_v7 = vld [vmem:[%s12842_s5 + $0x930] sm:$0xff] }
 0x5e9   :  { %v4406_v28 = vpop.xlane.xlu0 %4405  ;;  %v5109_v33 = vsel %vm3457_vm4, %v5018_v48, 0.0  ;;  %v3530_v52 = vsel %vm3457_vm4, %v3436_v31, 0.0  ;;  %v6196_v48 = vld [vmem:[%s12842_s5 + $0x938] sm:$0xff] }
 0x5ea   :  { %v5328_v36 = vsel %vm5313_vm8, %v5282_v44, %v4406_v28  ;;  %v4794_v31 = vmul.f32 %v6196_v48, %v11484_v16 }
 0x5eb   :  { %4658 = vadd.xlane.f32.xlu0 %v4657_v50  ;;  %4661 = vadd.xlane.f32.xlu1 %v4660_v53  ;;  %v5374_v39 = vsel %vm5359_vm9, %v5328_v36, %v11410_v0  ;;  %v6015_v0 = vld [vmem:[%s12842_s5 + $0x390] sm:$0xff]  ;;  %v4341_v36 = vmul.f32 %v6105_v58, %v11412_v15  ;;  %v4342_v53 = vmul.f32 %v6106_v42, %v11484_v16 }
 0x5ec   :  { %v11499_v25 = vpop.xlane.xlu1 %5086  ;;  %v3889_v23 = vmul.f32 %v6015_v0, %v11412_v15 }
 0x5ed   :  { %v4858_v29 = vpop.xlane.xlu0 %4857 }
 0x5ee   :  { %v5420_v43 = vsel %vm5405_vm10, %v5374_v39, %v4858_v29  ;;  %v3982_v45 = vsel %vm3457_vm4, %v3889_v23, 0.0  ;;  %v4793_v39 = vmul.f32 %v6195_v7, %v11412_v15  ;;  %v4437_v29 = vsel %vm3457_vm4, %v4342_v53, 0.0  ;;  %v5972_v15 = vld [vmem:[%s12842_s5 + $0x238] sm:$0xff] }
 0x5ef   :  { %5110 = vadd.xlane.f32.xlu0 %v5109_v33  ;;  %5113 = vadd.xlane.f32.xlu1 %v5112_v20 }
 0x5f0   :  { %v3734_v32 = vpop.xlane.xlu1 %3733  ;;  %v4886_v34 = vsel %vm3457_vm4, %v4793_v39, 0.0 }
 0x5f1   :  { %v5084_v22 = vpop.xlane.xlu0 %5083 }
 0x5f2   :  { %v5466_v41 = vsel %vm5451_vm11, %v5420_v43, %v5084_v22  ;;  %v4889_v22 = vsel %vm3457_vm4, %v4794_v31, 0.0 }
 0x5f3   :  { %v5570_v24 = vrot.slane %v5466_v41, 2  ;;  %3531 = vadd.xlane.f32.xlu0 %v3530_v52  ;;  %3534 = vadd.xlane.f32.xlu1 %v3533_v40  ;;  %v6062_v41 = vld [vmem:[%s12842_s5 + $0x508] sm:$0xff] }
 0x5f4   :  { %v11523_v5 = vpop.xlane.xlu1 %4185 }
 0x5f5   :  { %v5571_v1 = vsel %vm3088_vm3, %v5568_v27, %v5570_v24  ;;  %v3731_v44 = vpop.xlane.xlu0 %3730 }
 0x5f6   :  { %v5585_v28 = vsel %vm5497_vm12, %v5571_v1, 0.0  ;;  %v5191_v50 = vsel %vm5175_vm5, %v11427_v60, %v3731_v44  ;;  %v11547_v60 = vmax.f32 %v3303_v38, 0.0  ;;  %v4116_v44 = vmul.f32 %v6061_v35, %v11484_v16 }
 0x5f7   :  { %v5586_v18 = vadd.f32 %v5585_v28, %v5584_v11  ;;  %3983 = vadd.xlane.f32.xlu0 %v3982_v45  ;;  %3986 = vadd.xlane.f32.xlu1 %v3985_v51  ;;  %v5237_v27 = vsel %vm5221_vm6, %v5191_v50, %v11446_v49  ;;  %v4434_v11 = vsel %vm3457_vm4, %v4341_v36, 0.0  ;;  %v5971_v49 = vld [vmem:[%s12842_s5 + $0x230] sm:$0xff]  ;;  %v3304_v36 = vadd.f32 %v11252_v26, %v10362_v21 }
 0x5f8   :  { %v11545_v57 = vpop.xlane.xlu1 %4637  ;;  %v3664_v30 = vmul.f32 %v5971_v49, %v11484_v16  ;;  %v3665_v23 = vmul.f32 %v5972_v15, %v11547_v60  ;;  %v4117_v45 = vmul.f32 %v6062_v41, %v11547_v60  ;;  %v6151_v51 = vld [vmem:[%s12842_s5 + $0x7d0] sm:$0xff] }
 0x5f9   :  { %v4183_v63 = vpop.xlane.xlu0 %4182  ;;  %v4568_v7 = vmul.f32 %v6151_v51, %v11484_v16 }
 0x5fa   :  { %v5283_v3 = vsel %vm5267_vm7, %v5237_v27, %v4183_v63  ;;  %v3759_v38 = vsel %vm3457_vm4, %v3664_v30, 0.0  ;;  %v3762_v1 = vsel %vm3457_vm4, %v3665_v23, 0.0  ;;  %v4214_v63 = vsel %vm3457_vm4, %v4117_v45, 0.0 }
 0x5fb   :  { %4435 = vadd.xlane.f32.xlu0 %v4434_v11  ;;  %4438 = vadd.xlane.f32.xlu1 %v4437_v29  ;;  %v5329_v43 = vsel %vm5313_vm8, %v5283_v3, %v11464_v55  ;;  %v6241_v3 = vld [vmem:[%s12842_s5 + $0xaa0] sm:$0xff]  ;;  %v11607_v29 = vmax.f32 %v3304_v36, 0.0  ;;  %v4663_v15 = vsel %vm3457_vm4, %v4568_v7, 0.0  ;;  %v6107_v36 = vld [vmem:[%s12842_s5 + $0x670] sm:$0xff] }
 0x5fc   :  { %v11562_v33 = vpop.xlane.xlu1 %5089  ;;  %v5020_v49 = vmul.f32 %v6241_v3, %v11484_v16  ;;  %v3394_v16 = vld [vmem:[%s12842_s5 + $0xd8] sm:$0xff]  ;;  %v4343_v3 = vmul.f32 %v6107_v36, %v11547_v60  ;;  %v5974_v36 = vld [vmem:[%s12842_s5 + $0x248] sm:$0xff] }
 0x5fd   :  { %v4635_v20 = vpop.xlane.xlu0 %4634 }
 0x5fe   :  { %v5375_v0 = vsel %vm5359_vm9, %v5329_v43, %v4635_v20  ;;  %v5115_v23 = vsel %vm3457_vm4, %v5020_v49, 0.0 }
 0x5ff   :  { %v5421_v55 = vsel %vm5405_vm10, %v5375_v0, %v11482_v54  ;;  %4887 = vadd.xlane.f32.xlu0 %v4886_v34  ;;  %4890 = vadd.xlane.f32.xlu1 %v4889_v22  ;;  %v3393_v0 = vld [vmem:[%s12842_s5 + $0xd0] sm:$0xff] }
 0x600   :  { %v5467_v52 = vsel %vm5451_vm11, %v5421_v55, %v11499_v25  ;;  %v3511_v40 = vpop.xlane.xlu1 %3510  ;;  %v6152_v25 = vld [vmem:[%s12842_s5 + $0x7d8] sm:$0xff]  ;;  %v3438_v41 = vmul.f32 %v3393_v0, %v11547_v60  ;;  %v4440_v0 = vsel %vm3457_vm4, %v4343_v3, 0.0 }
 0x601   :  { %v5572_v58 = vrot.slane %v5467_v52, 2  ;;  %v3508_v42 = vpop.xlane.xlu0 %3507  ;;  %v4569_v39 = vmul.f32 %v6152_v25, %v11547_v60  ;;  %v6017_v52 = vld [vmem:[%s12842_s5 + $0x3a0] sm:$0xff] }
 0x602   :  { %v5192_v54 = vsel %vm5175_vm5, %v3508_v42, %v3734_v32  ;;  %v6018_v42 = vld [vmem:[%s12842_s5 + $0x3a8] sm:$0xff]  ;;  %v3891_v45 = vmul.f32 %v6017_v52, %v11547_v60 }
 0x603   :  { %v5573_v28 = vsel %vm3088_vm3, %v5570_v24, %v5572_v58  ;;  %3760 = vadd.xlane.f32.xlu0 %v3759_v38  ;;  %3763 = vadd.xlane.f32.xlu1 %v3762_v1  ;;  %v4211_v24 = vsel %vm3457_vm4, %v4116_v44, 0.0  ;;  %v4666_v20 = vsel %vm3457_vm4, %v4569_v39, 0.0  ;;  %v3892_v51 = vmul.f32 %v6018_v42, %v11607_v29 }
 0x604   :  { %v5587_v32 = vsel %vm5497_vm12, %v5573_v28, 0.0  ;;  %v3963_v50 = vpop.xlane.xlu1 %3962  ;;  %v3988_v39 = vsel %vm3457_vm4, %v3891_v45, 0.0 }
 0x605   :  { %v3960_v53 = vpop.xlane.xlu0 %3959  ;;  %v5588_v27 = vadd.f32 %v5587_v32, %v5586_v18  ;;  %v6242_v18 = vld [vmem:[%s12842_s5 + $0xaa8] sm:$0xff]  ;;  %v3536_v32 = vsel %vm3457_vm4, %v3438_v41, 0.0 }
 0x606   :  { %v5238_v48 = vsel %vm5221_vm6, %v5192_v54, %v3960_v53  ;;  %v5021_v30 = vmul.f32 %v6242_v18, %v11547_v60 }
 0x607   :  { %4212 = vadd.xlane.f32.xlu0 %v4211_v24  ;;  %4215 = vadd.xlane.f32.xlu1 %v4214_v63  ;;  %v5284_v21 = vsel %vm5267_vm7, %v5238_v48, %v11523_v5 }
 0x608   :  { %v4415_v11 = vpop.xlane.xlu1 %4414  ;;  %v5118_v35 = vsel %vm3457_vm4, %v5021_v30, 0.0  ;;  %v3305_v30 = vadd.f32 %v11252_v26, %v10378_v8  ;;  %v6243_v8 = vld [vmem:[%s12842_s5 + $0xab0] sm:$0xff] }
 0x609   :  { %v4412_v31 = vpop.xlane.xlu0 %4411 }
 0x60a   :  { %v5330_v43 = vsel %vm5313_vm8, %v5284_v21, %v4412_v31  ;;  %v3991_v31 = vsel %vm3457_vm4, %v3892_v51, 0.0  ;;  %v11687_v52 = vmax.f32 %v3305_v30, 0.0 }
 0x60b   :  { %4664 = vadd.xlane.f32.xlu0 %v4663_v15  ;;  %4667 = vadd.xlane.f32.xlu1 %v4666_v20  ;;  %v5376_v5 = vsel %vm5359_vm9, %v5330_v43, %v11545_v57  ;;  %v3439_v57 = vmul.f32 %v3394_v16, %v11607_v29  ;;  %v6198_v43 = vld [vmem:[%s12842_s5 + $0x948] sm:$0xff] }
 0x60c   :  { %v4867_v34 = vpop.xlane.xlu1 %4866 }
 0x60d   :  { %v4864_v22 = vpop.xlane.xlu0 %4863 }
 0x60e   :  { %v5422_v55 = vsel %vm5405_vm10, %v5376_v5, %v4864_v22 }
 0x60f   :  { %v11635_v38 = vsel %vm5451_vm11, %v5422_v55, %v11562_v33  ;;  %5116 = vadd.xlane.f32.xlu0 %v5115_v23  ;;  %5119 = vadd.xlane.f32.xlu1 %v5118_v35  ;;  %v3539_v33 = vsel %vm3457_vm4, %v3439_v57, 0.0  ;;  %v4796_v55 = vmul.f32 %v6198_v43, %v11607_v29  ;;  %v5973_v35 = vld [vmem:[%s12842_s5 + $0x240] sm:$0xff] }
 0x610   :  { %v5574_v54 = vrot.slane %v11635_v38, 2  ;;  %v11638_v1 = vpop.xlane.xlu1 %3739 }
 0x611   :  { %v3737_v44 = vpop.xlane.xlu0 %3736 }
 0x612   :  { %v5575_v28 = vsel %vm3088_vm3, %v5572_v58, %v5574_v54  ;;  %v5193_v25 = vsel %vm5175_vm5, %v3511_v40, %v3737_v44  ;;  %v6108_v58 = vld [vmem:[%s12842_s5 + $0x678] sm:$0xff]  ;;  %v5591_v24 = vsel %vm5507_vm13, %v5574_v54, 0.0  ;;  %v3666_v54 = vmul.f32 %v5973_v35, %v11607_v29 }
 0x613   :  { %v5589_v53 = vsel %vm5497_vm12, %v5575_v28, 0.0  ;;  %3537 = vadd.xlane.f32.xlu0 %v3536_v32  ;;  %3540 = vadd.xlane.f32.xlu1 %v3539_v33  ;;  %v5239_v7 = vsel %vm5221_vm6, %v5193_v25, %v3963_v50  ;;  %v4344_v50 = vmul.f32 %v6108_v58, %v11607_v29  ;;  %v5022_v44 = vmul.f32 %v6243_v8, %v11607_v29  ;;  %v6063_v33 = vld [vmem:[%s12842_s5 + $0x510] sm:$0xff] }
 0x614   :  { %v5590_v48 = vadd.f32 %v5589_v53, %v5588_v27  ;;  %v11654_v40 = vpop.xlane.xlu1 %4191  ;;  %v6197_v27 = vld [vmem:[%s12842_s5 + $0x940] sm:$0xff]  ;;  %v4895_v25 = vsel %vm3457_vm4, %v4796_v55, 0.0  ;;  %v4118_v3 = vmul.f32 %v6063_v33, %v11607_v29 }
 0x615   :  { %v4189_v63 = vpop.xlane.xlu0 %4188  ;;  %v4795_v16 = vmul.f32 %v6197_v27, %v11547_v60  ;;  %v6109_v33 = vld [vmem:[%s12842_s5 + $0x680] sm:$0xff] }
 0x616   :  { %v5592_v21 = vadd.f32 %v5591_v24, %v5590_v48  ;;  %v5285_v18 = vsel %vm5267_vm7, %v5239_v7, %v4189_v63  ;;  %v3765_v48 = vsel %vm3457_vm4, %v3666_v54, 0.0  ;;  %v5121_v24 = vsel %vm3457_vm4, %v5022_v44, 0.0 }
 0x617   :  { %3989 = vadd.xlane.f32.xlu0 %v3988_v39  ;;  %3992 = vadd.xlane.f32.xlu1 %v3991_v31  ;;  %v5331_v49 = vsel %vm5313_vm8, %v5285_v18, %v4415_v11  ;;  %v4443_v11 = vsel %vm3457_vm4, %v4344_v50, 0.0  ;;  %v4892_v28 = vsel %vm3457_vm4, %v4795_v16, 0.0  ;;  %v6153_v18 = vld [vmem:[%s12842_s5 + $0x7e0] sm:$0xff]  ;;  %v6064_v31 = vld [vmem:[%s12842_s5 + $0x518] sm:$0xff]  ;;  %v4217_v30 = vsel %vm3457_vm4, %v4118_v3, 0.0 }
 0x618   :  { %v5593_v15 = vrot.slane %v5592_v21, 4  ;;  %v11669_v20 = vpop.xlane.xlu1 %4643  ;;  %v4570_v43 = vmul.f32 %v6153_v18, %v11607_v29  ;;  %v3395_v29 = vld [vmem:[%s12842_s5 + $0xe0] sm:$0xff] }
 0x619   :  { %v4641_v5 = vpop.xlane.xlu0 %4640 }
 0x61a   :  { %v5594_v22 = vadd.f32 %v5593_v15, %v5592_v21  ;;  %v5377_v23 = vsel %vm5359_vm9, %v5331_v49, %v4641_v5  ;;  %v3667_v21 = vmul.f32 %v5974_v36, %v11687_v52  ;;  %v4669_v35 = vsel %vm3457_vm4, %v4570_v43, 0.0  ;;  %v6020_v36 = vld [vmem:[%s12842_s5 + $0x3b8] sm:$0xff] }
 0x61b   :  { %4441 = vadd.xlane.f32.xlu0 %v4440_v0  ;;  %4444 = vadd.xlane.f32.xlu1 %v4443_v11  ;;  %v5423_v41 = vsel %vm5405_vm10, %v5377_v23, %v4867_v34  ;;  %v5606_v34 = vrot.slane %v11635_v38, 7  ;;  %v4119_v0 = vmul.f32 %v6064_v31, %v11687_v52 }
 0x61c   :  { %v5595_v60 = vrot.slane %v5594_v22, 2  ;;  %v11685_v57 = vpop.xlane.xlu1 %5095  ;;  %v3768_v5 = vsel %vm3457_vm4, %v3667_v21, 0.0 }
 0x61d   :  { %v5093_v42 = vpop.xlane.xlu0 %5092  ;;  %v4220_v8 = vsel %vm3457_vm4, %v4119_v0, 0.0 }
 0x61e   :  { %v5596_v45 = vadd.f32 %v5595_v60, %v5594_v22  ;;  %v11692_v51 = vsel %vm5451_vm11, %v5423_v41, %v5093_v42  ;;  %v3440_v41 = vmul.f32 %v3395_v29, %v11687_v52  ;;  %v6019_v60 = vld [vmem:[%s12842_s5 + $0x3b0] sm:$0xff]  ;;  %v3396_v42 = vld [vmem:[%s12842_s5 + $0xe8] sm:$0xff]  ;;  %v6200_v29 = vld [vmem:[%s12842_s5 + $0x958] sm:$0xff] }
 0x61f   :  { %v5607_v32 = vrot.slane %v11692_v51, 7  ;;  %4893 = vadd.xlane.f32.xlu0 %v4892_v28  ;;  %4896 = vadd.xlane.f32.xlu1 %v4895_v25  ;;  %v6199_v51 = vld [vmem:[%s12842_s5 + $0x950] sm:$0xff] }
 0x620   :  { %v5597_v53 = vrot.slane %v5596_v45, 1  ;;  %v3517_v7 = vpop.xlane.xlu1 %3516  ;;  %v3542_v25 = vsel %vm3457_vm4, %v3440_v41, 0.0  ;;  %v4797_v0 = vmul.f32 %v6199_v51, %v11687_v52 }
 0x621   :  { %v5608_v58 = vsel %vm5605_vm15, %v5606_v34, %v5607_v32  ;;  %v3514_v38 = vpop.xlane.xlu0 %3513  ;;  %v3893_v34 = vmul.f32 %v6019_v60, %v11687_v52 }
 0x622   :  { %v5598_v63 = vadd.f32 %v5597_v53, %v5596_v45  ;;  %v5194_v39 = vsel %vm5175_vm5, %v3514_v38, %v11638_v1  ;;  %v3306_v1 = vadd.f32 %v11252_v26, %v10390_v62  ;;  %v4898_v41 = vsel %vm3457_vm4, %v4797_v0, 0.0 }
 0x623   :  { %3766 = vadd.xlane.f32.xlu0 %v3765_v48  ;;  %5122 = vadd.xlane.f32.xlu1 %v5121_v24  ;;  %v3994_v18 = vsel %vm3457_vm4, %v3893_v34, 0.0 }
 0x624   :  { %v11721_v50 = vsel %vm5730_vm0, %v11389_v59, %v5598_v63  ;;  %v3969_v27 = vpop.xlane.xlu1 %3968  ;;  %v6154_v59 = vld [vmem:[%s12842_s5 + $0x7e8] sm:$0xff]  ;;  %v11738_v22 = vmax.f32 %v3306_v1, 0.0  ;;  %v4345_v63 = vmul.f32 %v6109_v33, %v11687_v52 }
 0x625   :  { %v3966_v49 = vpop.xlane.xlu0 %3965  ;;  %v4571_v11 = vmul.f32 %v6154_v59, %v11687_v52  ;;  %v6244_v59 = vld [vmem:[%s12842_s5 + $0xab8] sm:$0xff] }
 0x626   :  { %v5240_v15 = vsel %vm5221_vm6, %v5194_v39, %v3966_v49  ;;  %v3894_v39 = vmul.f32 %v6020_v36, %v11738_v22  ;;  %v4798_v60 = vmul.f32 %v6200_v29, %v11738_v22 }
 0x627   :  { %4218 = vadd.xlane.f32.xlu0 %v4217_v30  ;;  %3769 = vadd.xlane.f32.xlu1 %v3768_v5  ;;  %v5286_v62 = vsel %vm5267_vm7, %v5240_v15, %v11654_v40  ;;  %v4672_v45 = vsel %vm3457_vm4, %v4571_v11, 0.0  ;;  %v4446_v30 = vsel %vm3457_vm4, %v4345_v63, 0.0  ;;  %v3307_v11 = vadd.f32 %v11252_v26, %v10410_v4  ;;  %v6245_v4 = vld [vmem:[%s12842_s5 + $0xac0] sm:$0xff] }
 0x628   :  { %v4421_v16 = vpop.xlane.xlu1 %4420  ;;  %v3997_v5 = vsel %vm3457_vm4, %v3894_v39, 0.0  ;;  %v4901_v33 = vsel %vm3457_vm4, %v4798_v60, 0.0  ;;  %v5024_v36 = vmul.f32 %v6245_v4, %v11738_v22 }
 0x629   :  { %v4418_v23 = vpop.xlane.xlu0 %4417 }
 0x62a   :  { %v5332_v55 = vsel %vm5313_vm8, %v5286_v62, %v4418_v23 }
 0x62b   :  { %4670 = vadd.xlane.f32.xlu0 %v4669_v35  ;;  %4221 = vadd.xlane.f32.xlu1 %v4220_v8  ;;  %v5378_v40 = vsel %vm5359_vm9, %v5332_v55, %v11669_v20  ;;  %v3441_v20 = vmul.f32 %v3396_v42, %v11738_v22  ;;  %v5023_v35 = vmul.f32 %v6244_v59, %v11687_v52  ;;  %v6156_v59 = vld [vmem:[%s12842_s5 + $0x7f8] sm:$0xff] }
 0x62c   :  { %v4873_v54 = vpop.xlane.xlu1 %4872 }
 0x62d   :  { %v4870_v44 = vpop.xlane.xlu0 %4869  ;;  %v3545_v31 = vsel %vm3457_vm4, %v3441_v20, 0.0 }
 0x62e   :  { %v5424_v28 = vsel %vm5405_vm10, %v5378_v40, %v4870_v44 }
 0x62f   :  { %v5470_v53 = vsel %vm5451_vm11, %v5424_v28, %v11685_v57  ;;  %4673 = vadd.xlane.f32.xlu1 %v4672_v45  ;;  %3543 = vadd.xlane.f32.xlu0 %v3542_v25  ;;  %v5625_v57 = vsel %vm5497_vm12, %v5608_v58, 0.0  ;;  %v11812_v45 = vmax.f32 %v3307_v11, 0.0 }
 0x630   :  { %v5609_v38 = vrot.slane %v5470_v53, 7  ;;  %v5099_v48 = vpop.xlane.xlu1 %5098 }
 0x631   :  { %v3743_v24 = vpop.xlane.xlu0 %3742 }
 0x632   :  { %v5610_v3 = vsel %vm5605_vm15, %v5607_v32, %v5609_v38  ;;  %v5195_v21 = vsel %vm5175_vm5, %v3517_v7, %v3743_v24  ;;  %v6110_v32 = vld [vmem:[%s12842_s5 + $0x688] sm:$0xff]  ;;  %v5976_v24 = vld [vmem:[%s12842_s5 + $0x258] sm:$0xff] }
 0x633   :  { %v5626_v1 = vsel %vm5497_vm12, %v5610_v3, 0.0  ;;  %3995 = vadd.xlane.f32.xlu0 %v3994_v18  ;;  %3546 = vadd.xlane.f32.xlu1 %v3545_v31  ;;  %v5241_v49 = vsel %vm5221_vm6, %v5195_v21, %v3969_v27  ;;  %v4346_v27 = vmul.f32 %v6110_v32, %v11738_v22  ;;  %v6066_v32 = vld [vmem:[%s12842_s5 + $0x528] sm:$0xff] }
 0x634   :  { %v5627_v7 = vadd.f32 %v5626_v1, %v5625_v57  ;;  %v3746_v43 = vpop.xlane.xlu1 %3745  ;;  %v3669_v1 = vmul.f32 %v5976_v24, %v11812_v45 }
 0x635   :  { %v4195_v15 = vpop.xlane.xlu0 %4194  ;;  %v4449_v40 = vsel %vm3457_vm4, %v4346_v27, 0.0  ;;  %v4121_v27 = vmul.f32 %v6066_v32, %v11812_v45 }
 0x636   :  { %v5287_v58 = vsel %vm5267_vm7, %v5241_v49, %v4195_v15  ;;  %v6155_v49 = vld [vmem:[%s12842_s5 + $0x7f0] sm:$0xff]  ;;  %v3774_v0 = vsel %vm3457_vm4, %v3669_v1, 0.0  ;;  %v6112_v1 = vld [vmem:[%s12842_s5 + $0x698] sm:$0xff] }
 0x637   :  { %4447 = vadd.xlane.f32.xlu0 %v4446_v30  ;;  %3998 = vadd.xlane.f32.xlu1 %v3997_v5  ;;  %v5333_v62 = vsel %vm5313_vm8, %v5287_v58, %v4421_v16  ;;  %v5975_v16 = vld [vmem:[%s12842_s5 + $0x250] sm:$0xff]  ;;  %v4572_v30 = vmul.f32 %v6155_v49, %v11738_v22 }
 0x638   :  { %v4198_v23 = vpop.xlane.xlu1 %4197  ;;  %v3668_v34 = vmul.f32 %v5975_v16, %v11738_v22 }
 0x639   :  { %v4647_v55 = vpop.xlane.xlu0 %4646 }
 0x63a   :  { %v5379_v8 = vsel %vm5359_vm9, %v5333_v62, %v4647_v55  ;;  %v3771_v21 = vsel %vm3457_vm4, %v3668_v34, 0.0  ;;  %v4675_v55 = vsel %vm3457_vm4, %v4572_v30, 0.0  ;;  %v6246_v30 = vld [vmem:[%s12842_s5 + $0xac8] sm:$0xff] }
 0x63b   :  { %v5425_v42 = vsel %vm5405_vm10, %v5379_v8, %v4873_v54  ;;  %4899 = vadd.xlane.f32.xlu0 %v4898_v41  ;;  %4450 = vadd.xlane.f32.xlu1 %v4449_v40  ;;  %v5124_v54 = vsel %vm3457_vm4, %v5023_v35, 0.0  ;;  %v4226_v35 = vsel %vm3457_vm4, %v4121_v27, 0.0  ;;  %v6021_v41 = vld [vmem:[%s12842_s5 + $0x3c0] sm:$0xff]  ;;  %v3398_v40 = vld [vmem:[%s12842_s5 + $0xf8] sm:$0xff] }
 0x63c   :  { %v11810_v52 = vsel %vm5451_vm11, %v5425_v42, %v5099_v48  ;;  %v4650_v44 = vpop.xlane.xlu1 %4649  ;;  %v6065_v48 = vld [vmem:[%s12842_s5 + $0x520] sm:$0xff] }
 0x63d   :  { %v5611_v28 = vrot.slane %v11810_v52, 7  ;;  %v3520_v25 = vpop.xlane.xlu0 %3519  ;;  %v4120_v57 = vmul.f32 %v6065_v48, %v11738_v22 }
 0x63e   :  { %v5196_v20 = vsel %vm5175_vm5, %v3520_v25, %v3746_v43  ;;  %v3308_v43 = vadd.f32 %v11252_v26, %v10422_v13  ;;  %v3397_v13 = vld [vmem:[%s12842_s5 + $0xf0] sm:$0xff]  ;;  %v3895_v25 = vmul.f32 %v6021_v41, %v11812_v45 }
 0x63f   :  { %v5612_v53 = vsel %vm5605_vm15, %v5609_v38, %v5611_v28  ;;  %5125 = vadd.xlane.f32.xlu0 %v5124_v54  ;;  %4902 = vadd.xlane.f32.xlu1 %v4901_v33  ;;  %v5127_v38 = vsel %vm3457_vm4, %v5024_v36, 0.0  ;;  %v4223_v5 = vsel %vm3457_vm4, %v4120_v57, 0.0  ;;  %v3442_v8 = vmul.f32 %v3397_v13, %v11812_v45  ;;  %v6022_v54 = vld [vmem:[%s12842_s5 + $0x3c8] sm:$0xff]  ;;  %v6201_v57 = vld [vmem:[%s12842_s5 + $0x960] sm:$0xff] }
 0x640   :  { %v3523_v63 = vpop.xlane.xlu1 %3522  ;;  %v5628_v39 = vsel %vm5497_vm12, %v5612_v53, 0.0  ;;  %v11856_v22 = vmax.f32 %v3308_v43, 0.0 }
 0x641   :  { %v3972_v3 = vpop.xlane.xlu0 %3971  ;;  %v5629_v18 = vadd.f32 %v5628_v39, %v5627_v7 }
 0x642   :  { %v5242_v31 = vsel %vm5221_vm6, %v5196_v20, %v3972_v3  ;;  %v3443_v34 = vmul.f32 %v3398_v40, %v11856_v22  ;;  %v6111_v20 = vld [vmem:[%s12842_s5 + $0x690] sm:$0xff]  ;;  %v3896_v39 = vmul.f32 %v6022_v54, %v11856_v22 }
 0x643   :  { %3772 = vadd.xlane.f32.xlu0 %v3771_v21  ;;  %5128 = vadd.xlane.f32.xlu1 %v5127_v38  ;;  %v5288_v51 = vsel %vm5267_vm7, %v5242_v31, %v4198_v23  ;;  %v4573_v23 = vmul.f32 %v6156_v59, %v11812_v45  ;;  %v4347_v24 = vmul.f32 %v6111_v20, %v11812_v45  ;;  %v4000_v31 = vsel %vm3457_vm4, %v3895_v25, 0.0 }
 0x644   :  { %v3975_v7 = vpop.xlane.xlu1 %3974  ;;  %v3551_v38 = vsel %vm3457_vm4, %v3443_v34, 0.0 }
 0x645   :  { %v4424_v15 = vpop.xlane.xlu0 %4423  ;;  %v4678_v42 = vsel %vm3457_vm4, %v4573_v23, 0.0  ;;  %v4452_v43 = vsel %vm3457_vm4, %v4347_v24, 0.0 }
 0x646   :  { %v5334_v58 = vsel %vm5313_vm8, %v5288_v51, %v4424_v15  ;;  %v4799_v51 = vmul.f32 %v6201_v57, %v11812_v45  ;;  %v4003_v15 = vsel %vm3457_vm4, %v3896_v39, 0.0 }
 0x647   :  { %4224 = vadd.xlane.f32.xlu0 %v4223_v5  ;;  %3775 = vadd.xlane.f32.xlu1 %v3774_v0  ;;  %v5380_v62 = vsel %vm5359_vm9, %v5334_v58, %v4650_v44  ;;  %v3548_v44 = vsel %vm3457_vm4, %v3442_v8, 0.0  ;;  %v6202_v58 = vld [vmem:[%s12842_s5 + $0x968] sm:$0xff]  ;;  %v11918_v0 = vld [vmem:[%s12841_s4] ss:$0 sm:$0xff] }
 0x648   :  { %v4427_v26 = vpop.xlane.xlu1 %4426  ;;  %v3309_v27 = vadd.f32 %v11918_v0, %v10440_v61  ;;  %v4800_v23 = vmul.f32 %v6202_v58, %v11856_v22  ;;  %v6247_v61 = vld [vmem:[%s12842_s5 + $0xad0] sm:$0xff] }
 0x649   :  { %v4876_v29 = vpop.xlane.xlu0 %4875 }
 0x64a   :  { %v5426_v11 = vsel %vm5405_vm10, %v5380_v62, %v4876_v29  ;;  %v4904_v62 = vsel %vm3457_vm4, %v4799_v51, 0.0  ;;  %v5025_v29 = vmul.f32 %v6246_v30, %v11812_v45  ;;  %v11934_v8 = vmax.f32 %v3309_v27, 0.0 }
 0x64b   :  { %4676 = vadd.xlane.f32.xlu0 %v4675_v55  ;;  %4227 = vadd.xlane.f32.xlu1 %v4226_v35 }
 0x64c   :  { %v4879_v60 = vpop.xlane.xlu1 %4878 }
 0x64d   :  { %v5102_v16 = vpop.xlane.xlu0 %5101 }
 0x64e   :  { %v11871_v4 = vsel %vm5451_vm11, %v5426_v11, %v5102_v16  ;;  %v5977_v11 = vld [vmem:[%s12842_s5 + $0x260] sm:$0xff]  ;;  %v5130_v16 = vsel %vm3457_vm4, %v5025_v29, 0.0 }
 0x64f   :  { %v5613_v33 = vrot.slane %v11871_v4, 7  ;;  %4679 = vadd.xlane.f32.xlu1 %v4678_v42  ;;  %3549 = vadd.xlane.f32.xlu0 %v3548_v44  ;;  %v3670_v45 = vmul.f32 %v5977_v11, %v11856_v22  ;;  %v4907_v42 = vsel %vm3457_vm4, %v4800_v23, 0.0  ;;  %v5026_v4 = vmul.f32 %v6247_v61, %v11856_v22  ;;  %v5978_v44 = vld [vmem:[%s12842_s5 + $0x268] sm:$0xff] }
 0x650   :  { %v3752_v36 = vpop.xlane.xlu1 %3751 }
 0x651   :  { %v5614_v53 = vsel %vm5605_vm15, %v5611_v28, %v5613_v33  ;;  %v3749_v48 = vpop.xlane.xlu0 %3748 }
 0x652   :  { %v5630_v3 = vsel %vm5497_vm12, %v5614_v53, 0.0  ;;  %v5197_v21 = vsel %vm5175_vm5, %v3523_v63, %v3749_v48  ;;  %v3671_v48 = vmul.f32 %v5978_v44, %v11934_v8 }
 0x653   :  { %v5631_v52 = vadd.f32 %v5630_v3, %v5629_v18  ;;  %4001 = vadd.xlane.f32.xlu0 %v4000_v31  ;;  %3552 = vadd.xlane.f32.xlu1 %v3551_v38  ;;  %v5243_v28 = vsel %vm5221_vm6, %v5197_v21, %v3975_v7  ;;  %v4348_v18 = vmul.f32 %v6112_v1, %v11856_v22  ;;  %v3777_v3 = vsel %vm3457_vm4, %v3670_v45, 0.0  ;;  %v6068_v38 = vld [vmem:[%s12842_s5 + $0x538] sm:$0xff] }
 0x654   :  { %v11899_v49 = vpop.xlane.xlu1 %4203  ;;  %v5133_v21 = vsel %vm3457_vm4, %v5026_v4, 0.0  ;;  %v4123_v51 = vmul.f32 %v6068_v38, %v11934_v8 }
 0x655   :  { %v4201_v63 = vpop.xlane.xlu0 %4200 }
 0x656   :  { %v5289_v32 = vsel %vm5267_vm7, %v5243_v28, %v4201_v63  ;;  %v3780_v63 = vsel %vm3457_vm4, %v3671_v48, 0.0 }
 0x657   :  { %4453 = vadd.xlane.f32.xlu0 %v4452_v43  ;;  %4004 = vadd.xlane.f32.xlu1 %v4003_v15  ;;  %v5335_v7 = vsel %vm5313_vm8, %v5289_v32, %v4427_v26  ;;  %v4455_v26 = vsel %vm3457_vm4, %v4348_v18, 0.0  ;;  %v6158_v32 = vld [vmem:[%s12842_s5 + $0x808] sm:$0xff]  ;;  %v3399_v15 = vld [vmem:[%s12842_s5 + $0x100] sm:$0xff] }
 0x658   :  { %v11913_v5 = vpop.xlane.xlu1 %4655  ;;  %v4575_v30 = vmul.f32 %v6158_v32, %v11934_v8 }
 0x659   :  { %v4653_v59 = vpop.xlane.xlu0 %4652 }
 0x65a   :  { %v5381_v13 = vsel %vm5359_vm9, %v5335_v7, %v4653_v59  ;;  %v3310_v7 = vadd.f32 %v11918_v0, %v10452_v37  ;;  %v4232_v59 = vsel %vm3457_vm4, %v4123_v51, 0.0  ;;  %v5979_v51 = vld [vmem:[%s12842_s5 + $0x270] sm:$0xff] }
 0x65b   :  { %4905 = vadd.xlane.f32.xlu0 %v4904_v62  ;;  %4456 = vadd.xlane.f32.xlu1 %v4455_v26  ;;  %v5427_v55 = vsel %vm5405_vm10, %v5381_v13, %v4879_v60  ;;  %v6067_v60 = vld [vmem:[%s12842_s5 + $0x530] sm:$0xff]  ;;  %v3444_v62 = vmul.f32 %v3399_v15, %v11934_v8 }
 0x65c   :  { %v5108_v35 = vpop.xlane.xlu1 %5107  ;;  %v4122_v53 = vmul.f32 %v6067_v60, %v11856_v22  ;;  %v6023_v13 = vld [vmem:[%s12842_s5 + $0x3d0] sm:$0xff] }
 0x65d   :  { %v5105_v41 = vpop.xlane.xlu0 %5104  ;;  %v3897_v11 = vmul.f32 %v6023_v13, %v11934_v8  ;;  %v3554_v45 = vsel %vm3457_vm4, %v3444_v62, 0.0 }
 0x65e   :  { %v11938_v40 = vsel %vm5451_vm11, %v5427_v55, %v5105_v41  ;;  %v4229_v1 = vsel %vm3457_vm4, %v4122_v53, 0.0  ;;  %v11993_v55 = vmax.f32 %v3310_v7, 0.0  ;;  %v4684_v41 = vsel %vm3457_vm4, %v4575_v30, 0.0 }
 0x65f   :  { %v5615_v25 = vrot.slane %v11938_v40, 7  ;;  %5131 = vadd.xlane.f32.xlu0 %v5130_v16  ;;  %4908 = vadd.xlane.f32.xlu1 %v4907_v42  ;;  %v3400_v16 = vld [vmem:[%s12842_s5 + $0x108] sm:$0xff] }
 0x660   :  { %v3529_v34 = vpop.xlane.xlu1 %3528  ;;  %v3445_v48 = vmul.f32 %v3400_v16, %v11993_v55  ;;  %v3672_v7 = vmul.f32 %v5979_v51, %v11993_v55 }
 0x661   :  { %v5616_v20 = vsel %vm5605_vm15, %v5613_v33, %v5615_v25  ;;  %v3526_v54 = vpop.xlane.xlu0 %3525  ;;  %v6157_v33 = vld [vmem:[%s12842_s5 + $0x800] sm:$0xff] }
 0x662   :  { %v5632_v24 = vsel %vm5497_vm12, %v5616_v20, 0.0  ;;  %v5198_v39 = vsel %vm5175_vm5, %v3526_v54, %v3752_v36 }
 0x663   :  { %v5633_v31 = vadd.f32 %v5632_v24, %v5631_v52  ;;  %3778 = vadd.xlane.f32.xlu0 %v3777_v3  ;;  %5134 = vadd.xlane.f32.xlu1 %v5133_v21  ;;  %v4574_v52 = vmul.f32 %v6157_v33, %v11856_v22  ;;  %v6203_v24 = vld [vmem:[%s12842_s5 + $0x970] sm:$0xff] }
 0x664   :  { %v3981_v57 = vpop.xlane.xlu1 %3980  ;;  %v4801_v38 = vmul.f32 %v6203_v24, %v11934_v8 }
 0x665   :  { %v3978_v28 = vpop.xlane.xlu0 %3977  ;;  %v4681_v27 = vsel %vm3457_vm4, %v4574_v52, 0.0  ;;  %v3557_v52 = vsel %vm3457_vm4, %v3445_v48, 0.0 }
 0x666   :  { %v5244_v36 = vsel %vm5221_vm6, %v5198_v39, %v3978_v28  ;;  %v6024_v39 = vld [vmem:[%s12842_s5 + $0x3d8] sm:$0xff]  ;;  %v4910_v15 = vsel %vm3457_vm4, %v4801_v38, 0.0 }
 0x667   :  { %4230 = vadd.xlane.f32.xlu0 %v4229_v1  ;;  %3781 = vadd.xlane.f32.xlu1 %v3780_v63  ;;  %v5290_v43 = vsel %vm5267_vm7, %v5244_v36, %v11899_v49  ;;  %v6248_v49 = vld [vmem:[%s12842_s5 + $0xad8] sm:$0xff]  ;;  %v3898_v28 = vmul.f32 %v6024_v39, %v11993_v55 }
 0x668   :  { %v4433_v18 = vpop.xlane.xlu1 %4432  ;;  %v5027_v23 = vmul.f32 %v6248_v49, %v11934_v8 }
 0x669   :  { %v4430_v22 = vpop.xlane.xlu0 %4429 }
 0x66a   :  { %v5336_v58 = vsel %vm5313_vm8, %v5290_v43, %v4430_v22  ;;  %v5136_v44 = vsel %vm3457_vm4, %v5027_v23, 0.0  ;;  %v3783_v23 = vsel %vm3457_vm4, %v3672_v7, 0.0 }
 0x66b   :  { %4682 = vadd.xlane.f32.xlu0 %v4681_v27  ;;  %4233 = vadd.xlane.f32.xlu1 %v4232_v59  ;;  %v5382_v37 = vsel %vm5359_vm9, %v5336_v58, %v11913_v5  ;;  %v6113_v5 = vld [vmem:[%s12842_s5 + $0x6a0] sm:$0xff]  ;;  %v4009_v58 = vsel %vm3457_vm4, %v3898_v28, 0.0  ;;  %v6204_v59 = vld [vmem:[%s12842_s5 + $0x978] sm:$0xff] }
 0x66c   :  { %v4885_v26 = vpop.xlane.xlu1 %4884  ;;  %v4349_v53 = vmul.f32 %v6113_v5, %v11934_v8  ;;  %v6114_v8 = vld [vmem:[%s12842_s5 + $0x6a8] sm:$0xff]  ;;  %v6159_v5 = vld [vmem:[%s12842_s5 + $0x810] sm:$0xff] }
 0x66d   :  { %v4882_v29 = vpop.xlane.xlu0 %4881  ;;  %v4350_v27 = vmul.f32 %v6114_v8, %v11993_v55 }
 0x66e   :  { %v5428_v61 = vsel %vm5405_vm10, %v5382_v37, %v4882_v29  ;;  %v4458_v63 = vsel %vm3457_vm4, %v4349_v53, 0.0  ;;  %v3311_v37 = vadd.f32 %v11918_v0, %v10470_v12  ;;  %v6249_v12 = vld [vmem:[%s12842_s5 + $0xae0] sm:$0xff]  ;;  %v4576_v53 = vmul.f32 %v6159_v5, %v11993_v55 }
 0x66f   :  { %v11999_v40 = vsel %vm5451_vm11, %v5428_v61, %v5108_v35  ;;  %4685 = vadd.xlane.f32.xlu1 %v4684_v41  ;;  %3555 = vadd.xlane.f32.xlu0 %v3554_v45  ;;  %v4006_v35 = vsel %vm3457_vm4, %v3897_v11, 0.0  ;;  %v4802_v61 = vmul.f32 %v6204_v59, %v11993_v55  ;;  %v5028_v48 = vmul.f32 %v6249_v12, %v11993_v55 }
 0x670   :  { %v5617_v42 = vrot.slane %v11999_v40, 7  ;;  %v12008_v4 = vpop.xlane.xlu1 %3757  ;;  %v5649_v16 = vrot.slane %v11999_v40, 4  ;;  %v4687_v28 = vsel %vm3457_vm4, %v4576_v53, 0.0 }
 0x671   :  { %v3755_v60 = vpop.xlane.xlu0 %3754  ;;  %v4913_v39 = vsel %vm3457_vm4, %v4802_v61, 0.0 }
 0x672   :  { %v5618_v20 = vsel %vm5605_vm15, %v5615_v25, %v5617_v42  ;;  %v5199_v54 = vsel %vm5175_vm5, %v3529_v34, %v3755_v60 }
 0x673   :  { %v5634_v3 = vsel %vm5507_vm13, %v5618_v20, 0.0  ;;  %5137 = vadd.xlane.f32.xlu1 %v5136_v44  ;;  %4007 = vadd.xlane.f32.xlu0 %v4006_v35  ;;  %v5245_v25 = vsel %vm5221_vm6, %v5199_v54, %v3981_v57  ;;  %v12071_v35 = vmax.f32 %v3311_v37, 0.0 }
 0x674   :  { %v5635_v21 = vadd.f32 %v5634_v3, %v5633_v31  ;;  %v12024_v34 = vpop.xlane.xlu1 %4209  ;;  %v5980_v3 = vld [vmem:[%s12842_s5 + $0x278] sm:$0xff] }
 0x675   :  { %v4207_v33 = vpop.xlane.xlu0 %4206 }
 0x676   :  { %v5636_v1 = vrot.slane %v5635_v21, 4  ;;  %v5291_v36 = vsel %vm5267_vm7, %v5245_v25, %v4207_v33  ;;  %v3673_v33 = vmul.f32 %v5980_v3, %v12071_v35 }
 0x677   :  { %4459 = vadd.xlane.f32.xlu0 %v4458_v63  ;;  %3558 = vadd.xlane.f32.xlu1 %v3557_v52  ;;  %v5337_v31 = vsel %vm5313_vm8, %v5291_v36, %v4433_v18  ;;  %v6069_v18 = vld [vmem:[%s12842_s5 + $0x540] sm:$0xff]  ;;  %v6070_v63 = vld [vmem:[%s12842_s5 + $0x548] sm:$0xff] }
 0x678   :  { %v5637_v57 = vadd.f32 %v5636_v1, %v5635_v21  ;;  %v12038_v32 = vpop.xlane.xlu1 %4661  ;;  %v4124_v11 = vmul.f32 %v6069_v18, %v11993_v55  ;;  %v3401_v55 = vld [vmem:[%s12842_s5 + $0x110] sm:$0xff]  ;;  %v5139_v1 = vsel %vm3457_vm4, %v5028_v48, 0.0  ;;  %v6025_v52 = vld [vmem:[%s12842_s5 + $0x3e0] sm:$0xff] }
 0x679   :  { %v4659_v43 = vpop.xlane.xlu0 %4658  ;;  %v3446_v36 = vmul.f32 %v3401_v55, %v12071_v35  ;;  %v3899_v7 = vmul.f32 %v6025_v52, %v12071_v35 }
 0x67a   :  { %v5638_v22 = vrot.slane %v5637_v57, 2  ;;  %v5383_v30 = vsel %vm5359_vm9, %v5337_v31, %v4659_v43  ;;  %v4235_v40 = vsel %vm3457_vm4, %v4124_v11, 0.0  ;;  %v3312_v31 = vadd.f32 %v11918_v0, %v10482_v10 }
 0x67b   :  { %4911 = vadd.xlane.f32.xlu0 %v4910_v15  ;;  %4010 = vadd.xlane.f32.xlu1 %v4009_v58  ;;  %v5429_v62 = vsel %vm5405_vm10, %v5383_v30, %v4885_v26  ;;  %v4461_v26 = vsel %vm3457_vm4, %v4350_v27, 0.0  ;;  %v3560_v15 = vsel %vm3457_vm4, %v3446_v36, 0.0  ;;  %v6115_v30 = vld [vmem:[%s12842_s5 + $0x6b0] sm:$0xff]  ;;  %v4012_v37 = vsel %vm3457_vm4, %v3899_v7, 0.0 }
 0x67c   :  { %v5639_v49 = vadd.f32 %v5638_v22, %v5637_v57  ;;  %v12052_v13 = vpop.xlane.xlu1 %5113  ;;  %v3786_v57 = vsel %vm3457_vm4, %v3673_v33, 0.0  ;;  %v6160_v22 = vld [vmem:[%s12842_s5 + $0x818] sm:$0xff]  ;;  %v12118_v27 = vmax.f32 %v3312_v31, 0.0  ;;  %v6071_v31 = vld [vmem:[%s12842_s5 + $0x550] sm:$0xff] }
 0x67d   :  { %v5111_v29 = vpop.xlane.xlu0 %5110  ;;  %v4577_v59 = vmul.f32 %v6160_v22, %v12071_v35 }
 0x67e   :  { %v5640_v41 = vrot.slane %v5639_v49, 1  ;;  %v12060_v45 = vsel %vm5451_vm11, %v5429_v62, %v5111_v29  ;;  %v4351_v29 = vmul.f32 %v6115_v30, %v12071_v35  ;;  %v4126_v7 = vmul.f32 %v6071_v31, %v12118_v27 }
 0x67f   :  { %v5650_v42 = vrot.slane %v12060_v45, 4  ;;  %3784 = vadd.xlane.f32.xlu0 %v3783_v23  ;;  %4462 = vadd.xlane.f32.xlu1 %v4461_v26  ;;  %v3402_v23 = vld [vmem:[%s12842_s5 + $0x118] sm:$0xff] }
 0x680   :  { %v5641_v60 = vadd.f32 %v5640_v41, %v5639_v49  ;;  %v3535_v44 = vpop.xlane.xlu1 %3534  ;;  %v3447_v5 = vmul.f32 %v3402_v23, %v12118_v27 }
 0x681   :  { %v5651_v20 = vsel %vm5648_vm2, %v5649_v16, %v5650_v42  ;;  %v3532_v54 = vpop.xlane.xlu0 %3531 }
 0x682   :  { %v5200_v24 = vsel %vm5175_vm5, %v3532_v54, %v12008_v4  ;;  %v12085_v25 = vsel %vm5523_vm14, %v11721_v50, %v5641_v60  ;;  %v4690_v60 = vsel %vm3457_vm4, %v4577_v59, 0.0  ;;  %v4464_v54 = vsel %vm3457_vm4, %v4351_v29, 0.0 }
 0x683   :  { %4236 = vadd.xlane.f32.xlu0 %v4235_v40  ;;  %4914 = vadd.xlane.f32.xlu1 %v4913_v39  ;;  %v5668_v53 = vsel %vm5497_vm12, %v5651_v20, 0.0  ;;  %vm5772_vm14 = vcmask 1044480  }
 0x684   :  { %v3987_v21 = vpop.xlane.xlu1 %3986 }
 0x685   :  { %v3984_v4 = vpop.xlane.xlu0 %3983 }
 0x686   :  { %v5246_v38 = vsel %vm5221_vm6, %v5200_v24, %v3984_v4  ;;  %v3563_v4 = vsel %vm3457_vm4, %v3447_v5, 0.0 }
 0x687   :  { %4688 = vadd.xlane.f32.xlu0 %v4687_v28  ;;  %5140 = vadd.xlane.f32.xlu1 %v5139_v1  ;;  %v5292_v50 = vsel %vm5267_vm7, %v5246_v38, %v12024_v34  ;;  %v4125_v34 = vmul.f32 %v6070_v63, %v12071_v35  ;;  %v5981_v38 = vld [vmem:[%s12842_s5 + $0x280] sm:$0xff] }
 0x688   :  { %v4439_v51 = vpop.xlane.xlu1 %4438  ;;  %v3674_v52 = vmul.f32 %v5981_v38, %v12118_v27  ;;  %v6162_v38 = vld [vmem:[%s12842_s5 + $0x828] sm:$0xff] }
 0x689   :  { %v4436_v8 = vpop.xlane.xlu0 %4435  ;;  %v4238_v49 = vsel %vm3457_vm4, %v4125_v34, 0.0 }
 0x68a   :  { %v5338_v43 = vsel %vm5313_vm8, %v5292_v50, %v4436_v8 }
 0x68b   :  { %3787 = vadd.xlane.f32.xlu1 %v3786_v57  ;;  %3561 = vadd.xlane.f32.xlu0 %v3560_v15  ;;  %v5384_v10 = vsel %vm5359_vm9, %v5338_v43, %v12038_v32  ;;  %v6205_v32 = vld [vmem:[%s12842_s5 + $0x980] sm:$0xff]  ;;  %v6206_v57 = vld [vmem:[%s12842_s5 + $0x988] sm:$0xff]  ;;  %v3313_v15 = vadd.f32 %v11918_v0, %v10500_v47  ;;  %v6251_v47 = vld [vmem:[%s12842_s5 + $0xaf0] sm:$0xff] }
 0x68c   :  { %v4891_v58 = vpop.xlane.xlu1 %4890  ;;  %v4803_v26 = vmul.f32 %v6205_v32, %v12071_v35  ;;  %v5030_v23 = vmul.f32 %v6251_v47, %v12118_v27 }
 0x68d   :  { %v4888_v18 = vpop.xlane.xlu0 %4887 }
 0x68e   :  { %v5430_v62 = vsel %vm5405_vm10, %v5384_v10, %v4888_v18  ;;  %v4916_v20 = vsel %vm3457_vm4, %v4803_v26, 0.0  ;;  %v3789_v10 = vsel %vm3457_vm4, %v3674_v52, 0.0  ;;  %v6161_v18 = vld [vmem:[%s12842_s5 + $0x820] sm:$0xff]  ;;  %v4241_v26 = vsel %vm3457_vm4, %v4126_v7, 0.0 }
 0x68f   :  { %v5476_v11 = vsel %vm5451_vm11, %v5430_v62, %v12052_v13  ;;  %4239 = vadd.xlane.f32.xlu1 %v4238_v49  ;;  %4013 = vadd.xlane.f32.xlu0 %v4012_v37  ;;  %v6250_v13 = vld [vmem:[%s12842_s5 + $0xae8] sm:$0xff]  ;;  %v12194_v49 = vmax.f32 %v3313_v15, 0.0  ;;  %v4578_v32 = vmul.f32 %v6161_v18, %v12118_v27 }
 0x690   :  { %v5652_v61 = vrot.slane %v5476_v11, 4  ;;  %v3764_v41 = vpop.xlane.xlu1 %3763  ;;  %v5029_v3 = vmul.f32 %v6250_v13, %v12071_v35  ;;  %v6116_v35 = vld [vmem:[%s12842_s5 + $0x6b8] sm:$0xff] }
 0x691   :  { %v3761_v45 = vpop.xlane.xlu0 %3760  ;;  %v4693_v13 = vsel %vm3457_vm4, %v4578_v32, 0.0  ;;  %v6252_v32 = vld [vmem:[%s12842_s5 + $0xaf8] sm:$0xff] }
 0x692   :  { %v5653_v12 = vsel %vm5648_vm2, %v5650_v42, %v5652_v61  ;;  %v5201_v16 = vsel %vm5175_vm5, %v3535_v44, %v3761_v45  ;;  %v6026_v42 = vld [vmem:[%s12842_s5 + $0x3e8] sm:$0xff]  ;;  %v5142_v36 = vsel %vm3457_vm4, %v5029_v3, 0.0  ;;  %v3314_v3 = vadd.f32 %v11918_v0, %v10512_v9 }
 0x693   :  { %v5669_v48 = vsel %vm5497_vm12, %v5653_v12, 0.0  ;;  %4691 = vadd.xlane.f32.xlu1 %v4690_v60  ;;  %4465 = vadd.xlane.f32.xlu0 %v4464_v54  ;;  %v5247_v24 = vsel %vm5221_vm6, %v5201_v16, %v3987_v21  ;;  %v3900_v33 = vmul.f32 %v6026_v42, %v12118_v27  ;;  %v5982_v12 = vld [vmem:[%s12842_s5 + $0x288] sm:$0xff]  ;;  %v6072_v42 = vld [vmem:[%s12842_s5 + $0x558] sm:$0xff] }
 0x694   :  { %v12148_v44 = vpop.xlane.xlu1 %4215  ;;  %v5670_v40 = vadd.f32 %v5669_v48, %v5668_v53  ;;  %v3675_v54 = vmul.f32 %v5982_v12, %v12194_v49  ;;  %v5145_v53 = vsel %vm3457_vm4, %v5030_v23, 0.0  ;;  %v5031_v12 = vmul.f32 %v6252_v32, %v12194_v49 }
 0x695   :  { %v4213_v39 = vpop.xlane.xlu0 %4212  ;;  %v4015_v63 = vsel %vm3457_vm4, %v3900_v33, 0.0 }
 0x696   :  { %v5293_v55 = vsel %vm5267_vm7, %v5247_v24, %v4213_v39 }
 0x697   :  { %4917 = vadd.xlane.f32.xlu0 %v4916_v20  ;;  %3564 = vadd.xlane.f32.xlu1 %v3563_v4  ;;  %v5339_v21 = vsel %vm5313_vm8, %v5293_v55, %v4439_v51  ;;  %v4352_v51 = vmul.f32 %v6116_v35, %v12118_v27  ;;  %v3792_v20 = vsel %vm3457_vm4, %v3675_v54, 0.0  ;;  %v6117_v35 = vld [vmem:[%s12842_s5 + $0x6c0] sm:$0xff] }
 0x698   :  { %v12162_v28 = vpop.xlane.xlu1 %4667 }
 0x699   :  { %v4665_v1 = vpop.xlane.xlu0 %4664  ;;  %v4467_v30 = vsel %vm3457_vm4, %v4352_v51, 0.0 }
 0x69a   :  { %v5385_v50 = vsel %vm5359_vm9, %v5339_v21, %v4665_v1 }
 0x69b   :  { %5143 = vadd.xlane.f32.xlu0 %v5142_v36  ;;  %4016 = vadd.xlane.f32.xlu1 %v4015_v63  ;;  %v5431_v8 = vsel %vm5405_vm10, %v5385_v50, %v4891_v58  ;;  %v4804_v58 = vmul.f32 %v6206_v57, %v12118_v27  ;;  %v12237_v36 = vmax.f32 %v3314_v3, 0.0  ;;  %v4579_v63 = vmul.f32 %v6162_v38, %v12194_v49  ;;  %v3404_v57 = vld [vmem:[%s12842_s5 + $0x128] sm:$0xff] }
 0x69c   :  { %v12176_v43 = vpop.xlane.xlu1 %5119 }
 0x69d   :  { %v5117_v34 = vpop.xlane.xlu0 %5116  ;;  %v4919_v5 = vsel %vm3457_vm4, %v4804_v58, 0.0  ;;  %v4696_v47 = vsel %vm3457_vm4, %v4579_v63, 0.0  ;;  %v5984_v63 = vld [vmem:[%s12842_s5 + $0x298] sm:$0xff] }
 0x69e   :  { %v12182_v22 = vsel %vm5451_vm11, %v5431_v8, %v5117_v34  ;;  %v4353_v8 = vmul.f32 %v6117_v35, %v12194_v49 }
 0x69f   :  { %v5654_v59 = vrot.slane %v12182_v22, 4  ;;  %3790 = vadd.xlane.f32.xlu0 %v3789_v10  ;;  %4468 = vadd.xlane.f32.xlu1 %v4467_v30  ;;  %v3449_v30 = vmul.f32 %v3404_v57, %v12237_v36 }
 0x6a0   :  { %v3541_v62 = vpop.xlane.xlu1 %3540 }
 0x6a1   :  { %v5655_v37 = vsel %vm5648_vm2, %v5652_v61, %v5654_v59  ;;  %v3538_v29 = vpop.xlane.xlu0 %3537  ;;  %v3403_v61 = vld [vmem:[%s12842_s5 + $0x120] sm:$0xff] }
 0x6a2   :  { %v5671_v11 = vsel %vm5497_vm12, %v5655_v37, 0.0  ;;  %v5202_v45 = vsel %vm5175_vm5, %v3538_v29, %v3764_v41  ;;  %v3448_v48 = vmul.f32 %v3403_v61, %v12194_v49  ;;  %v4470_v37 = vsel %vm3457_vm4, %v4353_v8, 0.0 }
 0x6a3   :  { %v5672_v16 = vadd.f32 %v5671_v11, %v5670_v40  ;;  %4242 = vadd.xlane.f32.xlu0 %v4241_v26  ;;  %4920 = vadd.xlane.f32.xlu1 %v4919_v5  ;;  %v6027_v40 = vld [vmem:[%s12842_s5 + $0x3f0] sm:$0xff]  ;;  %v3569_v5 = vsel %vm3457_vm4, %v3449_v30, 0.0  ;;  %v6074_v30 = vld [vmem:[%s12842_s5 + $0x568] sm:$0xff] }
 0x6a4   :  { %v3993_v27 = vpop.xlane.xlu1 %3992  ;;  %v3566_v33 = vsel %vm3457_vm4, %v3448_v48, 0.0  ;;  %v3901_v21 = vmul.f32 %v6027_v40, %v12194_v49  ;;  %v5148_v48 = vsel %vm3457_vm4, %v5031_v12, 0.0  ;;  %v6073_v40 = vld [vmem:[%s12842_s5 + $0x560] sm:$0xff] }
 0x6a5   :  { %v3990_v60 = vpop.xlane.xlu0 %3989 }
 0x6a6   :  { %v5248_v41 = vsel %vm5221_vm6, %v5202_v45, %v3990_v60  ;;  %v4018_v31 = vsel %vm3457_vm4, %v3901_v21, 0.0  ;;  %v6118_v60 = vld [vmem:[%s12842_s5 + $0x6c8] sm:$0xff] }
 0x6a7   :  { %4694 = vadd.xlane.f32.xlu0 %v4693_v13  ;;  %5146 = vadd.xlane.f32.xlu1 %v5145_v53  ;;  %v5294_v24 = vsel %vm5267_vm7, %v5248_v41, %v12148_v44  ;;  %v4127_v44 = vmul.f32 %v6072_v42, %v12194_v49  ;;  %v3315_v41 = vadd.f32 %v11918_v0, %v10531_v56  ;;  %v6208_v56 = vld [vmem:[%s12842_s5 + $0x998] sm:$0xff] }
 0x6a8   :  { %v4445_v39 = vpop.xlane.xlu1 %4444  ;;  %v4354_v42 = vmul.f32 %v6118_v60, %v12237_v36  ;;  %v4806_v35 = vmul.f32 %v6208_v56, %v12237_v36  ;;  %v6029_v60 = vld [vmem:[%s12842_s5 + $0x400] sm:$0xff] }
 0x6a9   :  { %v4442_v55 = vpop.xlane.xlu0 %4441  ;;  %v4244_v51 = vsel %vm3457_vm4, %v4127_v44, 0.0  ;;  %v4128_v44 = vmul.f32 %v6073_v40, %v12237_v36  ;;  %v6119_v40 = vld [vmem:[%s12842_s5 + $0x6d0] sm:$0xff] }
 0x6aa   :  { %v5340_v4 = vsel %vm5313_vm8, %v5294_v24, %v4442_v55 }
 0x6ab   :  { %3793 = vadd.xlane.f32.xlu1 %v3792_v20  ;;  %3567 = vadd.xlane.f32.xlu0 %v3566_v33  ;;  %v5386_v9 = vsel %vm5359_vm9, %v5340_v4, %v12162_v28  ;;  %v6207_v28 = vld [vmem:[%s12842_s5 + $0x990] sm:$0xff]  ;;  %v12295_v20 = vmax.f32 %v3315_v41, 0.0 }
 0x6ac   :  { %v4897_v1 = vpop.xlane.xlu1 %4896  ;;  %v4805_v10 = vmul.f32 %v6207_v28, %v12194_v49 }
 0x6ad   :  { %v4894_v50 = vpop.xlane.xlu0 %4893  ;;  %v4129_v32 = vmul.f32 %v6074_v30, %v12295_v20  ;;  %v6120_v30 = vld [vmem:[%s12842_s5 + $0x6d8] sm:$0xff] }
 0x6ae   :  { %v5432_v52 = vsel %vm5405_vm10, %v5386_v9, %v4894_v50  ;;  %v4922_v45 = vsel %vm3457_vm4, %v4805_v10, 0.0  ;;  %v4473_v9 = vsel %vm3457_vm4, %v4354_v42, 0.0  ;;  %v6253_v10 = vld [vmem:[%s12842_s5 + $0xb00] sm:$0xff] }
 0x6af   :  { %v5478_v15 = vsel %vm5451_vm11, %v5432_v52, %v12176_v43  ;;  %4245 = vadd.xlane.f32.xlu1 %v4244_v51  ;;  %4019 = vadd.xlane.f32.xlu0 %v4018_v31 }
 0x6b0   :  { %v5656_v34 = vrot.slane %v5478_v15, 4  ;;  %v5123_v7 = vpop.xlane.xlu1 %5122  ;;  %v4247_v15 = vsel %vm3457_vm4, %v4128_v44, 0.0 }
 0x6b1   :  { %v3767_v22 = vpop.xlane.xlu0 %3766 }
 0x6b2   :  { %v5657_v58 = vsel %vm5648_vm2, %v5654_v59, %v5656_v34  ;;  %v5203_v18 = vsel %vm5175_vm5, %v3541_v62, %v3767_v22  ;;  %v6028_v59 = vld [vmem:[%s12842_s5 + $0x3f8] sm:$0xff] }
 0x6b3   :  { %v5673_v29 = vsel %vm5497_vm12, %v5657_v58, 0.0  ;;  %4697 = vadd.xlane.f32.xlu1 %v4696_v47  ;;  %4471 = vadd.xlane.f32.xlu0 %v4470_v37  ;;  %v5249_v43 = vsel %vm5221_vm6, %v5203_v18, %v3993_v27  ;;  %v3902_v61 = vmul.f32 %v6028_v59, %v12237_v36  ;;  %v5983_v27 = vld [vmem:[%s12842_s5 + $0x290] sm:$0xff]  ;;  %v6164_v59 = vld [vmem:[%s12842_s5 + $0x838] sm:$0xff] }
 0x6b4   :  { %v5674_v23 = vadd.f32 %v5673_v29, %v5672_v16  ;;  %v3770_v62 = vpop.xlane.xlu1 %3769  ;;  %v3676_v49 = vmul.f32 %v5983_v27, %v12237_v36 }
 0x6b5   :  { %v4219_v11 = vpop.xlane.xlu0 %4218  ;;  %v4021_v24 = vsel %vm3457_vm4, %v3902_v61, 0.0  ;;  %v4250_v61 = vsel %vm3457_vm4, %v4129_v32, 0.0 }
 0x6b6   :  { %v5295_v26 = vsel %vm5267_vm7, %v5249_v43, %v4219_v11  ;;  %v3795_v38 = vsel %vm3457_vm4, %v3676_v49, 0.0  ;;  %v5032_v43 = vmul.f32 %v6253_v10, %v12237_v36 }
 0x6b7   :  { %4923 = vadd.xlane.f32.xlu0 %v4922_v45  ;;  %3570 = vadd.xlane.f32.xlu1 %v3569_v5  ;;  %v5341_v16 = vsel %vm5313_vm8, %v5295_v26, %v4445_v39  ;;  %v3316_v45 = vadd.f32 %v11918_v0, %v10543_v19 }
 0x6b8   :  { %v4222_v54 = vpop.xlane.xlu1 %4221  ;;  %v5151_v12 = vsel %vm3457_vm4, %v5032_v43, 0.0 }
 0x6b9   :  { %v4671_v13 = vpop.xlane.xlu0 %4670  ;;  %v12352_v49 = vmax.f32 %v3316_v45, 0.0  ;;  %v6210_v45 = vld [vmem:[%s12842_s5 + $0x9a8] sm:$0xff] }
 0x6ba   :  { %v5387_v53 = vsel %vm5359_vm9, %v5341_v16, %v4671_v13  ;;  %v6209_v16 = vld [vmem:[%s12842_s5 + $0x9a0] sm:$0xff]  ;;  %v3903_v13 = vmul.f32 %v6029_v60, %v12295_v20 }
 0x6bb   :  { %v5433_v39 = vsel %vm5405_vm10, %v5387_v53, %v4897_v1  ;;  %5149 = vadd.xlane.f32.xlu0 %v5148_v48  ;;  %4022 = vadd.xlane.f32.xlu1 %v4021_v24  ;;  %v6163_v1 = vld [vmem:[%s12842_s5 + $0x830] sm:$0xff]  ;;  %v4807_v41 = vmul.f32 %v6209_v16, %v12295_v20 }
 0x6bc   :  { %v12293_v3 = vsel %vm5451_vm11, %v5433_v39, %v5123_v7  ;;  %v4674_v55 = vpop.xlane.xlu1 %4673  ;;  %v4580_v8 = vmul.f32 %v6163_v1, %v12237_v36  ;;  %v4925_v7 = vsel %vm3457_vm4, %v4806_v35, 0.0  ;;  %v4581_v36 = vmul.f32 %v6164_v59, %v12295_v20  ;;  %v3406_v39 = vld [vmem:[%s12842_s5 + $0x138] sm:$0xff] }
 0x6bd   :  { %v5658_v4 = vrot.slane %v12293_v3, 4  ;;  %v3544_v33 = vpop.xlane.xlu0 %3543  ;;  %v4928_v44 = vsel %vm3457_vm4, %v4807_v41, 0.0  ;;  %v4355_v35 = vmul.f32 %v6119_v40, %v12295_v20  ;;  %v3451_v1 = vmul.f32 %v3406_v39, %v12352_v49 }
 0x6be   :  { %v5204_v21 = vsel %vm5175_vm5, %v3544_v33, %v3770_v62  ;;  %v4699_v47 = vsel %vm3457_vm4, %v4580_v8, 0.0  ;;  %v3405_v62 = vld [vmem:[%s12842_s5 + $0x130] sm:$0xff]  ;;  %v4702_v48 = vsel %vm3457_vm4, %v4581_v36, 0.0 }
 0x6bf   :  { %v5659_v50 = vsel %vm5648_vm2, %v5656_v34, %v5658_v4  ;;  %3796 = vadd.xlane.f32.xlu0 %v3795_v38  ;;  %4474 = vadd.xlane.f32.xlu1 %v4473_v9  ;;  %v3677_v34 = vmul.f32 %v5984_v63, %v12295_v20  ;;  %v3450_v27 = vmul.f32 %v3405_v62, %v12295_v20  ;;  %v6030_v63 = vld [vmem:[%s12842_s5 + $0x408] sm:$0xff]  ;;  %v6165_v62 = vld [vmem:[%s12842_s5 + $0x840] sm:$0xff] }
 0x6c0   :  { %v5675_v52 = vsel %vm5497_vm12, %v5659_v50, 0.0  ;;  %v3547_v51 = vpop.xlane.xlu1 %3546  ;;  %v5985_v50 = vld [vmem:[%s12842_s5 + $0x2a0] sm:$0xff]  ;;  %v4582_v60 = vmul.f32 %v6165_v62, %v12352_v49  ;;  %v3408_v62 = vld [vmem:[%s12842_s5 + $0x148] sm:$0xff] }
 0x6c1   :  { %v3996_v31 = vpop.xlane.xlu0 %3995  ;;  %v5676_v28 = vadd.f32 %v5675_v52, %v5674_v23  ;;  %v3798_v29 = vsel %vm3457_vm4, %v3677_v34, 0.0  ;;  %v3572_v24 = vsel %vm3457_vm4, %v3450_v27, 0.0  ;;  %v3678_v8 = vmul.f32 %v5985_v50, %v12352_v49  ;;  %v6075_v34 = vld [vmem:[%s12842_s5 + $0x570] sm:$0xff] }
 0x6c2   :  { %v5250_v57 = vsel %vm5221_vm6, %v5204_v21, %v3996_v31  ;;  %v4024_v21 = vsel %vm3457_vm4, %v3903_v13, 0.0  ;;  %v4808_v13 = vmul.f32 %v6210_v45, %v12352_v49 }
 0x6c3   :  { %4248 = vadd.xlane.f32.xlu0 %v4247_v15  ;;  %4926 = vadd.xlane.f32.xlu1 %v4925_v7  ;;  %v5296_v22 = vsel %vm5267_vm7, %v5250_v57, %v4222_v54  ;;  %v4476_v15 = vsel %vm3457_vm4, %v4355_v35, 0.0  ;;  %v3575_v7 = vsel %vm3457_vm4, %v3451_v1, 0.0  ;;  %v3801_v32 = vsel %vm3457_vm4, %v3678_v8, 0.0  ;;  %v3407_v35 = vld [vmem:[%s12842_s5 + $0x140] sm:$0xff]  ;;  %v6031_v8 = vld [vmem:[%s12842_s5 + $0x410] sm:$0xff] }
 0x6c4   :  { %v3999_v58 = vpop.xlane.xlu1 %3998 }
 0x6c5   :  { %v4448_v18 = vpop.xlane.xlu0 %4447 }
 0x6c6   :  { %v5342_v37 = vsel %vm5313_vm8, %v5296_v22, %v4448_v18 }
 0x6c7   :  { %4700 = vadd.xlane.f32.xlu0 %v4699_v47  ;;  %3799 = vadd.xlane.f32.xlu1 %v3798_v29  ;;  %v5388_v23 = vsel %vm5359_vm9, %v5342_v37, %v4674_v55  ;;  %v4130_v29 = vmul.f32 %v6075_v34, %v12352_v49 }
 0x6c8   :  { %v4451_v11 = vpop.xlane.xlu1 %4450 }
 0x6c9   :  { %v4900_v26 = vpop.xlane.xlu0 %4899 }
 0x6ca   :  { %v5434_v5 = vsel %vm5405_vm10, %v5388_v23, %v4900_v26  ;;  %v4356_v23 = vmul.f32 %v6120_v30, %v12352_v49 }
 0x6cb   :  { %5152 = vadd.xlane.f32.xlu0 %v5151_v12  ;;  %4251 = vadd.xlane.f32.xlu1 %v4250_v61 }
 0x6cc   :  { %v4903_v19 = vpop.xlane.xlu1 %4902  ;;  %v4479_v41 = vsel %vm3457_vm4, %v4356_v23, 0.0  ;;  %v6211_v23 = vld [vmem:[%s12842_s5 + $0x9b0] sm:$0xff] }
 0x6cd   :  { %v5126_v54 = vpop.xlane.xlu0 %5125 }
 0x6ce   :  { %v12355_v53 = vsel %vm5451_vm11, %v5434_v5, %v5126_v54  ;;  %v4253_v54 = vsel %vm3457_vm4, %v4130_v29, 0.0 }
 0x6cf   :  { %v5660_v42 = vrot.slane %v12355_v53, 4  ;;  %4703 = vadd.xlane.f32.xlu1 %v4702_v48  ;;  %3573 = vadd.xlane.f32.xlu0 %v3572_v24  ;;  %v5690_v61 = vrot.slane %v12355_v53, 1  ;;  %v6255_v53 = vld [vmem:[%s12842_s5 + $0xb10] sm:$0xff]  ;;  %v5986_v24 = vld [vmem:[%s12842_s5 + $0x2a8] sm:$0xff] }
 0x6d0   :  { %v5129_v56 = vpop.xlane.xlu1 %5128 }
 0x6d1   :  { %v5661_v55 = vsel %vm5648_vm2, %v5658_v4, %v5660_v42  ;;  %v3773_v33 = vpop.xlane.xlu0 %3772 }
 0x6d2   :  { %v5677_v38 = vsel %vm5507_vm13, %v5661_v55, 0.0  ;;  %v5205_v9 = vsel %vm5175_vm5, %v3547_v51, %v3773_v33  ;;  %v4705_v55 = vsel %vm3457_vm4, %v4582_v60, 0.0 }
 0x6d3   :  { %v5678_v3 = vadd.f32 %v5677_v38, %v5676_v28  ;;  %4929 = vadd.xlane.f32.xlu1 %v4928_v44  ;;  %4025 = vadd.xlane.f32.xlu0 %v4024_v21  ;;  %v5251_v4 = vsel %vm5221_vm6, %v5205_v9, %v3999_v58  ;;  %v3904_v28 = vmul.f32 %v6030_v63, %v12352_v49  ;;  %v4931_v44 = vsel %vm3457_vm4, %v4808_v13, 0.0  ;;  %v6076_v9 = vld [vmem:[%s12842_s5 + $0x578] sm:$0xff] }
 0x6d4   :  { %v3776_v52 = vpop.xlane.xlu1 %3775  ;;  %v3317_v58 = vadd.f32 %v11918_v0, %v10564_v6  ;;  %v5034_v21 = vmul.f32 %v6255_v53, %v12352_v49 }
 0x6d5   :  { %v5679_v31 = vrot.slane %v5678_v3, 4  ;;  %v4225_v51 = vpop.xlane.xlu0 %4224  ;;  %v4027_v59 = vsel %vm3457_vm4, %v3904_v28, 0.0 }
 0x6d6   :  { %v5297_v57 = vsel %vm5267_vm7, %v5251_v4, %v4225_v51  ;;  %v12408_v26 = vmax.f32 %v3317_v58, 0.0  ;;  %v5157_v4 = vsel %vm3457_vm4, %v5034_v21, 0.0  ;;  %v6256_v58 = vld [vmem:[%s12842_s5 + $0xb18] sm:$0xff]  ;;  %v6122_v21 = vld [vmem:[%s12842_s5 + $0x6e8] sm:$0xff] }
 0x6d7   :  { %v5680_v22 = vadd.f32 %v5679_v31, %v5678_v3  ;;  %4477 = vadd.xlane.f32.xlu0 %v4476_v15  ;;  %3576 = vadd.xlane.f32.xlu1 %v3575_v7  ;;  %v5343_v10 = vsel %vm5313_vm8, %v5297_v57, %v4451_v11  ;;  %v6166_v31 = vld [vmem:[%s12842_s5 + $0x848] sm:$0xff]  ;;  %v3318_v15 = vadd.f32 %v11918_v0, %v10577_v2  ;;  %v6121_v2 = vld [vmem:[%s12842_s5 + $0x6e0] sm:$0xff] }
 0x6d8   :  { %v4228_v18 = vpop.xlane.xlu1 %4227  ;;  %v3679_v38 = vmul.f32 %v5986_v24, %v12408_v26  ;;  %v4131_v3 = vmul.f32 %v6076_v9, %v12408_v26  ;;  %v4583_v28 = vmul.f32 %v6166_v31, %v12408_v26  ;;  %v3905_v30 = vmul.f32 %v6031_v8, %v12408_v26  ;;  %v12518_v9 = vld [vmem:[%s12841_s4] ss:$0 sm:$0xff] }
 0x6d9   :  { %v5681_v47 = vrot.slane %v5680_v22, 2  ;;  %v4677_v37 = vpop.xlane.xlu0 %4676 }
 0x6da   :  { %v5389_v43 = vsel %vm5359_vm9, %v5343_v10, %v4677_v37  ;;  %v3804_v63 = vsel %vm3457_vm4, %v3679_v38, 0.0  ;;  %v5035_v37 = vmul.f32 %v6256_v58, %v12408_v26 }
 0x6db   :  { %v5682_v11 = vadd.f32 %v5681_v47, %v5680_v22  ;;  %v5435_v6 = vsel %vm5405_vm10, %v5389_v43, %v4903_v19  ;;  %3802 = vadd.xlane.f32.xlu0 %v3801_v32  ;;  %4028 = vadd.xlane.f32.xlu1 %v4027_v59  ;;  %v4256_v22 = vsel %vm3457_vm4, %v4131_v3, 0.0  ;;  %v4708_v43 = vsel %vm3457_vm4, %v4583_v28, 0.0 }
 0x6dc   :  { %v12411_v36 = vsel %vm5451_vm11, %v5435_v6, %v5129_v56  ;;  %v4680_v5 = vpop.xlane.xlu1 %4679  ;;  %v4030_v32 = vsel %vm3457_vm4, %v3905_v30, 0.0  ;;  %v4357_v59 = vmul.f32 %v6121_v2, %v12408_v26  ;;  %v6257_v30 = vld [vmem:[%s12842_s5 + $0xb20] sm:$0xff]  ;;  %v5988_v2 = vld [vmem:[%s12842_s5 + $0x2b8] sm:$0xff] }
 0x6dd   :  { %v5683_v12 = vrot.slane %v5682_v11, 1  ;;  %v5691_v27 = vrot.slane %v12411_v36, 1  ;;  %v3550_v16 = vpop.xlane.xlu0 %3549  ;;  %v5987_v36 = vld [vmem:[%s12842_s5 + $0x2b0] sm:$0xff] }
 0x6de   :  { %v5206_v19 = vsel %vm5175_vm5, %v3550_v16, %v3776_v52  ;;  %v3452_v52 = vmul.f32 %v3407_v35, %v12408_v26 }
 0x6df   :  { %v5684_v48 = vadd.f32 %v5683_v12, %v5682_v11  ;;  %4254 = vadd.xlane.f32.xlu0 %v4253_v54  ;;  %4480 = vadd.xlane.f32.xlu1 %v4479_v41  ;;  %v5692_v42 = vsel %vm930_vm1, %v5690_v61, %v5691_v27  ;;  %v5160_v12 = vsel %vm3457_vm4, %v5035_v37, 0.0  ;;  %v4809_v61 = vmul.f32 %v6211_v23, %v12408_v26  ;;  %v6032_v26 = vld [vmem:[%s12842_s5 + $0x418] sm:$0xff] }
 0x6e0   :  { %v3553_v40 = vpop.xlane.xlu1 %3552  ;;  %v3578_v10 = vsel %vm3457_vm4, %v3452_v52, 0.0  ;;  %v5707_v60 = vsel %vm5497_vm12, %v5692_v42, 0.0  ;;  %v4482_v41 = vsel %vm3457_vm4, %v4357_v59, 0.0  ;;  %v6167_v52 = vld [vmem:[%s12842_s5 + $0x850] sm:$0xff] }
 0x6e1   :  { %v12431_v39 = vsel %vm5648_vm2, %v12085_v25, %v5684_v48  ;;  %v4002_v56 = vpop.xlane.xlu0 %4001 }
 0x6e2   :  { %v5252_v33 = vsel %vm5221_vm6, %v5206_v19, %v4002_v56 }
 0x6e3   :  { %4706 = vadd.xlane.f32.xlu0 %v4705_v55  ;;  %4932 = vadd.xlane.f32.xlu1 %v4931_v44  ;;  %v5298_v25 = vsel %vm5267_vm7, %v5252_v33, %v4228_v18  ;;  %v12470_v18 = vmax.f32 %v3318_v15, 0.0  ;;  %v6077_v33 = vld [vmem:[%s12842_s5 + $0x580] sm:$0xff] }
 0x6e4   :  { %v4005_v1 = vpop.xlane.xlu1 %4004 }
 0x6e5   :  { %v4454_v50 = vpop.xlane.xlu0 %4453  ;;  %v3453_v16 = vmul.f32 %v3408_v62, %v12470_v18  ;;  %v3680_v24 = vmul.f32 %v5987_v36, %v12470_v18  ;;  %v3906_v55 = vmul.f32 %v6032_v26, %v12470_v18  ;;  %v6033_v36 = vld [vmem:[%s12842_s5 + $0x420] sm:$0xff] }
 0x6e6   :  { %v5344_v49 = vsel %vm5313_vm8, %v5298_v25, %v4454_v50  ;;  %v3319_v25 = vadd.f32 %v12518_v9, %v10597_v46  ;;  %v6212_v46 = vld [vmem:[%s12842_s5 + $0x9b8] sm:$0xff] }
 0x6e7   :  { %5158 = vadd.xlane.f32.xlu0 %v5157_v4  ;;  %3805 = vadd.xlane.f32.xlu1 %v3804_v63  ;;  %v5390_v51 = vsel %vm5359_vm9, %v5344_v49, %v4680_v5  ;;  %v3581_v56 = vsel %vm3457_vm4, %v3453_v16, 0.0  ;;  %v3807_v3 = vsel %vm3457_vm4, %v3680_v24, 0.0  ;;  %v4033_v49 = vsel %vm3457_vm4, %v3906_v55, 0.0  ;;  %v6123_v55 = vld [vmem:[%s12842_s5 + $0x6f0] sm:$0xff] }
 0x6e8   :  { %v4457_v57 = vpop.xlane.xlu1 %4456  ;;  %v4358_v4 = vmul.f32 %v6122_v21, %v12470_v18  ;;  %v12535_v8 = vmax.f32 %v3319_v25, 0.0 }
 0x6e9   :  { %v4906_v7 = vpop.xlane.xlu0 %4905 }
 0x6ea   :  { %v5436_v34 = vsel %vm5405_vm10, %v5390_v51, %v4906_v7  ;;  %v3681_v62 = vmul.f32 %v5988_v2, %v12535_v8 }
 0x6eb   :  { %4257 = vadd.xlane.f32.xlu1 %v4256_v22  ;;  %3579 = vadd.xlane.f32.xlu0 %v3578_v10  ;;  %v4584_v22 = vmul.f32 %v6167_v52, %v12470_v18  ;;  %v4810_v10 = vmul.f32 %v6212_v46, %v12470_v18  ;;  %v3410_v46 = vld [vmem:[%s12842_s5 + $0x158] sm:$0xff] }
 0x6ec   :  { %v4909_v0 = vpop.xlane.xlu1 %4908 }
 0x6ed   :  { %v5132_v47 = vpop.xlane.xlu0 %5131  ;;  %v4711_v59 = vsel %vm3457_vm4, %v4584_v22, 0.0  ;;  %v4937_v23 = vsel %vm3457_vm4, %v4810_v10, 0.0  ;;  %v5989_v10 = vld [vmem:[%s12842_s5 + $0x2c0] sm:$0xff] }
 0x6ee   :  { %v12474_v29 = vsel %vm5451_vm11, %v5436_v34, %v5132_v47  ;;  %v4485_v34 = vsel %vm3457_vm4, %v4358_v4, 0.0  ;;  %v6258_v4 = vld [vmem:[%s12842_s5 + $0xb28] sm:$0xff] }
 0x6ef   :  { %v5693_v11 = vrot.slane %v12474_v29, 1  ;;  %4709 = vadd.xlane.f32.xlu1 %v4708_v43  ;;  %4031 = vadd.xlane.f32.xlu0 %v4030_v32  ;;  %v5036_v29 = vmul.f32 %v6257_v30, %v12470_v18 }
 0x6f0   :  { %v5135_v6 = vpop.xlane.xlu1 %5134 }
 0x6f1   :  { %v5694_v45 = vsel %vm930_vm1, %v5691_v27, %v5693_v11  ;;  %v3779_v5 = vpop.xlane.xlu0 %3778  ;;  %v5163_v16 = vsel %vm3457_vm4, %v5036_v29, 0.0 }
 0x6f2   :  { %v5708_v19 = vsel %vm5497_vm12, %v5694_v45, 0.0  ;;  %v5207_v54 = vsel %vm5175_vm5, %v3553_v40, %v3779_v5  ;;  %v4934_v40 = vsel %vm3457_vm4, %v4809_v61, 0.0 }
 0x6f3   :  { %v5709_v27 = vadd.f32 %v5708_v19, %v5707_v60  ;;  %5161 = vadd.xlane.f32.xlu1 %v5160_v12  ;;  %4483 = vadd.xlane.f32.xlu0 %v4482_v41  ;;  %v5253_v13 = vsel %vm5221_vm6, %v5207_v54, %v4005_v1  ;;  %v4132_v1 = vmul.f32 %v6077_v33, %v12470_v18  ;;  %v3409_v18 = vld [vmem:[%s12842_s5 + $0x150] sm:$0xff]  ;;  %v3810_v60 = vsel %vm3457_vm4, %v3681_v62, 0.0  ;;  %v6168_v41 = vld [vmem:[%s12842_s5 + $0x858] sm:$0xff] }
 0x6f4   :  { %v3782_v48 = vpop.xlane.xlu1 %3781  ;;  %v3454_v19 = vmul.f32 %v3409_v18, %v12535_v8 }
 0x6f5   :  { %v4231_v53 = vpop.xlane.xlu0 %4230  ;;  %v4259_v7 = vsel %vm3457_vm4, %v4132_v1, 0.0 }
 0x6f6   :  { %v5299_v42 = vsel %vm5267_vm7, %v5253_v13, %v4231_v53  ;;  %v3320_v13 = vadd.f32 %v12518_v9, %v10611_v17  ;;  %v3584_v24 = vsel %vm3457_vm4, %v3454_v19, 0.0  ;;  %v6169_v19 = vld [vmem:[%s12842_s5 + $0x860] sm:$0xff] }
 0x6f7   :  { %4935 = vadd.xlane.f32.xlu0 %v4934_v40  ;;  %3582 = vadd.xlane.f32.xlu1 %v3581_v56  ;;  %v5345_v44 = vsel %vm5313_vm8, %v5299_v42, %v4457_v57  ;;  %v4585_v42 = vmul.f32 %v6168_v41, %v12535_v8  ;;  %v3907_v40 = vmul.f32 %v6033_v36, %v12535_v8  ;;  %v6213_v56 = vld [vmem:[%s12842_s5 + $0x9c0] sm:$0xff] }
 0x6f8   :  { %v4234_v38 = vpop.xlane.xlu1 %4233  ;;  %v12588_v21 = vmax.f32 %v3320_v13, 0.0  ;;  %v4811_v25 = vmul.f32 %v6213_v56, %v12535_v8  ;;  %v6259_v56 = vld [vmem:[%s12842_s5 + $0xb30] sm:$0xff] }
 0x6f9   :  { %v4683_v35 = vpop.xlane.xlu0 %4682 }
 0x6fa   :  { %v5391_v50 = vsel %vm5359_vm9, %v5345_v44, %v4683_v35  ;;  %v4359_v35 = vmul.f32 %v6123_v55, %v12535_v8  ;;  %v3455_v22 = vmul.f32 %v3410_v46, %v12588_v21 }
 0x6fb   :  { %v5437_v63 = vsel %vm5405_vm10, %v5391_v50, %v4909_v0  ;;  %3808 = vadd.xlane.f32.xlu0 %v3807_v3  ;;  %4034 = vadd.xlane.f32.xlu1 %v4033_v49  ;;  %v4714_v3 = vsel %vm3457_vm4, %v4585_v42, 0.0  ;;  %v4036_v49 = vsel %vm3457_vm4, %v3907_v40, 0.0 }
 0x6fc   :  { %v5483_v31 = vsel %vm5451_vm11, %v5437_v63, %v5135_v6  ;;  %v4686_v51 = vpop.xlane.xlu1 %4685  ;;  %v3587_v29 = vsel %vm3457_vm4, %v3455_v22, 0.0  ;;  %v6035_v22 = vld [vmem:[%s12842_s5 + $0x430] sm:$0xff] }
 0x6fd   :  { %v5695_v57 = vrot.slane %v5483_v31, 1  ;;  %v3556_v15 = vpop.xlane.xlu0 %3555 }
 0x6fe   :  { %v5208_v28 = vsel %vm5175_vm5, %v3556_v15, %v3782_v48  ;;  %v5037_v15 = vmul.f32 %v6258_v4, %v12535_v8 }
 0x6ff   :  { %v5696_v58 = vsel %vm930_vm1, %v5693_v11, %v5695_v57  ;;  %4260 = vadd.xlane.f32.xlu0 %v4259_v7  ;;  %4486 = vadd.xlane.f32.xlu1 %v4485_v34  ;;  %v6078_v11 = vld [vmem:[%s12842_s5 + $0x588] sm:$0xff]  ;;  %v4488_v34 = vsel %vm3457_vm4, %v4359_v35, 0.0  ;;  %v5038_v35 = vmul.f32 %v6259_v56, %v12588_v21 }
 0x700   :  { %v5710_v0 = vsel %vm5497_vm12, %v5696_v58, 0.0  ;;  %v5138_v47 = vpop.xlane.xlu1 %5137  ;;  %v4133_v12 = vmul.f32 %v6078_v11, %v12535_v8  ;;  %v6034_v8 = vld [vmem:[%s12842_s5 + $0x428] sm:$0xff] }
 0x701   :  { %v4008_v37 = vpop.xlane.xlu0 %4007  ;;  %v5711_v43 = vadd.f32 %v5710_v0, %v5709_v27  ;;  %v3682_v0 = vmul.f32 %v5989_v10, %v12588_v21  ;;  %v6170_v10 = vld [vmem:[%s12842_s5 + $0x868] sm:$0xff] }
 0x702   :  { %v5254_v32 = vsel %vm5221_vm6, %v5208_v28, %v4008_v37  ;;  %v4262_v48 = vsel %vm3457_vm4, %v4133_v12, 0.0  ;;  %v4940_v28 = vsel %vm3457_vm4, %v4811_v25, 0.0  ;;  %v5166_v37 = vsel %vm3457_vm4, %v5037_v15, 0.0 }
 0x703   :  { %4712 = vadd.xlane.f32.xlu0 %v4711_v59  ;;  %4938 = vadd.xlane.f32.xlu1 %v4937_v23  ;;  %v5300_v6 = vsel %vm5267_vm7, %v5254_v32, %v4234_v38  ;;  %v6079_v59 = vld [vmem:[%s12842_s5 + $0x590] sm:$0xff]  ;;  %v6124_v23 = vld [vmem:[%s12842_s5 + $0x6f8] sm:$0xff] }
 0x704   :  { %v3559_v45 = vpop.xlane.xlu1 %3558 }
 0x705   :  { %v4460_v5 = vpop.xlane.xlu0 %4459 }
 0x706   :  { %v5346_v61 = vsel %vm5313_vm8, %v5300_v6, %v4460_v5  ;;  %v3321_v6 = vadd.f32 %v12518_v9, %v10635_v14  ;;  %v3813_v5 = vsel %vm3457_vm4, %v3682_v0, 0.0  ;;  %v6214_v14 = vld [vmem:[%s12842_s5 + $0x9c8] sm:$0xff] }
 0x707   :  { %5164 = vadd.xlane.f32.xlu0 %v5163_v16  ;;  %3811 = vadd.xlane.f32.xlu1 %v3810_v60  ;;  %v5392_v54 = vsel %vm5359_vm9, %v5346_v61, %v4686_v51  ;;  %v4134_v16 = vmul.f32 %v6079_v59, %v12588_v21  ;;  %v4360_v60 = vmul.f32 %v6124_v23, %v12588_v21 }
 0x708   :  { %v4011_v27 = vpop.xlane.xlu1 %4010  ;;  %v12647_v36 = vmax.f32 %v3321_v6, 0.0  ;;  %v6215_v6 = vld [vmem:[%s12842_s5 + $0x9d0] sm:$0xff] }
 0x709   :  { %v4912_v26 = vpop.xlane.xlu0 %4911  ;;  %v4265_v42 = vsel %vm3457_vm4, %v4134_v16, 0.0  ;;  %v4491_v40 = vsel %vm3457_vm4, %v4360_v60, 0.0 }
 0x70a   :  { %v5438_v53 = vsel %vm5405_vm10, %v5392_v54, %v4912_v26  ;;  %v4586_v26 = vmul.f32 %v6169_v19, %v12588_v21  ;;  %v3909_v0 = vmul.f32 %v6035_v22, %v12647_v36  ;;  %v4813_v19 = vmul.f32 %v6215_v6, %v12647_v36 }
 0x70b   :  { %v5484_v17 = vsel %vm5451_vm11, %v5438_v53, %v5138_v47  ;;  %4263 = vadd.xlane.f32.xlu1 %v4262_v48  ;;  %3585 = vadd.xlane.f32.xlu0 %v3584_v24  ;;  %v4812_v48 = vmul.f32 %v6214_v14, %v12588_v21  ;;  %v6254_v14 = vld [vmem:[%s12842_s5 + $0xb08] sm:$0xff] }
 0x70c   :  { %v5697_v33 = vrot.slane %v5484_v17, 1  ;;  %v4463_v44 = vpop.xlane.xlu1 %4462 }
 0x70d   :  { %v3785_v38 = vpop.xlane.xlu0 %3784 }
 0x70e   :  { %v5698_v1 = vsel %vm930_vm1, %v5695_v57, %v5697_v33  ;;  %v5209_v50 = vsel %vm5175_vm5, %v3559_v45, %v3785_v38 }
 0x70f   :  { %v5712_v63 = vsel %vm5497_vm12, %v5698_v1, 0.0  ;;  %4715 = vadd.xlane.f32.xlu1 %v4714_v3  ;;  %4037 = vadd.xlane.f32.xlu0 %v4036_v49  ;;  %v5255_v52 = vsel %vm5221_vm6, %v5209_v50, %v4011_v27  ;;  %v4717_v50 = vsel %vm3457_vm4, %v4586_v26, 0.0  ;;  %v4943_v3 = vsel %vm3457_vm4, %v4812_v48, 0.0 }
 0x710   :  { %v4915_v31 = vpop.xlane.xlu1 %4914  ;;  %v5713_v51 = vadd.f32 %v5712_v63, %v5711_v43  ;;  %v3908_v43 = vmul.f32 %v6034_v8, %v12588_v21  ;;  %v6080_v21 = vld [vmem:[%s12842_s5 + $0x598] sm:$0xff]  ;;  %v4946_v48 = vsel %vm3457_vm4, %v4813_v19, 0.0 }
 0x711   :  { %v4237_v57 = vpop.xlane.xlu0 %4236 }
 0x712   :  { %v5301_v7 = vsel %vm5267_vm7, %v5255_v52, %v4237_v57  ;;  %v4039_v61 = vsel %vm3457_vm4, %v3908_v43, 0.0  ;;  %v3411_v52 = vld [vmem:[%s12842_s5 + $0x160] sm:$0xff]  ;;  %v5169_v57 = vsel %vm3457_vm4, %v5038_v35, 0.0 }
 0x713   :  { %4941 = vadd.xlane.f32.xlu1 %v4940_v28  ;;  %4489 = vadd.xlane.f32.xlu0 %v4488_v34  ;;  %v5347_v30 = vsel %vm5313_vm8, %v5301_v7, %v4463_v44  ;;  %v3456_v28 = vmul.f32 %v3411_v52, %v12647_v36  ;;  %v4135_v34 = vmul.f32 %v6080_v21, %v12647_v36 }
 0x714   :  { %v5141_v58 = vpop.xlane.xlu1 %5140 }
 0x715   :  { %v4689_v2 = vpop.xlane.xlu0 %4688  ;;  %v4268_v43 = vsel %vm3457_vm4, %v4135_v34, 0.0 }
 0x716   :  { %v5393_v47 = vsel %vm5359_vm9, %v5347_v30, %v4689_v2 }
 0x717   :  { %v5439_v32 = vsel %vm5405_vm10, %v5393_v47, %v4915_v31  ;;  %5167 = vadd.xlane.f32.xlu0 %v5166_v37  ;;  %3588 = vadd.xlane.f32.xlu1 %v3587_v29  ;;  %v4587_v47 = vmul.f32 %v6170_v10, %v12647_v36  ;;  %v3590_v29 = vsel %vm3457_vm4, %v3456_v28, 0.0 }
 0x718   :  { %v12629_v62 = vsel %vm5451_vm11, %v5439_v32, %v5141_v58  ;;  %v3788_v11 = vpop.xlane.xlu1 %3787  ;;  %v6125_v32 = vld [vmem:[%s12842_s5 + $0x700] sm:$0xff] }
 0x719   :  { %v5699_v18 = vrot.slane %v12629_v62, 1  ;;  %v3562_v45 = vpop.xlane.xlu0 %3561  ;;  %v5731_v23 = vrot.slane %v12629_v62, 6  ;;  %v4042_v62 = vsel %vm3457_vm4, %v3909_v0, 0.0  ;;  %v4720_v60 = vsel %vm3457_vm4, %v4587_v47, 0.0 }
 0x71a   :  { %v5210_v12 = vsel %vm5175_vm5, %v3562_v45, %v3788_v11 }
 0x71b   :  { %v5700_v9 = vsel %vm930_vm1, %v5697_v33, %v5699_v18  ;;  %3814 = vadd.xlane.f32.xlu0 %v3813_v5  ;;  %4040 = vadd.xlane.f32.xlu1 %v4039_v61  ;;  %v5716_v53 = vsel %vm5507_vm13, %v5699_v18, 0.0  ;;  %v5990_v33 = vld [vmem:[%s12842_s5 + $0x2c8] sm:$0xff] }
 0x71c   :  { %v5714_v54 = vsel %vm5497_vm12, %v5700_v9, 0.0  ;;  %v4240_v41 = vpop.xlane.xlu1 %4239  ;;  %v3683_v49 = vmul.f32 %v5990_v33, %v12647_v36 }
 0x71d   :  { %v5715_v27 = vadd.f32 %v5714_v54, %v5713_v51  ;;  %v4014_v13 = vpop.xlane.xlu0 %4013 }
 0x71e   :  { %v5256_v24 = vsel %vm5221_vm6, %v5210_v12, %v4014_v13  ;;  %v3816_v7 = vsel %vm3457_vm4, %v3683_v49, 0.0  ;;  %v4361_v12 = vmul.f32 %v6125_v32, %v12647_v36 }
 0x71f   :  { %v5717_v55 = vadd.f32 %v5716_v53, %v5715_v27  ;;  %4266 = vadd.xlane.f32.xlu0 %v4265_v42  ;;  %4492 = vadd.xlane.f32.xlu1 %v4491_v40  ;;  %v5302_v17 = vsel %vm5267_vm7, %v5256_v24, %v4240_v41  ;;  %v5033_v27 = vmul.f32 %v6254_v14, %v12295_v20 }
 0x720   :  { %v4692_v44 = vpop.xlane.xlu1 %4691  ;;  %v4494_v26 = vsel %vm3457_vm4, %v4361_v12, 0.0 }
 0x721   :  { %v5718_v38 = vrot.slane %v5717_v55, 4  ;;  %v4466_v25 = vpop.xlane.xlu0 %4465 }
 0x722   :  { %v5348_v1 = vsel %vm5313_vm8, %v5302_v17, %v4466_v25 }
 0x723   :  { %v5719_v4 = vadd.f32 %v5718_v38, %v5717_v55  ;;  %4718 = vadd.xlane.f32.xlu0 %v4717_v50  ;;  %4944 = vadd.xlane.f32.xlu1 %v4943_v3  ;;  %v5394_v63 = vsel %vm5359_vm9, %v5348_v1, %v4692_v44  ;;  %v5154_v55 = vsel %vm3457_vm4, %v5033_v27, 0.0 }
 0x724   :  { %v3565_v46 = vpop.xlane.xlu1 %3564 }
 0x725   :  { %v5720_v31 = vrot.slane %v5719_v4, 2  ;;  %v4918_v51 = vpop.xlane.xlu0 %4917 }
 0x726   :  { %v5440_v15 = vsel %vm5405_vm10, %v5394_v63, %v4918_v51 }
 0x727   :  { %v5721_v30 = vadd.f32 %v5720_v31, %v5719_v4  ;;  %5170 = vadd.xlane.f32.xlu0 %v5169_v57  ;;  %3817 = vadd.xlane.f32.xlu1 %v3816_v7 }
 0x728   :  { %v4017_v8 = vpop.xlane.xlu1 %4016 }
 0x729   :  { %v5722_v58 = vrot.slane %v5721_v30, 1  ;;  %v5144_v2 = vpop.xlane.xlu0 %5143 }
 0x72a   :  { %v5486_v37 = vsel %vm5451_vm11, %v5440_v15, %v5144_v2 }
 0x72b   :  { %v5723_v59 = vadd.f32 %v5722_v58, %v5721_v30  ;;  %v5732_v11 = vrot.slane %v5486_v37, 6  ;;  %3591 = vadd.xlane.f32.xlu0 %v3590_v29  ;;  %4269 = vadd.xlane.f32.xlu1 %v4268_v43 }
 0x72c   :  { %v4469_v18 = vpop.xlane.xlu1 %4468 }
 0x72d   :  { %v5733_v45 = vsel %vm5730_vm0, %v5731_v23, %v5732_v11  ;;  %v3791_v5 = vpop.xlane.xlu0 %3790  ;;  %v12701_v61 = vsel %vm5772_vm14, %v12431_v39, %v5723_v59  ;;  %v6260_v39 = vld [vmem:[%s12842_s5 + $0xb38] sm:$0xff] }
 0x72e   :  { %v5211_v16 = vsel %vm5175_vm5, %v3565_v46, %v3791_v5  ;;  %v5039_v53 = vmul.f32 %v6260_v39, %v12647_v36  ;;  %v5750_v1 = vsel %vm5497_vm12, %v5733_v45, 0.0 }
 0x72f   :  { %4043 = vadd.xlane.f32.xlu0 %v4042_v62  ;;  %4721 = vadd.xlane.f32.xlu1 %v4720_v60  ;;  %v5257_v9 = vsel %vm5221_vm6, %v5211_v16, %v4017_v8 }
 0x730   :  { %v4921_v54 = vpop.xlane.xlu1 %4920  ;;  %v5172_v20 = vsel %vm3457_vm4, %v5039_v53, 0.0 }
 0x731   :  { %v4243_v41 = vpop.xlane.xlu0 %4242 }
 0x732   :  { %v5303_v13 = vsel %vm5267_vm7, %v5257_v9, %v4243_v41 }
 0x733   :  { %4495 = vadd.xlane.f32.xlu0 %v4494_v26  ;;  %4947 = vadd.xlane.f32.xlu1 %v4946_v48  ;;  %v5349_v24 = vsel %vm5313_vm8, %v5303_v13, %v4469_v18 }
 0x734   :  { %v5147_v42 = vpop.xlane.xlu1 %5146 }
 0x735   :  { %v4695_v40 = vpop.xlane.xlu0 %4694 }
 0x736   :  { %v5395_v56 = vsel %vm5359_vm9, %v5349_v24, %v4695_v40 }
 0x737   :  { %v5441_v17 = vsel %vm5405_vm10, %v5395_v56, %v4921_v54  ;;  %5155 = vadd.xlane.f32.xlu0 %v5154_v55  ;;  %5173 = vadd.xlane.f32.xlu1 %v5172_v20 }
 0x738   :  { %v5487_v33 = vsel %vm5451_vm11, %v5441_v17, %v5147_v42  ;;  %v3794_v44 = vpop.xlane.xlu1 %3793 }
 0x739   :  { %v5734_v36 = vrot.slane %v5487_v33, 6  ;;  %v3568_v38 = vpop.xlane.xlu0 %3567 }
 0x73a   :  { %v5212_v25 = vsel %vm5175_vm5, %v3568_v38, %v3794_v44 }
 0x73b   :  { %v5735_v35 = vsel %vm5730_vm0, %v5732_v11, %v5734_v36 }
 0x73c   :  { %v5751_v50 = vsel %vm5497_vm12, %v5735_v35, 0.0  ;;  %v4246_v3 = vpop.xlane.xlu1 %4245 }
 0x73d   :  { %v5752_v49 = vadd.f32 %v5751_v50, %v5750_v1  ;;  %v4020_v4 = vpop.xlane.xlu0 %4019 }
 0x73e   :  { %v5258_v63 = vsel %vm5221_vm6, %v5212_v25, %v4020_v4 }
 0x73f   :  { %v5304_v52 = vsel %vm5267_vm7, %v5258_v63, %v4246_v3 }
 0x740   :  { %v4698_v21 = vpop.xlane.xlu1 %4697 }
 0x741   :  { %v4472_v46 = vpop.xlane.xlu0 %4471 }
 0x742   :  { %v5350_v31 = vsel %vm5313_vm8, %v5304_v52, %v4472_v46 }
 0x743   :  { %v5396_v51 = vsel %vm5359_vm9, %v5350_v31, %v4698_v21 }
 0x744   :  { %v3571_v57 = vpop.xlane.xlu1 %3570 }
 0x745   :  { %v4924_v15 = vpop.xlane.xlu0 %4923 }
 0x746   :  { %v5442_v7 = vsel %vm5405_vm10, %v5396_v51, %v4924_v15 }
 0x748   :  { %v4023_v28 = vpop.xlane.xlu1 %4022 }
 0x749   :  { %v5150_v34 = vpop.xlane.xlu0 %5149 }
 0x74a   :  { %v5488_v22 = vsel %vm5451_vm11, %v5442_v7, %v5150_v34 }
 0x74b   :  { %v5736_v10 = vrot.slane %v5488_v22, 6 }
 0x74c   :  { %v4475_v30 = vpop.xlane.xlu1 %4474 }
 0x74d   :  { %v5737_v8 = vsel %vm5730_vm0, %v5734_v36, %v5736_v10  ;;  %v3797_v58 = vpop.xlane.xlu0 %3796 }
 0x74e   :  { %v5753_v2 = vsel %vm5497_vm12, %v5737_v8, 0.0  ;;  %v5213_v0 = vsel %vm5175_vm5, %v3571_v57, %v3797_v58 }
 0x74f   :  { %v5754_v47 = vadd.f32 %v5753_v2, %v5752_v49  ;;  %v5259_v37 = vsel %vm5221_vm6, %v5213_v0, %v4023_v28 }
 0x750   :  { %v4927_v29 = vpop.xlane.xlu1 %4926 }
 0x751   :  { %v4249_v43 = vpop.xlane.xlu0 %4248 }
 0x752   :  { %v5305_v32 = vsel %vm5267_vm7, %v5259_v37, %v4249_v43 }
 0x753   :  { %v5351_v59 = vsel %vm5313_vm8, %v5305_v32, %v4475_v30 }
 0x754   :  { %v3800_v23 = vpop.xlane.xlu1 %3799 }
 0x755   :  { %v4701_v11 = vpop.xlane.xlu0 %4700 }
 0x756   :  { %v5397_v6 = vsel %vm5359_vm9, %v5351_v59, %v4701_v11 }
 0x757   :  { %v5443_v18 = vsel %vm5405_vm10, %v5397_v6, %v4927_v29 }
 0x758   :  { %v4252_v45 = vpop.xlane.xlu1 %4251 }
 0x759   :  { %v5153_v5 = vpop.xlane.xlu0 %5152 }
 0x75a   :  { %v12744_v12 = vsel %vm5451_vm11, %v5443_v18, %v5153_v5 }
 0x75b   :  { %v5738_v16 = vrot.slane %v12744_v12, 6 }
 0x75c   :  { %v4704_v62 = vpop.xlane.xlu1 %4703 }
 0x75d   :  { %v5739_v60 = vsel %vm5730_vm0, %v5736_v10, %v5738_v16  ;;  %v3574_v19 = vpop.xlane.xlu0 %3573 }
 0x75e   :  { %v5755_v14 = vsel %vm5497_vm12, %v5739_v60, 0.0  ;;  %v5214_v9 = vsel %vm5175_vm5, %v3574_v19, %v3800_v23 }
 0x75f   :  { %v12752_v39 = vadd.f32 %v5755_v14, %v5754_v47 }
 0x760   :  { %v4930_v54 = vpop.xlane.xlu1 %4929 }
 0x761   :  { %v4026_v41 = vpop.xlane.xlu0 %4025 }
 0x762   :  { %v5260_v27 = vsel %vm5221_vm6, %v5214_v9, %v4026_v41 }
 0x763   :  { %v5306_v13 = vsel %vm5267_vm7, %v5260_v27, %v4252_v45 }
 0x764   :  { %v3577_v26 = vpop.xlane.xlu1 %3576 }
 0x765   :  { %v4478_v48 = vpop.xlane.xlu0 %4477 }
 0x766   :  { %v5352_v53 = vsel %vm5313_vm8, %v5306_v13, %v4478_v48 }
 0x767   :  { %v5398_v24 = vsel %vm5359_vm9, %v5352_v53, %v4704_v62 }
 0x768   :  { %v4029_v42 = vpop.xlane.xlu1 %4028  ;;  %v12759_v40 = vsel %vm5405_vm10, %v5398_v24, %v4930_v54 }
 0x769   :  { %v3803_v56 = vpop.xlane.xlu0 %3802 }
 0x76a   :  { %v5215_v55 = vsel %vm5175_vm5, %v3577_v26, %v3803_v56 }
 0x76b   :  { %v5261_v20 = vsel %vm5221_vm6, %v5215_v55, %v4029_v42 }
 0x76c   :  { %v4481_v17 = vpop.xlane.xlu1 %4480 }
 0x76d   :  { %v4255_v33 = vpop.xlane.xlu0 %4254 }
 0x76e   :  { %v5307_v44 = vsel %vm5267_vm7, %v5261_v20, %v4255_v33 }
 0x76f   :  { %v5353_v36 = vsel %vm5313_vm8, %v5307_v44, %v4481_v17 }
 0x770   :  { %v4933_v38 = vpop.xlane.xlu1 %4932 }
 0x771   :  { %v4707_v25 = vpop.xlane.xlu0 %4706 }
 0x772   :  { %v5399_v35 = vsel %vm5359_vm9, %v5353_v36, %v4707_v25 }
 0x773   :  { %v5445_v1 = vsel %vm5405_vm10, %v5399_v35, %v4933_v38 }
 0x774   :  { %v3806_v50 = vpop.xlane.xlu1 %3805 }
 0x775   :  { %v5159_v3 = vpop.xlane.xlu0 %5158 }
 0x776   :  { %v12768_v49 = vsel %vm5451_vm11, %v5445_v1, %v5159_v3 }
 0x777   :  { %v5773_v8 = vrot.slane %v12768_v49, 3 }
 0x778   :  { %v4258_v4 = vpop.xlane.xlu1 %4257 }
 0x779   :  { %v3580_v63 = vpop.xlane.xlu0 %3579 }
 0x77a   :  { %v5216_v52 = vsel %vm5175_vm5, %v3580_v63, %v3806_v50 }
 0x77c   :  { %v4710_v21 = vpop.xlane.xlu1 %4709 }
 0x77d   :  { %v4032_v46 = vpop.xlane.xlu0 %4031 }
 0x77e   :  { %v5262_v31 = vsel %vm5221_vm6, %v5216_v52, %v4032_v46 }
 0x77f   :  { %v5308_v51 = vsel %vm5267_vm7, %v5262_v31, %v4258_v4 }
 0x780   :  { %v5162_v57 = vpop.xlane.xlu1 %5161 }
 0x781   :  { %v4484_v15 = vpop.xlane.xlu0 %4483 }
 0x782   :  { %v5354_v7 = vsel %vm5313_vm8, %v5308_v51, %v4484_v15 }
 0x783   :  { %v5400_v28 = vsel %vm5359_vm9, %v5354_v7, %v4710_v21 }
 0x784   :  { %v3583_v34 = vpop.xlane.xlu1 %3582 }
 0x785   :  { %v4936_v22 = vpop.xlane.xlu0 %4935 }
 0x786   :  { %v5446_v10 = vsel %vm5405_vm10, %v5400_v28, %v4936_v22 }
 0x787   :  { %v5492_v30 = vsel %vm5451_vm11, %v5446_v10, %v5162_v57 }
 0x788   :  { %v5774_v58 = vrot.slane %v5492_v30, 3  ;;  %v4035_v2 = vpop.xlane.xlu1 %4034 }
 0x789   :  { %v3809_v0 = vpop.xlane.xlu0 %3808 }
 0x78a   :  { %v5775_v47 = vsel %vm5772_vm14, %v5773_v8, %v5774_v58  ;;  %v5217_v37 = vsel %vm5175_vm5, %v3583_v34, %v3809_v0 }
 0x78b   :  { %v5263_v43 = vsel %vm5221_vm6, %v5217_v37, %v4035_v2  ;;  %v5790_v41 = vsel %vm5497_vm12, %v5775_v47, 0.0 }
 0x78c   :  { %v4487_v29 = vpop.xlane.xlu1 %4486 }
 0x78d   :  { %v4261_v32 = vpop.xlane.xlu0 %4260 }
 0x78e   :  { %v5309_v59 = vsel %vm5267_vm7, %v5263_v43, %v4261_v32 }
 0x78f   :  { %v5355_v11 = vsel %vm5313_vm8, %v5309_v59, %v4487_v29 }
 0x790   :  { %v4939_v23 = vpop.xlane.xlu1 %4938 }
 0x791   :  { %v4713_v6 = vpop.xlane.xlu0 %4712 }
 0x792   :  { %v5401_v18 = vsel %vm5359_vm9, %v5355_v11, %v4713_v6 }
 0x793   :  { %v5447_v5 = vsel %vm5405_vm10, %v5401_v18, %v4939_v23 }
 0x794   :  { %v3812_v45 = vpop.xlane.xlu1 %3811 }
 0x795   :  { %v5165_v62 = vpop.xlane.xlu0 %5164 }
 0x796   :  { %v5493_v60 = vsel %vm5451_vm11, %v5447_v5, %v5165_v62 }
 0x797   :  { %v5776_v19 = vrot.slane %v5493_v60, 3 }
 0x798   :  { %v4264_v14 = vpop.xlane.xlu1 %4263 }
 0x799   :  { %v5777_v9 = vsel %vm5772_vm14, %v5774_v58, %v5776_v19  ;;  %v3586_v54 = vpop.xlane.xlu0 %3585 }
 0x79a   :  { %v5791_v27 = vsel %vm5497_vm12, %v5777_v9, 0.0  ;;  %v5218_v17 = vsel %vm5175_vm5, %v3586_v54, %v3812_v45 }
 0x79b   :  { %v5792_v13 = vadd.f32 %v5791_v27, %v5790_v41 }
 0x79c   :  { %v4716_v26 = vpop.xlane.xlu1 %4715 }
 0x79d   :  { %v4038_v48 = vpop.xlane.xlu0 %4037 }
 0x79e   :  { %v5264_v33 = vsel %vm5221_vm6, %v5218_v17, %v4038_v48 }
 0x79f   :  { %v5310_v38 = vsel %vm5267_vm7, %v5264_v33, %v4264_v14  ;;  %v5742_v14 = vrot.slane %v12768_v49, 6 }
 0x7a0   :  { %v4942_v53 = vpop.xlane.xlu1 %4941 }
 0x7a1   :  { %v4490_v24 = vpop.xlane.xlu0 %4489 }
 0x7a2   :  { %v5356_v35 = vsel %vm5313_vm8, %v5310_v38, %v4490_v24 }
 0x7a3   :  { %v5402_v4 = vsel %vm5359_vm9, %v5356_v35, %v4716_v26 }
 0x7a4   :  { %v3589_v42 = vpop.xlane.xlu1 %3588  ;;  %v5448_v46 = vsel %vm5405_vm10, %v5402_v4, %v4942_v53 }
 0x7a5   :  { %v5168_v56 = vpop.xlane.xlu0 %5167 }
 0x7a6   :  { %v5494_v15 = vsel %vm5451_vm11, %v5448_v46, %v5168_v56 }
 0x7a7   :  { %v5778_v22 = vrot.slane %v5494_v15, 3 }
 0x7a8   :  { %v4041_v55 = vpop.xlane.xlu1 %4040 }
 0x7a9   :  { %v3815_v20 = vpop.xlane.xlu0 %3814  ;;  %v5779_v0 = vsel %vm5772_vm14, %v5776_v19, %v5778_v22 }
 0x7aa   :  { %v5219_v25 = vsel %vm5175_vm5, %v3589_v42, %v3815_v20  ;;  %v5793_v59 = vsel %vm5497_vm12, %v5779_v0, 0.0 }
 0x7ab   :  { %v5265_v3 = vsel %vm5221_vm6, %v5219_v25, %v4041_v55  ;;  %v5794_v62 = vadd.f32 %v5793_v59, %v5792_v13 }
 0x7ac   :  { %v4493_v44 = vpop.xlane.xlu1 %4492 }
 0x7ad   :  { %v4267_v36 = vpop.xlane.xlu0 %4266 }
 0x7ae   :  { %v5311_v63 = vsel %vm5267_vm7, %v5265_v3, %v4267_v36 }
 0x7af   :  { %v5357_v31 = vsel %vm5313_vm8, %v5311_v63, %v4493_v44 }
 0x7b0   :  { %v4945_v1 = vpop.xlane.xlu1 %4944 }
 0x7b1   :  { %v4719_v50 = vpop.xlane.xlu0 %4718 }
 0x7b2   :  { %v5403_v51 = vsel %vm5359_vm9, %v5357_v31, %v4719_v50 }
 0x7b3   :  { %v5449_v28 = vsel %vm5405_vm10, %v5403_v51, %v4945_v1 }
 0x7b4   :  { %v3818_v52 = vpop.xlane.xlu1 %3817 }
 0x7b5   :  { %v5171_v21 = vpop.xlane.xlu0 %5170 }
 0x7b6   :  { %v5495_v34 = vsel %vm5451_vm11, %v5449_v28, %v5171_v21 }
 0x7b7   :  { %v5780_v58 = vrot.slane %v5495_v34, 3 }
 0x7b8   :  { %v4270_v57 = vpop.xlane.xlu1 %4269 }
 0x7b9   :  { %v3592_v7 = vpop.xlane.xlu0 %3591  ;;  %v5781_v43 = vsel %vm5772_vm14, %v5778_v22, %v5780_v58 }
 0x7ba   :  { %v5220_v30 = vsel %vm5175_vm5, %v3592_v7, %v3818_v52  ;;  %v5795_v18 = vsel %vm5497_vm12, %v5781_v43, 0.0 }
 0x7bb   :  { %v5796_v54 = vadd.f32 %v5795_v18, %v5794_v62 }
 0x7bc   :  { %v4722_v10 = vpop.xlane.xlu1 %4721 }
 0x7bd   :  { %v4044_v8 = vpop.xlane.xlu0 %4043 }
 0x7be   :  { %v5266_v2 = vsel %vm5221_vm6, %v5220_v30, %v4044_v8 }
 0x7bf   :  { %v5312_v29 = vsel %vm5267_vm7, %v5266_v2, %v4270_v57 }
 0x7c0   :  { %v4948_v47 = vpop.xlane.xlu1 %4947 }
 0x7c1   :  { %v4496_v37 = vpop.xlane.xlu0 %4495 }
 0x7c2   :  { %v5358_v32 = vsel %vm5313_vm8, %v5312_v29, %v4496_v37 }
 0x7c3   :  { %v5404_v23 = vsel %vm5359_vm9, %v5358_v32, %v4722_v10 }
 0x7c4   :  { %v5450_v11 = vsel %vm5405_vm10, %v5404_v23, %v4948_v47  ;;  %v5174_v6 = vpop.xlane.xlu1 %5173 }
 0x7c5   :  { %v5156_v45 = vpop.xlane.xlu0 %5155  ;;  %v5496_v5 = vsel %vm5451_vm11, %v5450_v11, %v5174_v6 }
 0x7c6   :  { %v5490_v60 = vsel %vm5451_vm11, %v12759_v40, %v5156_v45  ;;  %v5782_v19 = vrot.slane %v5496_v5, 3 }
 0x7c7   :  { %v5740_v9 = vrot.slane %v5490_v60, 6 }
 0x7c8   :  { %v5783_v41 = vsel %vm5772_vm14, %v5780_v58, %v5782_v19  ;;  %v5799_v24 = vsel %vm5507_vm13, %v5782_v19, 0.0 }
 0x7c9   :  { %v5741_v27 = vsel %vm5730_vm0, %v5738_v16, %v5740_v9  ;;  %v5743_v26 = vsel %vm5730_vm0, %v5740_v9, %v5742_v14  ;;  %v5797_v48 = vsel %vm5497_vm12, %v5783_v41, 0.0 }
 0x7ca   :  { %v5757_v13 = vsel %vm5497_vm12, %v5741_v27, 0.0  ;;  %v5798_v53 = vadd.f32 %v5797_v48, %v5796_v54  ;;  %v5759_v49 = vsel %vm5507_vm13, %v5743_v26, 0.0 }
 0x7cb   :  { %v5758_v40 = vadd.f32 %v5757_v13, %v12752_v39  ;;  %v6261_v39 = vld [vmem:[%s12843_s6] ss:$0 sm:$0xff] }
 0x7cc   :  { %v5800_v42 = vadd.f32 %v5799_v24, %v5798_v53 }
 0x7cd   :  { %v5760_v56 = vadd.f32 %v5759_v49, %v5758_v40 }
 0x7ce   :  { %v5801_v55 = vrot.slane %v5800_v42, 4 }
 0x7cf   :  { %v5761_v20 = vrot.slane %v5760_v56, 4 }
 0x7d0   :  { %v5802_v12 = vadd.f32 %v5801_v55, %v5800_v42 }
 0x7d1   :  { %v5762_v17 = vadd.f32 %v5761_v20, %v5760_v56 }
 0x7d2   :  { %v5803_v16 = vrot.slane %v5802_v12, 2 }
 0x7d3   :  { %v5763_v33 = vrot.slane %v5762_v17, 2 }
 0x7d4   :  { %v5804_v44 = vadd.f32 %v5803_v16, %v5802_v12 }
 0x7d5   :  { %v5764_v36 = vadd.f32 %v5763_v33, %v5762_v17 }
 0x7d6   :  { %v5805_v38 = vrot.slane %v5804_v44, 1 }
 0x7d7   :  { %v5765_v25 = vrot.slane %v5764_v36, 1 }
 0x7d8   :  { %v5806_v35 = vadd.f32 %v5805_v38, %v5804_v44 }
 0x7d9   :  { %v5766_v1 = vadd.f32 %v5765_v25, %v5764_v36 }
 0x7db   :  { %v5812_v50 = vsel %vm3088_vm3, %v12701_v61, %v5766_v1 }
 0x7dc   :  { %v5813_v3 = vsel %vm930_vm1, %v5812_v50, %v5806_v35 }
 0x7dd   :  { %v5821_v4 = vadd.f32 %v6261_v39, %v5813_v3 }
 0x7df   :  { %5822 = vst.msk [vmem:[%s12844_s7] sm:$0xff] %vm5497_vm12, %v5821_v4 }

</bundles_post_ra>
